<compile_context>
chip_gen: v7x
topology: tpu7x:2x2x1
jax: 0.10.0
libtpu: 0.0.40
codegen_flags: <defaults>
</compile_context>

<pallas_src>
import functools

import numpy as np

import jax
import jax.numpy as jnp
from jax.experimental import pallas as pl
from jax.experimental.pallas import tpu as pltpu

EPS = 1e-5  # torch.nn.InstanceNorm2d default


def _round_up(x, m):
    return (x + m - 1) // m * m


# -----------------------------------------------------------------------------
# Fused Pallas kernel: per-sample tap-accumulated conv
#       acc = sum_t  W_t @ x[:, off_t : off_t + L_out]        (MXU, f32 acc)
#   followed by (masked) InstanceNorm / ReLU / residual add / tanh, all fused.
#
#   w_ref  : (T, P*Cout, Cin)  bf16   (T taps; P sub-pixel phases, 1 for convs)
#   x_ref  : (1, Cin, L_in)    bf16   (flattened padded activation, per sample)
#   aux_ref: (1, L_out) f32 mask  when do_norm, else (P*Cout, 1) f32 bias
#   r_ref  : (1, Cout, L_out)  bf16   (optional residual, added after the norm)
#   o_ref  : (1, P*Cout, L_out)       (bf16 for hidden layers, f32 for final)
# -----------------------------------------------------------------------------
def _fused_tap_kernel(*refs, taps, cout, n_phase, do_norm, relu, act_tanh,
                      has_res, inv_count):
    it = iter(refs)
    w_ref = next(it)
    x_ref = next(it)
    aux_ref = next(it)
    r_ref = next(it) if has_res else None
    o_ref = next(it)

    L_out = o_ref.shape[-1]

    acc = None
    for t, off in enumerate(taps):
        a_t = x_ref[0, :, pl.ds(off, L_out)]                 # (Cin, L_out) bf16
        c = jnp.dot(w_ref[t], a_t, preferred_element_type=jnp.float32)
        acc = c if acc is None else acc + c                  # (P*Cout, L_out) f32

    if not do_norm:
        y = acc + aux_ref[...]                               # bias
        if relu:
            y = jnp.maximum(y, 0.0)
        if has_res:
            y = y + r_ref[0].astype(jnp.float32)
        if act_tanh:
            y = jnp.tanh(y)
        o_ref[0] = y.astype(o_ref.dtype)
        return

    m = aux_ref[...]                                         # (1, L_out) 0/1 f32
    if n_phase == 1:
        ym = acc * m
        mean = jnp.sum(ym, axis=-1, keepdims=True) * inv_count
        var = jnp.sum(ym * acc, axis=-1, keepdims=True) * inv_count - mean * mean
        y = (acc - mean) * jax.lax.rsqrt(jnp.maximum(var, 0.0) + EPS)
        if relu:
            y = jnp.maximum(y, 0.0)
        if has_res:
            y = y + r_ref[0].astype(jnp.float32)
        if act_tanh:
            y = jnp.tanh(y)
        o_ref[0] = y.astype(o_ref.dtype)
    else:
        # Pooled InstanceNorm stats over all n_phase sub-pixel phase segments
        # (ConvTranspose): per output channel over n_phase * count elements.
        s = jnp.zeros((cout, 1), jnp.float32)
        ss = jnp.zeros((cout, 1), jnp.float32)
        for p in range(n_phase):
            seg = acc[p * cout:(p + 1) * cout, :]
            segm = seg * m
            s = s + jnp.sum(segm, axis=-1, keepdims=True)
            ss = ss + jnp.sum(segm * seg, axis=-1, keepdims=True)
        mean = s * inv_count
        inv = jax.lax.rsqrt(
            jnp.maximum(ss * inv_count - mean * mean, 0.0) + EPS)
        for p in range(n_phase):                             # direct segment stores
            seg = (acc[p * cout:(p + 1) * cout, :] - mean) * inv
            if relu:
                seg = jnp.maximum(seg, 0.0)
            o_ref[:, p * cout:(p + 1) * cout, :] = seg[None].astype(o_ref.dtype)


def _fused_tap_call(w_taps, x_flat, *, taps, cout, n_phase, L_out, do_norm,
                    relu, act_tanh=False, inv_count=1.0, bias=None, mask=None,
                    residual=None, out_dtype=jnp.bfloat16):
    """w_taps: (T, P*Cout, Cin) bf16; x_flat: (N, Cin, L_in) bf16."""
    N, Cin, L_in = x_flat.shape
    T, PC, Cin_w = w_taps.shape
    assert Cin_w == Cin and T == len(taps) and PC == n_phase * cout

    args = [w_taps, x_flat]
    in_specs = [
        pl.BlockSpec((T, PC, Cin), lambda n: (0, 0, 0)),
        pl.BlockSpec((1, Cin, L_in), lambda n: (n, 0, 0)),
    ]
    if do_norm:
        args.append(mask)                                    # (1, L_out) f32
        in_specs.append(pl.BlockSpec((1, L_out), lambda n: (0, 0)))
    else:
        assert bias is not None
        args.append(bias)                                    # (PC, 1) f32
        in_specs.append(pl.BlockSpec((PC, 1), lambda n: (0, 0)))
    has_res = residual is not None
    if has_res:
        args.append(residual)                                # (N, Cout, L_out) bf16
        in_specs.append(pl.BlockSpec((1, cout, L_out), lambda n: (n, 0, 0)))

    kernel = functools.partial(
        _fused_tap_kernel, taps=tuple(int(t) for t in taps), cout=cout,
        n_phase=n_phase, do_norm=do_norm, relu=relu, act_tanh=act_tanh,
        has_res=has_res, inv_count=float(inv_count))

    out_itemsize = jnp.dtype(out_dtype).itemsize
    in_bytes = sum(int(np.prod(a.shape)) * a.dtype.itemsize for a in args)
    out_bytes = N * PC * L_out * out_itemsize
    flops = 2 * N * T * PC * Cin * L_out
    transc = (N * PC if do_norm else 0) + (N * PC * L_out if act_tanh else 0)
    cost = pl.CostEstimate(flops=int(flops), transcendentals=int(transc),
                           bytes_accessed=int(in_bytes + out_bytes))

    # VMEM budget: double-buffered blocks + f32 accumulator + headroom.
    blk_bytes = T * PC * Cin * 2 + Cin * L_in * 2 + PC * L_out * out_itemsize
    blk_bytes += L_out * 4 if do_norm else PC * 4
    if has_res:
        blk_bytes += cout * L_out * 2
    vmem_need = 2 * blk_bytes + 4 * PC * L_out * 4 + (4 << 20)
    vmem_limit = int(min(max(vmem_need, 32 << 20), 64 << 20))

    return pl.pallas_call(
        kernel,
        out_shape=jax.ShapeDtypeStruct((N, PC, L_out), out_dtype),
        grid=(N,),
        in_specs=in_specs,
        out_specs=pl.BlockSpec((1, PC, L_out), lambda n: (n, 0, 0)),
        compiler_params=pltpu.CompilerParams(
            dimension_semantics=("parallel",),
            vmem_limit_bytes=vmem_limit),
        cost_estimate=cost,
    )(*args)


# -----------------------------------------------------------------------------
# Layer wrappers (plain-XLA glue is only cheap pad / reshape / slice)
# -----------------------------------------------------------------------------
def conv2d_fused(x, w, b, *, pad, pad_mode="zeros", stride=1, do_norm=True,
                 relu=False, act_tanh=False, residual=None,
                 out_dtype=jnp.bfloat16):
    """x: (N, Cin, H, W) bf16; w: PyTorch Conv2d weight (Cout, Cin, kh, kw)."""
    Cout, Cin, kh, kw = w.shape
    N, C, H, W = x.shape
    assert C == Cin
    mode = "reflect" if pad_mode == "reflect" else "constant"
    xp = jnp.pad(x, ((0, 0), (0, 0), (pad, pad), (pad, pad)), mode=mode)
    Hp, Wp = H + 2 * pad, W + 2 * pad
    Ho = Hp - (kh - 1)                       # over-complete (stride-1) rows
    L_out = Ho * Wp
    L_in = _round_up(Hp * Wp + (kw - 1), 128)
    x_flat = jnp.pad(xp.reshape(N, Cin, Hp * Wp),
                     ((0, 0), (0, 0), (0, L_in - Hp * Wp))).astype(jnp.bfloat16)

    taps = tuple(i * Wp + j for i in range(kh) for j in range(kw))
    w_taps = jnp.transpose(w, (2, 3, 0, 1)).reshape(kh * kw, Cout, Cin)
    w_taps = w_taps.astype(jnp.bfloat16)

    if do_norm:
        rows = (np.arange(Ho) % stride) == 0
        cols = (np.arange(Wp) < W) & ((np.arange(Wp) % stride) == 0)
        mask_np = (rows[:, None] & cols[None, :]).astype(np.float32)
        count = int(mask_np.sum())
        mask = jnp.asarray(mask_np.reshape(1, L_out))
        bias = None                          # IN's mean subtraction cancels it
        inv_count = 1.0 / count
    else:
        mask = None
        bias = b.reshape(Cout, 1).astype(jnp.float32)
        inv_count = 1.0

    res_flat = None
    if residual is not None:
        assert stride == 1 and Ho == H
        res_flat = jnp.pad(residual.astype(jnp.bfloat16),
                           ((0, 0), (0, 0), (0, 0), (0, Wp - W)))
        res_flat = res_flat.reshape(N, Cout, L_out)

    y = _fused_tap_call(w_taps, x_flat, taps=taps, cout=Cout, n_phase=1,
                        L_out=L_out, do_norm=do_norm, relu=relu,
                        act_tanh=act_tanh, inv_count=inv_count, bias=bias,
                        mask=mask, residual=res_flat, out_dtype=out_dtype)
    y = y.reshape(N, Cout, Ho, Wp)
    if stride == 1:
        return y[:, :, :, :W]
    return y[:, :, ::stride, :W:stride]


def _convT_phase_tap_weights(w):
    """ConvTranspose2d weight (Cin, Cout, 3, 3), s=2, p=1, output_padding=1
    -> (T=4, 4*Cout, Cin): tap index dy*2+dx, row index (ph*2+pw)*Cout + co."""
    Cin, Cout, kh, kw = w.shape
    wt = jnp.zeros((2, 2, 2, 2, Cout, Cin), jnp.float32)   # [dy,dx,ph,pw,co,ci]
    for dy in range(2):
        for dx in range(2):
            for ph in range(2):
                ky = ph + 1 - 2 * dy
                if not 0 <= ky < kh:
                    continue
                for pw_ in range(2):
                    kx = pw_ + 1 - 2 * dx
                    if not 0 <= kx < kw:
                        continue
                    wt = wt.at[dy, dx, ph, pw_].set(jnp.transpose(w[:, :, ky, kx]))
    return wt.reshape(4, 4 * Cout, Cin)


def conv_transpose2d_fused(x, w, b):
    """ConvTranspose2d(k=3, s=2, p=1, output_padding=1) + IN + ReLU via a
    4-phase sub-pixel decomposition (4-tap fused matmul, pooled IN stats).
    x: (N, Cin, H, W) bf16; w: PyTorch (Cin, Cout, 3, 3).  Bias is dropped
    because the pooled InstanceNorm cancels it exactly."""
    del b
    Cin, Cout, kh, kw = w.shape
    N, C, H, W = x.shape
    assert C == Cin
    xp = jnp.pad(x, ((0, 0), (0, 0), (0, 1), (0, 1)))      # zero bottom/right
    Hp, Wp = H + 1, W + 1
    L_out = H * Wp
    L_in = _round_up(Hp * Wp + 1, 128)
    x_flat = jnp.pad(xp.reshape(N, Cin, Hp * Wp),
                     ((0, 0), (0, 0), (0, L_in - Hp * Wp))).astype(jnp.bfloat16)

    taps = (0, 1, Wp, Wp + 1)                              # (dy,dx) row-major
    w_taps = _convT_phase_tap_weights(w).astype(jnp.bfloat16)

    cols = np.arange(Wp) < W
    mask_np = np.broadcast_to(cols[None, :], (H, Wp)).astype(np.float32)
    mask = jnp.asarray(mask_np.reshape(1, L_out).copy())
    inv_count = 1.0 / (4 * H * W)

    y = _fused_tap_call(w_taps, x_flat, taps=taps, cout=Cout, n_phase=4,
                        L_out=L_out, do_norm=True, relu=True,
                        inv_count=inv_count, mask=mask,
                        out_dtype=jnp.bfloat16)
    # rows: (ph*2+pw)*Cout + co  ->  interleave back to (N, Cout, 2H, 2W)
    t = y.reshape(N, 2, 2, Cout, H, Wp)[:, :, :, :, :, :W]
    return t.transpose(0, 3, 4, 1, 5, 2).reshape(N, Cout, 2 * H, 2 * W)


# -----------------------------------------------------------------------------
# Parameter init (deterministic, synthetic) and Generator forward
# -----------------------------------------------------------------------------
def _conv_param(key, cout, cin, k):
    kw_, kb_ = jax.random.split(key)
    w = jax.random.normal(kw_, (cout, cin, k, k), jnp.float32) * 0.05
    b = jax.random.normal(kb_, (cout,), jnp.float32) * 0.01
    return {"w": w, "b": b}


def _convT_param(key, cin, cout, k):
    kw_, kb_ = jax.random.split(key)
    w = jax.random.normal(kw_, (cin, cout, k, k), jnp.float32) * 0.05
    b = jax.random.normal(kb_, (cout,), jnp.float32) * 0.01
    return {"w": w, "b": b}


def init_generator(key, in_channels=8, num_block=2):
    keys = jax.random.split(key, 6 + 2 * num_block)
    ki = iter(keys)
    params = {"in_conv": _conv_param(next(ki), in_channels, 3, 7)}
    c = in_channels
    params["down"] = []
    for _ in range(2):
        params["down"].append(_conv_param(next(ki), c * 2, c, 3))
        c *= 2
    params["res"] = []
    for _ in range(num_block):
        params["res"].append({
            "conv1": _conv_param(next(ki), c, c, 3),
            "conv2": _conv_param(next(ki), c, c, 3),
        })
    params["up"] = []
    for _ in range(2):
        params["up"].append(_convT_param(next(ki), c, c // 2, 3))
        c //= 2
    params["out_conv"] = _conv_param(next(ki), 3, c, 7)
    return params


def generator_forward(params, x_nchw):
    x = x_nchw.astype(jnp.bfloat16)                        # bf16 activations

    # in_conv: 7x7 reflect conv -> IN -> ReLU      (one fused kernel)
    p = params["in_conv"]
    x = conv2d_fused(x, p["w"], p["b"], pad=3, pad_mode="reflect",
                     do_norm=True, relu=True)

    # down_sample: 2 x (3x3 stride-2 conv -> IN -> ReLU)
    for p in params["down"]:
        x = conv2d_fused(x, p["w"], p["b"], pad=1, pad_mode="zeros", stride=2,
                         do_norm=True, relu=True)

    # residual blocks: x + IN(conv(ReLU(IN(conv(x)))))
    # TODO(synk): fuse both convs of a block into one pallas_call (keep h in
    # VMEM, in-kernel reflect halo) to halve the trunk's kernel count.
    for p in params["res"]:
        h = conv2d_fused(x, p["conv1"]["w"], p["conv1"]["b"], pad=1,
                         pad_mode="reflect", do_norm=True, relu=True)
        x = conv2d_fused(h, p["conv2"]["w"], p["conv2"]["b"], pad=1,
                         pad_mode="reflect", do_norm=True, relu=False,
                         residual=x)

    # up_sample: 2 x (3x3 stride-2 transposed conv -> IN -> ReLU), fused
    for p in params["up"]:
        x = conv_transpose2d_fused(x, p["w"], p["b"])

    # out_conv: 7x7 reflect conv -> tanh (fused, no norm, f32 output)
    p = params["out_conv"]
    x = conv2d_fused(x, p["w"], p["b"], pad=3, pad_mode="reflect",
                     do_norm=False, relu=False, act_tanh=True,
                     out_dtype=jnp.float32)
    return x


# -----------------------------------------------------------------------------
# main
# -----------------------------------------------------------------------------
if __name__ == "__main__":
    key = jax.random.PRNGKey(0)
    k_param, k_input = jax.random.split(key)

    params = init_generator(k_param, in_channels=8, num_block=2)
    x = jax.random.normal(k_input, (2, 3, 16, 16), jnp.float32)  # NCHW

    out = jax.jit(generator_forward)(params, x)
    out = jax.block_until_ready(out)

    assert out.shape == (2, 3, 16, 16), out.shape
    assert bool(jnp.all(jnp.isfinite(out)))
    assert bool(jnp.all(jnp.abs(out) <= 1.0 + 1e-6))  # tanh output range
    print("KERNEL_OK")
</pallas_src>

<mosaic_0001>
module attributes {stable_mosaic.version = 11 : i64} {
  func.func @_fused_tap_kernel(%arg0: i32, %arg1: memref<49x8x3xbf16, #tpu.memory_space<vmem>>, %arg2: memref<1x3x512xbf16, #tpu.memory_space<vmem>>, %arg3: memref<1x352xf32, #tpu.memory_space<vmem>>, %arg4: memref<1x8x352xbf16, #tpu.memory_space<vmem>>) attributes {dimension_semantics = [#tpu.dimension_semantics<parallel>], iteration_bounds = array<i64: 2>, scalar_prefetch = 0 : i64, scratch_operands = 0 : i64, tpu.core_type = #tpu.core_type<tc>, window_params = [{pipeline_mode = #tpu.pipeline_mode<synchronous>, transform_indices = @transform_0, window_bounds = array<i64: 49, 8, 3>}, {transform_indices = @transform_1, window_bounds = array<i64: 1, 3, 512>}, {pipeline_mode = #tpu.pipeline_mode<synchronous>, transform_indices = @transform_2, window_bounds = array<i64: 1, 352>}, {transform_indices = @transform_3, window_bounds = array<i64: 1, 8, 352>}]} {
    %c0 = arith.constant 0 : index
    %c0_0 = arith.constant 0 : index
    %c0_1 = arith.constant 0 : index
    %0 = vector.load %arg2[%c0, %c0_0, %c0_1] : memref<1x3x512xbf16, #tpu.memory_space<vmem>>, vector<1x3x352xbf16>
    %1 = vector.shape_cast %0 : vector<1x3x352xbf16> to vector<3x352xbf16>
    %c0_2 = arith.constant 0 : index
    %c0_3 = arith.constant 0 : index
    %c0_4 = arith.constant 0 : index
    %2 = vector.load %arg1[%c0_2, %c0_3, %c0_4] : memref<49x8x3xbf16, #tpu.memory_space<vmem>>, vector<1x8x3xbf16>
    %3 = vector.shape_cast %2 : vector<1x8x3xbf16> to vector<8x3xbf16>
    %cst = arith.constant dense<0.000000e+00> : vector<8x352xf32>
    %4 = tpu.matmul %3, %1, %cst {dimension_numbers = #tpu.dot_dimension_numbers<[1], [0], [0], [1], [0, 0, 1, 1], [], []>} : vector<8x3xbf16>, vector<3x352xbf16>, vector<8x352xf32> -> vector<8x352xf32>
    %c0_5 = arith.constant 0 : index
    %c0_6 = arith.constant 0 : index
    %c1 = arith.constant 1 : index
    %5 = vector.load %arg2[%c0_5, %c0_6, %c1] : memref<1x3x512xbf16, #tpu.memory_space<vmem>>, vector<1x3x352xbf16>
    %6 = vector.shape_cast %5 : vector<1x3x352xbf16> to vector<3x352xbf16>
    %c1_7 = arith.constant 1 : index
    %c0_8 = arith.constant 0 : index
    %c0_9 = arith.constant 0 : index
    %7 = vector.load %arg1[%c1_7, %c0_8, %c0_9] : memref<49x8x3xbf16, #tpu.memory_space<vmem>>, vector<1x8x3xbf16>
    %8 = vector.shape_cast %7 : vector<1x8x3xbf16> to vector<8x3xbf16>
    %cst_10 = arith.constant dense<0.000000e+00> : vector<8x352xf32>
    %9 = tpu.matmul %8, %6, %cst_10 {dimension_numbers = #tpu.dot_dimension_numbers<[1], [0], [0], [1], [0, 0, 1, 1], [], []>} : vector<8x3xbf16>, vector<3x352xbf16>, vector<8x352xf32> -> vector<8x352xf32>
    %10 = arith.addf %4, %9 : vector<8x352xf32>
    %c0_11 = arith.constant 0 : index
    %c0_12 = arith.constant 0 : index
    %c2 = arith.constant 2 : index
    %11 = vector.load %arg2[%c0_11, %c0_12, %c2] : memref<1x3x512xbf16, #tpu.memory_space<vmem>>, vector<1x3x352xbf16>
    %12 = vector.shape_cast %11 : vector<1x3x352xbf16> to vector<3x352xbf16>
    %c2_13 = arith.constant 2 : index
    %c0_14 = arith.constant 0 : index
    %c0_15 = arith.constant 0 : index
    %13 = vector.load %arg1[%c2_13, %c0_14, %c0_15] : memref<49x8x3xbf16, #tpu.memory_space<vmem>>, vector<1x8x3xbf16>
    %14 = vector.shape_cast %13 : vector<1x8x3xbf16> to vector<8x3xbf16>
    %cst_16 = arith.constant dense<0.000000e+00> : vector<8x352xf32>
    %15 = tpu.matmul %14, %12, %cst_16 {dimension_numbers = #tpu.dot_dimension_numbers<[1], [0], [0], [1], [0, 0, 1, 1], [], []>} : vector<8x3xbf16>, vector<3x352xbf16>, vector<8x352xf32> -> vector<8x352xf32>
    %16 = arith.addf %10, %15 : vector<8x352xf32>
    %c0_17 = arith.constant 0 : index
    %c0_18 = arith.constant 0 : index
    %c3 = arith.constant 3 : index
    %17 = vector.load %arg2[%c0_17, %c0_18, %c3] : memref<1x3x512xbf16, #tpu.memory_space<vmem>>, vector<1x3x352xbf16>
    %18 = vector.shape_cast %17 : vector<1x3x352xbf16> to vector<3x352xbf16>
    %c3_19 = arith.constant 3 : index
    %c0_20 = arith.constant 0 : index
    %c0_21 = arith.constant 0 : index
    %19 = vector.load %arg1[%c3_19, %c0_20, %c0_21] : memref<49x8x3xbf16, #tpu.memory_space<vmem>>, vector<1x8x3xbf16>
    %20 = vector.shape_cast %19 : vector<1x8x3xbf16> to vector<8x3xbf16>
    %cst_22 = arith.constant dense<0.000000e+00> : vector<8x352xf32>
    %21 = tpu.matmul %20, %18, %cst_22 {dimension_numbers = #tpu.dot_dimension_numbers<[1], [0], [0], [1], [0, 0, 1, 1], [], []>} : vector<8x3xbf16>, vector<3x352xbf16>, vector<8x352xf32> -> vector<8x352xf32>
    %22 = arith.addf %16, %21 : vector<8x352xf32>
    %c0_23 = arith.constant 0 : index
    %c0_24 = arith.constant 0 : index
    %c4 = arith.constant 4 : index
    %23 = vector.load %arg2[%c0_23, %c0_24, %c4] : memref<1x3x512xbf16, #tpu.memory_space<vmem>>, vector<1x3x352xbf16>
    %24 = vector.shape_cast %23 : vector<1x3x352xbf16> to vector<3x352xbf16>
    %c4_25 = arith.constant 4 : index
    %c0_26 = arith.constant 0 : index
    %c0_27 = arith.constant 0 : index
    %25 = vector.load %arg1[%c4_25, %c0_26, %c0_27] : memref<49x8x3xbf16, #tpu.memory_space<vmem>>, vector<1x8x3xbf16>
    %26 = vector.shape_cast %25 : vector<1x8x3xbf16> to vector<8x3xbf16>
    %cst_28 = arith.constant dense<0.000000e+00> : vector<8x352xf32>
    %27 = tpu.matmul %26, %24, %cst_28 {dimension_numbers = #tpu.dot_dimension_numbers<[1], [0], [0], [1], [0, 0, 1, 1], [], []>} : vector<8x3xbf16>, vector<3x352xbf16>, vector<8x352xf32> -> vector<8x352xf32>
    %28 = arith.addf %22, %27 : vector<8x352xf32>
    %c0_29 = arith.constant 0 : index
    %c0_30 = arith.constant 0 : index
    %c5 = arith.constant 5 : index
    %29 = vector.load %arg2[%c0_29, %c0_30, %c5] : memref<1x3x512xbf16, #tpu.memory_space<vmem>>, vector<1x3x352xbf16>
    %30 = vector.shape_cast %29 : vector<1x3x352xbf16> to vector<3x352xbf16>
    %c5_31 = arith.constant 5 : index
    %c0_32 = arith.constant 0 : index
    %c0_33 = arith.constant 0 : index
    %31 = vector.load %arg1[%c5_31, %c0_32, %c0_33] : memref<49x8x3xbf16, #tpu.memory_space<vmem>>, vector<1x8x3xbf16>
    %32 = vector.shape_cast %31 : vector<1x8x3xbf16> to vector<8x3xbf16>
    %cst_34 = arith.constant dense<0.000000e+00> : vector<8x352xf32>
    %33 = tpu.matmul %32, %30, %cst_34 {dimension_numbers = #tpu.dot_dimension_numbers<[1], [0], [0], [1], [0, 0, 1, 1], [], []>} : vector<8x3xbf16>, vector<3x352xbf16>, vector<8x352xf32> -> vector<8x352xf32>
    %34 = arith.addf %28, %33 : vector<8x352xf32>
    %c0_35 = arith.constant 0 : index
    %c0_36 = arith.constant 0 : index
    %c6 = arith.constant 6 : index
    %35 = vector.load %arg2[%c0_35, %c0_36, %c6] : memref<1x3x512xbf16, #tpu.memory_space<vmem>>, vector<1x3x352xbf16>
    %36 = vector.shape_cast %35 : vector<1x3x352xbf16> to vector<3x352xbf16>
    %c6_37 = arith.constant 6 : index
    %c0_38 = arith.constant 0 : index
    %c0_39 = arith.constant 0 : index
    %37 = vector.load %arg1[%c6_37, %c0_38, %c0_39] : memref<49x8x3xbf16, #tpu.memory_space<vmem>>, vector<1x8x3xbf16>
    %38 = vector.shape_cast %37 : vector<1x8x3xbf16> to vector<8x3xbf16>
    %cst_40 = arith.constant dense<0.000000e+00> : vector<8x352xf32>
    %39 = tpu.matmul %38, %36, %cst_40 {dimension_numbers = #tpu.dot_dimension_numbers<[1], [0], [0], [1], [0, 0, 1, 1], [], []>} : vector<8x3xbf16>, vector<3x352xbf16>, vector<8x352xf32> -> vector<8x352xf32>
    %40 = arith.addf %34, %39 : vector<8x352xf32>
    %c0_41 = arith.constant 0 : index
    %c0_42 = arith.constant 0 : index
    %c22 = arith.constant 22 : index
    %41 = vector.load %arg2[%c0_41, %c0_42, %c22] : memref<1x3x512xbf16, #tpu.memory_space<vmem>>, vector<1x3x352xbf16>
    %42 = vector.shape_cast %41 : vector<1x3x352xbf16> to vector<3x352xbf16>
    %c7 = arith.constant 7 : index
    %c0_43 = arith.constant 0 : index
    %c0_44 = arith.constant 0 : index
    %43 = vector.load %arg1[%c7, %c0_43, %c0_44] : memref<49x8x3xbf16, #tpu.memory_space<vmem>>, vector<1x8x3xbf16>
    %44 = vector.shape_cast %43 : vector<1x8x3xbf16> to vector<8x3xbf16>
    %cst_45 = arith.constant dense<0.000000e+00> : vector<8x352xf32>
    %45 = tpu.matmul %44, %42, %cst_45 {dimension_numbers = #tpu.dot_dimension_numbers<[1], [0], [0], [1], [0, 0, 1, 1], [], []>} : vector<8x3xbf16>, vector<3x352xbf16>, vector<8x352xf32> -> vector<8x352xf32>
    %46 = arith.addf %40, %45 : vector<8x352xf32>
    %c0_46 = arith.constant 0 : index
    %c0_47 = arith.constant 0 : index
    %c23 = arith.constant 23 : index
    %47 = vector.load %arg2[%c0_46, %c0_47, %c23] : memref<1x3x512xbf16, #tpu.memory_space<vmem>>, vector<1x3x352xbf16>
    %48 = vector.shape_cast %47 : vector<1x3x352xbf16> to vector<3x352xbf16>
    %c8 = arith.constant 8 : index
    %c0_48 = arith.constant 0 : index
    %c0_49 = arith.constant 0 : index
    %49 = vector.load %arg1[%c8, %c0_48, %c0_49] : memref<49x8x3xbf16, #tpu.memory_space<vmem>>, vector<1x8x3xbf16>
    %50 = vector.shape_cast %49 : vector<1x8x3xbf16> to vector<8x3xbf16>
    %cst_50 = arith.constant dense<0.000000e+00> : vector<8x352xf32>
    %51 = tpu.matmul %50, %48, %cst_50 {dimension_numbers = #tpu.dot_dimension_numbers<[1], [0], [0], [1], [0, 0, 1, 1], [], []>} : vector<8x3xbf16>, vector<3x352xbf16>, vector<8x352xf32> -> vector<8x352xf32>
    %52 = arith.addf %46, %51 : vector<8x352xf32>
    %c0_51 = arith.constant 0 : index
    %c0_52 = arith.constant 0 : index
    %c24 = arith.constant 24 : index
    %53 = vector.load %arg2[%c0_51, %c0_52, %c24] : memref<1x3x512xbf16, #tpu.memory_space<vmem>>, vector<1x3x352xbf16>
    %54 = vector.shape_cast %53 : vector<1x3x352xbf16> to vector<3x352xbf16>
    %c9 = arith.constant 9 : index
    %c0_53 = arith.constant 0 : index
    %c0_54 = arith.constant 0 : index
    %55 = vector.load %arg1[%c9, %c0_53, %c0_54] : memref<49x8x3xbf16, #tpu.memory_space<vmem>>, vector<1x8x3xbf16>
    %56 = vector.shape_cast %55 : vector<1x8x3xbf16> to vector<8x3xbf16>
    %cst_55 = arith.constant dense<0.000000e+00> : vector<8x352xf32>
    %57 = tpu.matmul %56, %54, %cst_55 {dimension_numbers = #tpu.dot_dimension_numbers<[1], [0], [0], [1], [0, 0, 1, 1], [], []>} : vector<8x3xbf16>, vector<3x352xbf16>, vector<8x352xf32> -> vector<8x352xf32>
    %58 = arith.addf %52, %57 : vector<8x352xf32>
    %c0_56 = arith.constant 0 : index
    %c0_57 = arith.constant 0 : index
    %c25 = arith.constant 25 : index
    %59 = vector.load %arg2[%c0_56, %c0_57, %c25] : memref<1x3x512xbf16, #tpu.memory_space<vmem>>, vector<1x3x352xbf16>
    %60 = vector.shape_cast %59 : vector<1x3x352xbf16> to vector<3x352xbf16>
    %c10 = arith.constant 10 : index
    %c0_58 = arith.constant 0 : index
    %c0_59 = arith.constant 0 : index
    %61 = vector.load %arg1[%c10, %c0_58, %c0_59] : memref<49x8x3xbf16, #tpu.memory_space<vmem>>, vector<1x8x3xbf16>
    %62 = vector.shape_cast %61 : vector<1x8x3xbf16> to vector<8x3xbf16>
    %cst_60 = arith.constant dense<0.000000e+00> : vector<8x352xf32>
    %63 = tpu.matmul %62, %60, %cst_60 {dimension_numbers = #tpu.dot_dimension_numbers<[1], [0], [0], [1], [0, 0, 1, 1], [], []>} : vector<8x3xbf16>, vector<3x352xbf16>, vector<8x352xf32> -> vector<8x352xf32>
    %64 = arith.addf %58, %63 : vector<8x352xf32>
    %c0_61 = arith.constant 0 : index
    %c0_62 = arith.constant 0 : index
    %c26 = arith.constant 26 : index
    %65 = vector.load %arg2[%c0_61, %c0_62, %c26] : memref<1x3x512xbf16, #tpu.memory_space<vmem>>, vector<1x3x352xbf16>
    %66 = vector.shape_cast %65 : vector<1x3x352xbf16> to vector<3x352xbf16>
    %c11 = arith.constant 11 : index
    %c0_63 = arith.constant 0 : index
    %c0_64 = arith.constant 0 : index
    %67 = vector.load %arg1[%c11, %c0_63, %c0_64] : memref<49x8x3xbf16, #tpu.memory_space<vmem>>, vector<1x8x3xbf16>
    %68 = vector.shape_cast %67 : vector<1x8x3xbf16> to vector<8x3xbf16>
    %cst_65 = arith.constant dense<0.000000e+00> : vector<8x352xf32>
    %69 = tpu.matmul %68, %66, %cst_65 {dimension_numbers = #tpu.dot_dimension_numbers<[1], [0], [0], [1], [0, 0, 1, 1], [], []>} : vector<8x3xbf16>, vector<3x352xbf16>, vector<8x352xf32> -> vector<8x352xf32>
    %70 = arith.addf %64, %69 : vector<8x352xf32>
    %c0_66 = arith.constant 0 : index
    %c0_67 = arith.constant 0 : index
    %c27 = arith.constant 27 : index
    %71 = vector.load %arg2[%c0_66, %c0_67, %c27] : memref<1x3x512xbf16, #tpu.memory_space<vmem>>, vector<1x3x352xbf16>
    %72 = vector.shape_cast %71 : vector<1x3x352xbf16> to vector<3x352xbf16>
    %c12 = arith.constant 12 : index
    %c0_68 = arith.constant 0 : index
    %c0_69 = arith.constant 0 : index
    %73 = vector.load %arg1[%c12, %c0_68, %c0_69] : memref<49x8x3xbf16, #tpu.memory_space<vmem>>, vector<1x8x3xbf16>
    %74 = vector.shape_cast %73 : vector<1x8x3xbf16> to vector<8x3xbf16>
    %cst_70 = arith.constant dense<0.000000e+00> : vector<8x352xf32>
    %75 = tpu.matmul %74, %72, %cst_70 {dimension_numbers = #tpu.dot_dimension_numbers<[1], [0], [0], [1], [0, 0, 1, 1], [], []>} : vector<8x3xbf16>, vector<3x352xbf16>, vector<8x352xf32> -> vector<8x352xf32>
    %76 = arith.addf %70, %75 : vector<8x352xf32>
    %c0_71 = arith.constant 0 : index
    %c0_72 = arith.constant 0 : index
    %c28 = arith.constant 28 : index
    %77 = vector.load %arg2[%c0_71, %c0_72, %c28] : memref<1x3x512xbf16, #tpu.memory_space<vmem>>, vector<1x3x352xbf16>
    %78 = vector.shape_cast %77 : vector<1x3x352xbf16> to vector<3x352xbf16>
    %c13 = arith.constant 13 : index
    %c0_73 = arith.constant 0 : index
    %c0_74 = arith.constant 0 : index
    %79 = vector.load %arg1[%c13, %c0_73, %c0_74] : memref<49x8x3xbf16, #tpu.memory_space<vmem>>, vector<1x8x3xbf16>
    %80 = vector.shape_cast %79 : vector<1x8x3xbf16> to vector<8x3xbf16>
    %cst_75 = arith.constant dense<0.000000e+00> : vector<8x352xf32>
    %81 = tpu.matmul %80, %78, %cst_75 {dimension_numbers = #tpu.dot_dimension_numbers<[1], [0], [0], [1], [0, 0, 1, 1], [], []>} : vector<8x3xbf16>, vector<3x352xbf16>, vector<8x352xf32> -> vector<8x352xf32>
    %82 = arith.addf %76, %81 : vector<8x352xf32>
    %c0_76 = arith.constant 0 : index
    %c0_77 = arith.constant 0 : index
    %c44 = arith.constant 44 : index
    %83 = vector.load %arg2[%c0_76, %c0_77, %c44] : memref<1x3x512xbf16, #tpu.memory_space<vmem>>, vector<1x3x352xbf16>
    %84 = vector.shape_cast %83 : vector<1x3x352xbf16> to vector<3x352xbf16>
    %c14 = arith.constant 14 : index
    %c0_78 = arith.constant 0 : index
    %c0_79 = arith.constant 0 : index
    %85 = vector.load %arg1[%c14, %c0_78, %c0_79] : memref<49x8x3xbf16, #tpu.memory_space<vmem>>, vector<1x8x3xbf16>
    %86 = vector.shape_cast %85 : vector<1x8x3xbf16> to vector<8x3xbf16>
    %cst_80 = arith.constant dense<0.000000e+00> : vector<8x352xf32>
    %87 = tpu.matmul %86, %84, %cst_80 {dimension_numbers = #tpu.dot_dimension_numbers<[1], [0], [0], [1], [0, 0, 1, 1], [], []>} : vector<8x3xbf16>, vector<3x352xbf16>, vector<8x352xf32> -> vector<8x352xf32>
    %88 = arith.addf %82, %87 : vector<8x352xf32>
    %c0_81 = arith.constant 0 : index
    %c0_82 = arith.constant 0 : index
    %c45 = arith.constant 45 : index
    %89 = vector.load %arg2[%c0_81, %c0_82, %c45] : memref<1x3x512xbf16, #tpu.memory_space<vmem>>, vector<1x3x352xbf16>
    %90 = vector.shape_cast %89 : vector<1x3x352xbf16> to vector<3x352xbf16>
    %c15 = arith.constant 15 : index
    %c0_83 = arith.constant 0 : index
    %c0_84 = arith.constant 0 : index
    %91 = vector.load %arg1[%c15, %c0_83, %c0_84] : memref<49x8x3xbf16, #tpu.memory_space<vmem>>, vector<1x8x3xbf16>
    %92 = vector.shape_cast %91 : vector<1x8x3xbf16> to vector<8x3xbf16>
    %cst_85 = arith.constant dense<0.000000e+00> : vector<8x352xf32>
    %93 = tpu.matmul %92, %90, %cst_85 {dimension_numbers = #tpu.dot_dimension_numbers<[1], [0], [0], [1], [0, 0, 1, 1], [], []>} : vector<8x3xbf16>, vector<3x352xbf16>, vector<8x352xf32> -> vector<8x352xf32>
    %94 = arith.addf %88, %93 : vector<8x352xf32>
    %c0_86 = arith.constant 0 : index
    %c0_87 = arith.constant 0 : index
    %c46 = arith.constant 46 : index
    %95 = vector.load %arg2[%c0_86, %c0_87, %c46] : memref<1x3x512xbf16, #tpu.memory_space<vmem>>, vector<1x3x352xbf16>
    %96 = vector.shape_cast %95 : vector<1x3x352xbf16> to vector<3x352xbf16>
    %c16 = arith.constant 16 : index
    %c0_88 = arith.constant 0 : index
    %c0_89 = arith.constant 0 : index
    %97 = vector.load %arg1[%c16, %c0_88, %c0_89] : memref<49x8x3xbf16, #tpu.memory_space<vmem>>, vector<1x8x3xbf16>
    %98 = vector.shape_cast %97 : vector<1x8x3xbf16> to vector<8x3xbf16>
    %cst_90 = arith.constant dense<0.000000e+00> : vector<8x352xf32>
    %99 = tpu.matmul %98, %96, %cst_90 {dimension_numbers = #tpu.dot_dimension_numbers<[1], [0], [0], [1], [0, 0, 1, 1], [], []>} : vector<8x3xbf16>, vector<3x352xbf16>, vector<8x352xf32> -> vector<8x352xf32>
    %100 = arith.addf %94, %99 : vector<8x352xf32>
    %c0_91 = arith.constant 0 : index
    %c0_92 = arith.constant 0 : index
    %c47 = arith.constant 47 : index
    %101 = vector.load %arg2[%c0_91, %c0_92, %c47] : memref<1x3x512xbf16, #tpu.memory_space<vmem>>, vector<1x3x352xbf16>
    %102 = vector.shape_cast %101 : vector<1x3x352xbf16> to vector<3x352xbf16>
    %c17 = arith.constant 17 : index
    %c0_93 = arith.constant 0 : index
    %c0_94 = arith.constant 0 : index
    %103 = vector.load %arg1[%c17, %c0_93, %c0_94] : memref<49x8x3xbf16, #tpu.memory_space<vmem>>, vector<1x8x3xbf16>
    %104 = vector.shape_cast %103 : vector<1x8x3xbf16> to vector<8x3xbf16>
    %cst_95 = arith.constant dense<0.000000e+00> : vector<8x352xf32>
    %105 = tpu.matmul %104, %102, %cst_95 {dimension_numbers = #tpu.dot_dimension_numbers<[1], [0], [0], [1], [0, 0, 1, 1], [], []>} : vector<8x3xbf16>, vector<3x352xbf16>, vector<8x352xf32> -> vector<8x352xf32>
    %106 = arith.addf %100, %105 : vector<8x352xf32>
    %c0_96 = arith.constant 0 : index
    %c0_97 = arith.constant 0 : index
    %c48 = arith.constant 48 : index
    %107 = vector.load %arg2[%c0_96, %c0_97, %c48] : memref<1x3x512xbf16, #tpu.memory_space<vmem>>, vector<1x3x352xbf16>
    %108 = vector.shape_cast %107 : vector<1x3x352xbf16> to vector<3x352xbf16>
    %c18 = arith.constant 18 : index
    %c0_98 = arith.constant 0 : index
    %c0_99 = arith.constant 0 : index
    %109 = vector.load %arg1[%c18, %c0_98, %c0_99] : memref<49x8x3xbf16, #tpu.memory_space<vmem>>, vector<1x8x3xbf16>
    %110 = vector.shape_cast %109 : vector<1x8x3xbf16> to vector<8x3xbf16>
    %cst_100 = arith.constant dense<0.000000e+00> : vector<8x352xf32>
    %111 = tpu.matmul %110, %108, %cst_100 {dimension_numbers = #tpu.dot_dimension_numbers<[1], [0], [0], [1], [0, 0, 1, 1], [], []>} : vector<8x3xbf16>, vector<3x352xbf16>, vector<8x352xf32> -> vector<8x352xf32>
    %112 = arith.addf %106, %111 : vector<8x352xf32>
    %c0_101 = arith.constant 0 : index
    %c0_102 = arith.constant 0 : index
    %c49 = arith.constant 49 : index
    %113 = vector.load %arg2[%c0_101, %c0_102, %c49] : memref<1x3x512xbf16, #tpu.memory_space<vmem>>, vector<1x3x352xbf16>
    %114 = vector.shape_cast %113 : vector<1x3x352xbf16> to vector<3x352xbf16>
    %c19 = arith.constant 19 : index
    %c0_103 = arith.constant 0 : index
    %c0_104 = arith.constant 0 : index
    %115 = vector.load %arg1[%c19, %c0_103, %c0_104] : memref<49x8x3xbf16, #tpu.memory_space<vmem>>, vector<1x8x3xbf16>
    %116 = vector.shape_cast %115 : vector<1x8x3xbf16> to vector<8x3xbf16>
    %cst_105 = arith.constant dense<0.000000e+00> : vector<8x352xf32>
    %117 = tpu.matmul %116, %114, %cst_105 {dimension_numbers = #tpu.dot_dimension_numbers<[1], [0], [0], [1], [0, 0, 1, 1], [], []>} : vector<8x3xbf16>, vector<3x352xbf16>, vector<8x352xf32> -> vector<8x352xf32>
    %118 = arith.addf %112, %117 : vector<8x352xf32>
    %c0_106 = arith.constant 0 : index
    %c0_107 = arith.constant 0 : index
    %c50 = arith.constant 50 : index
    %119 = vector.load %arg2[%c0_106, %c0_107, %c50] : memref<1x3x512xbf16, #tpu.memory_space<vmem>>, vector<1x3x352xbf16>
    %120 = vector.shape_cast %119 : vector<1x3x352xbf16> to vector<3x352xbf16>
    %c20 = arith.constant 20 : index
    %c0_108 = arith.constant 0 : index
    %c0_109 = arith.constant 0 : index
    %121 = vector.load %arg1[%c20, %c0_108, %c0_109] : memref<49x8x3xbf16, #tpu.memory_space<vmem>>, vector<1x8x3xbf16>
    %122 = vector.shape_cast %121 : vector<1x8x3xbf16> to vector<8x3xbf16>
    %cst_110 = arith.constant dense<0.000000e+00> : vector<8x352xf32>
    %123 = tpu.matmul %122, %120, %cst_110 {dimension_numbers = #tpu.dot_dimension_numbers<[1], [0], [0], [1], [0, 0, 1, 1], [], []>} : vector<8x3xbf16>, vector<3x352xbf16>, vector<8x352xf32> -> vector<8x352xf32>
    %124 = arith.addf %118, %123 : vector<8x352xf32>
    %c0_111 = arith.constant 0 : index
    %c0_112 = arith.constant 0 : index
    %c66 = arith.constant 66 : index
    %125 = vector.load %arg2[%c0_111, %c0_112, %c66] : memref<1x3x512xbf16, #tpu.memory_space<vmem>>, vector<1x3x352xbf16>
    %126 = vector.shape_cast %125 : vector<1x3x352xbf16> to vector<3x352xbf16>
    %c21 = arith.constant 21 : index
    %c0_113 = arith.constant 0 : index
    %c0_114 = arith.constant 0 : index
    %127 = vector.load %arg1[%c21, %c0_113, %c0_114] : memref<49x8x3xbf16, #tpu.memory_space<vmem>>, vector<1x8x3xbf16>
    %128 = vector.shape_cast %127 : vector<1x8x3xbf16> to vector<8x3xbf16>
    %cst_115 = arith.constant dense<0.000000e+00> : vector<8x352xf32>
    %129 = tpu.matmul %128, %126, %cst_115 {dimension_numbers = #tpu.dot_dimension_numbers<[1], [0], [0], [1], [0, 0, 1, 1], [], []>} : vector<8x3xbf16>, vector<3x352xbf16>, vector<8x352xf32> -> vector<8x352xf32>
    %130 = arith.addf %124, %129 : vector<8x352xf32>
    %c0_116 = arith.constant 0 : index
    %c0_117 = arith.constant 0 : index
    %c67 = arith.constant 67 : index
    %131 = vector.load %arg2[%c0_116, %c0_117, %c67] : memref<1x3x512xbf16, #tpu.memory_space<vmem>>, vector<1x3x352xbf16>
    %132 = vector.shape_cast %131 : vector<1x3x352xbf16> to vector<3x352xbf16>
    %c22_118 = arith.constant 22 : index
    %c0_119 = arith.constant 0 : index
    %c0_120 = arith.constant 0 : index
    %133 = vector.load %arg1[%c22_118, %c0_119, %c0_120] : memref<49x8x3xbf16, #tpu.memory_space<vmem>>, vector<1x8x3xbf16>
    %134 = vector.shape_cast %133 : vector<1x8x3xbf16> to vector<8x3xbf16>
    %cst_121 = arith.constant dense<0.000000e+00> : vector<8x352xf32>
    %135 = tpu.matmul %134, %132, %cst_121 {dimension_numbers = #tpu.dot_dimension_numbers<[1], [0], [0], [1], [0, 0, 1, 1], [], []>} : vector<8x3xbf16>, vector<3x352xbf16>, vector<8x352xf32> -> vector<8x352xf32>
    %136 = arith.addf %130, %135 : vector<8x352xf32>
    %c0_122 = arith.constant 0 : index
    %c0_123 = arith.constant 0 : index
    %c68 = arith.constant 68 : index
    %137 = vector.load %arg2[%c0_122, %c0_123, %c68] : memref<1x3x512xbf16, #tpu.memory_space<vmem>>, vector<1x3x352xbf16>
    %138 = vector.shape_cast %137 : vector<1x3x352xbf16> to vector<3x352xbf16>
    %c23_124 = arith.constant 23 : index
    %c0_125 = arith.constant 0 : index
    %c0_126 = arith.constant 0 : index
    %139 = vector.load %arg1[%c23_124, %c0_125, %c0_126] : memref<49x8x3xbf16, #tpu.memory_space<vmem>>, vector<1x8x3xbf16>
    %140 = vector.shape_cast %139 : vector<1x8x3xbf16> to vector<8x3xbf16>
    %cst_127 = arith.constant dense<0.000000e+00> : vector<8x352xf32>
    %141 = tpu.matmul %140, %138, %cst_127 {dimension_numbers = #tpu.dot_dimension_numbers<[1], [0], [0], [1], [0, 0, 1, 1], [], []>} : vector<8x3xbf16>, vector<3x352xbf16>, vector<8x352xf32> -> vector<8x352xf32>
    %142 = arith.addf %136, %141 : vector<8x352xf32>
    %c0_128 = arith.constant 0 : index
    %c0_129 = arith.constant 0 : index
    %c69 = arith.constant 69 : index
    %143 = vector.load %arg2[%c0_128, %c0_129, %c69] : memref<1x3x512xbf16, #tpu.memory_space<vmem>>, vector<1x3x352xbf16>
    %144 = vector.shape_cast %143 : vector<1x3x352xbf16> to vector<3x352xbf16>
    %c24_130 = arith.constant 24 : index
    %c0_131 = arith.constant 0 : index
    %c0_132 = arith.constant 0 : index
    %145 = vector.load %arg1[%c24_130, %c0_131, %c0_132] : memref<49x8x3xbf16, #tpu.memory_space<vmem>>, vector<1x8x3xbf16>
    %146 = vector.shape_cast %145 : vector<1x8x3xbf16> to vector<8x3xbf16>
    %cst_133 = arith.constant dense<0.000000e+00> : vector<8x352xf32>
    %147 = tpu.matmul %146, %144, %cst_133 {dimension_numbers = #tpu.dot_dimension_numbers<[1], [0], [0], [1], [0, 0, 1, 1], [], []>} : vector<8x3xbf16>, vector<3x352xbf16>, vector<8x352xf32> -> vector<8x352xf32>
    %148 = arith.addf %142, %147 : vector<8x352xf32>
    %c0_134 = arith.constant 0 : index
    %c0_135 = arith.constant 0 : index
    %c70 = arith.constant 70 : index
    %149 = vector.load %arg2[%c0_134, %c0_135, %c70] : memref<1x3x512xbf16, #tpu.memory_space<vmem>>, vector<1x3x352xbf16>
    %150 = vector.shape_cast %149 : vector<1x3x352xbf16> to vector<3x352xbf16>
    %c25_136 = arith.constant 25 : index
    %c0_137 = arith.constant 0 : index
    %c0_138 = arith.constant 0 : index
    %151 = vector.load %arg1[%c25_136, %c0_137, %c0_138] : memref<49x8x3xbf16, #tpu.memory_space<vmem>>, vector<1x8x3xbf16>
    %152 = vector.shape_cast %151 : vector<1x8x3xbf16> to vector<8x3xbf16>
    %cst_139 = arith.constant dense<0.000000e+00> : vector<8x352xf32>
    %153 = tpu.matmul %152, %150, %cst_139 {dimension_numbers = #tpu.dot_dimension_numbers<[1], [0], [0], [1], [0, 0, 1, 1], [], []>} : vector<8x3xbf16>, vector<3x352xbf16>, vector<8x352xf32> -> vector<8x352xf32>
    %154 = arith.addf %148, %153 : vector<8x352xf32>
    %c0_140 = arith.constant 0 : index
    %c0_141 = arith.constant 0 : index
    %c71 = arith.constant 71 : index
    %155 = vector.load %arg2[%c0_140, %c0_141, %c71] : memref<1x3x512xbf16, #tpu.memory_space<vmem>>, vector<1x3x352xbf16>
    %156 = vector.shape_cast %155 : vector<1x3x352xbf16> to vector<3x352xbf16>
    %c26_142 = arith.constant 26 : index
    %c0_143 = arith.constant 0 : index
    %c0_144 = arith.constant 0 : index
    %157 = vector.load %arg1[%c26_142, %c0_143, %c0_144] : memref<49x8x3xbf16, #tpu.memory_space<vmem>>, vector<1x8x3xbf16>
    %158 = vector.shape_cast %157 : vector<1x8x3xbf16> to vector<8x3xbf16>
    %cst_145 = arith.constant dense<0.000000e+00> : vector<8x352xf32>
    %159 = tpu.matmul %158, %156, %cst_145 {dimension_numbers = #tpu.dot_dimension_numbers<[1], [0], [0], [1], [0, 0, 1, 1], [], []>} : vector<8x3xbf16>, vector<3x352xbf16>, vector<8x352xf32> -> vector<8x352xf32>
    %160 = arith.addf %154, %159 : vector<8x352xf32>
    %c0_146 = arith.constant 0 : index
    %c0_147 = arith.constant 0 : index
    %c72 = arith.constant 72 : index
    %161 = vector.load %arg2[%c0_146, %c0_147, %c72] : memref<1x3x512xbf16, #tpu.memory_space<vmem>>, vector<1x3x352xbf16>
    %162 = vector.shape_cast %161 : vector<1x3x352xbf16> to vector<3x352xbf16>
    %c27_148 = arith.constant 27 : index
    %c0_149 = arith.constant 0 : index
    %c0_150 = arith.constant 0 : index
    %163 = vector.load %arg1[%c27_148, %c0_149, %c0_150] : memref<49x8x3xbf16, #tpu.memory_space<vmem>>, vector<1x8x3xbf16>
    %164 = vector.shape_cast %163 : vector<1x8x3xbf16> to vector<8x3xbf16>
    %cst_151 = arith.constant dense<0.000000e+00> : vector<8x352xf32>
    %165 = tpu.matmul %164, %162, %cst_151 {dimension_numbers = #tpu.dot_dimension_numbers<[1], [0], [0], [1], [0, 0, 1, 1], [], []>} : vector<8x3xbf16>, vector<3x352xbf16>, vector<8x352xf32> -> vector<8x352xf32>
    %166 = arith.addf %160, %165 : vector<8x352xf32>
    %c0_152 = arith.constant 0 : index
    %c0_153 = arith.constant 0 : index
    %c88 = arith.constant 88 : index
    %167 = vector.load %arg2[%c0_152, %c0_153, %c88] : memref<1x3x512xbf16, #tpu.memory_space<vmem>>, vector<1x3x352xbf16>
    %168 = vector.shape_cast %167 : vector<1x3x352xbf16> to vector<3x352xbf16>
    %c28_154 = arith.constant 28 : index
    %c0_155 = arith.constant 0 : index
    %c0_156 = arith.constant 0 : index
    %169 = vector.load %arg1[%c28_154, %c0_155, %c0_156] : memref<49x8x3xbf16, #tpu.memory_space<vmem>>, vector<1x8x3xbf16>
    %170 = vector.shape_cast %169 : vector<1x8x3xbf16> to vector<8x3xbf16>
    %cst_157 = arith.constant dense<0.000000e+00> : vector<8x352xf32>
    %171 = tpu.matmul %170, %168, %cst_157 {dimension_numbers = #tpu.dot_dimension_numbers<[1], [0], [0], [1], [0, 0, 1, 1], [], []>} : vector<8x3xbf16>, vector<3x352xbf16>, vector<8x352xf32> -> vector<8x352xf32>
    %172 = arith.addf %166, %171 : vector<8x352xf32>
    %c0_158 = arith.constant 0 : index
    %c0_159 = arith.constant 0 : index
    %c89 = arith.constant 89 : index
    %173 = vector.load %arg2[%c0_158, %c0_159, %c89] : memref<1x3x512xbf16, #tpu.memory_space<vmem>>, vector<1x3x352xbf16>
    %174 = vector.shape_cast %173 : vector<1x3x352xbf16> to vector<3x352xbf16>
    %c29 = arith.constant 29 : index
    %c0_160 = arith.constant 0 : index
    %c0_161 = arith.constant 0 : index
    %175 = vector.load %arg1[%c29, %c0_160, %c0_161] : memref<49x8x3xbf16, #tpu.memory_space<vmem>>, vector<1x8x3xbf16>
    %176 = vector.shape_cast %175 : vector<1x8x3xbf16> to vector<8x3xbf16>
    %cst_162 = arith.constant dense<0.000000e+00> : vector<8x352xf32>
    %177 = tpu.matmul %176, %174, %cst_162 {dimension_numbers = #tpu.dot_dimension_numbers<[1], [0], [0], [1], [0, 0, 1, 1], [], []>} : vector<8x3xbf16>, vector<3x352xbf16>, vector<8x352xf32> -> vector<8x352xf32>
    %178 = arith.addf %172, %177 : vector<8x352xf32>
    %c0_163 = arith.constant 0 : index
    %c0_164 = arith.constant 0 : index
    %c90 = arith.constant 90 : index
    %179 = vector.load %arg2[%c0_163, %c0_164, %c90] : memref<1x3x512xbf16, #tpu.memory_space<vmem>>, vector<1x3x352xbf16>
    %180 = vector.shape_cast %179 : vector<1x3x352xbf16> to vector<3x352xbf16>
    %c30 = arith.constant 30 : index
    %c0_165 = arith.constant 0 : index
    %c0_166 = arith.constant 0 : index
    %181 = vector.load %arg1[%c30, %c0_165, %c0_166] : memref<49x8x3xbf16, #tpu.memory_space<vmem>>, vector<1x8x3xbf16>
    %182 = vector.shape_cast %181 : vector<1x8x3xbf16> to vector<8x3xbf16>
    %cst_167 = arith.constant dense<0.000000e+00> : vector<8x352xf32>
    %183 = tpu.matmul %182, %180, %cst_167 {dimension_numbers = #tpu.dot_dimension_numbers<[1], [0], [0], [1], [0, 0, 1, 1], [], []>} : vector<8x3xbf16>, vector<3x352xbf16>, vector<8x352xf32> -> vector<8x352xf32>
    %184 = arith.addf %178, %183 : vector<8x352xf32>
    %c0_168 = arith.constant 0 : index
    %c0_169 = arith.constant 0 : index
    %c91 = arith.constant 91 : index
    %185 = vector.load %arg2[%c0_168, %c0_169, %c91] : memref<1x3x512xbf16, #tpu.memory_space<vmem>>, vector<1x3x352xbf16>
    %186 = vector.shape_cast %185 : vector<1x3x352xbf16> to vector<3x352xbf16>
    %c31 = arith.constant 31 : index
    %c0_170 = arith.constant 0 : index
    %c0_171 = arith.constant 0 : index
    %187 = vector.load %arg1[%c31, %c0_170, %c0_171] : memref<49x8x3xbf16, #tpu.memory_space<vmem>>, vector<1x8x3xbf16>
    %188 = vector.shape_cast %187 : vector<1x8x3xbf16> to vector<8x3xbf16>
    %cst_172 = arith.constant dense<0.000000e+00> : vector<8x352xf32>
    %189 = tpu.matmul %188, %186, %cst_172 {dimension_numbers = #tpu.dot_dimension_numbers<[1], [0], [0], [1], [0, 0, 1, 1], [], []>} : vector<8x3xbf16>, vector<3x352xbf16>, vector<8x352xf32> -> vector<8x352xf32>
    %190 = arith.addf %184, %189 : vector<8x352xf32>
    %c0_173 = arith.constant 0 : index
    %c0_174 = arith.constant 0 : index
    %c92 = arith.constant 92 : index
    %191 = vector.load %arg2[%c0_173, %c0_174, %c92] : memref<1x3x512xbf16, #tpu.memory_space<vmem>>, vector<1x3x352xbf16>
    %192 = vector.shape_cast %191 : vector<1x3x352xbf16> to vector<3x352xbf16>
    %c32 = arith.constant 32 : index
    %c0_175 = arith.constant 0 : index
    %c0_176 = arith.constant 0 : index
    %193 = vector.load %arg1[%c32, %c0_175, %c0_176] : memref<49x8x3xbf16, #tpu.memory_space<vmem>>, vector<1x8x3xbf16>
    %194 = vector.shape_cast %193 : vector<1x8x3xbf16> to vector<8x3xbf16>
    %cst_177 = arith.constant dense<0.000000e+00> : vector<8x352xf32>
    %195 = tpu.matmul %194, %192, %cst_177 {dimension_numbers = #tpu.dot_dimension_numbers<[1], [0], [0], [1], [0, 0, 1, 1], [], []>} : vector<8x3xbf16>, vector<3x352xbf16>, vector<8x352xf32> -> vector<8x352xf32>
    %196 = arith.addf %190, %195 : vector<8x352xf32>
    %c0_178 = arith.constant 0 : index
    %c0_179 = arith.constant 0 : index
    %c93 = arith.constant 93 : index
    %197 = vector.load %arg2[%c0_178, %c0_179, %c93] : memref<1x3x512xbf16, #tpu.memory_space<vmem>>, vector<1x3x352xbf16>
    %198 = vector.shape_cast %197 : vector<1x3x352xbf16> to vector<3x352xbf16>
    %c33 = arith.constant 33 : index
    %c0_180 = arith.constant 0 : index
    %c0_181 = arith.constant 0 : index
    %199 = vector.load %arg1[%c33, %c0_180, %c0_181] : memref<49x8x3xbf16, #tpu.memory_space<vmem>>, vector<1x8x3xbf16>
    %200 = vector.shape_cast %199 : vector<1x8x3xbf16> to vector<8x3xbf16>
    %cst_182 = arith.constant dense<0.000000e+00> : vector<8x352xf32>
    %201 = tpu.matmul %200, %198, %cst_182 {dimension_numbers = #tpu.dot_dimension_numbers<[1], [0], [0], [1], [0, 0, 1, 1], [], []>} : vector<8x3xbf16>, vector<3x352xbf16>, vector<8x352xf32> -> vector<8x352xf32>
    %202 = arith.addf %196, %201 : vector<8x352xf32>
    %c0_183 = arith.constant 0 : index
    %c0_184 = arith.constant 0 : index
    %c94 = arith.constant 94 : index
    %203 = vector.load %arg2[%c0_183, %c0_184, %c94] : memref<1x3x512xbf16, #tpu.memory_space<vmem>>, vector<1x3x352xbf16>
    %204 = vector.shape_cast %203 : vector<1x3x352xbf16> to vector<3x352xbf16>
    %c34 = arith.constant 34 : index
    %c0_185 = arith.constant 0 : index
    %c0_186 = arith.constant 0 : index
    %205 = vector.load %arg1[%c34, %c0_185, %c0_186] : memref<49x8x3xbf16, #tpu.memory_space<vmem>>, vector<1x8x3xbf16>
    %206 = vector.shape_cast %205 : vector<1x8x3xbf16> to vector<8x3xbf16>
    %cst_187 = arith.constant dense<0.000000e+00> : vector<8x352xf32>
    %207 = tpu.matmul %206, %204, %cst_187 {dimension_numbers = #tpu.dot_dimension_numbers<[1], [0], [0], [1], [0, 0, 1, 1], [], []>} : vector<8x3xbf16>, vector<3x352xbf16>, vector<8x352xf32> -> vector<8x352xf32>
    %208 = arith.addf %202, %207 : vector<8x352xf32>
    %c0_188 = arith.constant 0 : index
    %c0_189 = arith.constant 0 : index
    %c110 = arith.constant 110 : index
    %209 = vector.load %arg2[%c0_188, %c0_189, %c110] : memref<1x3x512xbf16, #tpu.memory_space<vmem>>, vector<1x3x352xbf16>
    %210 = vector.shape_cast %209 : vector<1x3x352xbf16> to vector<3x352xbf16>
    %c35 = arith.constant 35 : index
    %c0_190 = arith.constant 0 : index
    %c0_191 = arith.constant 0 : index
    %211 = vector.load %arg1[%c35, %c0_190, %c0_191] : memref<49x8x3xbf16, #tpu.memory_space<vmem>>, vector<1x8x3xbf16>
    %212 = vector.shape_cast %211 : vector<1x8x3xbf16> to vector<8x3xbf16>
    %cst_192 = arith.constant dense<0.000000e+00> : vector<8x352xf32>
    %213 = tpu.matmul %212, %210, %cst_192 {dimension_numbers = #tpu.dot_dimension_numbers<[1], [0], [0], [1], [0, 0, 1, 1], [], []>} : vector<8x3xbf16>, vector<3x352xbf16>, vector<8x352xf32> -> vector<8x352xf32>
    %214 = arith.addf %208, %213 : vector<8x352xf32>
    %c0_193 = arith.constant 0 : index
    %c0_194 = arith.constant 0 : index
    %c111 = arith.constant 111 : index
    %215 = vector.load %arg2[%c0_193, %c0_194, %c111] : memref<1x3x512xbf16, #tpu.memory_space<vmem>>, vector<1x3x352xbf16>
    %216 = vector.shape_cast %215 : vector<1x3x352xbf16> to vector<3x352xbf16>
    %c36 = arith.constant 36 : index
    %c0_195 = arith.constant 0 : index
    %c0_196 = arith.constant 0 : index
    %217 = vector.load %arg1[%c36, %c0_195, %c0_196] : memref<49x8x3xbf16, #tpu.memory_space<vmem>>, vector<1x8x3xbf16>
    %218 = vector.shape_cast %217 : vector<1x8x3xbf16> to vector<8x3xbf16>
    %cst_197 = arith.constant dense<0.000000e+00> : vector<8x352xf32>
    %219 = tpu.matmul %218, %216, %cst_197 {dimension_numbers = #tpu.dot_dimension_numbers<[1], [0], [0], [1], [0, 0, 1, 1], [], []>} : vector<8x3xbf16>, vector<3x352xbf16>, vector<8x352xf32> -> vector<8x352xf32>
    %220 = arith.addf %214, %219 : vector<8x352xf32>
    %c0_198 = arith.constant 0 : index
    %c0_199 = arith.constant 0 : index
    %c112 = arith.constant 112 : index
    %221 = vector.load %arg2[%c0_198, %c0_199, %c112] : memref<1x3x512xbf16, #tpu.memory_space<vmem>>, vector<1x3x352xbf16>
    %222 = vector.shape_cast %221 : vector<1x3x352xbf16> to vector<3x352xbf16>
    %c37 = arith.constant 37 : index
    %c0_200 = arith.constant 0 : index
    %c0_201 = arith.constant 0 : index
    %223 = vector.load %arg1[%c37, %c0_200, %c0_201] : memref<49x8x3xbf16, #tpu.memory_space<vmem>>, vector<1x8x3xbf16>
    %224 = vector.shape_cast %223 : vector<1x8x3xbf16> to vector<8x3xbf16>
    %cst_202 = arith.constant dense<0.000000e+00> : vector<8x352xf32>
    %225 = tpu.matmul %224, %222, %cst_202 {dimension_numbers = #tpu.dot_dimension_numbers<[1], [0], [0], [1], [0, 0, 1, 1], [], []>} : vector<8x3xbf16>, vector<3x352xbf16>, vector<8x352xf32> -> vector<8x352xf32>
    %226 = arith.addf %220, %225 : vector<8x352xf32>
    %c0_203 = arith.constant 0 : index
    %c0_204 = arith.constant 0 : index
    %c113 = arith.constant 113 : index
    %227 = vector.load %arg2[%c0_203, %c0_204, %c113] : memref<1x3x512xbf16, #tpu.memory_space<vmem>>, vector<1x3x352xbf16>
    %228 = vector.shape_cast %227 : vector<1x3x352xbf16> to vector<3x352xbf16>
    %c38 = arith.constant 38 : index
    %c0_205 = arith.constant 0 : index
    %c0_206 = arith.constant 0 : index
    %229 = vector.load %arg1[%c38, %c0_205, %c0_206] : memref<49x8x3xbf16, #tpu.memory_space<vmem>>, vector<1x8x3xbf16>
    %230 = vector.shape_cast %229 : vector<1x8x3xbf16> to vector<8x3xbf16>
    %cst_207 = arith.constant dense<0.000000e+00> : vector<8x352xf32>
    %231 = tpu.matmul %230, %228, %cst_207 {dimension_numbers = #tpu.dot_dimension_numbers<[1], [0], [0], [1], [0, 0, 1, 1], [], []>} : vector<8x3xbf16>, vector<3x352xbf16>, vector<8x352xf32> -> vector<8x352xf32>
    %232 = arith.addf %226, %231 : vector<8x352xf32>
    %c0_208 = arith.constant 0 : index
    %c0_209 = arith.constant 0 : index
    %c114 = arith.constant 114 : index
    %233 = vector.load %arg2[%c0_208, %c0_209, %c114] : memref<1x3x512xbf16, #tpu.memory_space<vmem>>, vector<1x3x352xbf16>
    %234 = vector.shape_cast %233 : vector<1x3x352xbf16> to vector<3x352xbf16>
    %c39 = arith.constant 39 : index
    %c0_210 = arith.constant 0 : index
    %c0_211 = arith.constant 0 : index
    %235 = vector.load %arg1[%c39, %c0_210, %c0_211] : memref<49x8x3xbf16, #tpu.memory_space<vmem>>, vector<1x8x3xbf16>
    %236 = vector.shape_cast %235 : vector<1x8x3xbf16> to vector<8x3xbf16>
    %cst_212 = arith.constant dense<0.000000e+00> : vector<8x352xf32>
    %237 = tpu.matmul %236, %234, %cst_212 {dimension_numbers = #tpu.dot_dimension_numbers<[1], [0], [0], [1], [0, 0, 1, 1], [], []>} : vector<8x3xbf16>, vector<3x352xbf16>, vector<8x352xf32> -> vector<8x352xf32>
    %238 = arith.addf %232, %237 : vector<8x352xf32>
    %c0_213 = arith.constant 0 : index
    %c0_214 = arith.constant 0 : index
    %c115 = arith.constant 115 : index
    %239 = vector.load %arg2[%c0_213, %c0_214, %c115] : memref<1x3x512xbf16, #tpu.memory_space<vmem>>, vector<1x3x352xbf16>
    %240 = vector.shape_cast %239 : vector<1x3x352xbf16> to vector<3x352xbf16>
    %c40 = arith.constant 40 : index
    %c0_215 = arith.constant 0 : index
    %c0_216 = arith.constant 0 : index
    %241 = vector.load %arg1[%c40, %c0_215, %c0_216] : memref<49x8x3xbf16, #tpu.memory_space<vmem>>, vector<1x8x3xbf16>
    %242 = vector.shape_cast %241 : vector<1x8x3xbf16> to vector<8x3xbf16>
    %cst_217 = arith.constant dense<0.000000e+00> : vector<8x352xf32>
    %243 = tpu.matmul %242, %240, %cst_217 {dimension_numbers = #tpu.dot_dimension_numbers<[1], [0], [0], [1], [0, 0, 1, 1], [], []>} : vector<8x3xbf16>, vector<3x352xbf16>, vector<8x352xf32> -> vector<8x352xf32>
    %244 = arith.addf %238, %243 : vector<8x352xf32>
    %c0_218 = arith.constant 0 : index
    %c0_219 = arith.constant 0 : index
    %c116 = arith.constant 116 : index
    %245 = vector.load %arg2[%c0_218, %c0_219, %c116] : memref<1x3x512xbf16, #tpu.memory_space<vmem>>, vector<1x3x352xbf16>
    %246 = vector.shape_cast %245 : vector<1x3x352xbf16> to vector<3x352xbf16>
    %c41 = arith.constant 41 : index
    %c0_220 = arith.constant 0 : index
    %c0_221 = arith.constant 0 : index
    %247 = vector.load %arg1[%c41, %c0_220, %c0_221] : memref<49x8x3xbf16, #tpu.memory_space<vmem>>, vector<1x8x3xbf16>
    %248 = vector.shape_cast %247 : vector<1x8x3xbf16> to vector<8x3xbf16>
    %cst_222 = arith.constant dense<0.000000e+00> : vector<8x352xf32>
    %249 = tpu.matmul %248, %246, %cst_222 {dimension_numbers = #tpu.dot_dimension_numbers<[1], [0], [0], [1], [0, 0, 1, 1], [], []>} : vector<8x3xbf16>, vector<3x352xbf16>, vector<8x352xf32> -> vector<8x352xf32>
    %250 = arith.addf %244, %249 : vector<8x352xf32>
    %c0_223 = arith.constant 0 : index
    %c0_224 = arith.constant 0 : index
    %c132 = arith.constant 132 : index
    %251 = vector.load %arg2[%c0_223, %c0_224, %c132] : memref<1x3x512xbf16, #tpu.memory_space<vmem>>, vector<1x3x352xbf16>
    %252 = vector.shape_cast %251 : vector<1x3x352xbf16> to vector<3x352xbf16>
    %c42 = arith.constant 42 : index
    %c0_225 = arith.constant 0 : index
    %c0_226 = arith.constant 0 : index
    %253 = vector.load %arg1[%c42, %c0_225, %c0_226] : memref<49x8x3xbf16, #tpu.memory_space<vmem>>, vector<1x8x3xbf16>
    %254 = vector.shape_cast %253 : vector<1x8x3xbf16> to vector<8x3xbf16>
    %cst_227 = arith.constant dense<0.000000e+00> : vector<8x352xf32>
    %255 = tpu.matmul %254, %252, %cst_227 {dimension_numbers = #tpu.dot_dimension_numbers<[1], [0], [0], [1], [0, 0, 1, 1], [], []>} : vector<8x3xbf16>, vector<3x352xbf16>, vector<8x352xf32> -> vector<8x352xf32>
    %256 = arith.addf %250, %255 : vector<8x352xf32>
    %c0_228 = arith.constant 0 : index
    %c0_229 = arith.constant 0 : index
    %c133 = arith.constant 133 : index
    %257 = vector.load %arg2[%c0_228, %c0_229, %c133] : memref<1x3x512xbf16, #tpu.memory_space<vmem>>, vector<1x3x352xbf16>
    %258 = vector.shape_cast %257 : vector<1x3x352xbf16> to vector<3x352xbf16>
    %c43 = arith.constant 43 : index
    %c0_230 = arith.constant 0 : index
    %c0_231 = arith.constant 0 : index
    %259 = vector.load %arg1[%c43, %c0_230, %c0_231] : memref<49x8x3xbf16, #tpu.memory_space<vmem>>, vector<1x8x3xbf16>
    %260 = vector.shape_cast %259 : vector<1x8x3xbf16> to vector<8x3xbf16>
    %cst_232 = arith.constant dense<0.000000e+00> : vector<8x352xf32>
    %261 = tpu.matmul %260, %258, %cst_232 {dimension_numbers = #tpu.dot_dimension_numbers<[1], [0], [0], [1], [0, 0, 1, 1], [], []>} : vector<8x3xbf16>, vector<3x352xbf16>, vector<8x352xf32> -> vector<8x352xf32>
    %262 = arith.addf %256, %261 : vector<8x352xf32>
    %c0_233 = arith.constant 0 : index
    %c0_234 = arith.constant 0 : index
    %c134 = arith.constant 134 : index
    %263 = vector.load %arg2[%c0_233, %c0_234, %c134] : memref<1x3x512xbf16, #tpu.memory_space<vmem>>, vector<1x3x352xbf16>
    %264 = vector.shape_cast %263 : vector<1x3x352xbf16> to vector<3x352xbf16>
    %c44_235 = arith.constant 44 : index
    %c0_236 = arith.constant 0 : index
    %c0_237 = arith.constant 0 : index
    %265 = vector.load %arg1[%c44_235, %c0_236, %c0_237] : memref<49x8x3xbf16, #tpu.memory_space<vmem>>, vector<1x8x3xbf16>
    %266 = vector.shape_cast %265 : vector<1x8x3xbf16> to vector<8x3xbf16>
    %cst_238 = arith.constant dense<0.000000e+00> : vector<8x352xf32>
    %267 = tpu.matmul %266, %264, %cst_238 {dimension_numbers = #tpu.dot_dimension_numbers<[1], [0], [0], [1], [0, 0, 1, 1], [], []>} : vector<8x3xbf16>, vector<3x352xbf16>, vector<8x352xf32> -> vector<8x352xf32>
    %268 = arith.addf %262, %267 : vector<8x352xf32>
    %c0_239 = arith.constant 0 : index
    %c0_240 = arith.constant 0 : index
    %c135 = arith.constant 135 : index
    %269 = vector.load %arg2[%c0_239, %c0_240, %c135] : memref<1x3x512xbf16, #tpu.memory_space<vmem>>, vector<1x3x352xbf16>
    %270 = vector.shape_cast %269 : vector<1x3x352xbf16> to vector<3x352xbf16>
    %c45_241 = arith.constant 45 : index
    %c0_242 = arith.constant 0 : index
    %c0_243 = arith.constant 0 : index
    %271 = vector.load %arg1[%c45_241, %c0_242, %c0_243] : memref<49x8x3xbf16, #tpu.memory_space<vmem>>, vector<1x8x3xbf16>
    %272 = vector.shape_cast %271 : vector<1x8x3xbf16> to vector<8x3xbf16>
    %cst_244 = arith.constant dense<0.000000e+00> : vector<8x352xf32>
    %273 = tpu.matmul %272, %270, %cst_244 {dimension_numbers = #tpu.dot_dimension_numbers<[1], [0], [0], [1], [0, 0, 1, 1], [], []>} : vector<8x3xbf16>, vector<3x352xbf16>, vector<8x352xf32> -> vector<8x352xf32>
    %274 = arith.addf %268, %273 : vector<8x352xf32>
    %c0_245 = arith.constant 0 : index
    %c0_246 = arith.constant 0 : index
    %c136 = arith.constant 136 : index
    %275 = vector.load %arg2[%c0_245, %c0_246, %c136] : memref<1x3x512xbf16, #tpu.memory_space<vmem>>, vector<1x3x352xbf16>
    %276 = vector.shape_cast %275 : vector<1x3x352xbf16> to vector<3x352xbf16>
    %c46_247 = arith.constant 46 : index
    %c0_248 = arith.constant 0 : index
    %c0_249 = arith.constant 0 : index
    %277 = vector.load %arg1[%c46_247, %c0_248, %c0_249] : memref<49x8x3xbf16, #tpu.memory_space<vmem>>, vector<1x8x3xbf16>
    %278 = vector.shape_cast %277 : vector<1x8x3xbf16> to vector<8x3xbf16>
    %cst_250 = arith.constant dense<0.000000e+00> : vector<8x352xf32>
    %279 = tpu.matmul %278, %276, %cst_250 {dimension_numbers = #tpu.dot_dimension_numbers<[1], [0], [0], [1], [0, 0, 1, 1], [], []>} : vector<8x3xbf16>, vector<3x352xbf16>, vector<8x352xf32> -> vector<8x352xf32>
    %280 = arith.addf %274, %279 : vector<8x352xf32>
    %c0_251 = arith.constant 0 : index
    %c0_252 = arith.constant 0 : index
    %c137 = arith.constant 137 : index
    %281 = vector.load %arg2[%c0_251, %c0_252, %c137] : memref<1x3x512xbf16, #tpu.memory_space<vmem>>, vector<1x3x352xbf16>
    %282 = vector.shape_cast %281 : vector<1x3x352xbf16> to vector<3x352xbf16>
    %c47_253 = arith.constant 47 : index
    %c0_254 = arith.constant 0 : index
    %c0_255 = arith.constant 0 : index
    %283 = vector.load %arg1[%c47_253, %c0_254, %c0_255] : memref<49x8x3xbf16, #tpu.memory_space<vmem>>, vector<1x8x3xbf16>
    %284 = vector.shape_cast %283 : vector<1x8x3xbf16> to vector<8x3xbf16>
    %cst_256 = arith.constant dense<0.000000e+00> : vector<8x352xf32>
    %285 = tpu.matmul %284, %282, %cst_256 {dimension_numbers = #tpu.dot_dimension_numbers<[1], [0], [0], [1], [0, 0, 1, 1], [], []>} : vector<8x3xbf16>, vector<3x352xbf16>, vector<8x352xf32> -> vector<8x352xf32>
    %286 = arith.addf %280, %285 : vector<8x352xf32>
    %c0_257 = arith.constant 0 : index
    %c0_258 = arith.constant 0 : index
    %c138 = arith.constant 138 : index
    %287 = vector.load %arg2[%c0_257, %c0_258, %c138] : memref<1x3x512xbf16, #tpu.memory_space<vmem>>, vector<1x3x352xbf16>
    %288 = vector.shape_cast %287 : vector<1x3x352xbf16> to vector<3x352xbf16>
    %c48_259 = arith.constant 48 : index
    %c0_260 = arith.constant 0 : index
    %c0_261 = arith.constant 0 : index
    %289 = vector.load %arg1[%c48_259, %c0_260, %c0_261] : memref<49x8x3xbf16, #tpu.memory_space<vmem>>, vector<1x8x3xbf16>
    %290 = vector.shape_cast %289 : vector<1x8x3xbf16> to vector<8x3xbf16>
    %cst_262 = arith.constant dense<0.000000e+00> : vector<8x352xf32>
    %291 = tpu.matmul %290, %288, %cst_262 {dimension_numbers = #tpu.dot_dimension_numbers<[1], [0], [0], [1], [0, 0, 1, 1], [], []>} : vector<8x3xbf16>, vector<3x352xbf16>, vector<8x352xf32> -> vector<8x352xf32>
    %292 = arith.addf %286, %291 : vector<8x352xf32>
    %c0_263 = arith.constant 0 : index
    %c0_264 = arith.constant 0 : index
    %293 = vector.load %arg3[%c0_263, %c0_264] : memref<1x352xf32, #tpu.memory_space<vmem>>, vector<1x352xf32>
    %294 = vector.broadcast %293 : vector<1x352xf32> to vector<8x352xf32>
    %295 = arith.mulf %292, %294 : vector<8x352xf32>
    %cst_265 = arith.constant dense<0.000000e+00> : vector<8xf32>
    %296 = vector.multi_reduction <add>, %295, %cst_265 [1] : vector<8x352xf32> to vector<8xf32>
    %297 = vector.shape_cast %296 : vector<8xf32> to vector<8x1xf32>
    %cst_266 = arith.constant 3.906250e-03 : f32
    %298 = vector.broadcast %cst_266 : f32 to vector<8x1xf32>
    %299 = arith.mulf %297, %298 : vector<8x1xf32>
    %300 = arith.mulf %295, %292 : vector<8x352xf32>
    %cst_267 = arith.constant dense<0.000000e+00> : vector<8xf32>
    %301 = vector.multi_reduction <add>, %300, %cst_267 [1] : vector<8x352xf32> to vector<8xf32>
    %302 = vector.shape_cast %301 : vector<8xf32> to vector<8x1xf32>
    %cst_268 = arith.constant 3.906250e-03 : f32
    %303 = vector.broadcast %cst_268 : f32 to vector<8x1xf32>
    %304 = arith.mulf %302, %303 : vector<8x1xf32>
    %305 = arith.mulf %299, %299 : vector<8x1xf32>
    %306 = arith.subf %304, %305 : vector<8x1xf32>
    %307 = vector.broadcast %299 : vector<8x1xf32> to vector<8x352xf32>
    %308 = arith.subf %292, %307 : vector<8x352xf32>
    %cst_269 = arith.constant 0.000000e+00 : f32
    %309 = vector.broadcast %cst_269 : f32 to vector<8x1xf32>
    %310 = arith.maximumf %306, %309 : vector<8x1xf32>
    %cst_270 = arith.constant 9.99999974E-6 : f32
    %311 = vector.broadcast %cst_270 : f32 to vector<8x1xf32>
    %312 = arith.addf %310, %311 : vector<8x1xf32>
    %313 = math.rsqrt %312 : vector<8x1xf32>
    %314 = vector.broadcast %313 : vector<8x1xf32> to vector<8x352xf32>
    %315 = arith.mulf %308, %314 : vector<8x352xf32>
    %cst_271 = arith.constant 0.000000e+00 : f32
    %316 = vector.broadcast %cst_271 : f32 to vector<8x352xf32>
    %317 = arith.maximumf %315, %316 : vector<8x352xf32>
    %318 = arith.truncf %317 : vector<8x352xf32> to vector<8x352xbf16>
    %c0_272 = arith.constant 0 : index
    %c0_273 = arith.constant 0 : index
    %c0_274 = arith.constant 0 : index
    %319 = vector.load %arg4[%c0_272, %c0_273, %c0_274] : memref<1x8x352xbf16, #tpu.memory_space<vmem>>, vector<1x8x352xbf16>
    %320 = vector.shape_cast %319 : vector<1x8x352xbf16> to vector<8x352xbf16>
    %321 = vector.shape_cast %318 : vector<8x352xbf16> to vector<1x8x352xbf16>
    tpu.vector_store %arg4[%c0_272, %c0_273, %c0_274], %321 {strides = array<i32>} : memref<1x8x352xbf16, #tpu.memory_space<vmem>>, vector<1x8x352xbf16>,
    return
  }
  func.func @transform_0(%arg0: i32) -> (i32, i32, i32) {
    %c0_i32 = arith.constant 0 : i32
    %c0_i32_0 = arith.constant 0 : i32
    %c0_i32_1 = arith.constant 0 : i32
    %c0_i32_2 = arith.constant 0 : i32
    return %c0_i32, %c0_i32_0, %c0_i32_1 : i32, i32, i32
  }
  func.func @transform_1(%arg0: i32) -> (i32, i32, i32) {
    %c0_i32 = arith.constant 0 : i32
    %c0_i32_0 = arith.constant 0 : i32
    %c0_i32_1 = arith.constant 0 : i32
    return %arg0, %c0_i32, %c0_i32_0 : i32, i32, i32
  }
  func.func @transform_2(%arg0: i32) -> (i32, i32) {
    %c0_i32 = arith.constant 0 : i32
    %c0_i32_0 = arith.constant 0 : i32
    %c0_i32_1 = arith.constant 0 : i32
    return %c0_i32, %c0_i32_0 : i32, i32
  }
  func.func @transform_3(%arg0: i32) -> (i32, i32, i32) {
    %c0_i32 = arith.constant 0 : i32
    %c0_i32_0 = arith.constant 0 : i32
    %c0_i32_1 = arith.constant 0 : i32
    return %arg0, %c0_i32, %c0_i32_0 : i32, i32, i32
  }
}

module attributes {stable_mosaic.version = 11 : i64} {
  func.func @_fused_tap_kernel(%arg0: i32, %arg1: memref<9x16x8xbf16, #tpu.memory_space<vmem>>, %arg2: memref<1x8x384xbf16, #tpu.memory_space<vmem>>, %arg3: memref<1x288xf32, #tpu.memory_space<vmem>>, %arg4: memref<1x16x288xbf16, #tpu.memory_space<vmem>>) attributes {dimension_semantics = [#tpu.dimension_semantics<parallel>], iteration_bounds = array<i64: 2>, scalar_prefetch = 0 : i64, scratch_operands = 0 : i64, tpu.core_type = #tpu.core_type<tc>, window_params = [{pipeline_mode = #tpu.pipeline_mode<synchronous>, transform_indices = @transform_0, window_bounds = array<i64: 9, 16, 8>}, {transform_indices = @transform_1, window_bounds = array<i64: 1, 8, 384>}, {pipeline_mode = #tpu.pipeline_mode<synchronous>, transform_indices = @transform_2, window_bounds = array<i64: 1, 288>}, {transform_indices = @transform_3, window_bounds = array<i64: 1, 16, 288>}]} {
    %c0 = arith.constant 0 : index
    %c0_0 = arith.constant 0 : index
    %c0_1 = arith.constant 0 : index
    %0 = vector.load %arg2[%c0, %c0_0, %c0_1] : memref<1x8x384xbf16, #tpu.memory_space<vmem>>, vector<1x8x288xbf16>
    %1 = vector.shape_cast %0 : vector<1x8x288xbf16> to vector<8x288xbf16>
    %c0_2 = arith.constant 0 : index
    %c0_3 = arith.constant 0 : index
    %c0_4 = arith.constant 0 : index
    %2 = vector.load %arg1[%c0_2, %c0_3, %c0_4] : memref<9x16x8xbf16, #tpu.memory_space<vmem>>, vector<1x16x8xbf16>
    %3 = vector.shape_cast %2 : vector<1x16x8xbf16> to vector<16x8xbf16>
    %cst = arith.constant dense<0.000000e+00> : vector<16x288xf32>
    %4 = tpu.matmul %3, %1, %cst {dimension_numbers = #tpu.dot_dimension_numbers<[1], [0], [0], [1], [0, 0, 1, 1], [], []>} : vector<16x8xbf16>, vector<8x288xbf16>, vector<16x288xf32> -> vector<16x288xf32>
    %c0_5 = arith.constant 0 : index
    %c0_6 = arith.constant 0 : index
    %c1 = arith.constant 1 : index
    %5 = vector.load %arg2[%c0_5, %c0_6, %c1] : memref<1x8x384xbf16, #tpu.memory_space<vmem>>, vector<1x8x288xbf16>
    %6 = vector.shape_cast %5 : vector<1x8x288xbf16> to vector<8x288xbf16>
    %c1_7 = arith.constant 1 : index
    %c0_8 = arith.constant 0 : index
    %c0_9 = arith.constant 0 : index
    %7 = vector.load %arg1[%c1_7, %c0_8, %c0_9] : memref<9x16x8xbf16, #tpu.memory_space<vmem>>, vector<1x16x8xbf16>
    %8 = vector.shape_cast %7 : vector<1x16x8xbf16> to vector<16x8xbf16>
    %cst_10 = arith.constant dense<0.000000e+00> : vector<16x288xf32>
    %9 = tpu.matmul %8, %6, %cst_10 {dimension_numbers = #tpu.dot_dimension_numbers<[1], [0], [0], [1], [0, 0, 1, 1], [], []>} : vector<16x8xbf16>, vector<8x288xbf16>, vector<16x288xf32> -> vector<16x288xf32>
    %10 = arith.addf %4, %9 : vector<16x288xf32>
    %c0_11 = arith.constant 0 : index
    %c0_12 = arith.constant 0 : index
    %c2 = arith.constant 2 : index
    %11 = vector.load %arg2[%c0_11, %c0_12, %c2] : memref<1x8x384xbf16, #tpu.memory_space<vmem>>, vector<1x8x288xbf16>
    %12 = vector.shape_cast %11 : vector<1x8x288xbf16> to vector<8x288xbf16>
    %c2_13 = arith.constant 2 : index
    %c0_14 = arith.constant 0 : index
    %c0_15 = arith.constant 0 : index
    %13 = vector.load %arg1[%c2_13, %c0_14, %c0_15] : memref<9x16x8xbf16, #tpu.memory_space<vmem>>, vector<1x16x8xbf16>
    %14 = vector.shape_cast %13 : vector<1x16x8xbf16> to vector<16x8xbf16>
    %cst_16 = arith.constant dense<0.000000e+00> : vector<16x288xf32>
    %15 = tpu.matmul %14, %12, %cst_16 {dimension_numbers = #tpu.dot_dimension_numbers<[1], [0], [0], [1], [0, 0, 1, 1], [], []>} : vector<16x8xbf16>, vector<8x288xbf16>, vector<16x288xf32> -> vector<16x288xf32>
    %16 = arith.addf %10, %15 : vector<16x288xf32>
    %c0_17 = arith.constant 0 : index
    %c0_18 = arith.constant 0 : index
    %c18 = arith.constant 18 : index
    %17 = vector.load %arg2[%c0_17, %c0_18, %c18] : memref<1x8x384xbf16, #tpu.memory_space<vmem>>, vector<1x8x288xbf16>
    %18 = vector.shape_cast %17 : vector<1x8x288xbf16> to vector<8x288xbf16>
    %c3 = arith.constant 3 : index
    %c0_19 = arith.constant 0 : index
    %c0_20 = arith.constant 0 : index
    %19 = vector.load %arg1[%c3, %c0_19, %c0_20] : memref<9x16x8xbf16, #tpu.memory_space<vmem>>, vector<1x16x8xbf16>
    %20 = vector.shape_cast %19 : vector<1x16x8xbf16> to vector<16x8xbf16>
    %cst_21 = arith.constant dense<0.000000e+00> : vector<16x288xf32>
    %21 = tpu.matmul %20, %18, %cst_21 {dimension_numbers = #tpu.dot_dimension_numbers<[1], [0], [0], [1], [0, 0, 1, 1], [], []>} : vector<16x8xbf16>, vector<8x288xbf16>, vector<16x288xf32> -> vector<16x288xf32>
    %22 = arith.addf %16, %21 : vector<16x288xf32>
    %c0_22 = arith.constant 0 : index
    %c0_23 = arith.constant 0 : index
    %c19 = arith.constant 19 : index
    %23 = vector.load %arg2[%c0_22, %c0_23, %c19] : memref<1x8x384xbf16, #tpu.memory_space<vmem>>, vector<1x8x288xbf16>
    %24 = vector.shape_cast %23 : vector<1x8x288xbf16> to vector<8x288xbf16>
    %c4 = arith.constant 4 : index
    %c0_24 = arith.constant 0 : index
    %c0_25 = arith.constant 0 : index
    %25 = vector.load %arg1[%c4, %c0_24, %c0_25] : memref<9x16x8xbf16, #tpu.memory_space<vmem>>, vector<1x16x8xbf16>
    %26 = vector.shape_cast %25 : vector<1x16x8xbf16> to vector<16x8xbf16>
    %cst_26 = arith.constant dense<0.000000e+00> : vector<16x288xf32>
    %27 = tpu.matmul %26, %24, %cst_26 {dimension_numbers = #tpu.dot_dimension_numbers<[1], [0], [0], [1], [0, 0, 1, 1], [], []>} : vector<16x8xbf16>, vector<8x288xbf16>, vector<16x288xf32> -> vector<16x288xf32>
    %28 = arith.addf %22, %27 : vector<16x288xf32>
    %c0_27 = arith.constant 0 : index
    %c0_28 = arith.constant 0 : index
    %c20 = arith.constant 20 : index
    %29 = vector.load %arg2[%c0_27, %c0_28, %c20] : memref<1x8x384xbf16, #tpu.memory_space<vmem>>, vector<1x8x288xbf16>
    %30 = vector.shape_cast %29 : vector<1x8x288xbf16> to vector<8x288xbf16>
    %c5 = arith.constant 5 : index
    %c0_29 = arith.constant 0 : index
    %c0_30 = arith.constant 0 : index
    %31 = vector.load %arg1[%c5, %c0_29, %c0_30] : memref<9x16x8xbf16, #tpu.memory_space<vmem>>, vector<1x16x8xbf16>
    %32 = vector.shape_cast %31 : vector<1x16x8xbf16> to vector<16x8xbf16>
    %cst_31 = arith.constant dense<0.000000e+00> : vector<16x288xf32>
    %33 = tpu.matmul %32, %30, %cst_31 {dimension_numbers = #tpu.dot_dimension_numbers<[1], [0], [0], [1], [0, 0, 1, 1], [], []>} : vector<16x8xbf16>, vector<8x288xbf16>, vector<16x288xf32> -> vector<16x288xf32>
    %34 = arith.addf %28, %33 : vector<16x288xf32>
    %c0_32 = arith.constant 0 : index
    %c0_33 = arith.constant 0 : index
    %c36 = arith.constant 36 : index
    %35 = vector.load %arg2[%c0_32, %c0_33, %c36] : memref<1x8x384xbf16, #tpu.memory_space<vmem>>, vector<1x8x288xbf16>
    %36 = vector.shape_cast %35 : vector<1x8x288xbf16> to vector<8x288xbf16>
    %c6 = arith.constant 6 : index
    %c0_34 = arith.constant 0 : index
    %c0_35 = arith.constant 0 : index
    %37 = vector.load %arg1[%c6, %c0_34, %c0_35] : memref<9x16x8xbf16, #tpu.memory_space<vmem>>, vector<1x16x8xbf16>
    %38 = vector.shape_cast %37 : vector<1x16x8xbf16> to vector<16x8xbf16>
    %cst_36 = arith.constant dense<0.000000e+00> : vector<16x288xf32>
    %39 = tpu.matmul %38, %36, %cst_36 {dimension_numbers = #tpu.dot_dimension_numbers<[1], [0], [0], [1], [0, 0, 1, 1], [], []>} : vector<16x8xbf16>, vector<8x288xbf16>, vector<16x288xf32> -> vector<16x288xf32>
    %40 = arith.addf %34, %39 : vector<16x288xf32>
    %c0_37 = arith.constant 0 : index
    %c0_38 = arith.constant 0 : index
    %c37 = arith.constant 37 : index
    %41 = vector.load %arg2[%c0_37, %c0_38, %c37] : memref<1x8x384xbf16, #tpu.memory_space<vmem>>, vector<1x8x288xbf16>
    %42 = vector.shape_cast %41 : vector<1x8x288xbf16> to vector<8x288xbf16>
    %c7 = arith.constant 7 : index
    %c0_39 = arith.constant 0 : index
    %c0_40 = arith.constant 0 : index
    %43 = vector.load %arg1[%c7, %c0_39, %c0_40] : memref<9x16x8xbf16, #tpu.memory_space<vmem>>, vector<1x16x8xbf16>
    %44 = vector.shape_cast %43 : vector<1x16x8xbf16> to vector<16x8xbf16>
    %cst_41 = arith.constant dense<0.000000e+00> : vector<16x288xf32>
    %45 = tpu.matmul %44, %42, %cst_41 {dimension_numbers = #tpu.dot_dimension_numbers<[1], [0], [0], [1], [0, 0, 1, 1], [], []>} : vector<16x8xbf16>, vector<8x288xbf16>, vector<16x288xf32> -> vector<16x288xf32>
    %46 = arith.addf %40, %45 : vector<16x288xf32>
    %c0_42 = arith.constant 0 : index
    %c0_43 = arith.constant 0 : index
    %c38 = arith.constant 38 : index
    %47 = vector.load %arg2[%c0_42, %c0_43, %c38] : memref<1x8x384xbf16, #tpu.memory_space<vmem>>, vector<1x8x288xbf16>
    %48 = vector.shape_cast %47 : vector<1x8x288xbf16> to vector<8x288xbf16>
    %c8 = arith.constant 8 : index
    %c0_44 = arith.constant 0 : index
    %c0_45 = arith.constant 0 : index
    %49 = vector.load %arg1[%c8, %c0_44, %c0_45] : memref<9x16x8xbf16, #tpu.memory_space<vmem>>, vector<1x16x8xbf16>
    %50 = vector.shape_cast %49 : vector<1x16x8xbf16> to vector<16x8xbf16>
    %cst_46 = arith.constant dense<0.000000e+00> : vector<16x288xf32>
    %51 = tpu.matmul %50, %48, %cst_46 {dimension_numbers = #tpu.dot_dimension_numbers<[1], [0], [0], [1], [0, 0, 1, 1], [], []>} : vector<16x8xbf16>, vector<8x288xbf16>, vector<16x288xf32> -> vector<16x288xf32>
    %52 = arith.addf %46, %51 : vector<16x288xf32>
    %c0_47 = arith.constant 0 : index
    %c0_48 = arith.constant 0 : index
    %53 = vector.load %arg3[%c0_47, %c0_48] : memref<1x288xf32, #tpu.memory_space<vmem>>, vector<1x288xf32>
    %54 = vector.broadcast %53 : vector<1x288xf32> to vector<16x288xf32>
    %55 = arith.mulf %52, %54 : vector<16x288xf32>
    %cst_49 = arith.constant dense<0.000000e+00> : vector<16xf32>
    %56 = vector.multi_reduction <add>, %55, %cst_49 [1] : vector<16x288xf32> to vector<16xf32>
    %57 = vector.shape_cast %56 : vector<16xf32> to vector<16x1xf32>
    %cst_50 = arith.constant 1.562500e-02 : f32
    %58 = vector.broadcast %cst_50 : f32 to vector<16x1xf32>
    %59 = arith.mulf %57, %58 : vector<16x1xf32>
    %60 = arith.mulf %55, %52 : vector<16x288xf32>
    %cst_51 = arith.constant dense<0.000000e+00> : vector<16xf32>
    %61 = vector.multi_reduction <add>, %60, %cst_51 [1] : vector<16x288xf32> to vector<16xf32>
    %62 = vector.shape_cast %61 : vector<16xf32> to vector<16x1xf32>
    %cst_52 = arith.constant 1.562500e-02 : f32
    %63 = vector.broadcast %cst_52 : f32 to vector<16x1xf32>
    %64 = arith.mulf %62, %63 : vector<16x1xf32>
    %65 = arith.mulf %59, %59 : vector<16x1xf32>
    %66 = arith.subf %64, %65 : vector<16x1xf32>
    %67 = vector.broadcast %59 : vector<16x1xf32> to vector<16x288xf32>
    %68 = arith.subf %52, %67 : vector<16x288xf32>
    %cst_53 = arith.constant 0.000000e+00 : f32
    %69 = vector.broadcast %cst_53 : f32 to vector<16x1xf32>
    %70 = arith.maximumf %66, %69 : vector<16x1xf32>
    %cst_54 = arith.constant 9.99999974E-6 : f32
    %71 = vector.broadcast %cst_54 : f32 to vector<16x1xf32>
    %72 = arith.addf %70, %71 : vector<16x1xf32>
    %73 = math.rsqrt %72 : vector<16x1xf32>
    %74 = vector.broadcast %73 : vector<16x1xf32> to vector<16x288xf32>
    %75 = arith.mulf %68, %74 : vector<16x288xf32>
    %cst_55 = arith.constant 0.000000e+00 : f32
    %76 = vector.broadcast %cst_55 : f32 to vector<16x288xf32>
    %77 = arith.maximumf %75, %76 : vector<16x288xf32>
    %78 = arith.truncf %77 : vector<16x288xf32> to vector<16x288xbf16>
    %c0_56 = arith.constant 0 : index
    %c0_57 = arith.constant 0 : index
    %c0_58 = arith.constant 0 : index
    %79 = vector.load %arg4[%c0_56, %c0_57, %c0_58] : memref<1x16x288xbf16, #tpu.memory_space<vmem>>, vector<1x16x288xbf16>
    %80 = vector.shape_cast %79 : vector<1x16x288xbf16> to vector<16x288xbf16>
    %81 = vector.shape_cast %78 : vector<16x288xbf16> to vector<1x16x288xbf16>
    tpu.vector_store %arg4[%c0_56, %c0_57, %c0_58], %81 {strides = array<i32>} : memref<1x16x288xbf16, #tpu.memory_space<vmem>>, vector<1x16x288xbf16>,
    return
  }
  func.func @transform_0(%arg0: i32) -> (i32, i32, i32) {
    %c0_i32 = arith.constant 0 : i32
    %c0_i32_0 = arith.constant 0 : i32
    %c0_i32_1 = arith.constant 0 : i32
    %c0_i32_2 = arith.constant 0 : i32
    return %c0_i32, %c0_i32_0, %c0_i32_1 : i32, i32, i32
  }
  func.func @transform_1(%arg0: i32) -> (i32, i32, i32) {
    %c0_i32 = arith.constant 0 : i32
    %c0_i32_0 = arith.constant 0 : i32
    %c0_i32_1 = arith.constant 0 : i32
    return %arg0, %c0_i32, %c0_i32_0 : i32, i32, i32
  }
  func.func @transform_2(%arg0: i32) -> (i32, i32) {
    %c0_i32 = arith.constant 0 : i32
    %c0_i32_0 = arith.constant 0 : i32
    %c0_i32_1 = arith.constant 0 : i32
    return %c0_i32, %c0_i32_0 : i32, i32
  }
  func.func @transform_3(%arg0: i32) -> (i32, i32, i32) {
    %c0_i32 = arith.constant 0 : i32
    %c0_i32_0 = arith.constant 0 : i32
    %c0_i32_1 = arith.constant 0 : i32
    return %arg0, %c0_i32, %c0_i32_0 : i32, i32, i32
  }
}

module attributes {stable_mosaic.version = 11 : i64} {
  func.func @_fused_tap_kernel(%arg0: i32, %arg1: memref<9x32x16xbf16, #tpu.memory_space<vmem>>, %arg2: memref<1x16x128xbf16, #tpu.memory_space<vmem>>, %arg3: memref<1x80xf32, #tpu.memory_space<vmem>>, %arg4: memref<1x32x80xbf16, #tpu.memory_space<vmem>>) attributes {dimension_semantics = [#tpu.dimension_semantics<parallel>], iteration_bounds = array<i64: 2>, scalar_prefetch = 0 : i64, scratch_operands = 0 : i64, tpu.core_type = #tpu.core_type<tc>, window_params = [{pipeline_mode = #tpu.pipeline_mode<synchronous>, transform_indices = @transform_0, window_bounds = array<i64: 9, 32, 16>}, {transform_indices = @transform_1, window_bounds = array<i64: 1, 16, 128>}, {pipeline_mode = #tpu.pipeline_mode<synchronous>, transform_indices = @transform_2, window_bounds = array<i64: 1, 80>}, {transform_indices = @transform_3, window_bounds = array<i64: 1, 32, 80>}]} {
    %c0 = arith.constant 0 : index
    %c0_0 = arith.constant 0 : index
    %c0_1 = arith.constant 0 : index
    %0 = vector.load %arg2[%c0, %c0_0, %c0_1] : memref<1x16x128xbf16, #tpu.memory_space<vmem>>, vector<1x16x80xbf16>
    %1 = vector.shape_cast %0 : vector<1x16x80xbf16> to vector<16x80xbf16>
    %c0_2 = arith.constant 0 : index
    %c0_3 = arith.constant 0 : index
    %c0_4 = arith.constant 0 : index
    %2 = vector.load %arg1[%c0_2, %c0_3, %c0_4] : memref<9x32x16xbf16, #tpu.memory_space<vmem>>, vector<1x32x16xbf16>
    %3 = vector.shape_cast %2 : vector<1x32x16xbf16> to vector<32x16xbf16>
    %cst = arith.constant dense<0.000000e+00> : vector<32x80xf32>
    %4 = tpu.matmul %3, %1, %cst {dimension_numbers = #tpu.dot_dimension_numbers<[1], [0], [0], [1], [0, 0, 1, 1], [], []>} : vector<32x16xbf16>, vector<16x80xbf16>, vector<32x80xf32> -> vector<32x80xf32>
    %c0_5 = arith.constant 0 : index
    %c0_6 = arith.constant 0 : index
    %c1 = arith.constant 1 : index
    %5 = vector.load %arg2[%c0_5, %c0_6, %c1] : memref<1x16x128xbf16, #tpu.memory_space<vmem>>, vector<1x16x80xbf16>
    %6 = vector.shape_cast %5 : vector<1x16x80xbf16> to vector<16x80xbf16>
    %c1_7 = arith.constant 1 : index
    %c0_8 = arith.constant 0 : index
    %c0_9 = arith.constant 0 : index
    %7 = vector.load %arg1[%c1_7, %c0_8, %c0_9] : memref<9x32x16xbf16, #tpu.memory_space<vmem>>, vector<1x32x16xbf16>
    %8 = vector.shape_cast %7 : vector<1x32x16xbf16> to vector<32x16xbf16>
    %cst_10 = arith.constant dense<0.000000e+00> : vector<32x80xf32>
    %9 = tpu.matmul %8, %6, %cst_10 {dimension_numbers = #tpu.dot_dimension_numbers<[1], [0], [0], [1], [0, 0, 1, 1], [], []>} : vector<32x16xbf16>, vector<16x80xbf16>, vector<32x80xf32> -> vector<32x80xf32>
    %10 = arith.addf %4, %9 : vector<32x80xf32>
    %c0_11 = arith.constant 0 : index
    %c0_12 = arith.constant 0 : index
    %c2 = arith.constant 2 : index
    %11 = vector.load %arg2[%c0_11, %c0_12, %c2] : memref<1x16x128xbf16, #tpu.memory_space<vmem>>, vector<1x16x80xbf16>
    %12 = vector.shape_cast %11 : vector<1x16x80xbf16> to vector<16x80xbf16>
    %c2_13 = arith.constant 2 : index
    %c0_14 = arith.constant 0 : index
    %c0_15 = arith.constant 0 : index
    %13 = vector.load %arg1[%c2_13, %c0_14, %c0_15] : memref<9x32x16xbf16, #tpu.memory_space<vmem>>, vector<1x32x16xbf16>
    %14 = vector.shape_cast %13 : vector<1x32x16xbf16> to vector<32x16xbf16>
    %cst_16 = arith.constant dense<0.000000e+00> : vector<32x80xf32>
    %15 = tpu.matmul %14, %12, %cst_16 {dimension_numbers = #tpu.dot_dimension_numbers<[1], [0], [0], [1], [0, 0, 1, 1], [], []>} : vector<32x16xbf16>, vector<16x80xbf16>, vector<32x80xf32> -> vector<32x80xf32>
    %16 = arith.addf %10, %15 : vector<32x80xf32>
    %c0_17 = arith.constant 0 : index
    %c0_18 = arith.constant 0 : index
    %c10 = arith.constant 10 : index
    %17 = vector.load %arg2[%c0_17, %c0_18, %c10] : memref<1x16x128xbf16, #tpu.memory_space<vmem>>, vector<1x16x80xbf16>
    %18 = vector.shape_cast %17 : vector<1x16x80xbf16> to vector<16x80xbf16>
    %c3 = arith.constant 3 : index
    %c0_19 = arith.constant 0 : index
    %c0_20 = arith.constant 0 : index
    %19 = vector.load %arg1[%c3, %c0_19, %c0_20] : memref<9x32x16xbf16, #tpu.memory_space<vmem>>, vector<1x32x16xbf16>
    %20 = vector.shape_cast %19 : vector<1x32x16xbf16> to vector<32x16xbf16>
    %cst_21 = arith.constant dense<0.000000e+00> : vector<32x80xf32>
    %21 = tpu.matmul %20, %18, %cst_21 {dimension_numbers = #tpu.dot_dimension_numbers<[1], [0], [0], [1], [0, 0, 1, 1], [], []>} : vector<32x16xbf16>, vector<16x80xbf16>, vector<32x80xf32> -> vector<32x80xf32>
    %22 = arith.addf %16, %21 : vector<32x80xf32>
    %c0_22 = arith.constant 0 : index
    %c0_23 = arith.constant 0 : index
    %c11 = arith.constant 11 : index
    %23 = vector.load %arg2[%c0_22, %c0_23, %c11] : memref<1x16x128xbf16, #tpu.memory_space<vmem>>, vector<1x16x80xbf16>
    %24 = vector.shape_cast %23 : vector<1x16x80xbf16> to vector<16x80xbf16>
    %c4 = arith.constant 4 : index
    %c0_24 = arith.constant 0 : index
    %c0_25 = arith.constant 0 : index
    %25 = vector.load %arg1[%c4, %c0_24, %c0_25] : memref<9x32x16xbf16, #tpu.memory_space<vmem>>, vector<1x32x16xbf16>
    %26 = vector.shape_cast %25 : vector<1x32x16xbf16> to vector<32x16xbf16>
    %cst_26 = arith.constant dense<0.000000e+00> : vector<32x80xf32>
    %27 = tpu.matmul %26, %24, %cst_26 {dimension_numbers = #tpu.dot_dimension_numbers<[1], [0], [0], [1], [0, 0, 1, 1], [], []>} : vector<32x16xbf16>, vector<16x80xbf16>, vector<32x80xf32> -> vector<32x80xf32>
    %28 = arith.addf %22, %27 : vector<32x80xf32>
    %c0_27 = arith.constant 0 : index
    %c0_28 = arith.constant 0 : index
    %c12 = arith.constant 12 : index
    %29 = vector.load %arg2[%c0_27, %c0_28, %c12] : memref<1x16x128xbf16, #tpu.memory_space<vmem>>, vector<1x16x80xbf16>
    %30 = vector.shape_cast %29 : vector<1x16x80xbf16> to vector<16x80xbf16>
    %c5 = arith.constant 5 : index
    %c0_29 = arith.constant 0 : index
    %c0_30 = arith.constant 0 : index
    %31 = vector.load %arg1[%c5, %c0_29, %c0_30] : memref<9x32x16xbf16, #tpu.memory_space<vmem>>, vector<1x32x16xbf16>
    %32 = vector.shape_cast %31 : vector<1x32x16xbf16> to vector<32x16xbf16>
    %cst_31 = arith.constant dense<0.000000e+00> : vector<32x80xf32>
    %33 = tpu.matmul %32, %30, %cst_31 {dimension_numbers = #tpu.dot_dimension_numbers<[1], [0], [0], [1], [0, 0, 1, 1], [], []>} : vector<32x16xbf16>, vector<16x80xbf16>, vector<32x80xf32> -> vector<32x80xf32>
    %34 = arith.addf %28, %33 : vector<32x80xf32>
    %c0_32 = arith.constant 0 : index
    %c0_33 = arith.constant 0 : index
    %c20 = arith.constant 20 : index
    %35 = vector.load %arg2[%c0_32, %c0_33, %c20] : memref<1x16x128xbf16, #tpu.memory_space<vmem>>, vector<1x16x80xbf16>
    %36 = vector.shape_cast %35 : vector<1x16x80xbf16> to vector<16x80xbf16>
    %c6 = arith.constant 6 : index
    %c0_34 = arith.constant 0 : index
    %c0_35 = arith.constant 0 : index
    %37 = vector.load %arg1[%c6, %c0_34, %c0_35] : memref<9x32x16xbf16, #tpu.memory_space<vmem>>, vector<1x32x16xbf16>
    %38 = vector.shape_cast %37 : vector<1x32x16xbf16> to vector<32x16xbf16>
    %cst_36 = arith.constant dense<0.000000e+00> : vector<32x80xf32>
    %39 = tpu.matmul %38, %36, %cst_36 {dimension_numbers = #tpu.dot_dimension_numbers<[1], [0], [0], [1], [0, 0, 1, 1], [], []>} : vector<32x16xbf16>, vector<16x80xbf16>, vector<32x80xf32> -> vector<32x80xf32>
    %40 = arith.addf %34, %39 : vector<32x80xf32>
    %c0_37 = arith.constant 0 : index
    %c0_38 = arith.constant 0 : index
    %c21 = arith.constant 21 : index
    %41 = vector.load %arg2[%c0_37, %c0_38, %c21] : memref<1x16x128xbf16, #tpu.memory_space<vmem>>, vector<1x16x80xbf16>
    %42 = vector.shape_cast %41 : vector<1x16x80xbf16> to vector<16x80xbf16>
    %c7 = arith.constant 7 : index
    %c0_39 = arith.constant 0 : index
    %c0_40 = arith.constant 0 : index
    %43 = vector.load %arg1[%c7, %c0_39, %c0_40] : memref<9x32x16xbf16, #tpu.memory_space<vmem>>, vector<1x32x16xbf16>
    %44 = vector.shape_cast %43 : vector<1x32x16xbf16> to vector<32x16xbf16>
    %cst_41 = arith.constant dense<0.000000e+00> : vector<32x80xf32>
    %45 = tpu.matmul %44, %42, %cst_41 {dimension_numbers = #tpu.dot_dimension_numbers<[1], [0], [0], [1], [0, 0, 1, 1], [], []>} : vector<32x16xbf16>, vector<16x80xbf16>, vector<32x80xf32> -> vector<32x80xf32>
    %46 = arith.addf %40, %45 : vector<32x80xf32>
    %c0_42 = arith.constant 0 : index
    %c0_43 = arith.constant 0 : index
    %c22 = arith.constant 22 : index
    %47 = vector.load %arg2[%c0_42, %c0_43, %c22] : memref<1x16x128xbf16, #tpu.memory_space<vmem>>, vector<1x16x80xbf16>
    %48 = vector.shape_cast %47 : vector<1x16x80xbf16> to vector<16x80xbf16>
    %c8 = arith.constant 8 : index
    %c0_44 = arith.constant 0 : index
    %c0_45 = arith.constant 0 : index
    %49 = vector.load %arg1[%c8, %c0_44, %c0_45] : memref<9x32x16xbf16, #tpu.memory_space<vmem>>, vector<1x32x16xbf16>
    %50 = vector.shape_cast %49 : vector<1x32x16xbf16> to vector<32x16xbf16>
    %cst_46 = arith.constant dense<0.000000e+00> : vector<32x80xf32>
    %51 = tpu.matmul %50, %48, %cst_46 {dimension_numbers = #tpu.dot_dimension_numbers<[1], [0], [0], [1], [0, 0, 1, 1], [], []>} : vector<32x16xbf16>, vector<16x80xbf16>, vector<32x80xf32> -> vector<32x80xf32>
    %52 = arith.addf %46, %51 : vector<32x80xf32>
    %c0_47 = arith.constant 0 : index
    %c0_48 = arith.constant 0 : index
    %53 = vector.load %arg3[%c0_47, %c0_48] : memref<1x80xf32, #tpu.memory_space<vmem>>, vector<1x80xf32>
    %54 = vector.broadcast %53 : vector<1x80xf32> to vector<32x80xf32>
    %55 = arith.mulf %52, %54 : vector<32x80xf32>
    %cst_49 = arith.constant dense<0.000000e+00> : vector<32xf32>
    %56 = vector.multi_reduction <add>, %55, %cst_49 [1] : vector<32x80xf32> to vector<32xf32>
    %57 = vector.shape_cast %56 : vector<32xf32> to vector<32x1xf32>
    %cst_50 = arith.constant 6.250000e-02 : f32
    %58 = vector.broadcast %cst_50 : f32 to vector<32x1xf32>
    %59 = arith.mulf %57, %58 : vector<32x1xf32>
    %60 = arith.mulf %55, %52 : vector<32x80xf32>
    %cst_51 = arith.constant dense<0.000000e+00> : vector<32xf32>
    %61 = vector.multi_reduction <add>, %60, %cst_51 [1] : vector<32x80xf32> to vector<32xf32>
    %62 = vector.shape_cast %61 : vector<32xf32> to vector<32x1xf32>
    %cst_52 = arith.constant 6.250000e-02 : f32
    %63 = vector.broadcast %cst_52 : f32 to vector<32x1xf32>
    %64 = arith.mulf %62, %63 : vector<32x1xf32>
    %65 = arith.mulf %59, %59 : vector<32x1xf32>
    %66 = arith.subf %64, %65 : vector<32x1xf32>
    %67 = vector.broadcast %59 : vector<32x1xf32> to vector<32x80xf32>
    %68 = arith.subf %52, %67 : vector<32x80xf32>
    %cst_53 = arith.constant 0.000000e+00 : f32
    %69 = vector.broadcast %cst_53 : f32 to vector<32x1xf32>
    %70 = arith.maximumf %66, %69 : vector<32x1xf32>
    %cst_54 = arith.constant 9.99999974E-6 : f32
    %71 = vector.broadcast %cst_54 : f32 to vector<32x1xf32>
    %72 = arith.addf %70, %71 : vector<32x1xf32>
    %73 = math.rsqrt %72 : vector<32x1xf32>
    %74 = vector.broadcast %73 : vector<32x1xf32> to vector<32x80xf32>
    %75 = arith.mulf %68, %74 : vector<32x80xf32>
    %cst_55 = arith.constant 0.000000e+00 : f32
    %76 = vector.broadcast %cst_55 : f32 to vector<32x80xf32>
    %77 = arith.maximumf %75, %76 : vector<32x80xf32>
    %78 = arith.truncf %77 : vector<32x80xf32> to vector<32x80xbf16>
    %c0_56 = arith.constant 0 : index
    %c0_57 = arith.constant 0 : index
    %c0_58 = arith.constant 0 : index
    %79 = vector.load %arg4[%c0_56, %c0_57, %c0_58] : memref<1x32x80xbf16, #tpu.memory_space<vmem>>, vector<1x32x80xbf16>
    %80 = vector.shape_cast %79 : vector<1x32x80xbf16> to vector<32x80xbf16>
    %81 = vector.shape_cast %78 : vector<32x80xbf16> to vector<1x32x80xbf16>
    tpu.vector_store %arg4[%c0_56, %c0_57, %c0_58], %81 {strides = array<i32>} : memref<1x32x80xbf16, #tpu.memory_space<vmem>>, vector<1x32x80xbf16>,
    return
  }
  func.func @transform_0(%arg0: i32) -> (i32, i32, i32) {
    %c0_i32 = arith.constant 0 : i32
    %c0_i32_0 = arith.constant 0 : i32
    %c0_i32_1 = arith.constant 0 : i32
    %c0_i32_2 = arith.constant 0 : i32
    return %c0_i32, %c0_i32_0, %c0_i32_1 : i32, i32, i32
  }
  func.func @transform_1(%arg0: i32) -> (i32, i32, i32) {
    %c0_i32 = arith.constant 0 : i32
    %c0_i32_0 = arith.constant 0 : i32
    %c0_i32_1 = arith.constant 0 : i32
    return %arg0, %c0_i32, %c0_i32_0 : i32, i32, i32
  }
  func.func @transform_2(%arg0: i32) -> (i32, i32) {
    %c0_i32 = arith.constant 0 : i32
    %c0_i32_0 = arith.constant 0 : i32
    %c0_i32_1 = arith.constant 0 : i32
    return %c0_i32, %c0_i32_0 : i32, i32
  }
  func.func @transform_3(%arg0: i32) -> (i32, i32, i32) {
    %c0_i32 = arith.constant 0 : i32
    %c0_i32_0 = arith.constant 0 : i32
    %c0_i32_1 = arith.constant 0 : i32
    return %arg0, %c0_i32, %c0_i32_0 : i32, i32, i32
  }
}

module attributes {stable_mosaic.version = 11 : i64} {
  func.func @_fused_tap_kernel(%arg0: i32, %arg1: memref<9x32x32xbf16, #tpu.memory_space<vmem>>, %arg2: memref<1x32x128xbf16, #tpu.memory_space<vmem>>, %arg3: memref<1x24xf32, #tpu.memory_space<vmem>>, %arg4: memref<1x32x24xbf16, #tpu.memory_space<vmem>>) attributes {dimension_semantics = [#tpu.dimension_semantics<parallel>], iteration_bounds = array<i64: 2>, scalar_prefetch = 0 : i64, scratch_operands = 0 : i64, tpu.core_type = #tpu.core_type<tc>, window_params = [{pipeline_mode = #tpu.pipeline_mode<synchronous>, transform_indices = @transform_0, window_bounds = array<i64: 9, 32, 32>}, {transform_indices = @transform_1, window_bounds = array<i64: 1, 32, 128>}, {pipeline_mode = #tpu.pipeline_mode<synchronous>, transform_indices = @transform_2, window_bounds = array<i64: 1, 24>}, {transform_indices = @transform_3, window_bounds = array<i64: 1, 32, 24>}]} {
    %c0 = arith.constant 0 : index
    %c0_0 = arith.constant 0 : index
    %c0_1 = arith.constant 0 : index
    %0 = vector.load %arg2[%c0, %c0_0, %c0_1] : memref<1x32x128xbf16, #tpu.memory_space<vmem>>, vector<1x32x24xbf16>
    %1 = vector.shape_cast %0 : vector<1x32x24xbf16> to vector<32x24xbf16>
    %c0_2 = arith.constant 0 : index
    %c0_3 = arith.constant 0 : index
    %c0_4 = arith.constant 0 : index
    %2 = vector.load %arg1[%c0_2, %c0_3, %c0_4] : memref<9x32x32xbf16, #tpu.memory_space<vmem>>, vector<1x32x32xbf16>
    %3 = vector.shape_cast %2 : vector<1x32x32xbf16> to vector<32x32xbf16>
    %cst = arith.constant dense<0.000000e+00> : vector<32x24xf32>
    %4 = tpu.matmul %3, %1, %cst {dimension_numbers = #tpu.dot_dimension_numbers<[1], [0], [0], [1], [0, 0, 1, 1], [], []>} : vector<32x32xbf16>, vector<32x24xbf16>, vector<32x24xf32> -> vector<32x24xf32>
    %c0_5 = arith.constant 0 : index
    %c0_6 = arith.constant 0 : index
    %c1 = arith.constant 1 : index
    %5 = vector.load %arg2[%c0_5, %c0_6, %c1] : memref<1x32x128xbf16, #tpu.memory_space<vmem>>, vector<1x32x24xbf16>
    %6 = vector.shape_cast %5 : vector<1x32x24xbf16> to vector<32x24xbf16>
    %c1_7 = arith.constant 1 : index
    %c0_8 = arith.constant 0 : index
    %c0_9 = arith.constant 0 : index
    %7 = vector.load %arg1[%c1_7, %c0_8, %c0_9] : memref<9x32x32xbf16, #tpu.memory_space<vmem>>, vector<1x32x32xbf16>
    %8 = vector.shape_cast %7 : vector<1x32x32xbf16> to vector<32x32xbf16>
    %cst_10 = arith.constant dense<0.000000e+00> : vector<32x24xf32>
    %9 = tpu.matmul %8, %6, %cst_10 {dimension_numbers = #tpu.dot_dimension_numbers<[1], [0], [0], [1], [0, 0, 1, 1], [], []>} : vector<32x32xbf16>, vector<32x24xbf16>, vector<32x24xf32> -> vector<32x24xf32>
    %10 = arith.addf %4, %9 : vector<32x24xf32>
    %c0_11 = arith.constant 0 : index
    %c0_12 = arith.constant 0 : index
    %c2 = arith.constant 2 : index
    %11 = vector.load %arg2[%c0_11, %c0_12, %c2] : memref<1x32x128xbf16, #tpu.memory_space<vmem>>, vector<1x32x24xbf16>
    %12 = vector.shape_cast %11 : vector<1x32x24xbf16> to vector<32x24xbf16>
    %c2_13 = arith.constant 2 : index
    %c0_14 = arith.constant 0 : index
    %c0_15 = arith.constant 0 : index
    %13 = vector.load %arg1[%c2_13, %c0_14, %c0_15] : memref<9x32x32xbf16, #tpu.memory_space<vmem>>, vector<1x32x32xbf16>
    %14 = vector.shape_cast %13 : vector<1x32x32xbf16> to vector<32x32xbf16>
    %cst_16 = arith.constant dense<0.000000e+00> : vector<32x24xf32>
    %15 = tpu.matmul %14, %12, %cst_16 {dimension_numbers = #tpu.dot_dimension_numbers<[1], [0], [0], [1], [0, 0, 1, 1], [], []>} : vector<32x32xbf16>, vector<32x24xbf16>, vector<32x24xf32> -> vector<32x24xf32>
    %16 = arith.addf %10, %15 : vector<32x24xf32>
    %c0_17 = arith.constant 0 : index
    %c0_18 = arith.constant 0 : index
    %c6 = arith.constant 6 : index
    %17 = vector.load %arg2[%c0_17, %c0_18, %c6] : memref<1x32x128xbf16, #tpu.memory_space<vmem>>, vector<1x32x24xbf16>
    %18 = vector.shape_cast %17 : vector<1x32x24xbf16> to vector<32x24xbf16>
    %c3 = arith.constant 3 : index
    %c0_19 = arith.constant 0 : index
    %c0_20 = arith.constant 0 : index
    %19 = vector.load %arg1[%c3, %c0_19, %c0_20] : memref<9x32x32xbf16, #tpu.memory_space<vmem>>, vector<1x32x32xbf16>
    %20 = vector.shape_cast %19 : vector<1x32x32xbf16> to vector<32x32xbf16>
    %cst_21 = arith.constant dense<0.000000e+00> : vector<32x24xf32>
    %21 = tpu.matmul %20, %18, %cst_21 {dimension_numbers = #tpu.dot_dimension_numbers<[1], [0], [0], [1], [0, 0, 1, 1], [], []>} : vector<32x32xbf16>, vector<32x24xbf16>, vector<32x24xf32> -> vector<32x24xf32>
    %22 = arith.addf %16, %21 : vector<32x24xf32>
    %c0_22 = arith.constant 0 : index
    %c0_23 = arith.constant 0 : index
    %c7 = arith.constant 7 : index
    %23 = vector.load %arg2[%c0_22, %c0_23, %c7] : memref<1x32x128xbf16, #tpu.memory_space<vmem>>, vector<1x32x24xbf16>
    %24 = vector.shape_cast %23 : vector<1x32x24xbf16> to vector<32x24xbf16>
    %c4 = arith.constant 4 : index
    %c0_24 = arith.constant 0 : index
    %c0_25 = arith.constant 0 : index
    %25 = vector.load %arg1[%c4, %c0_24, %c0_25] : memref<9x32x32xbf16, #tpu.memory_space<vmem>>, vector<1x32x32xbf16>
    %26 = vector.shape_cast %25 : vector<1x32x32xbf16> to vector<32x32xbf16>
    %cst_26 = arith.constant dense<0.000000e+00> : vector<32x24xf32>
    %27 = tpu.matmul %26, %24, %cst_26 {dimension_numbers = #tpu.dot_dimension_numbers<[1], [0], [0], [1], [0, 0, 1, 1], [], []>} : vector<32x32xbf16>, vector<32x24xbf16>, vector<32x24xf32> -> vector<32x24xf32>
    %28 = arith.addf %22, %27 : vector<32x24xf32>
    %c0_27 = arith.constant 0 : index
    %c0_28 = arith.constant 0 : index
    %c8 = arith.constant 8 : index
    %29 = vector.load %arg2[%c0_27, %c0_28, %c8] : memref<1x32x128xbf16, #tpu.memory_space<vmem>>, vector<1x32x24xbf16>
    %30 = vector.shape_cast %29 : vector<1x32x24xbf16> to vector<32x24xbf16>
    %c5 = arith.constant 5 : index
    %c0_29 = arith.constant 0 : index
    %c0_30 = arith.constant 0 : index
    %31 = vector.load %arg1[%c5, %c0_29, %c0_30] : memref<9x32x32xbf16, #tpu.memory_space<vmem>>, vector<1x32x32xbf16>
    %32 = vector.shape_cast %31 : vector<1x32x32xbf16> to vector<32x32xbf16>
    %cst_31 = arith.constant dense<0.000000e+00> : vector<32x24xf32>
    %33 = tpu.matmul %32, %30, %cst_31 {dimension_numbers = #tpu.dot_dimension_numbers<[1], [0], [0], [1], [0, 0, 1, 1], [], []>} : vector<32x32xbf16>, vector<32x24xbf16>, vector<32x24xf32> -> vector<32x24xf32>
    %34 = arith.addf %28, %33 : vector<32x24xf32>
    %c0_32 = arith.constant 0 : index
    %c0_33 = arith.constant 0 : index
    %c12 = arith.constant 12 : index
    %35 = vector.load %arg2[%c0_32, %c0_33, %c12] : memref<1x32x128xbf16, #tpu.memory_space<vmem>>, vector<1x32x24xbf16>
    %36 = vector.shape_cast %35 : vector<1x32x24xbf16> to vector<32x24xbf16>
    %c6_34 = arith.constant 6 : index
    %c0_35 = arith.constant 0 : index
    %c0_36 = arith.constant 0 : index
    %37 = vector.load %arg1[%c6_34, %c0_35, %c0_36] : memref<9x32x32xbf16, #tpu.memory_space<vmem>>, vector<1x32x32xbf16>
    %38 = vector.shape_cast %37 : vector<1x32x32xbf16> to vector<32x32xbf16>
    %cst_37 = arith.constant dense<0.000000e+00> : vector<32x24xf32>
    %39 = tpu.matmul %38, %36, %cst_37 {dimension_numbers = #tpu.dot_dimension_numbers<[1], [0], [0], [1], [0, 0, 1, 1], [], []>} : vector<32x32xbf16>, vector<32x24xbf16>, vector<32x24xf32> -> vector<32x24xf32>
    %40 = arith.addf %34, %39 : vector<32x24xf32>
    %c0_38 = arith.constant 0 : index
    %c0_39 = arith.constant 0 : index
    %c13 = arith.constant 13 : index
    %41 = vector.load %arg2[%c0_38, %c0_39, %c13] : memref<1x32x128xbf16, #tpu.memory_space<vmem>>, vector<1x32x24xbf16>
    %42 = vector.shape_cast %41 : vector<1x32x24xbf16> to vector<32x24xbf16>
    %c7_40 = arith.constant 7 : index
    %c0_41 = arith.constant 0 : index
    %c0_42 = arith.constant 0 : index
    %43 = vector.load %arg1[%c7_40, %c0_41, %c0_42] : memref<9x32x32xbf16, #tpu.memory_space<vmem>>, vector<1x32x32xbf16>
    %44 = vector.shape_cast %43 : vector<1x32x32xbf16> to vector<32x32xbf16>
    %cst_43 = arith.constant dense<0.000000e+00> : vector<32x24xf32>
    %45 = tpu.matmul %44, %42, %cst_43 {dimension_numbers = #tpu.dot_dimension_numbers<[1], [0], [0], [1], [0, 0, 1, 1], [], []>} : vector<32x32xbf16>, vector<32x24xbf16>, vector<32x24xf32> -> vector<32x24xf32>
    %46 = arith.addf %40, %45 : vector<32x24xf32>
    %c0_44 = arith.constant 0 : index
    %c0_45 = arith.constant 0 : index
    %c14 = arith.constant 14 : index
    %47 = vector.load %arg2[%c0_44, %c0_45, %c14] : memref<1x32x128xbf16, #tpu.memory_space<vmem>>, vector<1x32x24xbf16>
    %48 = vector.shape_cast %47 : vector<1x32x24xbf16> to vector<32x24xbf16>
    %c8_46 = arith.constant 8 : index
    %c0_47 = arith.constant 0 : index
    %c0_48 = arith.constant 0 : index
    %49 = vector.load %arg1[%c8_46, %c0_47, %c0_48] : memref<9x32x32xbf16, #tpu.memory_space<vmem>>, vector<1x32x32xbf16>
    %50 = vector.shape_cast %49 : vector<1x32x32xbf16> to vector<32x32xbf16>
    %cst_49 = arith.constant dense<0.000000e+00> : vector<32x24xf32>
    %51 = tpu.matmul %50, %48, %cst_49 {dimension_numbers = #tpu.dot_dimension_numbers<[1], [0], [0], [1], [0, 0, 1, 1], [], []>} : vector<32x32xbf16>, vector<32x24xbf16>, vector<32x24xf32> -> vector<32x24xf32>
    %52 = arith.addf %46, %51 : vector<32x24xf32>
    %c0_50 = arith.constant 0 : index
    %c0_51 = arith.constant 0 : index
    %53 = vector.load %arg3[%c0_50, %c0_51] : memref<1x24xf32, #tpu.memory_space<vmem>>, vector<1x24xf32>
    %54 = vector.broadcast %53 : vector<1x24xf32> to vector<32x24xf32>
    %55 = arith.mulf %52, %54 : vector<32x24xf32>
    %cst_52 = arith.constant dense<0.000000e+00> : vector<32xf32>
    %56 = vector.multi_reduction <add>, %55, %cst_52 [1] : vector<32x24xf32> to vector<32xf32>
    %57 = vector.shape_cast %56 : vector<32xf32> to vector<32x1xf32>
    %cst_53 = arith.constant 6.250000e-02 : f32
    %58 = vector.broadcast %cst_53 : f32 to vector<32x1xf32>
    %59 = arith.mulf %57, %58 : vector<32x1xf32>
    %60 = arith.mulf %55, %52 : vector<32x24xf32>
    %cst_54 = arith.constant dense<0.000000e+00> : vector<32xf32>
    %61 = vector.multi_reduction <add>, %60, %cst_54 [1] : vector<32x24xf32> to vector<32xf32>
    %62 = vector.shape_cast %61 : vector<32xf32> to vector<32x1xf32>
    %cst_55 = arith.constant 6.250000e-02 : f32
    %63 = vector.broadcast %cst_55 : f32 to vector<32x1xf32>
    %64 = arith.mulf %62, %63 : vector<32x1xf32>
    %65 = arith.mulf %59, %59 : vector<32x1xf32>
    %66 = arith.subf %64, %65 : vector<32x1xf32>
    %67 = vector.broadcast %59 : vector<32x1xf32> to vector<32x24xf32>
    %68 = arith.subf %52, %67 : vector<32x24xf32>
    %cst_56 = arith.constant 0.000000e+00 : f32
    %69 = vector.broadcast %cst_56 : f32 to vector<32x1xf32>
    %70 = arith.maximumf %66, %69 : vector<32x1xf32>
    %cst_57 = arith.constant 9.99999974E-6 : f32
    %71 = vector.broadcast %cst_57 : f32 to vector<32x1xf32>
    %72 = arith.addf %70, %71 : vector<32x1xf32>
    %73 = math.rsqrt %72 : vector<32x1xf32>
    %74 = vector.broadcast %73 : vector<32x1xf32> to vector<32x24xf32>
    %75 = arith.mulf %68, %74 : vector<32x24xf32>
    %cst_58 = arith.constant 0.000000e+00 : f32
    %76 = vector.broadcast %cst_58 : f32 to vector<32x24xf32>
    %77 = arith.maximumf %75, %76 : vector<32x24xf32>
    %78 = arith.truncf %77 : vector<32x24xf32> to vector<32x24xbf16>
    %c0_59 = arith.constant 0 : index
    %c0_60 = arith.constant 0 : index
    %c0_61 = arith.constant 0 : index
    %79 = vector.load %arg4[%c0_59, %c0_60, %c0_61] : memref<1x32x24xbf16, #tpu.memory_space<vmem>>, vector<1x32x24xbf16>
    %80 = vector.shape_cast %79 : vector<1x32x24xbf16> to vector<32x24xbf16>
    %81 = vector.shape_cast %78 : vector<32x24xbf16> to vector<1x32x24xbf16>
    tpu.vector_store %arg4[%c0_59, %c0_60, %c0_61], %81 {strides = array<i32>} : memref<1x32x24xbf16, #tpu.memory_space<vmem>>, vector<1x32x24xbf16>,
    return
  }
  func.func @transform_0(%arg0: i32) -> (i32, i32, i32) {
    %c0_i32 = arith.constant 0 : i32
    %c0_i32_0 = arith.constant 0 : i32
    %c0_i32_1 = arith.constant 0 : i32
    %c0_i32_2 = arith.constant 0 : i32
    return %c0_i32, %c0_i32_0, %c0_i32_1 : i32, i32, i32
  }
  func.func @transform_1(%arg0: i32) -> (i32, i32, i32) {
    %c0_i32 = arith.constant 0 : i32
    %c0_i32_0 = arith.constant 0 : i32
    %c0_i32_1 = arith.constant 0 : i32
    return %arg0, %c0_i32, %c0_i32_0 : i32, i32, i32
  }
  func.func @transform_2(%arg0: i32) -> (i32, i32) {
    %c0_i32 = arith.constant 0 : i32
    %c0_i32_0 = arith.constant 0 : i32
    %c0_i32_1 = arith.constant 0 : i32
    return %c0_i32, %c0_i32_0 : i32, i32
  }
  func.func @transform_3(%arg0: i32) -> (i32, i32, i32) {
    %c0_i32 = arith.constant 0 : i32
    %c0_i32_0 = arith.constant 0 : i32
    %c0_i32_1 = arith.constant 0 : i32
    return %arg0, %c0_i32, %c0_i32_0 : i32, i32, i32
  }
}

module attributes {stable_mosaic.version = 11 : i64} {
  func.func @_fused_tap_kernel(%arg0: i32, %arg1: memref<9x32x32xbf16, #tpu.memory_space<vmem>>, %arg2: memref<1x32x128xbf16, #tpu.memory_space<vmem>>, %arg3: memref<1x24xf32, #tpu.memory_space<vmem>>, %arg4: memref<1x32x24xbf16, #tpu.memory_space<vmem>>, %arg5: memref<1x32x24xbf16, #tpu.memory_space<vmem>>) attributes {dimension_semantics = [#tpu.dimension_semantics<parallel>], iteration_bounds = array<i64: 2>, scalar_prefetch = 0 : i64, scratch_operands = 0 : i64, tpu.core_type = #tpu.core_type<tc>, window_params = [{pipeline_mode = #tpu.pipeline_mode<synchronous>, transform_indices = @transform_0, window_bounds = array<i64: 9, 32, 32>}, {transform_indices = @transform_1, window_bounds = array<i64: 1, 32, 128>}, {pipeline_mode = #tpu.pipeline_mode<synchronous>, transform_indices = @transform_2, window_bounds = array<i64: 1, 24>}, {transform_indices = @transform_3, window_bounds = array<i64: 1, 32, 24>}, {transform_indices = @transform_4, window_bounds = array<i64: 1, 32, 24>}]} {
    %c0 = arith.constant 0 : index
    %c0_0 = arith.constant 0 : index
    %c0_1 = arith.constant 0 : index
    %0 = vector.load %arg2[%c0, %c0_0, %c0_1] : memref<1x32x128xbf16, #tpu.memory_space<vmem>>, vector<1x32x24xbf16>
    %1 = vector.shape_cast %0 : vector<1x32x24xbf16> to vector<32x24xbf16>
    %c0_2 = arith.constant 0 : index
    %c0_3 = arith.constant 0 : index
    %c0_4 = arith.constant 0 : index
    %2 = vector.load %arg1[%c0_2, %c0_3, %c0_4] : memref<9x32x32xbf16, #tpu.memory_space<vmem>>, vector<1x32x32xbf16>
    %3 = vector.shape_cast %2 : vector<1x32x32xbf16> to vector<32x32xbf16>
    %cst = arith.constant dense<0.000000e+00> : vector<32x24xf32>
    %4 = tpu.matmul %3, %1, %cst {dimension_numbers = #tpu.dot_dimension_numbers<[1], [0], [0], [1], [0, 0, 1, 1], [], []>} : vector<32x32xbf16>, vector<32x24xbf16>, vector<32x24xf32> -> vector<32x24xf32>
    %c0_5 = arith.constant 0 : index
    %c0_6 = arith.constant 0 : index
    %c1 = arith.constant 1 : index
    %5 = vector.load %arg2[%c0_5, %c0_6, %c1] : memref<1x32x128xbf16, #tpu.memory_space<vmem>>, vector<1x32x24xbf16>
    %6 = vector.shape_cast %5 : vector<1x32x24xbf16> to vector<32x24xbf16>
    %c1_7 = arith.constant 1 : index
    %c0_8 = arith.constant 0 : index
    %c0_9 = arith.constant 0 : index
    %7 = vector.load %arg1[%c1_7, %c0_8, %c0_9] : memref<9x32x32xbf16, #tpu.memory_space<vmem>>, vector<1x32x32xbf16>
    %8 = vector.shape_cast %7 : vector<1x32x32xbf16> to vector<32x32xbf16>
    %cst_10 = arith.constant dense<0.000000e+00> : vector<32x24xf32>
    %9 = tpu.matmul %8, %6, %cst_10 {dimension_numbers = #tpu.dot_dimension_numbers<[1], [0], [0], [1], [0, 0, 1, 1], [], []>} : vector<32x32xbf16>, vector<32x24xbf16>, vector<32x24xf32> -> vector<32x24xf32>
    %10 = arith.addf %4, %9 : vector<32x24xf32>
    %c0_11 = arith.constant 0 : index
    %c0_12 = arith.constant 0 : index
    %c2 = arith.constant 2 : index
    %11 = vector.load %arg2[%c0_11, %c0_12, %c2] : memref<1x32x128xbf16, #tpu.memory_space<vmem>>, vector<1x32x24xbf16>
    %12 = vector.shape_cast %11 : vector<1x32x24xbf16> to vector<32x24xbf16>
    %c2_13 = arith.constant 2 : index
    %c0_14 = arith.constant 0 : index
    %c0_15 = arith.constant 0 : index
    %13 = vector.load %arg1[%c2_13, %c0_14, %c0_15] : memref<9x32x32xbf16, #tpu.memory_space<vmem>>, vector<1x32x32xbf16>
    %14 = vector.shape_cast %13 : vector<1x32x32xbf16> to vector<32x32xbf16>
    %cst_16 = arith.constant dense<0.000000e+00> : vector<32x24xf32>
    %15 = tpu.matmul %14, %12, %cst_16 {dimension_numbers = #tpu.dot_dimension_numbers<[1], [0], [0], [1], [0, 0, 1, 1], [], []>} : vector<32x32xbf16>, vector<32x24xbf16>, vector<32x24xf32> -> vector<32x24xf32>
    %16 = arith.addf %10, %15 : vector<32x24xf32>
    %c0_17 = arith.constant 0 : index
    %c0_18 = arith.constant 0 : index
    %c6 = arith.constant 6 : index
    %17 = vector.load %arg2[%c0_17, %c0_18, %c6] : memref<1x32x128xbf16, #tpu.memory_space<vmem>>, vector<1x32x24xbf16>
    %18 = vector.shape_cast %17 : vector<1x32x24xbf16> to vector<32x24xbf16>
    %c3 = arith.constant 3 : index
    %c0_19 = arith.constant 0 : index
    %c0_20 = arith.constant 0 : index
    %19 = vector.load %arg1[%c3, %c0_19, %c0_20] : memref<9x32x32xbf16, #tpu.memory_space<vmem>>, vector<1x32x32xbf16>
    %20 = vector.shape_cast %19 : vector<1x32x32xbf16> to vector<32x32xbf16>
    %cst_21 = arith.constant dense<0.000000e+00> : vector<32x24xf32>
    %21 = tpu.matmul %20, %18, %cst_21 {dimension_numbers = #tpu.dot_dimension_numbers<[1], [0], [0], [1], [0, 0, 1, 1], [], []>} : vector<32x32xbf16>, vector<32x24xbf16>, vector<32x24xf32> -> vector<32x24xf32>
    %22 = arith.addf %16, %21 : vector<32x24xf32>
    %c0_22 = arith.constant 0 : index
    %c0_23 = arith.constant 0 : index
    %c7 = arith.constant 7 : index
    %23 = vector.load %arg2[%c0_22, %c0_23, %c7] : memref<1x32x128xbf16, #tpu.memory_space<vmem>>, vector<1x32x24xbf16>
    %24 = vector.shape_cast %23 : vector<1x32x24xbf16> to vector<32x24xbf16>
    %c4 = arith.constant 4 : index
    %c0_24 = arith.constant 0 : index
    %c0_25 = arith.constant 0 : index
    %25 = vector.load %arg1[%c4, %c0_24, %c0_25] : memref<9x32x32xbf16, #tpu.memory_space<vmem>>, vector<1x32x32xbf16>
    %26 = vector.shape_cast %25 : vector<1x32x32xbf16> to vector<32x32xbf16>
    %cst_26 = arith.constant dense<0.000000e+00> : vector<32x24xf32>
    %27 = tpu.matmul %26, %24, %cst_26 {dimension_numbers = #tpu.dot_dimension_numbers<[1], [0], [0], [1], [0, 0, 1, 1], [], []>} : vector<32x32xbf16>, vector<32x24xbf16>, vector<32x24xf32> -> vector<32x24xf32>
    %28 = arith.addf %22, %27 : vector<32x24xf32>
    %c0_27 = arith.constant 0 : index
    %c0_28 = arith.constant 0 : index
    %c8 = arith.constant 8 : index
    %29 = vector.load %arg2[%c0_27, %c0_28, %c8] : memref<1x32x128xbf16, #tpu.memory_space<vmem>>, vector<1x32x24xbf16>
    %30 = vector.shape_cast %29 : vector<1x32x24xbf16> to vector<32x24xbf16>
    %c5 = arith.constant 5 : index
    %c0_29 = arith.constant 0 : index
    %c0_30 = arith.constant 0 : index
    %31 = vector.load %arg1[%c5, %c0_29, %c0_30] : memref<9x32x32xbf16, #tpu.memory_space<vmem>>, vector<1x32x32xbf16>
    %32 = vector.shape_cast %31 : vector<1x32x32xbf16> to vector<32x32xbf16>
    %cst_31 = arith.constant dense<0.000000e+00> : vector<32x24xf32>
    %33 = tpu.matmul %32, %30, %cst_31 {dimension_numbers = #tpu.dot_dimension_numbers<[1], [0], [0], [1], [0, 0, 1, 1], [], []>} : vector<32x32xbf16>, vector<32x24xbf16>, vector<32x24xf32> -> vector<32x24xf32>
    %34 = arith.addf %28, %33 : vector<32x24xf32>
    %c0_32 = arith.constant 0 : index
    %c0_33 = arith.constant 0 : index
    %c12 = arith.constant 12 : index
    %35 = vector.load %arg2[%c0_32, %c0_33, %c12] : memref<1x32x128xbf16, #tpu.memory_space<vmem>>, vector<1x32x24xbf16>
    %36 = vector.shape_cast %35 : vector<1x32x24xbf16> to vector<32x24xbf16>
    %c6_34 = arith.constant 6 : index
    %c0_35 = arith.constant 0 : index
    %c0_36 = arith.constant 0 : index
    %37 = vector.load %arg1[%c6_34, %c0_35, %c0_36] : memref<9x32x32xbf16, #tpu.memory_space<vmem>>, vector<1x32x32xbf16>
    %38 = vector.shape_cast %37 : vector<1x32x32xbf16> to vector<32x32xbf16>
    %cst_37 = arith.constant dense<0.000000e+00> : vector<32x24xf32>
    %39 = tpu.matmul %38, %36, %cst_37 {dimension_numbers = #tpu.dot_dimension_numbers<[1], [0], [0], [1], [0, 0, 1, 1], [], []>} : vector<32x32xbf16>, vector<32x24xbf16>, vector<32x24xf32> -> vector<32x24xf32>
    %40 = arith.addf %34, %39 : vector<32x24xf32>
    %c0_38 = arith.constant 0 : index
    %c0_39 = arith.constant 0 : index
    %c13 = arith.constant 13 : index
    %41 = vector.load %arg2[%c0_38, %c0_39, %c13] : memref<1x32x128xbf16, #tpu.memory_space<vmem>>, vector<1x32x24xbf16>
    %42 = vector.shape_cast %41 : vector<1x32x24xbf16> to vector<32x24xbf16>
    %c7_40 = arith.constant 7 : index
    %c0_41 = arith.constant 0 : index
    %c0_42 = arith.constant 0 : index
    %43 = vector.load %arg1[%c7_40, %c0_41, %c0_42] : memref<9x32x32xbf16, #tpu.memory_space<vmem>>, vector<1x32x32xbf16>
    %44 = vector.shape_cast %43 : vector<1x32x32xbf16> to vector<32x32xbf16>
    %cst_43 = arith.constant dense<0.000000e+00> : vector<32x24xf32>
    %45 = tpu.matmul %44, %42, %cst_43 {dimension_numbers = #tpu.dot_dimension_numbers<[1], [0], [0], [1], [0, 0, 1, 1], [], []>} : vector<32x32xbf16>, vector<32x24xbf16>, vector<32x24xf32> -> vector<32x24xf32>
    %46 = arith.addf %40, %45 : vector<32x24xf32>
    %c0_44 = arith.constant 0 : index
    %c0_45 = arith.constant 0 : index
    %c14 = arith.constant 14 : index
    %47 = vector.load %arg2[%c0_44, %c0_45, %c14] : memref<1x32x128xbf16, #tpu.memory_space<vmem>>, vector<1x32x24xbf16>
    %48 = vector.shape_cast %47 : vector<1x32x24xbf16> to vector<32x24xbf16>
    %c8_46 = arith.constant 8 : index
    %c0_47 = arith.constant 0 : index
    %c0_48 = arith.constant 0 : index
    %49 = vector.load %arg1[%c8_46, %c0_47, %c0_48] : memref<9x32x32xbf16, #tpu.memory_space<vmem>>, vector<1x32x32xbf16>
    %50 = vector.shape_cast %49 : vector<1x32x32xbf16> to vector<32x32xbf16>
    %cst_49 = arith.constant dense<0.000000e+00> : vector<32x24xf32>
    %51 = tpu.matmul %50, %48, %cst_49 {dimension_numbers = #tpu.dot_dimension_numbers<[1], [0], [0], [1], [0, 0, 1, 1], [], []>} : vector<32x32xbf16>, vector<32x24xbf16>, vector<32x24xf32> -> vector<32x24xf32>
    %52 = arith.addf %46, %51 : vector<32x24xf32>
    %c0_50 = arith.constant 0 : index
    %c0_51 = arith.constant 0 : index
    %53 = vector.load %arg3[%c0_50, %c0_51] : memref<1x24xf32, #tpu.memory_space<vmem>>, vector<1x24xf32>
    %54 = vector.broadcast %53 : vector<1x24xf32> to vector<32x24xf32>
    %55 = arith.mulf %52, %54 : vector<32x24xf32>
    %cst_52 = arith.constant dense<0.000000e+00> : vector<32xf32>
    %56 = vector.multi_reduction <add>, %55, %cst_52 [1] : vector<32x24xf32> to vector<32xf32>
    %57 = vector.shape_cast %56 : vector<32xf32> to vector<32x1xf32>
    %cst_53 = arith.constant 6.250000e-02 : f32
    %58 = vector.broadcast %cst_53 : f32 to vector<32x1xf32>
    %59 = arith.mulf %57, %58 : vector<32x1xf32>
    %60 = arith.mulf %55, %52 : vector<32x24xf32>
    %cst_54 = arith.constant dense<0.000000e+00> : vector<32xf32>
    %61 = vector.multi_reduction <add>, %60, %cst_54 [1] : vector<32x24xf32> to vector<32xf32>
    %62 = vector.shape_cast %61 : vector<32xf32> to vector<32x1xf32>
    %cst_55 = arith.constant 6.250000e-02 : f32
    %63 = vector.broadcast %cst_55 : f32 to vector<32x1xf32>
    %64 = arith.mulf %62, %63 : vector<32x1xf32>
    %65 = arith.mulf %59, %59 : vector<32x1xf32>
    %66 = arith.subf %64, %65 : vector<32x1xf32>
    %67 = vector.broadcast %59 : vector<32x1xf32> to vector<32x24xf32>
    %68 = arith.subf %52, %67 : vector<32x24xf32>
    %cst_56 = arith.constant 0.000000e+00 : f32
    %69 = vector.broadcast %cst_56 : f32 to vector<32x1xf32>
    %70 = arith.maximumf %66, %69 : vector<32x1xf32>
    %cst_57 = arith.constant 9.99999974E-6 : f32
    %71 = vector.broadcast %cst_57 : f32 to vector<32x1xf32>
    %72 = arith.addf %70, %71 : vector<32x1xf32>
    %73 = math.rsqrt %72 : vector<32x1xf32>
    %74 = vector.broadcast %73 : vector<32x1xf32> to vector<32x24xf32>
    %75 = arith.mulf %68, %74 : vector<32x24xf32>
    %c0_58 = arith.constant 0 : index
    %c0_59 = arith.constant 0 : index
    %c0_60 = arith.constant 0 : index
    %76 = vector.load %arg4[%c0_58, %c0_59, %c0_60] : memref<1x32x24xbf16, #tpu.memory_space<vmem>>, vector<1x32x24xbf16>
    %77 = vector.shape_cast %76 : vector<1x32x24xbf16> to vector<32x24xbf16>
    %78 = arith.extf %77 : vector<32x24xbf16> to vector<32x24xf32>
    %79 = arith.addf %75, %78 : vector<32x24xf32>
    %80 = arith.truncf %79 : vector<32x24xf32> to vector<32x24xbf16>
    %c0_61 = arith.constant 0 : index
    %c0_62 = arith.constant 0 : index
    %c0_63 = arith.constant 0 : index
    %81 = vector.load %arg5[%c0_61, %c0_62, %c0_63] : memref<1x32x24xbf16, #tpu.memory_space<vmem>>, vector<1x32x24xbf16>
    %82 = vector.shape_cast %81 : vector<1x32x24xbf16> to vector<32x24xbf16>
    %83 = vector.shape_cast %80 : vector<32x24xbf16> to vector<1x32x24xbf16>
    tpu.vector_store %arg5[%c0_61, %c0_62, %c0_63], %83 {strides = array<i32>} : memref<1x32x24xbf16, #tpu.memory_space<vmem>>, vector<1x32x24xbf16>,
    return
  }
  func.func @transform_0(%arg0: i32) -> (i32, i32, i32) {
    %c0_i32 = arith.constant 0 : i32
    %c0_i32_0 = arith.constant 0 : i32
    %c0_i32_1 = arith.constant 0 : i32
    %c0_i32_2 = arith.constant 0 : i32
    return %c0_i32, %c0_i32_0, %c0_i32_1 : i32, i32, i32
  }
  func.func @transform_1(%arg0: i32) -> (i32, i32, i32) {
    %c0_i32 = arith.constant 0 : i32
    %c0_i32_0 = arith.constant 0 : i32
    %c0_i32_1 = arith.constant 0 : i32
    return %arg0, %c0_i32, %c0_i32_0 : i32, i32, i32
  }
  func.func @transform_2(%arg0: i32) -> (i32, i32) {
    %c0_i32 = arith.constant 0 : i32
    %c0_i32_0 = arith.constant 0 : i32
    %c0_i32_1 = arith.constant 0 : i32
    return %c0_i32, %c0_i32_0 : i32, i32
  }
  func.func @transform_3(%arg0: i32) -> (i32, i32, i32) {
    %c0_i32 = arith.constant 0 : i32
    %c0_i32_0 = arith.constant 0 : i32
    %c0_i32_1 = arith.constant 0 : i32
    return %arg0, %c0_i32, %c0_i32_0 : i32, i32, i32
  }
  func.func @transform_4(%arg0: i32) -> (i32, i32, i32) {
    %c0_i32 = arith.constant 0 : i32
    %c0_i32_0 = arith.constant 0 : i32
    %c0_i32_1 = arith.constant 0 : i32
    return %arg0, %c0_i32, %c0_i32_0 : i32, i32, i32
  }
}

module attributes {stable_mosaic.version = 11 : i64} {
  func.func @_fused_tap_kernel(%arg0: i32, %arg1: memref<4x64x32xbf16, #tpu.memory_space<vmem>>, %arg2: memref<1x32x128xbf16, #tpu.memory_space<vmem>>, %arg3: memref<1x20xf32, #tpu.memory_space<vmem>>, %arg4: memref<1x64x20xbf16, #tpu.memory_space<vmem>>) attributes {dimension_semantics = [#tpu.dimension_semantics<parallel>], iteration_bounds = array<i64: 2>, scalar_prefetch = 0 : i64, scratch_operands = 0 : i64, tpu.core_type = #tpu.core_type<tc>, window_params = [{pipeline_mode = #tpu.pipeline_mode<synchronous>, transform_indices = @transform_0, window_bounds = array<i64: 4, 64, 32>}, {transform_indices = @transform_1, window_bounds = array<i64: 1, 32, 128>}, {pipeline_mode = #tpu.pipeline_mode<synchronous>, transform_indices = @transform_2, window_bounds = array<i64: 1, 20>}, {transform_indices = @transform_3, window_bounds = array<i64: 1, 64, 20>}]} {
    %c0 = arith.constant 0 : index
    %c0_0 = arith.constant 0 : index
    %c0_1 = arith.constant 0 : index
    %0 = vector.load %arg2[%c0, %c0_0, %c0_1] : memref<1x32x128xbf16, #tpu.memory_space<vmem>>, vector<1x32x20xbf16>
    %1 = vector.shape_cast %0 : vector<1x32x20xbf16> to vector<32x20xbf16>
    %c0_2 = arith.constant 0 : index
    %c0_3 = arith.constant 0 : index
    %c0_4 = arith.constant 0 : index
    %2 = vector.load %arg1[%c0_2, %c0_3, %c0_4] : memref<4x64x32xbf16, #tpu.memory_space<vmem>>, vector<1x64x32xbf16>
    %3 = vector.shape_cast %2 : vector<1x64x32xbf16> to vector<64x32xbf16>
    %cst = arith.constant dense<0.000000e+00> : vector<64x20xf32>
    %4 = tpu.matmul %3, %1, %cst {dimension_numbers = #tpu.dot_dimension_numbers<[1], [0], [0], [1], [0, 0, 1, 1], [], []>} : vector<64x32xbf16>, vector<32x20xbf16>, vector<64x20xf32> -> vector<64x20xf32>
    %c0_5 = arith.constant 0 : index
    %c0_6 = arith.constant 0 : index
    %c1 = arith.constant 1 : index
    %5 = vector.load %arg2[%c0_5, %c0_6, %c1] : memref<1x32x128xbf16, #tpu.memory_space<vmem>>, vector<1x32x20xbf16>
    %6 = vector.shape_cast %5 : vector<1x32x20xbf16> to vector<32x20xbf16>
    %c1_7 = arith.constant 1 : index
    %c0_8 = arith.constant 0 : index
    %c0_9 = arith.constant 0 : index
    %7 = vector.load %arg1[%c1_7, %c0_8, %c0_9] : memref<4x64x32xbf16, #tpu.memory_space<vmem>>, vector<1x64x32xbf16>
    %8 = vector.shape_cast %7 : vector<1x64x32xbf16> to vector<64x32xbf16>
    %cst_10 = arith.constant dense<0.000000e+00> : vector<64x20xf32>
    %9 = tpu.matmul %8, %6, %cst_10 {dimension_numbers = #tpu.dot_dimension_numbers<[1], [0], [0], [1], [0, 0, 1, 1], [], []>} : vector<64x32xbf16>, vector<32x20xbf16>, vector<64x20xf32> -> vector<64x20xf32>
    %10 = arith.addf %4, %9 : vector<64x20xf32>
    %c0_11 = arith.constant 0 : index
    %c0_12 = arith.constant 0 : index
    %c5 = arith.constant 5 : index
    %11 = vector.load %arg2[%c0_11, %c0_12, %c5] : memref<1x32x128xbf16, #tpu.memory_space<vmem>>, vector<1x32x20xbf16>
    %12 = vector.shape_cast %11 : vector<1x32x20xbf16> to vector<32x20xbf16>
    %c2 = arith.constant 2 : index
    %c0_13 = arith.constant 0 : index
    %c0_14 = arith.constant 0 : index
    %13 = vector.load %arg1[%c2, %c0_13, %c0_14] : memref<4x64x32xbf16, #tpu.memory_space<vmem>>, vector<1x64x32xbf16>
    %14 = vector.shape_cast %13 : vector<1x64x32xbf16> to vector<64x32xbf16>
    %cst_15 = arith.constant dense<0.000000e+00> : vector<64x20xf32>
    %15 = tpu.matmul %14, %12, %cst_15 {dimension_numbers = #tpu.dot_dimension_numbers<[1], [0], [0], [1], [0, 0, 1, 1], [], []>} : vector<64x32xbf16>, vector<32x20xbf16>, vector<64x20xf32> -> vector<64x20xf32>
    %16 = arith.addf %10, %15 : vector<64x20xf32>
    %c0_16 = arith.constant 0 : index
    %c0_17 = arith.constant 0 : index
    %c6 = arith.constant 6 : index
    %17 = vector.load %arg2[%c0_16, %c0_17, %c6] : memref<1x32x128xbf16, #tpu.memory_space<vmem>>, vector<1x32x20xbf16>
    %18 = vector.shape_cast %17 : vector<1x32x20xbf16> to vector<32x20xbf16>
    %c3 = arith.constant 3 : index
    %c0_18 = arith.constant 0 : index
    %c0_19 = arith.constant 0 : index
    %19 = vector.load %arg1[%c3, %c0_18, %c0_19] : memref<4x64x32xbf16, #tpu.memory_space<vmem>>, vector<1x64x32xbf16>
    %20 = vector.shape_cast %19 : vector<1x64x32xbf16> to vector<64x32xbf16>
    %cst_20 = arith.constant dense<0.000000e+00> : vector<64x20xf32>
    %21 = tpu.matmul %20, %18, %cst_20 {dimension_numbers = #tpu.dot_dimension_numbers<[1], [0], [0], [1], [0, 0, 1, 1], [], []>} : vector<64x32xbf16>, vector<32x20xbf16>, vector<64x20xf32> -> vector<64x20xf32>
    %22 = arith.addf %16, %21 : vector<64x20xf32>
    %c0_21 = arith.constant 0 : index
    %c0_22 = arith.constant 0 : index
    %23 = vector.load %arg3[%c0_21, %c0_22] : memref<1x20xf32, #tpu.memory_space<vmem>>, vector<1x20xf32>
    %cst_23 = arith.constant 0.000000e+00 : f32
    %24 = vector.broadcast %cst_23 : f32 to vector<16x1xf32>
    %cst_24 = arith.constant 0.000000e+00 : f32
    %25 = vector.broadcast %cst_24 : f32 to vector<16x1xf32>
    %26 = vector.extract_strided_slice %22 {offsets = [0, 0], sizes = [16, 20], strides = [1, 1]} : vector<64x20xf32> to vector<16x20xf32>
    %27 = vector.broadcast %23 : vector<1x20xf32> to vector<16x20xf32>
    %28 = arith.mulf %26, %27 : vector<16x20xf32>
    %cst_25 = arith.constant dense<0.000000e+00> : vector<16xf32>
    %29 = vector.multi_reduction <add>, %28, %cst_25 [1] : vector<16x20xf32> to vector<16xf32>
    %30 = vector.shape_cast %29 : vector<16xf32> to vector<16x1xf32>
    %31 = arith.addf %24, %30 : vector<16x1xf32>
    %32 = arith.mulf %28, %26 : vector<16x20xf32>
    %cst_26 = arith.constant dense<0.000000e+00> : vector<16xf32>
    %33 = vector.multi_reduction <add>, %32, %cst_26 [1] : vector<16x20xf32> to vector<16xf32>
    %34 = vector.shape_cast %33 : vector<16xf32> to vector<16x1xf32>
    %35 = arith.addf %25, %34 : vector<16x1xf32>
    %36 = vector.extract_strided_slice %22 {offsets = [16, 0], sizes = [16, 20], strides = [1, 1]} : vector<64x20xf32> to vector<16x20xf32>
    %37 = vector.broadcast %23 : vector<1x20xf32> to vector<16x20xf32>
    %38 = arith.mulf %36, %37 : vector<16x20xf32>
    %cst_27 = arith.constant dense<0.000000e+00> : vector<16xf32>
    %39 = vector.multi_reduction <add>, %38, %cst_27 [1] : vector<16x20xf32> to vector<16xf32>
    %40 = vector.shape_cast %39 : vector<16xf32> to vector<16x1xf32>
    %41 = arith.addf %31, %40 : vector<16x1xf32>
    %42 = arith.mulf %38, %36 : vector<16x20xf32>
    %cst_28 = arith.constant dense<0.000000e+00> : vector<16xf32>
    %43 = vector.multi_reduction <add>, %42, %cst_28 [1] : vector<16x20xf32> to vector<16xf32>
    %44 = vector.shape_cast %43 : vector<16xf32> to vector<16x1xf32>
    %45 = arith.addf %35, %44 : vector<16x1xf32>
    %46 = vector.extract_strided_slice %22 {offsets = [32, 0], sizes = [16, 20], strides = [1, 1]} : vector<64x20xf32> to vector<16x20xf32>
    %47 = vector.broadcast %23 : vector<1x20xf32> to vector<16x20xf32>
    %48 = arith.mulf %46, %47 : vector<16x20xf32>
    %cst_29 = arith.constant dense<0.000000e+00> : vector<16xf32>
    %49 = vector.multi_reduction <add>, %48, %cst_29 [1] : vector<16x20xf32> to vector<16xf32>
    %50 = vector.shape_cast %49 : vector<16xf32> to vector<16x1xf32>
    %51 = arith.addf %41, %50 : vector<16x1xf32>
    %52 = arith.mulf %48, %46 : vector<16x20xf32>
    %cst_30 = arith.constant dense<0.000000e+00> : vector<16xf32>
    %53 = vector.multi_reduction <add>, %52, %cst_30 [1] : vector<16x20xf32> to vector<16xf32>
    %54 = vector.shape_cast %53 : vector<16xf32> to vector<16x1xf32>
    %55 = arith.addf %45, %54 : vector<16x1xf32>
    %56 = vector.extract_strided_slice %22 {offsets = [48, 0], sizes = [16, 20], strides = [1, 1]} : vector<64x20xf32> to vector<16x20xf32>
    %57 = vector.broadcast %23 : vector<1x20xf32> to vector<16x20xf32>
    %58 = arith.mulf %56, %57 : vector<16x20xf32>
    %cst_31 = arith.constant dense<0.000000e+00> : vector<16xf32>
    %59 = vector.multi_reduction <add>, %58, %cst_31 [1] : vector<16x20xf32> to vector<16xf32>
    %60 = vector.shape_cast %59 : vector<16xf32> to vector<16x1xf32>
    %61 = arith.addf %51, %60 : vector<16x1xf32>
    %62 = arith.mulf %58, %56 : vector<16x20xf32>
    %cst_32 = arith.constant dense<0.000000e+00> : vector<16xf32>
    %63 = vector.multi_reduction <add>, %62, %cst_32 [1] : vector<16x20xf32> to vector<16xf32>
    %64 = vector.shape_cast %63 : vector<16xf32> to vector<16x1xf32>
    %65 = arith.addf %55, %64 : vector<16x1xf32>
    %cst_33 = arith.constant 1.562500e-02 : f32
    %66 = vector.broadcast %cst_33 : f32 to vector<16x1xf32>
    %67 = arith.mulf %61, %66 : vector<16x1xf32>
    %cst_34 = arith.constant 1.562500e-02 : f32
    %68 = vector.broadcast %cst_34 : f32 to vector<16x1xf32>
    %69 = arith.mulf %65, %68 : vector<16x1xf32>
    %70 = arith.mulf %67, %67 : vector<16x1xf32>
    %71 = arith.subf %69, %70 : vector<16x1xf32>
    %cst_35 = arith.constant 0.000000e+00 : f32
    %72 = vector.broadcast %cst_35 : f32 to vector<16x1xf32>
    %73 = arith.maximumf %71, %72 : vector<16x1xf32>
    %cst_36 = arith.constant 9.99999974E-6 : f32
    %74 = vector.broadcast %cst_36 : f32 to vector<16x1xf32>
    %75 = arith.addf %73, %74 : vector<16x1xf32>
    %76 = math.rsqrt %75 : vector<16x1xf32>
    %77 = vector.extract_strided_slice %22 {offsets = [0, 0], sizes = [16, 20], strides = [1, 1]} : vector<64x20xf32> to vector<16x20xf32>
    %78 = vector.broadcast %67 : vector<16x1xf32> to vector<16x20xf32>
    %79 = arith.subf %77, %78 : vector<16x20xf32>
    %80 = vector.broadcast %76 : vector<16x1xf32> to vector<16x20xf32>
    %81 = arith.mulf %79, %80 : vector<16x20xf32>
    %cst_37 = arith.constant 0.000000e+00 : f32
    %82 = vector.broadcast %cst_37 : f32 to vector<16x20xf32>
    %83 = arith.maximumf %81, %82 : vector<16x20xf32>
    %84 = vector.shape_cast %83 : vector<16x20xf32> to vector<1x16x20xf32>
    %85 = arith.truncf %84 : vector<1x16x20xf32> to vector<1x16x20xbf16>
    %c0_38 = arith.constant 0 : index
    %c0_39 = arith.constant 0 : index
    %c0_40 = arith.constant 0 : index
    %86 = vector.load %arg4[%c0_38, %c0_39, %c0_40] : memref<1x64x20xbf16, #tpu.memory_space<vmem>>, vector<1x16x20xbf16>
    tpu.vector_store %arg4[%c0_38, %c0_39, %c0_40], %85 {strides = array<i32>} : memref<1x64x20xbf16, #tpu.memory_space<vmem>>, vector<1x16x20xbf16>,
    %87 = vector.extract_strided_slice %22 {offsets = [16, 0], sizes = [16, 20], strides = [1, 1]} : vector<64x20xf32> to vector<16x20xf32>
    %88 = vector.broadcast %67 : vector<16x1xf32> to vector<16x20xf32>
    %89 = arith.subf %87, %88 : vector<16x20xf32>
    %90 = vector.broadcast %76 : vector<16x1xf32> to vector<16x20xf32>
    %91 = arith.mulf %89, %90 : vector<16x20xf32>
    %cst_41 = arith.constant 0.000000e+00 : f32
    %92 = vector.broadcast %cst_41 : f32 to vector<16x20xf32>
    %93 = arith.maximumf %91, %92 : vector<16x20xf32>
    %94 = vector.shape_cast %93 : vector<16x20xf32> to vector<1x16x20xf32>
    %95 = arith.truncf %94 : vector<1x16x20xf32> to vector<1x16x20xbf16>
    %c0_42 = arith.constant 0 : index
    %c16 = arith.constant 16 : index
    %c0_43 = arith.constant 0 : index
    %96 = vector.load %arg4[%c0_42, %c16, %c0_43] : memref<1x64x20xbf16, #tpu.memory_space<vmem>>, vector<1x16x20xbf16>
    tpu.vector_store %arg4[%c0_42, %c16, %c0_43], %95 {strides = array<i32>} : memref<1x64x20xbf16, #tpu.memory_space<vmem>>, vector<1x16x20xbf16>,
    %97 = vector.extract_strided_slice %22 {offsets = [32, 0], sizes = [16, 20], strides = [1, 1]} : vector<64x20xf32> to vector<16x20xf32>
    %98 = vector.broadcast %67 : vector<16x1xf32> to vector<16x20xf32>
    %99 = arith.subf %97, %98 : vector<16x20xf32>
    %100 = vector.broadcast %76 : vector<16x1xf32> to vector<16x20xf32>
    %101 = arith.mulf %99, %100 : vector<16x20xf32>
    %cst_44 = arith.constant 0.000000e+00 : f32
    %102 = vector.broadcast %cst_44 : f32 to vector<16x20xf32>
    %103 = arith.maximumf %101, %102 : vector<16x20xf32>
    %104 = vector.shape_cast %103 : vector<16x20xf32> to vector<1x16x20xf32>
    %105 = arith.truncf %104 : vector<1x16x20xf32> to vector<1x16x20xbf16>
    %c0_45 = arith.constant 0 : index
    %c32 = arith.constant 32 : index
    %c0_46 = arith.constant 0 : index
    %106 = vector.load %arg4[%c0_45, %c32, %c0_46] : memref<1x64x20xbf16, #tpu.memory_space<vmem>>, vector<1x16x20xbf16>
    tpu.vector_store %arg4[%c0_45, %c32, %c0_46], %105 {strides = array<i32>} : memref<1x64x20xbf16, #tpu.memory_space<vmem>>, vector<1x16x20xbf16>,
    %107 = vector.extract_strided_slice %22 {offsets = [48, 0], sizes = [16, 20], strides = [1, 1]} : vector<64x20xf32> to vector<16x20xf32>
    %108 = vector.broadcast %67 : vector<16x1xf32> to vector<16x20xf32>
    %109 = arith.subf %107, %108 : vector<16x20xf32>
    %110 = vector.broadcast %76 : vector<16x1xf32> to vector<16x20xf32>
    %111 = arith.mulf %109, %110 : vector<16x20xf32>
    %cst_47 = arith.constant 0.000000e+00 : f32
    %112 = vector.broadcast %cst_47 : f32 to vector<16x20xf32>
    %113 = arith.maximumf %111, %112 : vector<16x20xf32>
    %114 = vector.shape_cast %113 : vector<16x20xf32> to vector<1x16x20xf32>
    %115 = arith.truncf %114 : vector<1x16x20xf32> to vector<1x16x20xbf16>
    %c0_48 = arith.constant 0 : index
    %c48 = arith.constant 48 : index
    %c0_49 = arith.constant 0 : index
    %116 = vector.load %arg4[%c0_48, %c48, %c0_49] : memref<1x64x20xbf16, #tpu.memory_space<vmem>>, vector<1x16x20xbf16>
    tpu.vector_store %arg4[%c0_48, %c48, %c0_49], %115 {strides = array<i32>} : memref<1x64x20xbf16, #tpu.memory_space<vmem>>, vector<1x16x20xbf16>,
    return
  }
  func.func @transform_0(%arg0: i32) -> (i32, i32, i32) {
    %c0_i32 = arith.constant 0 : i32
    %c0_i32_0 = arith.constant 0 : i32
    %c0_i32_1 = arith.constant 0 : i32
    %c0_i32_2 = arith.constant 0 : i32
    return %c0_i32, %c0_i32_0, %c0_i32_1 : i32, i32, i32
  }
  func.func @transform_1(%arg0: i32) -> (i32, i32, i32) {
    %c0_i32 = arith.constant 0 : i32
    %c0_i32_0 = arith.constant 0 : i32
    %c0_i32_1 = arith.constant 0 : i32
    return %arg0, %c0_i32, %c0_i32_0 : i32, i32, i32
  }
  func.func @transform_2(%arg0: i32) -> (i32, i32) {
    %c0_i32 = arith.constant 0 : i32
    %c0_i32_0 = arith.constant 0 : i32
    %c0_i32_1 = arith.constant 0 : i32
    return %c0_i32, %c0_i32_0 : i32, i32
  }
  func.func @transform_3(%arg0: i32) -> (i32, i32, i32) {
    %c0_i32 = arith.constant 0 : i32
    %c0_i32_0 = arith.constant 0 : i32
    %c0_i32_1 = arith.constant 0 : i32
    return %arg0, %c0_i32, %c0_i32_0 : i32, i32, i32
  }
}

module attributes {stable_mosaic.version = 11 : i64} {
  func.func @_fused_tap_kernel(%arg0: i32, %arg1: memref<4x32x16xbf16, #tpu.memory_space<vmem>>, %arg2: memref<1x16x128xbf16, #tpu.memory_space<vmem>>, %arg3: memref<1x72xf32, #tpu.memory_space<vmem>>, %arg4: memref<1x32x72xbf16, #tpu.memory_space<vmem>>) attributes {dimension_semantics = [#tpu.dimension_semantics<parallel>], iteration_bounds = array<i64: 2>, scalar_prefetch = 0 : i64, scratch_operands = 0 : i64, tpu.core_type = #tpu.core_type<tc>, window_params = [{pipeline_mode = #tpu.pipeline_mode<synchronous>, transform_indices = @transform_0, window_bounds = array<i64: 4, 32, 16>}, {transform_indices = @transform_1, window_bounds = array<i64: 1, 16, 128>}, {pipeline_mode = #tpu.pipeline_mode<synchronous>, transform_indices = @transform_2, window_bounds = array<i64: 1, 72>}, {transform_indices = @transform_3, window_bounds = array<i64: 1, 32, 72>}]} {
    %c0 = arith.constant 0 : index
    %c0_0 = arith.constant 0 : index
    %c0_1 = arith.constant 0 : index
    %0 = vector.load %arg2[%c0, %c0_0, %c0_1] : memref<1x16x128xbf16, #tpu.memory_space<vmem>>, vector<1x16x72xbf16>
    %1 = vector.shape_cast %0 : vector<1x16x72xbf16> to vector<16x72xbf16>
    %c0_2 = arith.constant 0 : index
    %c0_3 = arith.constant 0 : index
    %c0_4 = arith.constant 0 : index
    %2 = vector.load %arg1[%c0_2, %c0_3, %c0_4] : memref<4x32x16xbf16, #tpu.memory_space<vmem>>, vector<1x32x16xbf16>
    %3 = vector.shape_cast %2 : vector<1x32x16xbf16> to vector<32x16xbf16>
    %cst = arith.constant dense<0.000000e+00> : vector<32x72xf32>
    %4 = tpu.matmul %3, %1, %cst {dimension_numbers = #tpu.dot_dimension_numbers<[1], [0], [0], [1], [0, 0, 1, 1], [], []>} : vector<32x16xbf16>, vector<16x72xbf16>, vector<32x72xf32> -> vector<32x72xf32>
    %c0_5 = arith.constant 0 : index
    %c0_6 = arith.constant 0 : index
    %c1 = arith.constant 1 : index
    %5 = vector.load %arg2[%c0_5, %c0_6, %c1] : memref<1x16x128xbf16, #tpu.memory_space<vmem>>, vector<1x16x72xbf16>
    %6 = vector.shape_cast %5 : vector<1x16x72xbf16> to vector<16x72xbf16>
    %c1_7 = arith.constant 1 : index
    %c0_8 = arith.constant 0 : index
    %c0_9 = arith.constant 0 : index
    %7 = vector.load %arg1[%c1_7, %c0_8, %c0_9] : memref<4x32x16xbf16, #tpu.memory_space<vmem>>, vector<1x32x16xbf16>
    %8 = vector.shape_cast %7 : vector<1x32x16xbf16> to vector<32x16xbf16>
    %cst_10 = arith.constant dense<0.000000e+00> : vector<32x72xf32>
    %9 = tpu.matmul %8, %6, %cst_10 {dimension_numbers = #tpu.dot_dimension_numbers<[1], [0], [0], [1], [0, 0, 1, 1], [], []>} : vector<32x16xbf16>, vector<16x72xbf16>, vector<32x72xf32> -> vector<32x72xf32>
    %10 = arith.addf %4, %9 : vector<32x72xf32>
    %c0_11 = arith.constant 0 : index
    %c0_12 = arith.constant 0 : index
    %c9 = arith.constant 9 : index
    %11 = vector.load %arg2[%c0_11, %c0_12, %c9] : memref<1x16x128xbf16, #tpu.memory_space<vmem>>, vector<1x16x72xbf16>
    %12 = vector.shape_cast %11 : vector<1x16x72xbf16> to vector<16x72xbf16>
    %c2 = arith.constant 2 : index
    %c0_13 = arith.constant 0 : index
    %c0_14 = arith.constant 0 : index
    %13 = vector.load %arg1[%c2, %c0_13, %c0_14] : memref<4x32x16xbf16, #tpu.memory_space<vmem>>, vector<1x32x16xbf16>
    %14 = vector.shape_cast %13 : vector<1x32x16xbf16> to vector<32x16xbf16>
    %cst_15 = arith.constant dense<0.000000e+00> : vector<32x72xf32>
    %15 = tpu.matmul %14, %12, %cst_15 {dimension_numbers = #tpu.dot_dimension_numbers<[1], [0], [0], [1], [0, 0, 1, 1], [], []>} : vector<32x16xbf16>, vector<16x72xbf16>, vector<32x72xf32> -> vector<32x72xf32>
    %16 = arith.addf %10, %15 : vector<32x72xf32>
    %c0_16 = arith.constant 0 : index
    %c0_17 = arith.constant 0 : index
    %c10 = arith.constant 10 : index
    %17 = vector.load %arg2[%c0_16, %c0_17, %c10] : memref<1x16x128xbf16, #tpu.memory_space<vmem>>, vector<1x16x72xbf16>
    %18 = vector.shape_cast %17 : vector<1x16x72xbf16> to vector<16x72xbf16>
    %c3 = arith.constant 3 : index
    %c0_18 = arith.constant 0 : index
    %c0_19 = arith.constant 0 : index
    %19 = vector.load %arg1[%c3, %c0_18, %c0_19] : memref<4x32x16xbf16, #tpu.memory_space<vmem>>, vector<1x32x16xbf16>
    %20 = vector.shape_cast %19 : vector<1x32x16xbf16> to vector<32x16xbf16>
    %cst_20 = arith.constant dense<0.000000e+00> : vector<32x72xf32>
    %21 = tpu.matmul %20, %18, %cst_20 {dimension_numbers = #tpu.dot_dimension_numbers<[1], [0], [0], [1], [0, 0, 1, 1], [], []>} : vector<32x16xbf16>, vector<16x72xbf16>, vector<32x72xf32> -> vector<32x72xf32>
    %22 = arith.addf %16, %21 : vector<32x72xf32>
    %c0_21 = arith.constant 0 : index
    %c0_22 = arith.constant 0 : index
    %23 = vector.load %arg3[%c0_21, %c0_22] : memref<1x72xf32, #tpu.memory_space<vmem>>, vector<1x72xf32>
    %cst_23 = arith.constant 0.000000e+00 : f32
    %24 = vector.broadcast %cst_23 : f32 to vector<8x1xf32>
    %cst_24 = arith.constant 0.000000e+00 : f32
    %25 = vector.broadcast %cst_24 : f32 to vector<8x1xf32>
    %26 = vector.extract_strided_slice %22 {offsets = [0, 0], sizes = [8, 72], strides = [1, 1]} : vector<32x72xf32> to vector<8x72xf32>
    %27 = vector.broadcast %23 : vector<1x72xf32> to vector<8x72xf32>
    %28 = arith.mulf %26, %27 : vector<8x72xf32>
    %cst_25 = arith.constant dense<0.000000e+00> : vector<8xf32>
    %29 = vector.multi_reduction <add>, %28, %cst_25 [1] : vector<8x72xf32> to vector<8xf32>
    %30 = vector.shape_cast %29 : vector<8xf32> to vector<8x1xf32>
    %31 = arith.addf %24, %30 : vector<8x1xf32>
    %32 = arith.mulf %28, %26 : vector<8x72xf32>
    %cst_26 = arith.constant dense<0.000000e+00> : vector<8xf32>
    %33 = vector.multi_reduction <add>, %32, %cst_26 [1] : vector<8x72xf32> to vector<8xf32>
    %34 = vector.shape_cast %33 : vector<8xf32> to vector<8x1xf32>
    %35 = arith.addf %25, %34 : vector<8x1xf32>
    %36 = vector.extract_strided_slice %22 {offsets = [8, 0], sizes = [8, 72], strides = [1, 1]} : vector<32x72xf32> to vector<8x72xf32>
    %37 = vector.broadcast %23 : vector<1x72xf32> to vector<8x72xf32>
    %38 = arith.mulf %36, %37 : vector<8x72xf32>
    %cst_27 = arith.constant dense<0.000000e+00> : vector<8xf32>
    %39 = vector.multi_reduction <add>, %38, %cst_27 [1] : vector<8x72xf32> to vector<8xf32>
    %40 = vector.shape_cast %39 : vector<8xf32> to vector<8x1xf32>
    %41 = arith.addf %31, %40 : vector<8x1xf32>
    %42 = arith.mulf %38, %36 : vector<8x72xf32>
    %cst_28 = arith.constant dense<0.000000e+00> : vector<8xf32>
    %43 = vector.multi_reduction <add>, %42, %cst_28 [1] : vector<8x72xf32> to vector<8xf32>
    %44 = vector.shape_cast %43 : vector<8xf32> to vector<8x1xf32>
    %45 = arith.addf %35, %44 : vector<8x1xf32>
    %46 = vector.extract_strided_slice %22 {offsets = [16, 0], sizes = [8, 72], strides = [1, 1]} : vector<32x72xf32> to vector<8x72xf32>
    %47 = vector.broadcast %23 : vector<1x72xf32> to vector<8x72xf32>
    %48 = arith.mulf %46, %47 : vector<8x72xf32>
    %cst_29 = arith.constant dense<0.000000e+00> : vector<8xf32>
    %49 = vector.multi_reduction <add>, %48, %cst_29 [1] : vector<8x72xf32> to vector<8xf32>
    %50 = vector.shape_cast %49 : vector<8xf32> to vector<8x1xf32>
    %51 = arith.addf %41, %50 : vector<8x1xf32>
    %52 = arith.mulf %48, %46 : vector<8x72xf32>
    %cst_30 = arith.constant dense<0.000000e+00> : vector<8xf32>
    %53 = vector.multi_reduction <add>, %52, %cst_30 [1] : vector<8x72xf32> to vector<8xf32>
    %54 = vector.shape_cast %53 : vector<8xf32> to vector<8x1xf32>
    %55 = arith.addf %45, %54 : vector<8x1xf32>
    %56 = vector.extract_strided_slice %22 {offsets = [24, 0], sizes = [8, 72], strides = [1, 1]} : vector<32x72xf32> to vector<8x72xf32>
    %57 = vector.broadcast %23 : vector<1x72xf32> to vector<8x72xf32>
    %58 = arith.mulf %56, %57 : vector<8x72xf32>
    %cst_31 = arith.constant dense<0.000000e+00> : vector<8xf32>
    %59 = vector.multi_reduction <add>, %58, %cst_31 [1] : vector<8x72xf32> to vector<8xf32>
    %60 = vector.shape_cast %59 : vector<8xf32> to vector<8x1xf32>
    %61 = arith.addf %51, %60 : vector<8x1xf32>
    %62 = arith.mulf %58, %56 : vector<8x72xf32>
    %cst_32 = arith.constant dense<0.000000e+00> : vector<8xf32>
    %63 = vector.multi_reduction <add>, %62, %cst_32 [1] : vector<8x72xf32> to vector<8xf32>
    %64 = vector.shape_cast %63 : vector<8xf32> to vector<8x1xf32>
    %65 = arith.addf %55, %64 : vector<8x1xf32>
    %cst_33 = arith.constant 3.906250e-03 : f32
    %66 = vector.broadcast %cst_33 : f32 to vector<8x1xf32>
    %67 = arith.mulf %61, %66 : vector<8x1xf32>
    %cst_34 = arith.constant 3.906250e-03 : f32
    %68 = vector.broadcast %cst_34 : f32 to vector<8x1xf32>
    %69 = arith.mulf %65, %68 : vector<8x1xf32>
    %70 = arith.mulf %67, %67 : vector<8x1xf32>
    %71 = arith.subf %69, %70 : vector<8x1xf32>
    %cst_35 = arith.constant 0.000000e+00 : f32
    %72 = vector.broadcast %cst_35 : f32 to vector<8x1xf32>
    %73 = arith.maximumf %71, %72 : vector<8x1xf32>
    %cst_36 = arith.constant 9.99999974E-6 : f32
    %74 = vector.broadcast %cst_36 : f32 to vector<8x1xf32>
    %75 = arith.addf %73, %74 : vector<8x1xf32>
    %76 = math.rsqrt %75 : vector<8x1xf32>
    %77 = vector.extract_strided_slice %22 {offsets = [0, 0], sizes = [8, 72], strides = [1, 1]} : vector<32x72xf32> to vector<8x72xf32>
    %78 = vector.broadcast %67 : vector<8x1xf32> to vector<8x72xf32>
    %79 = arith.subf %77, %78 : vector<8x72xf32>
    %80 = vector.broadcast %76 : vector<8x1xf32> to vector<8x72xf32>
    %81 = arith.mulf %79, %80 : vector<8x72xf32>
    %cst_37 = arith.constant 0.000000e+00 : f32
    %82 = vector.broadcast %cst_37 : f32 to vector<8x72xf32>
    %83 = arith.maximumf %81, %82 : vector<8x72xf32>
    %84 = vector.shape_cast %83 : vector<8x72xf32> to vector<1x8x72xf32>
    %85 = arith.truncf %84 : vector<1x8x72xf32> to vector<1x8x72xbf16>
    %c0_38 = arith.constant 0 : index
    %c0_39 = arith.constant 0 : index
    %c0_40 = arith.constant 0 : index
    %86 = vector.load %arg4[%c0_38, %c0_39, %c0_40] : memref<1x32x72xbf16, #tpu.memory_space<vmem>>, vector<1x8x72xbf16>
    tpu.vector_store %arg4[%c0_38, %c0_39, %c0_40], %85 {strides = array<i32>} : memref<1x32x72xbf16, #tpu.memory_space<vmem>>, vector<1x8x72xbf16>,
    %87 = vector.extract_strided_slice %22 {offsets = [8, 0], sizes = [8, 72], strides = [1, 1]} : vector<32x72xf32> to vector<8x72xf32>
    %88 = vector.broadcast %67 : vector<8x1xf32> to vector<8x72xf32>
    %89 = arith.subf %87, %88 : vector<8x72xf32>
    %90 = vector.broadcast %76 : vector<8x1xf32> to vector<8x72xf32>
    %91 = arith.mulf %89, %90 : vector<8x72xf32>
    %cst_41 = arith.constant 0.000000e+00 : f32
    %92 = vector.broadcast %cst_41 : f32 to vector<8x72xf32>
    %93 = arith.maximumf %91, %92 : vector<8x72xf32>
    %94 = vector.shape_cast %93 : vector<8x72xf32> to vector<1x8x72xf32>
    %95 = arith.truncf %94 : vector<1x8x72xf32> to vector<1x8x72xbf16>
    %c0_42 = arith.constant 0 : index
    %c8 = arith.constant 8 : index
    %c0_43 = arith.constant 0 : index
    %96 = vector.load %arg4[%c0_42, %c8, %c0_43] : memref<1x32x72xbf16, #tpu.memory_space<vmem>>, vector<1x8x72xbf16>
    tpu.vector_store %arg4[%c0_42, %c8, %c0_43], %95 {strides = array<i32>} : memref<1x32x72xbf16, #tpu.memory_space<vmem>>, vector<1x8x72xbf16>,
    %97 = vector.extract_strided_slice %22 {offsets = [16, 0], sizes = [8, 72], strides = [1, 1]} : vector<32x72xf32> to vector<8x72xf32>
    %98 = vector.broadcast %67 : vector<8x1xf32> to vector<8x72xf32>
    %99 = arith.subf %97, %98 : vector<8x72xf32>
    %100 = vector.broadcast %76 : vector<8x1xf32> to vector<8x72xf32>
    %101 = arith.mulf %99, %100 : vector<8x72xf32>
    %cst_44 = arith.constant 0.000000e+00 : f32
    %102 = vector.broadcast %cst_44 : f32 to vector<8x72xf32>
    %103 = arith.maximumf %101, %102 : vector<8x72xf32>
    %104 = vector.shape_cast %103 : vector<8x72xf32> to vector<1x8x72xf32>
    %105 = arith.truncf %104 : vector<1x8x72xf32> to vector<1x8x72xbf16>
    %c0_45 = arith.constant 0 : index
    %c16 = arith.constant 16 : index
    %c0_46 = arith.constant 0 : index
    %106 = vector.load %arg4[%c0_45, %c16, %c0_46] : memref<1x32x72xbf16, #tpu.memory_space<vmem>>, vector<1x8x72xbf16>
    tpu.vector_store %arg4[%c0_45, %c16, %c0_46], %105 {strides = array<i32>} : memref<1x32x72xbf16, #tpu.memory_space<vmem>>, vector<1x8x72xbf16>,
    %107 = vector.extract_strided_slice %22 {offsets = [24, 0], sizes = [8, 72], strides = [1, 1]} : vector<32x72xf32> to vector<8x72xf32>
    %108 = vector.broadcast %67 : vector<8x1xf32> to vector<8x72xf32>
    %109 = arith.subf %107, %108 : vector<8x72xf32>
    %110 = vector.broadcast %76 : vector<8x1xf32> to vector<8x72xf32>
    %111 = arith.mulf %109, %110 : vector<8x72xf32>
    %cst_47 = arith.constant 0.000000e+00 : f32
    %112 = vector.broadcast %cst_47 : f32 to vector<8x72xf32>
    %113 = arith.maximumf %111, %112 : vector<8x72xf32>
    %114 = vector.shape_cast %113 : vector<8x72xf32> to vector<1x8x72xf32>
    %115 = arith.truncf %114 : vector<1x8x72xf32> to vector<1x8x72xbf16>
    %c0_48 = arith.constant 0 : index
    %c24 = arith.constant 24 : index
    %c0_49 = arith.constant 0 : index
    %116 = vector.load %arg4[%c0_48, %c24, %c0_49] : memref<1x32x72xbf16, #tpu.memory_space<vmem>>, vector<1x8x72xbf16>
    tpu.vector_store %arg4[%c0_48, %c24, %c0_49], %115 {strides = array<i32>} : memref<1x32x72xbf16, #tpu.memory_space<vmem>>, vector<1x8x72xbf16>,
    return
  }
  func.func @transform_0(%arg0: i32) -> (i32, i32, i32) {
    %c0_i32 = arith.constant 0 : i32
    %c0_i32_0 = arith.constant 0 : i32
    %c0_i32_1 = arith.constant 0 : i32
    %c0_i32_2 = arith.constant 0 : i32
    return %c0_i32, %c0_i32_0, %c0_i32_1 : i32, i32, i32
  }
  func.func @transform_1(%arg0: i32) -> (i32, i32, i32) {
    %c0_i32 = arith.constant 0 : i32
    %c0_i32_0 = arith.constant 0 : i32
    %c0_i32_1 = arith.constant 0 : i32
    return %arg0, %c0_i32, %c0_i32_0 : i32, i32, i32
  }
  func.func @transform_2(%arg0: i32) -> (i32, i32) {
    %c0_i32 = arith.constant 0 : i32
    %c0_i32_0 = arith.constant 0 : i32
    %c0_i32_1 = arith.constant 0 : i32
    return %c0_i32, %c0_i32_0 : i32, i32
  }
  func.func @transform_3(%arg0: i32) -> (i32, i32, i32) {
    %c0_i32 = arith.constant 0 : i32
    %c0_i32_0 = arith.constant 0 : i32
    %c0_i32_1 = arith.constant 0 : i32
    return %arg0, %c0_i32, %c0_i32_0 : i32, i32, i32
  }
}

module attributes {stable_mosaic.version = 11 : i64} {
  func.func @_fused_tap_kernel(%arg0: i32, %arg1: memref<49x3x8xbf16, #tpu.memory_space<vmem>>, %arg2: memref<1x8x512xbf16, #tpu.memory_space<vmem>>, %arg3: memref<3x1xf32, #tpu.memory_space<vmem>>, %arg4: memref<1x3x352xf32, #tpu.memory_space<vmem>>) attributes {dimension_semantics = [#tpu.dimension_semantics<parallel>], iteration_bounds = array<i64: 2>, scalar_prefetch = 0 : i64, scratch_operands = 0 : i64, tpu.core_type = #tpu.core_type<tc>, window_params = [{pipeline_mode = #tpu.pipeline_mode<synchronous>, transform_indices = @transform_0, window_bounds = array<i64: 49, 3, 8>}, {transform_indices = @transform_1, window_bounds = array<i64: 1, 8, 512>}, {pipeline_mode = #tpu.pipeline_mode<synchronous>, transform_indices = @transform_2, window_bounds = array<i64: 3, 1>}, {transform_indices = @transform_3, window_bounds = array<i64: 1, 3, 352>}]} {
    %c0 = arith.constant 0 : index
    %c0_0 = arith.constant 0 : index
    %c0_1 = arith.constant 0 : index
    %0 = vector.load %arg2[%c0, %c0_0, %c0_1] : memref<1x8x512xbf16, #tpu.memory_space<vmem>>, vector<1x8x352xbf16>
    %1 = vector.shape_cast %0 : vector<1x8x352xbf16> to vector<8x352xbf16>
    %c0_2 = arith.constant 0 : index
    %c0_3 = arith.constant 0 : index
    %c0_4 = arith.constant 0 : index
    %2 = vector.load %arg1[%c0_2, %c0_3, %c0_4] : memref<49x3x8xbf16, #tpu.memory_space<vmem>>, vector<1x3x8xbf16>
    %3 = vector.shape_cast %2 : vector<1x3x8xbf16> to vector<3x8xbf16>
    %cst = arith.constant dense<0.000000e+00> : vector<3x352xf32>
    %4 = tpu.matmul %3, %1, %cst {dimension_numbers = #tpu.dot_dimension_numbers<[1], [0], [0], [1], [0, 0, 1, 1], [], []>} : vector<3x8xbf16>, vector<8x352xbf16>, vector<3x352xf32> -> vector<3x352xf32>
    %c0_5 = arith.constant 0 : index
    %c0_6 = arith.constant 0 : index
    %c1 = arith.constant 1 : index
    %5 = vector.load %arg2[%c0_5, %c0_6, %c1] : memref<1x8x512xbf16, #tpu.memory_space<vmem>>, vector<1x8x352xbf16>
    %6 = vector.shape_cast %5 : vector<1x8x352xbf16> to vector<8x352xbf16>
    %c1_7 = arith.constant 1 : index
    %c0_8 = arith.constant 0 : index
    %c0_9 = arith.constant 0 : index
    %7 = vector.load %arg1[%c1_7, %c0_8, %c0_9] : memref<49x3x8xbf16, #tpu.memory_space<vmem>>, vector<1x3x8xbf16>
    %8 = vector.shape_cast %7 : vector<1x3x8xbf16> to vector<3x8xbf16>
    %cst_10 = arith.constant dense<0.000000e+00> : vector<3x352xf32>
    %9 = tpu.matmul %8, %6, %cst_10 {dimension_numbers = #tpu.dot_dimension_numbers<[1], [0], [0], [1], [0, 0, 1, 1], [], []>} : vector<3x8xbf16>, vector<8x352xbf16>, vector<3x352xf32> -> vector<3x352xf32>
    %10 = arith.addf %4, %9 : vector<3x352xf32>
    %c0_11 = arith.constant 0 : index
    %c0_12 = arith.constant 0 : index
    %c2 = arith.constant 2 : index
    %11 = vector.load %arg2[%c0_11, %c0_12, %c2] : memref<1x8x512xbf16, #tpu.memory_space<vmem>>, vector<1x8x352xbf16>
    %12 = vector.shape_cast %11 : vector<1x8x352xbf16> to vector<8x352xbf16>
    %c2_13 = arith.constant 2 : index
    %c0_14 = arith.constant 0 : index
    %c0_15 = arith.constant 0 : index
    %13 = vector.load %arg1[%c2_13, %c0_14, %c0_15] : memref<49x3x8xbf16, #tpu.memory_space<vmem>>, vector<1x3x8xbf16>
    %14 = vector.shape_cast %13 : vector<1x3x8xbf16> to vector<3x8xbf16>
    %cst_16 = arith.constant dense<0.000000e+00> : vector<3x352xf32>
    %15 = tpu.matmul %14, %12, %cst_16 {dimension_numbers = #tpu.dot_dimension_numbers<[1], [0], [0], [1], [0, 0, 1, 1], [], []>} : vector<3x8xbf16>, vector<8x352xbf16>, vector<3x352xf32> -> vector<3x352xf32>
    %16 = arith.addf %10, %15 : vector<3x352xf32>
    %c0_17 = arith.constant 0 : index
    %c0_18 = arith.constant 0 : index
    %c3 = arith.constant 3 : index
    %17 = vector.load %arg2[%c0_17, %c0_18, %c3] : memref<1x8x512xbf16, #tpu.memory_space<vmem>>, vector<1x8x352xbf16>
    %18 = vector.shape_cast %17 : vector<1x8x352xbf16> to vector<8x352xbf16>
    %c3_19 = arith.constant 3 : index
    %c0_20 = arith.constant 0 : index
    %c0_21 = arith.constant 0 : index
    %19 = vector.load %arg1[%c3_19, %c0_20, %c0_21] : memref<49x3x8xbf16, #tpu.memory_space<vmem>>, vector<1x3x8xbf16>
    %20 = vector.shape_cast %19 : vector<1x3x8xbf16> to vector<3x8xbf16>
    %cst_22 = arith.constant dense<0.000000e+00> : vector<3x352xf32>
    %21 = tpu.matmul %20, %18, %cst_22 {dimension_numbers = #tpu.dot_dimension_numbers<[1], [0], [0], [1], [0, 0, 1, 1], [], []>} : vector<3x8xbf16>, vector<8x352xbf16>, vector<3x352xf32> -> vector<3x352xf32>
    %22 = arith.addf %16, %21 : vector<3x352xf32>
    %c0_23 = arith.constant 0 : index
    %c0_24 = arith.constant 0 : index
    %c4 = arith.constant 4 : index
    %23 = vector.load %arg2[%c0_23, %c0_24, %c4] : memref<1x8x512xbf16, #tpu.memory_space<vmem>>, vector<1x8x352xbf16>
    %24 = vector.shape_cast %23 : vector<1x8x352xbf16> to vector<8x352xbf16>
    %c4_25 = arith.constant 4 : index
    %c0_26 = arith.constant 0 : index
    %c0_27 = arith.constant 0 : index
    %25 = vector.load %arg1[%c4_25, %c0_26, %c0_27] : memref<49x3x8xbf16, #tpu.memory_space<vmem>>, vector<1x3x8xbf16>
    %26 = vector.shape_cast %25 : vector<1x3x8xbf16> to vector<3x8xbf16>
    %cst_28 = arith.constant dense<0.000000e+00> : vector<3x352xf32>
    %27 = tpu.matmul %26, %24, %cst_28 {dimension_numbers = #tpu.dot_dimension_numbers<[1], [0], [0], [1], [0, 0, 1, 1], [], []>} : vector<3x8xbf16>, vector<8x352xbf16>, vector<3x352xf32> -> vector<3x352xf32>
    %28 = arith.addf %22, %27 : vector<3x352xf32>
    %c0_29 = arith.constant 0 : index
    %c0_30 = arith.constant 0 : index
    %c5 = arith.constant 5 : index
    %29 = vector.load %arg2[%c0_29, %c0_30, %c5] : memref<1x8x512xbf16, #tpu.memory_space<vmem>>, vector<1x8x352xbf16>
    %30 = vector.shape_cast %29 : vector<1x8x352xbf16> to vector<8x352xbf16>
    %c5_31 = arith.constant 5 : index
    %c0_32 = arith.constant 0 : index
    %c0_33 = arith.constant 0 : index
    %31 = vector.load %arg1[%c5_31, %c0_32, %c0_33] : memref<49x3x8xbf16, #tpu.memory_space<vmem>>, vector<1x3x8xbf16>
    %32 = vector.shape_cast %31 : vector<1x3x8xbf16> to vector<3x8xbf16>
    %cst_34 = arith.constant dense<0.000000e+00> : vector<3x352xf32>
    %33 = tpu.matmul %32, %30, %cst_34 {dimension_numbers = #tpu.dot_dimension_numbers<[1], [0], [0], [1], [0, 0, 1, 1], [], []>} : vector<3x8xbf16>, vector<8x352xbf16>, vector<3x352xf32> -> vector<3x352xf32>
    %34 = arith.addf %28, %33 : vector<3x352xf32>
    %c0_35 = arith.constant 0 : index
    %c0_36 = arith.constant 0 : index
    %c6 = arith.constant 6 : index
    %35 = vector.load %arg2[%c0_35, %c0_36, %c6] : memref<1x8x512xbf16, #tpu.memory_space<vmem>>, vector<1x8x352xbf16>
    %36 = vector.shape_cast %35 : vector<1x8x352xbf16> to vector<8x352xbf16>
    %c6_37 = arith.constant 6 : index
    %c0_38 = arith.constant 0 : index
    %c0_39 = arith.constant 0 : index
    %37 = vector.load %arg1[%c6_37, %c0_38, %c0_39] : memref<49x3x8xbf16, #tpu.memory_space<vmem>>, vector<1x3x8xbf16>
    %38 = vector.shape_cast %37 : vector<1x3x8xbf16> to vector<3x8xbf16>
    %cst_40 = arith.constant dense<0.000000e+00> : vector<3x352xf32>
    %39 = tpu.matmul %38, %36, %cst_40 {dimension_numbers = #tpu.dot_dimension_numbers<[1], [0], [0], [1], [0, 0, 1, 1], [], []>} : vector<3x8xbf16>, vector<8x352xbf16>, vector<3x352xf32> -> vector<3x352xf32>
    %40 = arith.addf %34, %39 : vector<3x352xf32>
    %c0_41 = arith.constant 0 : index
    %c0_42 = arith.constant 0 : index
    %c22 = arith.constant 22 : index
    %41 = vector.load %arg2[%c0_41, %c0_42, %c22] : memref<1x8x512xbf16, #tpu.memory_space<vmem>>, vector<1x8x352xbf16>
    %42 = vector.shape_cast %41 : vector<1x8x352xbf16> to vector<8x352xbf16>
    %c7 = arith.constant 7 : index
    %c0_43 = arith.constant 0 : index
    %c0_44 = arith.constant 0 : index
    %43 = vector.load %arg1[%c7, %c0_43, %c0_44] : memref<49x3x8xbf16, #tpu.memory_space<vmem>>, vector<1x3x8xbf16>
    %44 = vector.shape_cast %43 : vector<1x3x8xbf16> to vector<3x8xbf16>
    %cst_45 = arith.constant dense<0.000000e+00> : vector<3x352xf32>
    %45 = tpu.matmul %44, %42, %cst_45 {dimension_numbers = #tpu.dot_dimension_numbers<[1], [0], [0], [1], [0, 0, 1, 1], [], []>} : vector<3x8xbf16>, vector<8x352xbf16>, vector<3x352xf32> -> vector<3x352xf32>
    %46 = arith.addf %40, %45 : vector<3x352xf32>
    %c0_46 = arith.constant 0 : index
    %c0_47 = arith.constant 0 : index
    %c23 = arith.constant 23 : index
    %47 = vector.load %arg2[%c0_46, %c0_47, %c23] : memref<1x8x512xbf16, #tpu.memory_space<vmem>>, vector<1x8x352xbf16>
    %48 = vector.shape_cast %47 : vector<1x8x352xbf16> to vector<8x352xbf16>
    %c8 = arith.constant 8 : index
    %c0_48 = arith.constant 0 : index
    %c0_49 = arith.constant 0 : index
    %49 = vector.load %arg1[%c8, %c0_48, %c0_49] : memref<49x3x8xbf16, #tpu.memory_space<vmem>>, vector<1x3x8xbf16>
    %50 = vector.shape_cast %49 : vector<1x3x8xbf16> to vector<3x8xbf16>
    %cst_50 = arith.constant dense<0.000000e+00> : vector<3x352xf32>
    %51 = tpu.matmul %50, %48, %cst_50 {dimension_numbers = #tpu.dot_dimension_numbers<[1], [0], [0], [1], [0, 0, 1, 1], [], []>} : vector<3x8xbf16>, vector<8x352xbf16>, vector<3x352xf32> -> vector<3x352xf32>
    %52 = arith.addf %46, %51 : vector<3x352xf32>
    %c0_51 = arith.constant 0 : index
    %c0_52 = arith.constant 0 : index
    %c24 = arith.constant 24 : index
    %53 = vector.load %arg2[%c0_51, %c0_52, %c24] : memref<1x8x512xbf16, #tpu.memory_space<vmem>>, vector<1x8x352xbf16>
    %54 = vector.shape_cast %53 : vector<1x8x352xbf16> to vector<8x352xbf16>
    %c9 = arith.constant 9 : index
    %c0_53 = arith.constant 0 : index
    %c0_54 = arith.constant 0 : index
    %55 = vector.load %arg1[%c9, %c0_53, %c0_54] : memref<49x3x8xbf16, #tpu.memory_space<vmem>>, vector<1x3x8xbf16>
    %56 = vector.shape_cast %55 : vector<1x3x8xbf16> to vector<3x8xbf16>
    %cst_55 = arith.constant dense<0.000000e+00> : vector<3x352xf32>
    %57 = tpu.matmul %56, %54, %cst_55 {dimension_numbers = #tpu.dot_dimension_numbers<[1], [0], [0], [1], [0, 0, 1, 1], [], []>} : vector<3x8xbf16>, vector<8x352xbf16>, vector<3x352xf32> -> vector<3x352xf32>
    %58 = arith.addf %52, %57 : vector<3x352xf32>
    %c0_56 = arith.constant 0 : index
    %c0_57 = arith.constant 0 : index
    %c25 = arith.constant 25 : index
    %59 = vector.load %arg2[%c0_56, %c0_57, %c25] : memref<1x8x512xbf16, #tpu.memory_space<vmem>>, vector<1x8x352xbf16>
    %60 = vector.shape_cast %59 : vector<1x8x352xbf16> to vector<8x352xbf16>
    %c10 = arith.constant 10 : index
    %c0_58 = arith.constant 0 : index
    %c0_59 = arith.constant 0 : index
    %61 = vector.load %arg1[%c10, %c0_58, %c0_59] : memref<49x3x8xbf16, #tpu.memory_space<vmem>>, vector<1x3x8xbf16>
    %62 = vector.shape_cast %61 : vector<1x3x8xbf16> to vector<3x8xbf16>
    %cst_60 = arith.constant dense<0.000000e+00> : vector<3x352xf32>
    %63 = tpu.matmul %62, %60, %cst_60 {dimension_numbers = #tpu.dot_dimension_numbers<[1], [0], [0], [1], [0, 0, 1, 1], [], []>} : vector<3x8xbf16>, vector<8x352xbf16>, vector<3x352xf32> -> vector<3x352xf32>
    %64 = arith.addf %58, %63 : vector<3x352xf32>
    %c0_61 = arith.constant 0 : index
    %c0_62 = arith.constant 0 : index
    %c26 = arith.constant 26 : index
    %65 = vector.load %arg2[%c0_61, %c0_62, %c26] : memref<1x8x512xbf16, #tpu.memory_space<vmem>>, vector<1x8x352xbf16>
    %66 = vector.shape_cast %65 : vector<1x8x352xbf16> to vector<8x352xbf16>
    %c11 = arith.constant 11 : index
    %c0_63 = arith.constant 0 : index
    %c0_64 = arith.constant 0 : index
    %67 = vector.load %arg1[%c11, %c0_63, %c0_64] : memref<49x3x8xbf16, #tpu.memory_space<vmem>>, vector<1x3x8xbf16>
    %68 = vector.shape_cast %67 : vector<1x3x8xbf16> to vector<3x8xbf16>
    %cst_65 = arith.constant dense<0.000000e+00> : vector<3x352xf32>
    %69 = tpu.matmul %68, %66, %cst_65 {dimension_numbers = #tpu.dot_dimension_numbers<[1], [0], [0], [1], [0, 0, 1, 1], [], []>} : vector<3x8xbf16>, vector<8x352xbf16>, vector<3x352xf32> -> vector<3x352xf32>
    %70 = arith.addf %64, %69 : vector<3x352xf32>
    %c0_66 = arith.constant 0 : index
    %c0_67 = arith.constant 0 : index
    %c27 = arith.constant 27 : index
    %71 = vector.load %arg2[%c0_66, %c0_67, %c27] : memref<1x8x512xbf16, #tpu.memory_space<vmem>>, vector<1x8x352xbf16>
    %72 = vector.shape_cast %71 : vector<1x8x352xbf16> to vector<8x352xbf16>
    %c12 = arith.constant 12 : index
    %c0_68 = arith.constant 0 : index
    %c0_69 = arith.constant 0 : index
    %73 = vector.load %arg1[%c12, %c0_68, %c0_69] : memref<49x3x8xbf16, #tpu.memory_space<vmem>>, vector<1x3x8xbf16>
    %74 = vector.shape_cast %73 : vector<1x3x8xbf16> to vector<3x8xbf16>
    %cst_70 = arith.constant dense<0.000000e+00> : vector<3x352xf32>
    %75 = tpu.matmul %74, %72, %cst_70 {dimension_numbers = #tpu.dot_dimension_numbers<[1], [0], [0], [1], [0, 0, 1, 1], [], []>} : vector<3x8xbf16>, vector<8x352xbf16>, vector<3x352xf32> -> vector<3x352xf32>
    %76 = arith.addf %70, %75 : vector<3x352xf32>
    %c0_71 = arith.constant 0 : index
    %c0_72 = arith.constant 0 : index
    %c28 = arith.constant 28 : index
    %77 = vector.load %arg2[%c0_71, %c0_72, %c28] : memref<1x8x512xbf16, #tpu.memory_space<vmem>>, vector<1x8x352xbf16>
    %78 = vector.shape_cast %77 : vector<1x8x352xbf16> to vector<8x352xbf16>
    %c13 = arith.constant 13 : index
    %c0_73 = arith.constant 0 : index
    %c0_74 = arith.constant 0 : index
    %79 = vector.load %arg1[%c13, %c0_73, %c0_74] : memref<49x3x8xbf16, #tpu.memory_space<vmem>>, vector<1x3x8xbf16>
    %80 = vector.shape_cast %79 : vector<1x3x8xbf16> to vector<3x8xbf16>
    %cst_75 = arith.constant dense<0.000000e+00> : vector<3x352xf32>
    %81 = tpu.matmul %80, %78, %cst_75 {dimension_numbers = #tpu.dot_dimension_numbers<[1], [0], [0], [1], [0, 0, 1, 1], [], []>} : vector<3x8xbf16>, vector<8x352xbf16>, vector<3x352xf32> -> vector<3x352xf32>
    %82 = arith.addf %76, %81 : vector<3x352xf32>
    %c0_76 = arith.constant 0 : index
    %c0_77 = arith.constant 0 : index
    %c44 = arith.constant 44 : index
    %83 = vector.load %arg2[%c0_76, %c0_77, %c44] : memref<1x8x512xbf16, #tpu.memory_space<vmem>>, vector<1x8x352xbf16>
    %84 = vector.shape_cast %83 : vector<1x8x352xbf16> to vector<8x352xbf16>
    %c14 = arith.constant 14 : index
    %c0_78 = arith.constant 0 : index
    %c0_79 = arith.constant 0 : index
    %85 = vector.load %arg1[%c14, %c0_78, %c0_79] : memref<49x3x8xbf16, #tpu.memory_space<vmem>>, vector<1x3x8xbf16>
    %86 = vector.shape_cast %85 : vector<1x3x8xbf16> to vector<3x8xbf16>
    %cst_80 = arith.constant dense<0.000000e+00> : vector<3x352xf32>
    %87 = tpu.matmul %86, %84, %cst_80 {dimension_numbers = #tpu.dot_dimension_numbers<[1], [0], [0], [1], [0, 0, 1, 1], [], []>} : vector<3x8xbf16>, vector<8x352xbf16>, vector<3x352xf32> -> vector<3x352xf32>
    %88 = arith.addf %82, %87 : vector<3x352xf32>
    %c0_81 = arith.constant 0 : index
    %c0_82 = arith.constant 0 : index
    %c45 = arith.constant 45 : index
    %89 = vector.load %arg2[%c0_81, %c0_82, %c45] : memref<1x8x512xbf16, #tpu.memory_space<vmem>>, vector<1x8x352xbf16>
    %90 = vector.shape_cast %89 : vector<1x8x352xbf16> to vector<8x352xbf16>
    %c15 = arith.constant 15 : index
    %c0_83 = arith.constant 0 : index
    %c0_84 = arith.constant 0 : index
    %91 = vector.load %arg1[%c15, %c0_83, %c0_84] : memref<49x3x8xbf16, #tpu.memory_space<vmem>>, vector<1x3x8xbf16>
    %92 = vector.shape_cast %91 : vector<1x3x8xbf16> to vector<3x8xbf16>
    %cst_85 = arith.constant dense<0.000000e+00> : vector<3x352xf32>
    %93 = tpu.matmul %92, %90, %cst_85 {dimension_numbers = #tpu.dot_dimension_numbers<[1], [0], [0], [1], [0, 0, 1, 1], [], []>} : vector<3x8xbf16>, vector<8x352xbf16>, vector<3x352xf32> -> vector<3x352xf32>
    %94 = arith.addf %88, %93 : vector<3x352xf32>
    %c0_86 = arith.constant 0 : index
    %c0_87 = arith.constant 0 : index
    %c46 = arith.constant 46 : index
    %95 = vector.load %arg2[%c0_86, %c0_87, %c46] : memref<1x8x512xbf16, #tpu.memory_space<vmem>>, vector<1x8x352xbf16>
    %96 = vector.shape_cast %95 : vector<1x8x352xbf16> to vector<8x352xbf16>
    %c16 = arith.constant 16 : index
    %c0_88 = arith.constant 0 : index
    %c0_89 = arith.constant 0 : index
    %97 = vector.load %arg1[%c16, %c0_88, %c0_89] : memref<49x3x8xbf16, #tpu.memory_space<vmem>>, vector<1x3x8xbf16>
    %98 = vector.shape_cast %97 : vector<1x3x8xbf16> to vector<3x8xbf16>
    %cst_90 = arith.constant dense<0.000000e+00> : vector<3x352xf32>
    %99 = tpu.matmul %98, %96, %cst_90 {dimension_numbers = #tpu.dot_dimension_numbers<[1], [0], [0], [1], [0, 0, 1, 1], [], []>} : vector<3x8xbf16>, vector<8x352xbf16>, vector<3x352xf32> -> vector<3x352xf32>
    %100 = arith.addf %94, %99 : vector<3x352xf32>
    %c0_91 = arith.constant 0 : index
    %c0_92 = arith.constant 0 : index
    %c47 = arith.constant 47 : index
    %101 = vector.load %arg2[%c0_91, %c0_92, %c47] : memref<1x8x512xbf16, #tpu.memory_space<vmem>>, vector<1x8x352xbf16>
    %102 = vector.shape_cast %101 : vector<1x8x352xbf16> to vector<8x352xbf16>
    %c17 = arith.constant 17 : index
    %c0_93 = arith.constant 0 : index
    %c0_94 = arith.constant 0 : index
    %103 = vector.load %arg1[%c17, %c0_93, %c0_94] : memref<49x3x8xbf16, #tpu.memory_space<vmem>>, vector<1x3x8xbf16>
    %104 = vector.shape_cast %103 : vector<1x3x8xbf16> to vector<3x8xbf16>
    %cst_95 = arith.constant dense<0.000000e+00> : vector<3x352xf32>
    %105 = tpu.matmul %104, %102, %cst_95 {dimension_numbers = #tpu.dot_dimension_numbers<[1], [0], [0], [1], [0, 0, 1, 1], [], []>} : vector<3x8xbf16>, vector<8x352xbf16>, vector<3x352xf32> -> vector<3x352xf32>
    %106 = arith.addf %100, %105 : vector<3x352xf32>
    %c0_96 = arith.constant 0 : index
    %c0_97 = arith.constant 0 : index
    %c48 = arith.constant 48 : index
    %107 = vector.load %arg2[%c0_96, %c0_97, %c48] : memref<1x8x512xbf16, #tpu.memory_space<vmem>>, vector<1x8x352xbf16>
    %108 = vector.shape_cast %107 : vector<1x8x352xbf16> to vector<8x352xbf16>
    %c18 = arith.constant 18 : index
    %c0_98 = arith.constant 0 : index
    %c0_99 = arith.constant 0 : index
    %109 = vector.load %arg1[%c18, %c0_98, %c0_99] : memref<49x3x8xbf16, #tpu.memory_space<vmem>>, vector<1x3x8xbf16>
    %110 = vector.shape_cast %109 : vector<1x3x8xbf16> to vector<3x8xbf16>
    %cst_100 = arith.constant dense<0.000000e+00> : vector<3x352xf32>
    %111 = tpu.matmul %110, %108, %cst_100 {dimension_numbers = #tpu.dot_dimension_numbers<[1], [0], [0], [1], [0, 0, 1, 1], [], []>} : vector<3x8xbf16>, vector<8x352xbf16>, vector<3x352xf32> -> vector<3x352xf32>
    %112 = arith.addf %106, %111 : vector<3x352xf32>
    %c0_101 = arith.constant 0 : index
    %c0_102 = arith.constant 0 : index
    %c49 = arith.constant 49 : index
    %113 = vector.load %arg2[%c0_101, %c0_102, %c49] : memref<1x8x512xbf16, #tpu.memory_space<vmem>>, vector<1x8x352xbf16>
    %114 = vector.shape_cast %113 : vector<1x8x352xbf16> to vector<8x352xbf16>
    %c19 = arith.constant 19 : index
    %c0_103 = arith.constant 0 : index
    %c0_104 = arith.constant 0 : index
    %115 = vector.load %arg1[%c19, %c0_103, %c0_104] : memref<49x3x8xbf16, #tpu.memory_space<vmem>>, vector<1x3x8xbf16>
    %116 = vector.shape_cast %115 : vector<1x3x8xbf16> to vector<3x8xbf16>
    %cst_105 = arith.constant dense<0.000000e+00> : vector<3x352xf32>
    %117 = tpu.matmul %116, %114, %cst_105 {dimension_numbers = #tpu.dot_dimension_numbers<[1], [0], [0], [1], [0, 0, 1, 1], [], []>} : vector<3x8xbf16>, vector<8x352xbf16>, vector<3x352xf32> -> vector<3x352xf32>
    %118 = arith.addf %112, %117 : vector<3x352xf32>
    %c0_106 = arith.constant 0 : index
    %c0_107 = arith.constant 0 : index
    %c50 = arith.constant 50 : index
    %119 = vector.load %arg2[%c0_106, %c0_107, %c50] : memref<1x8x512xbf16, #tpu.memory_space<vmem>>, vector<1x8x352xbf16>
    %120 = vector.shape_cast %119 : vector<1x8x352xbf16> to vector<8x352xbf16>
    %c20 = arith.constant 20 : index
    %c0_108 = arith.constant 0 : index
    %c0_109 = arith.constant 0 : index
    %121 = vector.load %arg1[%c20, %c0_108, %c0_109] : memref<49x3x8xbf16, #tpu.memory_space<vmem>>, vector<1x3x8xbf16>
    %122 = vector.shape_cast %121 : vector<1x3x8xbf16> to vector<3x8xbf16>
    %cst_110 = arith.constant dense<0.000000e+00> : vector<3x352xf32>
    %123 = tpu.matmul %122, %120, %cst_110 {dimension_numbers = #tpu.dot_dimension_numbers<[1], [0], [0], [1], [0, 0, 1, 1], [], []>} : vector<3x8xbf16>, vector<8x352xbf16>, vector<3x352xf32> -> vector<3x352xf32>
    %124 = arith.addf %118, %123 : vector<3x352xf32>
    %c0_111 = arith.constant 0 : index
    %c0_112 = arith.constant 0 : index
    %c66 = arith.constant 66 : index
    %125 = vector.load %arg2[%c0_111, %c0_112, %c66] : memref<1x8x512xbf16, #tpu.memory_space<vmem>>, vector<1x8x352xbf16>
    %126 = vector.shape_cast %125 : vector<1x8x352xbf16> to vector<8x352xbf16>
    %c21 = arith.constant 21 : index
    %c0_113 = arith.constant 0 : index
    %c0_114 = arith.constant 0 : index
    %127 = vector.load %arg1[%c21, %c0_113, %c0_114] : memref<49x3x8xbf16, #tpu.memory_space<vmem>>, vector<1x3x8xbf16>
    %128 = vector.shape_cast %127 : vector<1x3x8xbf16> to vector<3x8xbf16>
    %cst_115 = arith.constant dense<0.000000e+00> : vector<3x352xf32>
    %129 = tpu.matmul %128, %126, %cst_115 {dimension_numbers = #tpu.dot_dimension_numbers<[1], [0], [0], [1], [0, 0, 1, 1], [], []>} : vector<3x8xbf16>, vector<8x352xbf16>, vector<3x352xf32> -> vector<3x352xf32>
    %130 = arith.addf %124, %129 : vector<3x352xf32>
    %c0_116 = arith.constant 0 : index
    %c0_117 = arith.constant 0 : index
    %c67 = arith.constant 67 : index
    %131 = vector.load %arg2[%c0_116, %c0_117, %c67] : memref<1x8x512xbf16, #tpu.memory_space<vmem>>, vector<1x8x352xbf16>
    %132 = vector.shape_cast %131 : vector<1x8x352xbf16> to vector<8x352xbf16>
    %c22_118 = arith.constant 22 : index
    %c0_119 = arith.constant 0 : index
    %c0_120 = arith.constant 0 : index
    %133 = vector.load %arg1[%c22_118, %c0_119, %c0_120] : memref<49x3x8xbf16, #tpu.memory_space<vmem>>, vector<1x3x8xbf16>
    %134 = vector.shape_cast %133 : vector<1x3x8xbf16> to vector<3x8xbf16>
    %cst_121 = arith.constant dense<0.000000e+00> : vector<3x352xf32>
    %135 = tpu.matmul %134, %132, %cst_121 {dimension_numbers = #tpu.dot_dimension_numbers<[1], [0], [0], [1], [0, 0, 1, 1], [], []>} : vector<3x8xbf16>, vector<8x352xbf16>, vector<3x352xf32> -> vector<3x352xf32>
    %136 = arith.addf %130, %135 : vector<3x352xf32>
    %c0_122 = arith.constant 0 : index
    %c0_123 = arith.constant 0 : index
    %c68 = arith.constant 68 : index
    %137 = vector.load %arg2[%c0_122, %c0_123, %c68] : memref<1x8x512xbf16, #tpu.memory_space<vmem>>, vector<1x8x352xbf16>
    %138 = vector.shape_cast %137 : vector<1x8x352xbf16> to vector<8x352xbf16>
    %c23_124 = arith.constant 23 : index
    %c0_125 = arith.constant 0 : index
    %c0_126 = arith.constant 0 : index
    %139 = vector.load %arg1[%c23_124, %c0_125, %c0_126] : memref<49x3x8xbf16, #tpu.memory_space<vmem>>, vector<1x3x8xbf16>
    %140 = vector.shape_cast %139 : vector<1x3x8xbf16> to vector<3x8xbf16>
    %cst_127 = arith.constant dense<0.000000e+00> : vector<3x352xf32>
    %141 = tpu.matmul %140, %138, %cst_127 {dimension_numbers = #tpu.dot_dimension_numbers<[1], [0], [0], [1], [0, 0, 1, 1], [], []>} : vector<3x8xbf16>, vector<8x352xbf16>, vector<3x352xf32> -> vector<3x352xf32>
    %142 = arith.addf %136, %141 : vector<3x352xf32>
    %c0_128 = arith.constant 0 : index
    %c0_129 = arith.constant 0 : index
    %c69 = arith.constant 69 : index
    %143 = vector.load %arg2[%c0_128, %c0_129, %c69] : memref<1x8x512xbf16, #tpu.memory_space<vmem>>, vector<1x8x352xbf16>
    %144 = vector.shape_cast %143 : vector<1x8x352xbf16> to vector<8x352xbf16>
    %c24_130 = arith.constant 24 : index
    %c0_131 = arith.constant 0 : index
    %c0_132 = arith.constant 0 : index
    %145 = vector.load %arg1[%c24_130, %c0_131, %c0_132] : memref<49x3x8xbf16, #tpu.memory_space<vmem>>, vector<1x3x8xbf16>
    %146 = vector.shape_cast %145 : vector<1x3x8xbf16> to vector<3x8xbf16>
    %cst_133 = arith.constant dense<0.000000e+00> : vector<3x352xf32>
    %147 = tpu.matmul %146, %144, %cst_133 {dimension_numbers = #tpu.dot_dimension_numbers<[1], [0], [0], [1], [0, 0, 1, 1], [], []>} : vector<3x8xbf16>, vector<8x352xbf16>, vector<3x352xf32> -> vector<3x352xf32>
    %148 = arith.addf %142, %147 : vector<3x352xf32>
    %c0_134 = arith.constant 0 : index
    %c0_135 = arith.constant 0 : index
    %c70 = arith.constant 70 : index
    %149 = vector.load %arg2[%c0_134, %c0_135, %c70] : memref<1x8x512xbf16, #tpu.memory_space<vmem>>, vector<1x8x352xbf16>
    %150 = vector.shape_cast %149 : vector<1x8x352xbf16> to vector<8x352xbf16>
    %c25_136 = arith.constant 25 : index
    %c0_137 = arith.constant 0 : index
    %c0_138 = arith.constant 0 : index
    %151 = vector.load %arg1[%c25_136, %c0_137, %c0_138] : memref<49x3x8xbf16, #tpu.memory_space<vmem>>, vector<1x3x8xbf16>
    %152 = vector.shape_cast %151 : vector<1x3x8xbf16> to vector<3x8xbf16>
    %cst_139 = arith.constant dense<0.000000e+00> : vector<3x352xf32>
    %153 = tpu.matmul %152, %150, %cst_139 {dimension_numbers = #tpu.dot_dimension_numbers<[1], [0], [0], [1], [0, 0, 1, 1], [], []>} : vector<3x8xbf16>, vector<8x352xbf16>, vector<3x352xf32> -> vector<3x352xf32>
    %154 = arith.addf %148, %153 : vector<3x352xf32>
    %c0_140 = arith.constant 0 : index
    %c0_141 = arith.constant 0 : index
    %c71 = arith.constant 71 : index
    %155 = vector.load %arg2[%c0_140, %c0_141, %c71] : memref<1x8x512xbf16, #tpu.memory_space<vmem>>, vector<1x8x352xbf16>
    %156 = vector.shape_cast %155 : vector<1x8x352xbf16> to vector<8x352xbf16>
    %c26_142 = arith.constant 26 : index
    %c0_143 = arith.constant 0 : index
    %c0_144 = arith.constant 0 : index
    %157 = vector.load %arg1[%c26_142, %c0_143, %c0_144] : memref<49x3x8xbf16, #tpu.memory_space<vmem>>, vector<1x3x8xbf16>
    %158 = vector.shape_cast %157 : vector<1x3x8xbf16> to vector<3x8xbf16>
    %cst_145 = arith.constant dense<0.000000e+00> : vector<3x352xf32>
    %159 = tpu.matmul %158, %156, %cst_145 {dimension_numbers = #tpu.dot_dimension_numbers<[1], [0], [0], [1], [0, 0, 1, 1], [], []>} : vector<3x8xbf16>, vector<8x352xbf16>, vector<3x352xf32> -> vector<3x352xf32>
    %160 = arith.addf %154, %159 : vector<3x352xf32>
    %c0_146 = arith.constant 0 : index
    %c0_147 = arith.constant 0 : index
    %c72 = arith.constant 72 : index
    %161 = vector.load %arg2[%c0_146, %c0_147, %c72] : memref<1x8x512xbf16, #tpu.memory_space<vmem>>, vector<1x8x352xbf16>
    %162 = vector.shape_cast %161 : vector<1x8x352xbf16> to vector<8x352xbf16>
    %c27_148 = arith.constant 27 : index
    %c0_149 = arith.constant 0 : index
    %c0_150 = arith.constant 0 : index
    %163 = vector.load %arg1[%c27_148, %c0_149, %c0_150] : memref<49x3x8xbf16, #tpu.memory_space<vmem>>, vector<1x3x8xbf16>
    %164 = vector.shape_cast %163 : vector<1x3x8xbf16> to vector<3x8xbf16>
    %cst_151 = arith.constant dense<0.000000e+00> : vector<3x352xf32>
    %165 = tpu.matmul %164, %162, %cst_151 {dimension_numbers = #tpu.dot_dimension_numbers<[1], [0], [0], [1], [0, 0, 1, 1], [], []>} : vector<3x8xbf16>, vector<8x352xbf16>, vector<3x352xf32> -> vector<3x352xf32>
    %166 = arith.addf %160, %165 : vector<3x352xf32>
    %c0_152 = arith.constant 0 : index
    %c0_153 = arith.constant 0 : index
    %c88 = arith.constant 88 : index
    %167 = vector.load %arg2[%c0_152, %c0_153, %c88] : memref<1x8x512xbf16, #tpu.memory_space<vmem>>, vector<1x8x352xbf16>
    %168 = vector.shape_cast %167 : vector<1x8x352xbf16> to vector<8x352xbf16>
    %c28_154 = arith.constant 28 : index
    %c0_155 = arith.constant 0 : index
    %c0_156 = arith.constant 0 : index
    %169 = vector.load %arg1[%c28_154, %c0_155, %c0_156] : memref<49x3x8xbf16, #tpu.memory_space<vmem>>, vector<1x3x8xbf16>
    %170 = vector.shape_cast %169 : vector<1x3x8xbf16> to vector<3x8xbf16>
    %cst_157 = arith.constant dense<0.000000e+00> : vector<3x352xf32>
    %171 = tpu.matmul %170, %168, %cst_157 {dimension_numbers = #tpu.dot_dimension_numbers<[1], [0], [0], [1], [0, 0, 1, 1], [], []>} : vector<3x8xbf16>, vector<8x352xbf16>, vector<3x352xf32> -> vector<3x352xf32>
    %172 = arith.addf %166, %171 : vector<3x352xf32>
    %c0_158 = arith.constant 0 : index
    %c0_159 = arith.constant 0 : index
    %c89 = arith.constant 89 : index
    %173 = vector.load %arg2[%c0_158, %c0_159, %c89] : memref<1x8x512xbf16, #tpu.memory_space<vmem>>, vector<1x8x352xbf16>
    %174 = vector.shape_cast %173 : vector<1x8x352xbf16> to vector<8x352xbf16>
    %c29 = arith.constant 29 : index
    %c0_160 = arith.constant 0 : index
    %c0_161 = arith.constant 0 : index
    %175 = vector.load %arg1[%c29, %c0_160, %c0_161] : memref<49x3x8xbf16, #tpu.memory_space<vmem>>, vector<1x3x8xbf16>
    %176 = vector.shape_cast %175 : vector<1x3x8xbf16> to vector<3x8xbf16>
    %cst_162 = arith.constant dense<0.000000e+00> : vector<3x352xf32>
    %177 = tpu.matmul %176, %174, %cst_162 {dimension_numbers = #tpu.dot_dimension_numbers<[1], [0], [0], [1], [0, 0, 1, 1], [], []>} : vector<3x8xbf16>, vector<8x352xbf16>, vector<3x352xf32> -> vector<3x352xf32>
    %178 = arith.addf %172, %177 : vector<3x352xf32>
    %c0_163 = arith.constant 0 : index
    %c0_164 = arith.constant 0 : index
    %c90 = arith.constant 90 : index
    %179 = vector.load %arg2[%c0_163, %c0_164, %c90] : memref<1x8x512xbf16, #tpu.memory_space<vmem>>, vector<1x8x352xbf16>
    %180 = vector.shape_cast %179 : vector<1x8x352xbf16> to vector<8x352xbf16>
    %c30 = arith.constant 30 : index
    %c0_165 = arith.constant 0 : index
    %c0_166 = arith.constant 0 : index
    %181 = vector.load %arg1[%c30, %c0_165, %c0_166] : memref<49x3x8xbf16, #tpu.memory_space<vmem>>, vector<1x3x8xbf16>
    %182 = vector.shape_cast %181 : vector<1x3x8xbf16> to vector<3x8xbf16>
    %cst_167 = arith.constant dense<0.000000e+00> : vector<3x352xf32>
    %183 = tpu.matmul %182, %180, %cst_167 {dimension_numbers = #tpu.dot_dimension_numbers<[1], [0], [0], [1], [0, 0, 1, 1], [], []>} : vector<3x8xbf16>, vector<8x352xbf16>, vector<3x352xf32> -> vector<3x352xf32>
    %184 = arith.addf %178, %183 : vector<3x352xf32>
    %c0_168 = arith.constant 0 : index
    %c0_169 = arith.constant 0 : index
    %c91 = arith.constant 91 : index
    %185 = vector.load %arg2[%c0_168, %c0_169, %c91] : memref<1x8x512xbf16, #tpu.memory_space<vmem>>, vector<1x8x352xbf16>
    %186 = vector.shape_cast %185 : vector<1x8x352xbf16> to vector<8x352xbf16>
    %c31 = arith.constant 31 : index
    %c0_170 = arith.constant 0 : index
    %c0_171 = arith.constant 0 : index
    %187 = vector.load %arg1[%c31, %c0_170, %c0_171] : memref<49x3x8xbf16, #tpu.memory_space<vmem>>, vector<1x3x8xbf16>
    %188 = vector.shape_cast %187 : vector<1x3x8xbf16> to vector<3x8xbf16>
    %cst_172 = arith.constant dense<0.000000e+00> : vector<3x352xf32>
    %189 = tpu.matmul %188, %186, %cst_172 {dimension_numbers = #tpu.dot_dimension_numbers<[1], [0], [0], [1], [0, 0, 1, 1], [], []>} : vector<3x8xbf16>, vector<8x352xbf16>, vector<3x352xf32> -> vector<3x352xf32>
    %190 = arith.addf %184, %189 : vector<3x352xf32>
    %c0_173 = arith.constant 0 : index
    %c0_174 = arith.constant 0 : index
    %c92 = arith.constant 92 : index
    %191 = vector.load %arg2[%c0_173, %c0_174, %c92] : memref<1x8x512xbf16, #tpu.memory_space<vmem>>, vector<1x8x352xbf16>
    %192 = vector.shape_cast %191 : vector<1x8x352xbf16> to vector<8x352xbf16>
    %c32 = arith.constant 32 : index
    %c0_175 = arith.constant 0 : index
    %c0_176 = arith.constant 0 : index
    %193 = vector.load %arg1[%c32, %c0_175, %c0_176] : memref<49x3x8xbf16, #tpu.memory_space<vmem>>, vector<1x3x8xbf16>
    %194 = vector.shape_cast %193 : vector<1x3x8xbf16> to vector<3x8xbf16>
    %cst_177 = arith.constant dense<0.000000e+00> : vector<3x352xf32>
    %195 = tpu.matmul %194, %192, %cst_177 {dimension_numbers = #tpu.dot_dimension_numbers<[1], [0], [0], [1], [0, 0, 1, 1], [], []>} : vector<3x8xbf16>, vector<8x352xbf16>, vector<3x352xf32> -> vector<3x352xf32>
    %196 = arith.addf %190, %195 : vector<3x352xf32>
    %c0_178 = arith.constant 0 : index
    %c0_179 = arith.constant 0 : index
    %c93 = arith.constant 93 : index
    %197 = vector.load %arg2[%c0_178, %c0_179, %c93] : memref<1x8x512xbf16, #tpu.memory_space<vmem>>, vector<1x8x352xbf16>
    %198 = vector.shape_cast %197 : vector<1x8x352xbf16> to vector<8x352xbf16>
    %c33 = arith.constant 33 : index
    %c0_180 = arith.constant 0 : index
    %c0_181 = arith.constant 0 : index
    %199 = vector.load %arg1[%c33, %c0_180, %c0_181] : memref<49x3x8xbf16, #tpu.memory_space<vmem>>, vector<1x3x8xbf16>
    %200 = vector.shape_cast %199 : vector<1x3x8xbf16> to vector<3x8xbf16>
    %cst_182 = arith.constant dense<0.000000e+00> : vector<3x352xf32>
    %201 = tpu.matmul %200, %198, %cst_182 {dimension_numbers = #tpu.dot_dimension_numbers<[1], [0], [0], [1], [0, 0, 1, 1], [], []>} : vector<3x8xbf16>, vector<8x352xbf16>, vector<3x352xf32> -> vector<3x352xf32>
    %202 = arith.addf %196, %201 : vector<3x352xf32>
    %c0_183 = arith.constant 0 : index
    %c0_184 = arith.constant 0 : index
    %c94 = arith.constant 94 : index
    %203 = vector.load %arg2[%c0_183, %c0_184, %c94] : memref<1x8x512xbf16, #tpu.memory_space<vmem>>, vector<1x8x352xbf16>
    %204 = vector.shape_cast %203 : vector<1x8x352xbf16> to vector<8x352xbf16>
    %c34 = arith.constant 34 : index
    %c0_185 = arith.constant 0 : index
    %c0_186 = arith.constant 0 : index
    %205 = vector.load %arg1[%c34, %c0_185, %c0_186] : memref<49x3x8xbf16, #tpu.memory_space<vmem>>, vector<1x3x8xbf16>
    %206 = vector.shape_cast %205 : vector<1x3x8xbf16> to vector<3x8xbf16>
    %cst_187 = arith.constant dense<0.000000e+00> : vector<3x352xf32>
    %207 = tpu.matmul %206, %204, %cst_187 {dimension_numbers = #tpu.dot_dimension_numbers<[1], [0], [0], [1], [0, 0, 1, 1], [], []>} : vector<3x8xbf16>, vector<8x352xbf16>, vector<3x352xf32> -> vector<3x352xf32>
    %208 = arith.addf %202, %207 : vector<3x352xf32>
    %c0_188 = arith.constant 0 : index
    %c0_189 = arith.constant 0 : index
    %c110 = arith.constant 110 : index
    %209 = vector.load %arg2[%c0_188, %c0_189, %c110] : memref<1x8x512xbf16, #tpu.memory_space<vmem>>, vector<1x8x352xbf16>
    %210 = vector.shape_cast %209 : vector<1x8x352xbf16> to vector<8x352xbf16>
    %c35 = arith.constant 35 : index
    %c0_190 = arith.constant 0 : index
    %c0_191 = arith.constant 0 : index
    %211 = vector.load %arg1[%c35, %c0_190, %c0_191] : memref<49x3x8xbf16, #tpu.memory_space<vmem>>, vector<1x3x8xbf16>
    %212 = vector.shape_cast %211 : vector<1x3x8xbf16> to vector<3x8xbf16>
    %cst_192 = arith.constant dense<0.000000e+00> : vector<3x352xf32>
    %213 = tpu.matmul %212, %210, %cst_192 {dimension_numbers = #tpu.dot_dimension_numbers<[1], [0], [0], [1], [0, 0, 1, 1], [], []>} : vector<3x8xbf16>, vector<8x352xbf16>, vector<3x352xf32> -> vector<3x352xf32>
    %214 = arith.addf %208, %213 : vector<3x352xf32>
    %c0_193 = arith.constant 0 : index
    %c0_194 = arith.constant 0 : index
    %c111 = arith.constant 111 : index
    %215 = vector.load %arg2[%c0_193, %c0_194, %c111] : memref<1x8x512xbf16, #tpu.memory_space<vmem>>, vector<1x8x352xbf16>
    %216 = vector.shape_cast %215 : vector<1x8x352xbf16> to vector<8x352xbf16>
    %c36 = arith.constant 36 : index
    %c0_195 = arith.constant 0 : index
    %c0_196 = arith.constant 0 : index
    %217 = vector.load %arg1[%c36, %c0_195, %c0_196] : memref<49x3x8xbf16, #tpu.memory_space<vmem>>, vector<1x3x8xbf16>
    %218 = vector.shape_cast %217 : vector<1x3x8xbf16> to vector<3x8xbf16>
    %cst_197 = arith.constant dense<0.000000e+00> : vector<3x352xf32>
    %219 = tpu.matmul %218, %216, %cst_197 {dimension_numbers = #tpu.dot_dimension_numbers<[1], [0], [0], [1], [0, 0, 1, 1], [], []>} : vector<3x8xbf16>, vector<8x352xbf16>, vector<3x352xf32> -> vector<3x352xf32>
    %220 = arith.addf %214, %219 : vector<3x352xf32>
    %c0_198 = arith.constant 0 : index
    %c0_199 = arith.constant 0 : index
    %c112 = arith.constant 112 : index
    %221 = vector.load %arg2[%c0_198, %c0_199, %c112] : memref<1x8x512xbf16, #tpu.memory_space<vmem>>, vector<1x8x352xbf16>
    %222 = vector.shape_cast %221 : vector<1x8x352xbf16> to vector<8x352xbf16>
    %c37 = arith.constant 37 : index
    %c0_200 = arith.constant 0 : index
    %c0_201 = arith.constant 0 : index
    %223 = vector.load %arg1[%c37, %c0_200, %c0_201] : memref<49x3x8xbf16, #tpu.memory_space<vmem>>, vector<1x3x8xbf16>
    %224 = vector.shape_cast %223 : vector<1x3x8xbf16> to vector<3x8xbf16>
    %cst_202 = arith.constant dense<0.000000e+00> : vector<3x352xf32>
    %225 = tpu.matmul %224, %222, %cst_202 {dimension_numbers = #tpu.dot_dimension_numbers<[1], [0], [0], [1], [0, 0, 1, 1], [], []>} : vector<3x8xbf16>, vector<8x352xbf16>, vector<3x352xf32> -> vector<3x352xf32>
    %226 = arith.addf %220, %225 : vector<3x352xf32>
    %c0_203 = arith.constant 0 : index
    %c0_204 = arith.constant 0 : index
    %c113 = arith.constant 113 : index
    %227 = vector.load %arg2[%c0_203, %c0_204, %c113] : memref<1x8x512xbf16, #tpu.memory_space<vmem>>, vector<1x8x352xbf16>
    %228 = vector.shape_cast %227 : vector<1x8x352xbf16> to vector<8x352xbf16>
    %c38 = arith.constant 38 : index
    %c0_205 = arith.constant 0 : index
    %c0_206 = arith.constant 0 : index
    %229 = vector.load %arg1[%c38, %c0_205, %c0_206] : memref<49x3x8xbf16, #tpu.memory_space<vmem>>, vector<1x3x8xbf16>
    %230 = vector.shape_cast %229 : vector<1x3x8xbf16> to vector<3x8xbf16>
    %cst_207 = arith.constant dense<0.000000e+00> : vector<3x352xf32>
    %231 = tpu.matmul %230, %228, %cst_207 {dimension_numbers = #tpu.dot_dimension_numbers<[1], [0], [0], [1], [0, 0, 1, 1], [], []>} : vector<3x8xbf16>, vector<8x352xbf16>, vector<3x352xf32> -> vector<3x352xf32>
    %232 = arith.addf %226, %231 : vector<3x352xf32>
    %c0_208 = arith.constant 0 : index
    %c0_209 = arith.constant 0 : index
    %c114 = arith.constant 114 : index
    %233 = vector.load %arg2[%c0_208, %c0_209, %c114] : memref<1x8x512xbf16, #tpu.memory_space<vmem>>, vector<1x8x352xbf16>
    %234 = vector.shape_cast %233 : vector<1x8x352xbf16> to vector<8x352xbf16>
    %c39 = arith.constant 39 : index
    %c0_210 = arith.constant 0 : index
    %c0_211 = arith.constant 0 : index
    %235 = vector.load %arg1[%c39, %c0_210, %c0_211] : memref<49x3x8xbf16, #tpu.memory_space<vmem>>, vector<1x3x8xbf16>
    %236 = vector.shape_cast %235 : vector<1x3x8xbf16> to vector<3x8xbf16>
    %cst_212 = arith.constant dense<0.000000e+00> : vector<3x352xf32>
    %237 = tpu.matmul %236, %234, %cst_212 {dimension_numbers = #tpu.dot_dimension_numbers<[1], [0], [0], [1], [0, 0, 1, 1], [], []>} : vector<3x8xbf16>, vector<8x352xbf16>, vector<3x352xf32> -> vector<3x352xf32>
    %238 = arith.addf %232, %237 : vector<3x352xf32>
    %c0_213 = arith.constant 0 : index
    %c0_214 = arith.constant 0 : index
    %c115 = arith.constant 115 : index
    %239 = vector.load %arg2[%c0_213, %c0_214, %c115] : memref<1x8x512xbf16, #tpu.memory_space<vmem>>, vector<1x8x352xbf16>
    %240 = vector.shape_cast %239 : vector<1x8x352xbf16> to vector<8x352xbf16>
    %c40 = arith.constant 40 : index
    %c0_215 = arith.constant 0 : index
    %c0_216 = arith.constant 0 : index
    %241 = vector.load %arg1[%c40, %c0_215, %c0_216] : memref<49x3x8xbf16, #tpu.memory_space<vmem>>, vector<1x3x8xbf16>
    %242 = vector.shape_cast %241 : vector<1x3x8xbf16> to vector<3x8xbf16>
    %cst_217 = arith.constant dense<0.000000e+00> : vector<3x352xf32>
    %243 = tpu.matmul %242, %240, %cst_217 {dimension_numbers = #tpu.dot_dimension_numbers<[1], [0], [0], [1], [0, 0, 1, 1], [], []>} : vector<3x8xbf16>, vector<8x352xbf16>, vector<3x352xf32> -> vector<3x352xf32>
    %244 = arith.addf %238, %243 : vector<3x352xf32>
    %c0_218 = arith.constant 0 : index
    %c0_219 = arith.constant 0 : index
    %c116 = arith.constant 116 : index
    %245 = vector.load %arg2[%c0_218, %c0_219, %c116] : memref<1x8x512xbf16, #tpu.memory_space<vmem>>, vector<1x8x352xbf16>
    %246 = vector.shape_cast %245 : vector<1x8x352xbf16> to vector<8x352xbf16>
    %c41 = arith.constant 41 : index
    %c0_220 = arith.constant 0 : index
    %c0_221 = arith.constant 0 : index
    %247 = vector.load %arg1[%c41, %c0_220, %c0_221] : memref<49x3x8xbf16, #tpu.memory_space<vmem>>, vector<1x3x8xbf16>
    %248 = vector.shape_cast %247 : vector<1x3x8xbf16> to vector<3x8xbf16>
    %cst_222 = arith.constant dense<0.000000e+00> : vector<3x352xf32>
    %249 = tpu.matmul %248, %246, %cst_222 {dimension_numbers = #tpu.dot_dimension_numbers<[1], [0], [0], [1], [0, 0, 1, 1], [], []>} : vector<3x8xbf16>, vector<8x352xbf16>, vector<3x352xf32> -> vector<3x352xf32>
    %250 = arith.addf %244, %249 : vector<3x352xf32>
    %c0_223 = arith.constant 0 : index
    %c0_224 = arith.constant 0 : index
    %c132 = arith.constant 132 : index
    %251 = vector.load %arg2[%c0_223, %c0_224, %c132] : memref<1x8x512xbf16, #tpu.memory_space<vmem>>, vector<1x8x352xbf16>
    %252 = vector.shape_cast %251 : vector<1x8x352xbf16> to vector<8x352xbf16>
    %c42 = arith.constant 42 : index
    %c0_225 = arith.constant 0 : index
    %c0_226 = arith.constant 0 : index
    %253 = vector.load %arg1[%c42, %c0_225, %c0_226] : memref<49x3x8xbf16, #tpu.memory_space<vmem>>, vector<1x3x8xbf16>
    %254 = vector.shape_cast %253 : vector<1x3x8xbf16> to vector<3x8xbf16>
    %cst_227 = arith.constant dense<0.000000e+00> : vector<3x352xf32>
    %255 = tpu.matmul %254, %252, %cst_227 {dimension_numbers = #tpu.dot_dimension_numbers<[1], [0], [0], [1], [0, 0, 1, 1], [], []>} : vector<3x8xbf16>, vector<8x352xbf16>, vector<3x352xf32> -> vector<3x352xf32>
    %256 = arith.addf %250, %255 : vector<3x352xf32>
    %c0_228 = arith.constant 0 : index
    %c0_229 = arith.constant 0 : index
    %c133 = arith.constant 133 : index
    %257 = vector.load %arg2[%c0_228, %c0_229, %c133] : memref<1x8x512xbf16, #tpu.memory_space<vmem>>, vector<1x8x352xbf16>
    %258 = vector.shape_cast %257 : vector<1x8x352xbf16> to vector<8x352xbf16>
    %c43 = arith.constant 43 : index
    %c0_230 = arith.constant 0 : index
    %c0_231 = arith.constant 0 : index
    %259 = vector.load %arg1[%c43, %c0_230, %c0_231] : memref<49x3x8xbf16, #tpu.memory_space<vmem>>, vector<1x3x8xbf16>
    %260 = vector.shape_cast %259 : vector<1x3x8xbf16> to vector<3x8xbf16>
    %cst_232 = arith.constant dense<0.000000e+00> : vector<3x352xf32>
    %261 = tpu.matmul %260, %258, %cst_232 {dimension_numbers = #tpu.dot_dimension_numbers<[1], [0], [0], [1], [0, 0, 1, 1], [], []>} : vector<3x8xbf16>, vector<8x352xbf16>, vector<3x352xf32> -> vector<3x352xf32>
    %262 = arith.addf %256, %261 : vector<3x352xf32>
    %c0_233 = arith.constant 0 : index
    %c0_234 = arith.constant 0 : index
    %c134 = arith.constant 134 : index
    %263 = vector.load %arg2[%c0_233, %c0_234, %c134] : memref<1x8x512xbf16, #tpu.memory_space<vmem>>, vector<1x8x352xbf16>
    %264 = vector.shape_cast %263 : vector<1x8x352xbf16> to vector<8x352xbf16>
    %c44_235 = arith.constant 44 : index
    %c0_236 = arith.constant 0 : index
    %c0_237 = arith.constant 0 : index
    %265 = vector.load %arg1[%c44_235, %c0_236, %c0_237] : memref<49x3x8xbf16, #tpu.memory_space<vmem>>, vector<1x3x8xbf16>
    %266 = vector.shape_cast %265 : vector<1x3x8xbf16> to vector<3x8xbf16>
    %cst_238 = arith.constant dense<0.000000e+00> : vector<3x352xf32>
    %267 = tpu.matmul %266, %264, %cst_238 {dimension_numbers = #tpu.dot_dimension_numbers<[1], [0], [0], [1], [0, 0, 1, 1], [], []>} : vector<3x8xbf16>, vector<8x352xbf16>, vector<3x352xf32> -> vector<3x352xf32>
    %268 = arith.addf %262, %267 : vector<3x352xf32>
    %c0_239 = arith.constant 0 : index
    %c0_240 = arith.constant 0 : index
    %c135 = arith.constant 135 : index
    %269 = vector.load %arg2[%c0_239, %c0_240, %c135] : memref<1x8x512xbf16, #tpu.memory_space<vmem>>, vector<1x8x352xbf16>
    %270 = vector.shape_cast %269 : vector<1x8x352xbf16> to vector<8x352xbf16>
    %c45_241 = arith.constant 45 : index
    %c0_242 = arith.constant 0 : index
    %c0_243 = arith.constant 0 : index
    %271 = vector.load %arg1[%c45_241, %c0_242, %c0_243] : memref<49x3x8xbf16, #tpu.memory_space<vmem>>, vector<1x3x8xbf16>
    %272 = vector.shape_cast %271 : vector<1x3x8xbf16> to vector<3x8xbf16>
    %cst_244 = arith.constant dense<0.000000e+00> : vector<3x352xf32>
    %273 = tpu.matmul %272, %270, %cst_244 {dimension_numbers = #tpu.dot_dimension_numbers<[1], [0], [0], [1], [0, 0, 1, 1], [], []>} : vector<3x8xbf16>, vector<8x352xbf16>, vector<3x352xf32> -> vector<3x352xf32>
    %274 = arith.addf %268, %273 : vector<3x352xf32>
    %c0_245 = arith.constant 0 : index
    %c0_246 = arith.constant 0 : index
    %c136 = arith.constant 136 : index
    %275 = vector.load %arg2[%c0_245, %c0_246, %c136] : memref<1x8x512xbf16, #tpu.memory_space<vmem>>, vector<1x8x352xbf16>
    %276 = vector.shape_cast %275 : vector<1x8x352xbf16> to vector<8x352xbf16>
    %c46_247 = arith.constant 46 : index
    %c0_248 = arith.constant 0 : index
    %c0_249 = arith.constant 0 : index
    %277 = vector.load %arg1[%c46_247, %c0_248, %c0_249] : memref<49x3x8xbf16, #tpu.memory_space<vmem>>, vector<1x3x8xbf16>
    %278 = vector.shape_cast %277 : vector<1x3x8xbf16> to vector<3x8xbf16>
    %cst_250 = arith.constant dense<0.000000e+00> : vector<3x352xf32>
    %279 = tpu.matmul %278, %276, %cst_250 {dimension_numbers = #tpu.dot_dimension_numbers<[1], [0], [0], [1], [0, 0, 1, 1], [], []>} : vector<3x8xbf16>, vector<8x352xbf16>, vector<3x352xf32> -> vector<3x352xf32>
    %280 = arith.addf %274, %279 : vector<3x352xf32>
    %c0_251 = arith.constant 0 : index
    %c0_252 = arith.constant 0 : index
    %c137 = arith.constant 137 : index
    %281 = vector.load %arg2[%c0_251, %c0_252, %c137] : memref<1x8x512xbf16, #tpu.memory_space<vmem>>, vector<1x8x352xbf16>
    %282 = vector.shape_cast %281 : vector<1x8x352xbf16> to vector<8x352xbf16>
    %c47_253 = arith.constant 47 : index
    %c0_254 = arith.constant 0 : index
    %c0_255 = arith.constant 0 : index
    %283 = vector.load %arg1[%c47_253, %c0_254, %c0_255] : memref<49x3x8xbf16, #tpu.memory_space<vmem>>, vector<1x3x8xbf16>
    %284 = vector.shape_cast %283 : vector<1x3x8xbf16> to vector<3x8xbf16>
    %cst_256 = arith.constant dense<0.000000e+00> : vector<3x352xf32>
    %285 = tpu.matmul %284, %282, %cst_256 {dimension_numbers = #tpu.dot_dimension_numbers<[1], [0], [0], [1], [0, 0, 1, 1], [], []>} : vector<3x8xbf16>, vector<8x352xbf16>, vector<3x352xf32> -> vector<3x352xf32>
    %286 = arith.addf %280, %285 : vector<3x352xf32>
    %c0_257 = arith.constant 0 : index
    %c0_258 = arith.constant 0 : index
    %c138 = arith.constant 138 : index
    %287 = vector.load %arg2[%c0_257, %c0_258, %c138] : memref<1x8x512xbf16, #tpu.memory_space<vmem>>, vector<1x8x352xbf16>
    %288 = vector.shape_cast %287 : vector<1x8x352xbf16> to vector<8x352xbf16>
    %c48_259 = arith.constant 48 : index
    %c0_260 = arith.constant 0 : index
    %c0_261 = arith.constant 0 : index
    %289 = vector.load %arg1[%c48_259, %c0_260, %c0_261] : memref<49x3x8xbf16, #tpu.memory_space<vmem>>, vector<1x3x8xbf16>
    %290 = vector.shape_cast %289 : vector<1x3x8xbf16> to vector<3x8xbf16>
    %cst_262 = arith.constant dense<0.000000e+00> : vector<3x352xf32>
    %291 = tpu.matmul %290, %288, %cst_262 {dimension_numbers = #tpu.dot_dimension_numbers<[1], [0], [0], [1], [0, 0, 1, 1], [], []>} : vector<3x8xbf16>, vector<8x352xbf16>, vector<3x352xf32> -> vector<3x352xf32>
    %292 = arith.addf %286, %291 : vector<3x352xf32>
    %c0_263 = arith.constant 0 : index
    %c0_264 = arith.constant 0 : index
    %293 = vector.load %arg3[%c0_263, %c0_264] : memref<3x1xf32, #tpu.memory_space<vmem>>, vector<3x1xf32>
    %294 = vector.broadcast %293 : vector<3x1xf32> to vector<3x352xf32>
    %295 = arith.addf %292, %294 : vector<3x352xf32>
    %296 = math.tanh %295 : vector<3x352xf32>
    %c0_265 = arith.constant 0 : index
    %c0_266 = arith.constant 0 : index
    %c0_267 = arith.constant 0 : index
    %297 = vector.load %arg4[%c0_265, %c0_266, %c0_267] : memref<1x3x352xf32, #tpu.memory_space<vmem>>, vector<1x3x352xf32>
    %298 = vector.shape_cast %297 : vector<1x3x352xf32> to vector<3x352xf32>
    %299 = vector.shape_cast %296 : vector<3x352xf32> to vector<1x3x352xf32>
    tpu.vector_store %arg4[%c0_265, %c0_266, %c0_267], %299 {strides = array<i32>} : memref<1x3x352xf32, #tpu.memory_space<vmem>>, vector<1x3x352xf32>,
    return
  }
  func.func @transform_0(%arg0: i32) -> (i32, i32, i32) {
    %c0_i32 = arith.constant 0 : i32
    %c0_i32_0 = arith.constant 0 : i32
    %c0_i32_1 = arith.constant 0 : i32
    %c0_i32_2 = arith.constant 0 : i32
    return %c0_i32, %c0_i32_0, %c0_i32_1 : i32, i32, i32
  }
  func.func @transform_1(%arg0: i32) -> (i32, i32, i32) {
    %c0_i32 = arith.constant 0 : i32
    %c0_i32_0 = arith.constant 0 : i32
    %c0_i32_1 = arith.constant 0 : i32
    return %arg0, %c0_i32, %c0_i32_0 : i32, i32, i32
  }
  func.func @transform_2(%arg0: i32) -> (i32, i32) {
    %c0_i32 = arith.constant 0 : i32
    %c0_i32_0 = arith.constant 0 : i32
    %c0_i32_1 = arith.constant 0 : i32
    return %c0_i32, %c0_i32_0 : i32, i32
  }
  func.func @transform_3(%arg0: i32) -> (i32, i32, i32) {
    %c0_i32 = arith.constant 0 : i32
    %c0_i32_0 = arith.constant 0 : i32
    %c0_i32_1 = arith.constant 0 : i32
    return %arg0, %c0_i32, %c0_i32_0 : i32, i32, i32
  }
}

</mosaic_0001>

<bundles_post_ra>
// kernel: generator_forward.11
= control target key start
LH: loop header
LB: loop body
LE: loop exit
PB: predicated region body
PF: predicated region fallthrough
CT: control target
= control target key end

     0   :  { %s1679_s12 = smov 0   ;;  %s1832_s0 = inlined_call_operand.vmem [shape: bf16[9,16,8], index: 0, kind: input, shape index: {}]   ;;  %s1833_s1 = inlined_call_operand.vmem [shape: bf16[2,8,384], index: 1, kind: input, shape index: {}]   ;;  %s1834_s2 = inlined_call_operand.vmem [shape: f32[1,288], index: 2, kind: input, shape index: {}]   ;;  %s1835_s3 = inlined_call_operand.vmem [shape: bf16[2,16,288], index: 3, kind: output, shape index: {}]  }
   0x1 LB: > { %s1395_s13 = sadd.s32 4294967295, %s1646_s12   ;;  %p1399_p0 = scmp.ge.s32.totalorder %s1646_s12, 1  ;;  %s1646_s12 = sphi %s1679_s12, %s13_s12  }
   0x2   : > { %p137_p1 = scmp.lt.s32.totalorder %s1646_s12, 3 }
   0x4   : > { %p138_p2 = pnand %p1399_p0, %p137_p1 }
   0x5   : > { %p161_p3 = scmp.lt.s32.totalorder (!%p138_p2), %s1395_s13, 1  ;;  %v1648_v0 = vmov (!%p138_p2), 0.0   ;;  %vm1649_vm0 = vmmov (!%p138_p2), 0   ;;  %v1650_v1 = vmov (!%p138_p2), 0   ;;  %s1651_s18 = smov (!%p138_p2), 127   ;;  %vm205_vm1 = vcmask (!%p138_p2), 1043456  }
   0x6   : > { %141 = sbr.rel (%p138_p2) target bundleno = 636 (0x27c), region = 32  ;;  %1485 = vmatprep.subr.bf16.mxu1 (!%p138_p2), %v1648_v0  ;;  %1487 = vmatprep.mubr.msk.bf16.mxu1 (!%p138_p2), %vm1649_vm0, %v1648_v0  ;;  %s1652_s19 = smov (!%p138_p2), 126   ;;  %v1627_v9 = vld [vmem:[%s1832_s0 + $0x8] sm:$0xff] (!%p138_p2)   ;;  %vm201_vm2 = vcmask (!%p138_p2), 64512   ;;  %vm198_vm3 = vcmask (!%p138_p2), 1039360   ;;  %vm414_vm4 = vcmask (!%p138_p2), 1031168  }
   0x7   : > { %247 = vmatprep.mubr.bf16.mxu0 (!%p138_p2), %v1650_v1  ;;  %s1653_s20 = smov (!%p138_p2), 110   ;;  %s1654_s21 = smov (!%p138_p2), 109   ;;  %v1628_v20 = vld [vmem:[%s1832_s0] sm:$0xff] (!%p138_p2)   ;;  %vm533_vm5 = vcmask (!%p138_p2), 900096   ;;  %v1629_v28 = vld [vmem:[%s1832_s0 + $0x10] sm:$0xff] (!%p138_p2)   ;;  %vm652_vm6 = vcmask (!%p138_p2), 891904  }
   0x8   : > { %s1655_s22 = smov (!%p138_p2), 108   ;;  %s1656_s23 = smov (!%p138_p2), 92   ;;  %v1630_v36 = vld [vmem:[%s1832_s0 + $0x18] sm:$0xff] (!%p138_p2)   ;;  %vm771_vm7 = vcmask (!%p138_p2), 883712   ;;  %v1631_v44 = vld [vmem:[%s1832_s0 + $0x20] sm:$0xff] (!%p138_p2)   ;;  %vm890_vm8 = vcmask (!%p138_p2), 752640  }
   0x9   : > { %s1657_s24 = smov (!%p138_p2), 91   ;;  %s1658_s25 = smov (!%p138_p2), 90   ;;  %v1632_v52 = vld [vmem:[%s1832_s0 + $0x28] sm:$0xff] (!%p138_p2)   ;;  %vm1009_vm9 = vcmask (!%p138_p2), 744448   ;;  %v1633_v60 = vld [vmem:[%s1832_s0 + $0x30] sm:$0xff] (!%p138_p2)   ;;  %vm1128_vm10 = vcmask (!%p138_p2), 736256  }
   0xa   : > { %vm1257_vm11 = vcmask (!%p138_p2), 261120   ;;  %vm1336_vm12 = vcmask (!%p138_p2), 257024  }
   0xd   : > { %s1837_s13 = smov (!%p161_p3, %s1395_s13), 1 }
   0xe   : > { %s1603_s14 = smul.u32 12, %s1837_s13 }
  0x10   : > { %s165_s17 = scalar_lea.vmem %s1833_s1, %s1603_s14 }
  0x11   : > { %v1624_v2 = vld [vmem:[%s165_s17 + $0x8] ss:$0 sps:$4 sm:$0xff]   ;;  %v172_v3 = vld [vmem:[%s165_s17] sm:$0xff] }
  0x12   : > { %v1405_v4 = vcombine.low %v172_v3, %v172_v3  ;;  %196 = vrot.lane.b32.xlu1 %v1624_v2, %s1651_s18  ;;  %v1406_v5 = vcombine.high %v172_v3, %v172_v3  ;;  %v314_v10 = vsel %vm205_vm1, %v1624_v2, 0 }
  0x14   : > { %192 = vrot.lane.b32.xlu0 %v1405_v4, %s1651_s18  ;;  %v308_v17 = vsel %vm205_vm1, %v1405_v4, 0 }
  0x16   : > { %408 = vrot.lane.b32.xlu1 %v1405_v4, %s1652_s19 }
  0x18   : > { %194 = vrot.lane.b32.xlu0 %v1406_v5, %s1651_s18 }
  0x1a   : > { %412 = vrot.lane.b32.xlu1 %v1624_v2, %s1652_s19 }
  0x1c   : > { %410 = vrot.lane.b32.xlu0 %v1406_v5, %s1652_s19 }
  0x1e   : > { %529 = vrot.lane.b32.xlu1 %v1406_v5, %s1653_s20 }
  0x20   : > { %527 = vrot.lane.b32.xlu0 %v1405_v4, %s1653_s20 }
  0x22   : > { %646 = vrot.lane.b32.xlu1 %v1405_v4, %s1654_s21 }
  0x24   : > { %531 = vrot.lane.b32.xlu0 %v1624_v2, %s1653_s20 }
  0x26   : > { %650 = vrot.lane.b32.xlu1 %v1624_v2, %s1654_s21 }
  0x28   : > { %648 = vrot.lane.b32.xlu0 %v1406_v5, %s1654_s21  ;;  %s1604_s21 = smul.u32 24, %s1837_s13 }
  0x2a   : > { %767 = vrot.lane.b32.xlu1 %v1406_v5, %s1655_s22 }
  0x2c   : > { %765 = vrot.lane.b32.xlu0 %v1405_v4, %s1655_s22 }
  0x2e   : > { %884 = vrot.lane.b32.xlu1 %v1405_v4, %s1656_s23 }
  0x30   : > { %769 = vrot.lane.b32.xlu0 %v1624_v2, %s1655_s22 }
  0x32   : > { %888 = vrot.lane.b32.xlu1 %v1624_v2, %s1656_s23 }
  0x34   : > { %886 = vrot.lane.b32.xlu0 %v1406_v5, %s1656_s23 }
  0x36   : > { %1005 = vrot.lane.b32.xlu1 %v1406_v5, %s1657_s24 }
  0x38   : > { %1003 = vrot.lane.b32.xlu0 %v1405_v4, %s1657_s24 }
  0x3a   : > { %1122 = vrot.lane.b32.xlu1 %v1405_v4, %s1658_s25 }
  0x3c   : > { %1007 = vrot.lane.b32.xlu0 %v1624_v2, %s1657_s24  ;;  %s170_s24 = scalar_lea.vmem %s1835_s3, %s1604_s21 }
  0x3e   : > { %1126 = vrot.lane.b32.xlu1 %v1624_v2, %s1658_s25 }
  0x40   : > { %1124 = vrot.lane.b32.xlu0 %v1406_v5, %s1658_s25 }
  0x84   : > { %v197_v6 = vpop.permute.xlu1 %196 }
  0x85   : > { %v213_v8 = vsel %vm205_vm1, %v197_v6, 0 }
  0x86   : > { %v193_v7 = vpop.permute.xlu0 %192  ;;  %1486 = vmatpush3.bf16.msra.mxu1 %v213_v8 }
  0x87   : > { %1491 = vmatprep.subr.bf16.mxu1 %v1648_v0 }
  0x88   : > { %v409_v11 = vpop.permute.xlu1 %408 }
  0x89   : > { %1488 = vmatmul.mubr.msk.bf16.vlgmr.msra.gmra.mrb[0].mxu1 %vm201_vm2, %v1627_v9 }
  0x8a   : > { %v195_v12 = vpop.permute.xlu0 %194  ;;  %1492 = vmatpush3.bf16.msra.mxu1 %v314_v10  ;;  %1493 = vmatprep.mubr.msk.bf16.mxu1 %vm1649_vm0, %v1648_v0  ;;  %v1635_v10 = vld [vmem:[%s1832_s0 + $0x40] sm:$0xff]  }
  0x8b   : > { %v200_v13 = vsel %vm198_vm3, %v195_v12, %v197_v6  ;;  %v199_v14 = vsel %vm198_vm3, %v193_v7, %v195_v12  ;;  %1497 = vmatprep.subr.bf16.mxu1 %v1648_v0  ;;  %v1634_v6 = vld [vmem:[%s1832_s0 + $0x38] sm:$0xff]  }
  0x8c   : > { %1408 = vmatprep.subr.msk.bf16.mxu0 %vm205_vm1, %v200_v13  ;;  %v207_v15 = vsel %vm205_vm1, %v199_v14, 0  ;;  %v413_v16 = vpop.permute.xlu1 %412 }
  0x8d   : > { %216 = vmatpush1.bf16.msra.mxu0 %v207_v15  ;;  %v427_v22 = vsel %vm205_vm1, %v413_v16, 0 }
  0x8e   : > { %1412 = vmatprep.subr.msk.bf16.mxu0 %vm205_vm1, %v1406_v5  ;;  %v411_v18 = vpop.permute.xlu0 %410 }
  0x8f   : > { %v416_v19 = vsel %vm414_vm4, %v411_v18, %v413_v16  ;;  %v415_v23 = vsel %vm414_vm4, %v409_v11, %v411_v18  ;;  %v1235_v11 = vlaneseq }
  0x90   : > { %1409 = vmatmul.mubr.msk.bf16.vlgmr.msra.gmra.mrb[0].mxu0 %vm201_vm2, %v1627_v9  ;;  %v530_v24 = vpop.permute.xlu1 %529  ;;  %v421_v26 = vsel %vm205_vm1, %v415_v23, 0 }
  0x91   : > { %317 = vmatpush1.bf16.msra.mxu0 %v308_v17  ;;  %348 = vmatprep.mubr.bf16.mxu0 %v1650_v1  ;;  %v1236_v12 = vshrl.u32 %v1235_v11, 7 }
  0x92   : > { %1418 = vmatprep.subr.msk.bf16.mxu0 %vm205_vm1, %v416_v19  ;;  %v528_v21 = vpop.permute.xlu0 %527 }
  0x93   : > { %v534_v31 = vsel %vm533_vm5, %v528_v21, %v530_v24  ;;  %v1245_v13 = vsub.s32 2, %v1236_v12  ;;  %v1237_v14 = vsub.s32 0, %v1236_v12  ;;  %v1241_v16 = vsub.s32 1, %v1236_v12 }
  0x94   : > { %v647_v29 = vpop.permute.xlu1 %646  ;;  %v540_v34 = vsel %vm205_vm1, %v534_v31, 0 }
  0x95   : > { %1494 = vmatmul.mubr.msk.bf16.vlgmr.msra.gmra.mrb[0].mxu1 %vm201_vm2, %v1628_v20 }
  0x96   : > { %1498 = vmatpush3.bf16.msra.mxu1 %v427_v22  ;;  %1499 = vmatprep.mubr.msk.bf16.mxu1 %vm1649_vm0, %v1648_v0  ;;  %v532_v25 = vpop.permute.xlu0 %531 }
  0x97   : > { %1503 = vmatprep.subr.bf16.mxu1 %v1648_v0  ;;  %v535_v27 = vsel %vm533_vm5, %v530_v24, %v532_v25  ;;  %v546_v30 = vsel %vm205_vm1, %v532_v25, 0 }
  0x98   : > { %v651_v33 = vpop.permute.xlu1 %650 }
  0x99   : > { %v665_v38 = vsel %vm205_vm1, %v651_v33, 0 }
  0x9a   : > { %v649_v32 = vpop.permute.xlu0 %648 }
  0x9b   : > { %v654_v35 = vsel %vm652_vm6, %v649_v32, %v651_v33  ;;  %v653_v39 = vsel %vm652_vm6, %v647_v29, %v649_v32 }
  0x9c   : > { %1413 = vmatmul.mubr.msk.bf16.vlgmr.msra.gmra.mrb[0].mxu0 %vm201_vm2, %v1628_v20  ;;  %v768_v40 = vpop.permute.xlu1 %767  ;;  %v659_v42 = vsel %vm205_vm1, %v653_v39, 0 }
  0x9d   : > { %430 = vmatpush1.bf16.msra.mxu0 %v421_v26  ;;  %461 = vmatprep.mubr.bf16.mxu0 %v1650_v1 }
  0x9e   : > { %1424 = vmatprep.subr.msk.bf16.mxu0 %vm205_vm1, %v535_v27  ;;  %v766_v37 = vpop.permute.xlu0 %765 }
  0x9f   : > { %v772_v47 = vsel %vm771_vm7, %v766_v37, %v768_v40 }
  0xa0   : > { %v885_v45 = vpop.permute.xlu1 %884  ;;  %v778_v50 = vsel %vm205_vm1, %v772_v47, 0 }
  0xa1   : > { %1500 = vmatmul.mubr.msk.bf16.vlgmr.msra.gmra.mrb[0].mxu1 %vm201_vm2, %v1629_v28 }
  0xa2   : > { %1504 = vmatpush3.bf16.msra.mxu1 %v546_v30  ;;  %1505 = vmatprep.mubr.msk.bf16.mxu1 %vm1649_vm0, %v1648_v0  ;;  %v770_v41 = vpop.permute.xlu0 %769 }
  0xa3   : > { %1509 = vmatprep.subr.bf16.mxu1 %v1648_v0  ;;  %v773_v43 = vsel %vm771_vm7, %v768_v40, %v770_v41  ;;  %v784_v46 = vsel %vm205_vm1, %v770_v41, 0 }
  0xa4   : > { %v889_v49 = vpop.permute.xlu1 %888 }
  0xa5   : > { %v903_v54 = vsel %vm205_vm1, %v889_v49, 0 }
  0xa6   : > { %v887_v48 = vpop.permute.xlu0 %886 }
  0xa7   : > { %v892_v51 = vsel %vm890_vm8, %v887_v48, %v889_v49  ;;  %v891_v55 = vsel %vm890_vm8, %v885_v45, %v887_v48 }
  0xa8   : > { %1419 = vmatmul.mubr.msk.bf16.vlgmr.msra.gmra.mrb[0].mxu0 %vm201_vm2, %v1629_v28  ;;  %v1006_v56 = vpop.permute.xlu1 %1005  ;;  %v897_v58 = vsel %vm205_vm1, %v891_v55, 0 }
  0xa9   : > { %549 = vmatpush1.bf16.msra.mxu0 %v540_v34  ;;  %580 = vmatprep.mubr.bf16.mxu0 %v1650_v1 }
  0xaa   : > { %1430 = vmatprep.subr.msk.bf16.mxu0 %vm205_vm1, %v654_v35  ;;  %v1004_v53 = vpop.permute.xlu0 %1003 }
  0xab   : > { %v1010_v63 = vsel %vm1009_vm9, %v1004_v53, %v1006_v56 }
  0xac   : > { %v1123_v61 = vpop.permute.xlu1 %1122  ;;  %v1016_v4 = vsel %vm205_vm1, %v1010_v63, 0 }
  0xad   : > { %1506 = vmatmul.mubr.msk.bf16.vlgmr.msra.gmra.mrb[0].mxu1 %vm201_vm2, %v1630_v36 }
  0xae   : > { %1510 = vmatpush3.bf16.msra.mxu1 %v665_v38  ;;  %1511 = vmatprep.mubr.msk.bf16.mxu1 %vm1649_vm0, %v1648_v0  ;;  %v1008_v57 = vpop.permute.xlu0 %1007 }
  0xaf   : > { %1515 = vmatprep.subr.bf16.mxu1 %v1648_v0  ;;  %v1011_v59 = vsel %vm1009_vm9, %v1006_v56, %v1008_v57  ;;  %v1022_v62 = vsel %vm205_vm1, %v1008_v57, 0 }
  0xb0   : > { %v1127_v3 = vpop.permute.xlu1 %1126 }
  0xb1   : > { %v1141_v7 = vsel %vm205_vm1, %v1127_v3, 0 }
  0xb2   : > { %v1125_v2 = vpop.permute.xlu0 %1124 }
  0xb3   : > { %v1130_v5 = vsel %vm1128_vm10, %v1125_v2, %v1127_v3  ;;  %v1129_v8 = vsel %vm1128_vm10, %v1123_v61, %v1125_v2 }
  0xb4   : > { %1425 = vmatmul.mubr.msk.bf16.vlgmr.msra.gmra.mrb[0].mxu0 %vm201_vm2, %v1630_v36  ;;  %v1135_v9 = vsel %vm205_vm1, %v1129_v8, 0 }
  0xb5   : > { %668 = vmatpush1.bf16.msra.mxu0 %v659_v42  ;;  %699 = vmatprep.mubr.bf16.mxu0 %v1650_v1 }
  0xb6   : > { %1436 = vmatprep.subr.msk.bf16.mxu0 %vm205_vm1, %v773_v43 }
  0xb9   : > { %1512 = vmatmul.mubr.msk.bf16.vlgmr.msra.gmra.mrb[0].mxu1 %vm201_vm2, %v1631_v44 }
  0xba   : > { %1516 = vmatpush3.bf16.msra.mxu1 %v784_v46  ;;  %1517 = vmatprep.mubr.msk.bf16.mxu1 %vm1649_vm0, %v1648_v0 }
  0xbb   : > { %1521 = vmatprep.subr.bf16.mxu1 %v1648_v0 }
  0xc0   : > { %1431 = vmatmul.mubr.msk.bf16.vlgmr.msra.gmra.mrb[0].mxu0 %vm201_vm2, %v1631_v44 }
  0xc1   : > { %787 = vmatpush1.bf16.msra.mxu0 %v778_v50  ;;  %818 = vmatprep.mubr.bf16.mxu0 %v1650_v1 }
  0xc2   : > { %1442 = vmatprep.subr.msk.bf16.mxu0 %vm205_vm1, %v892_v51 }
  0xc5   : > { %1518 = vmatmul.mubr.msk.bf16.vlgmr.msra.gmra.mrb[0].mxu1 %vm201_vm2, %v1632_v52 }
  0xc6   : > { %1522 = vmatpush3.bf16.msra.mxu1 %v903_v54  ;;  %1523 = vmatprep.mubr.msk.bf16.mxu1 %vm1649_vm0, %v1648_v0 }
  0xc7   : > { %1527 = vmatprep.subr.bf16.mxu1 %v1648_v0 }
  0xcc   : > { %1437 = vmatmul.mubr.msk.bf16.vlgmr.msra.gmra.mrb[0].mxu0 %vm201_vm2, %v1632_v52 }
  0xcd   : > { %906 = vmatpush1.bf16.msra.mxu0 %v897_v58  ;;  %937 = vmatprep.mubr.bf16.mxu0 %v1650_v1 }
  0xce   : > { %1448 = vmatprep.subr.msk.bf16.mxu0 %vm205_vm1, %v1011_v59 }
  0xd1   : > { %1524 = vmatmul.mubr.msk.bf16.vlgmr.msra.gmra.mrb[0].mxu1 %vm201_vm2, %v1633_v60 }
  0xd2   : > { %1528 = vmatpush3.bf16.msra.mxu1 %v1022_v62  ;;  %1529 = vmatprep.mubr.msk.bf16.mxu1 %vm1649_vm0, %v1648_v0 }
  0xd3   : > { %1533 = vmatprep.subr.bf16.mxu1 %v1648_v0 }
  0xd8   : > { %1443 = vmatmul.mubr.msk.bf16.vlgmr.msra.gmra.mrb[0].mxu0 %vm201_vm2, %v1633_v60 }
  0xd9   : > { %1025 = vmatpush1.bf16.msra.mxu0 %v1016_v4  ;;  %1056 = vmatprep.mubr.bf16.mxu0 %v1650_v1 }
  0xda   : > { %1454 = vmatprep.subr.msk.bf16.mxu0 %vm205_vm1, %v1130_v5 }
  0xdd   : > { %1530 = vmatmul.mubr.msk.bf16.vlgmr.msra.gmra.mrb[0].mxu1 %vm201_vm2, %v1634_v6 }
  0xde   : > { %1534 = vmatpush3.bf16.msra.mxu1 %v1141_v7  ;;  %1535 = vmatprep.mubr.msk.bf16.mxu1 %vm1649_vm0, %v1648_v0  ;;  %v1233_v0 = vld [vmem:[%s1834_s2] sm:$0x7] }
  0xdf   : > { %v1238_v20 = vrot.slane %v1233_v0, %v1237_v14  ;;  %v1242_v21 = vrot.slane %v1233_v0, %v1241_v16 }
  0xe4   : > { %1449 = vmatmul.mubr.msk.bf16.vlgmr.msra.gmra.mrb[0].mxu0 %vm201_vm2, %v1634_v6 }
  0xe5   : > { %1144 = vmatpush1.bf16.msra.mxu0 %v1135_v9  ;;  %1175 = vmatprep.mubr.bf16.mxu0 %v1650_v1  ;;  %v1246_v1 = vrot.slane %v1233_v0, %v1245_v13 }
  0xe9   : > { %1536 = vmatmul.mubr.msk.bf16.vlgmr.msra.gmra.mrb[0].mxu1 %vm201_vm2, %v1635_v10 }
  0xf0   : > { %1455 = vmatmul.mubr.msk.bf16.vlgmr.msra.gmra.mrb[0].mxu0 %vm201_vm2, %v1635_v10 }
 0x1bc   : > { %v1806_v15 = vpop.f32.mrb[0].mxu1 }
 0x1bd   : > { %v1537_v17 = vpop.f32.mrb[1].mxu1  ;;  %v1252_v22 = vmul.f32 %v1246_v1, %v1806_v15 }
 0x1be   : > { %v1808_v18 = vpop.f32.mrb[2].mxu1 }
 0x1bf   : > { %v1538_v19 = vpop.f32.mrb[3].mxu1  ;;  %v1255_v24 = vmul.f32 %v1246_v1, %v1808_v18  ;;  %v1271_v29 = vmul.f32 %v1252_v22, %v1806_v15  ;;  %v1258_v38 = vsel %vm1257_vm11, %v1252_v22, 0.0 }
 0x1c1   : > { %v1274_v36 = vmul.f32 %v1255_v24, %v1808_v18  ;;  %v1263_v43 = vsel %vm1257_vm11, %v1255_v24, 0.0  ;;  %v1276_v44 = vsel %vm1257_vm11, %v1271_v29, 0.0 }
 0x1c3   : > { %v1177_v23 = vpop.f32.mrb[0].mxu0  ;;  %v1281_v48 = vsel %vm1257_vm11, %v1274_v36, 0.0 }
 0x1c4   : > { %v1250_v25 = vmul.f32 %v1238_v20, %v1177_v23  ;;  %v1179_v26 = vpop.f32.mrb[1].mxu0 }
 0x1c5   : > { %v1251_v27 = vmul.f32 %v1242_v21, %v1179_v26  ;;  %v1812_v28 = vpop.f32.mrb[2].mxu0 }
 0x1c6   : > { %v1269_v30 = vmul.f32 %v1250_v25, %v1177_v23  ;;  %v1253_v31 = vmul.f32 %v1238_v20, %v1812_v28  ;;  %v1183_v32 = vpop.f32.mrb[3].mxu0 }
 0x1c7   : > { %v1270_v33 = vmul.f32 %v1251_v27, %v1179_v26  ;;  %v1254_v34 = vmul.f32 %v1242_v21, %v1183_v32  ;;  %v1256_v35 = vadd.f32 %v1251_v27, %v1250_v25 }
 0x1c8   : > { %v1272_v37 = vmul.f32 %v1253_v31, %v1812_v28 }
 0x1c9   : > { %v1273_v39 = vmul.f32 %v1254_v34, %v1183_v32  ;;  %v1259_v40 = vadd.f32 %v1258_v38, %v1256_v35  ;;  %v1262_v41 = vadd.f32 %v1254_v34, %v1253_v31  ;;  %v1275_v42 = vadd.f32 %v1270_v33, %v1269_v30 }
 0x1cb   : > { %1260 = vadd.xlane.f32.xlu0 %v1259_v40  ;;  %v1264_v45 = vadd.f32 %v1263_v43, %v1262_v41  ;;  %v1277_v46 = vadd.f32 %v1276_v44, %v1275_v42  ;;  %v1280_v47 = vadd.f32 %v1273_v39, %v1272_v37 }
 0x1cd   : > { %1265 = vadd.xlane.f32.xlu1 %v1264_v45  ;;  %v1282_v49 = vadd.f32 %v1281_v48, %v1280_v47 }
 0x1cf   : > { %1278 = vadd.xlane.f32.xlu0 %v1277_v46 }
 0x1d3   : > { %1283 = vadd.xlane.f32.xlu0 %v1282_v49 }
 0x258   : > { %v1261_v50 = vpop.xlane.xlu0 %1260 }
 0x259   : > { %v1267_v51 = vmul.f32 0.015625, %v1261_v50 }
 0x25a   : > { %v1266_v52 = vpop.xlane.xlu1 %1265 }
 0x25b   : > { %v1268_v54 = vmul.f32 0.015625, %v1266_v52  ;;  %v1287_v55 = vmul.f32 %v1267_v51, %v1267_v51  ;;  %v1291_v4 = vsub.f32 %v1177_v23, %v1267_v51  ;;  %v1292_v5 = vsub.f32 %v1179_v26, %v1267_v51 }
 0x25c   : > { %v1279_v53 = vpop.xlane.xlu0 %1278  ;;  %v1293_v6 = vsub.f32 %v1806_v15, %v1267_v51 }
 0x25d   : > { %v1285_v56 = vmul.f32 0.015625, %v1279_v53  ;;  %v1288_v61 = vmul.f32 %v1268_v54, %v1268_v54  ;;  %v1294_v11 = vsub.f32 %v1812_v28, %v1268_v54  ;;  %v1295_v12 = vsub.f32 %v1183_v32, %v1268_v54 }
 0x25e   : > { %v1296_v1 = vsub.f32 %v1808_v18, %v1268_v54 }
 0x25f   : > { %v1289_v57 = vsub.f32 %v1285_v56, %v1287_v55 }
 0x260   : > { %v1284_v58 = vpop.xlane.xlu0 %1283 }
 0x261   : > { %v1297_v59 = vmax.f32 %v1289_v57, 0.0  ;;  %v1286_v60 = vmul.f32 0.015625, %v1284_v58 }
 0x263   : > { %v1299_v62 = vadd.f32 1e-05, %v1297_v59  ;;  %v1290_v63 = vsub.f32 %v1286_v60, %v1288_v61 }
 0x265   : > { %1636 = vrsqrt.f32 %v1299_v62  ;;  %v1298_v2 = vmax.f32 %v1290_v63, 0.0 }
 0x267   : > { %v1300_v3 = vadd.f32 1e-05, %v1298_v2 }
 0x269   : > { %1638 = vrsqrt.f32 %v1300_v3 }
 0x26f   : > { %v1637_v7 = vpop.eup %1636 }
 0x270   : > { %v1303_v8 = vmul.f32 %v1637_v7, %v1291_v4  ;;  %v1304_v9 = vmul.f32 %v1637_v7, %v1292_v5  ;;  %v1305_v10 = vmul.f32 %v1637_v7, %v1293_v6 }
 0x272   : > { %v1309_v13 = vmax.f32 %v1303_v8, 0.0  ;;  %v1310_v0 = vmax.f32 %v1304_v9, 0.0  ;;  %v1311_v14 = vmax.f32 %v1305_v10, 0.0 }
 0x273   : > { %v1639_v16 = vpop.eup %1638 }
 0x274   : > { %v1463_v15 = vpack.c.bf16 %v1310_v0, %v1309_v13  ;;  %v1464_v17 = vpack.c.bf16 %v1311_v14, %v1311_v14  ;;  %v1306_v19 = vmul.f32 %v1639_v16, %v1294_v11  ;;  %v1307_v20 = vmul.f32 %v1639_v16, %v1295_v12 }
 0x275   : > { %v1308_v21 = vmul.f32 %v1639_v16, %v1296_v1 }
 0x276   : > { %1335 = vst [vmem:[%s170_s24] sm:$0xff] %v1463_v15  ;;  %1337 = vst.msk [vmem:[%s170_s24 + $0x8] sm:$0xf] %vm1336_vm12, %v1464_v17  ;;  %v1312_v22 = vmax.f32 %v1306_v19, 0.0  ;;  %v1313_v23 = vmax.f32 %v1307_v20, 0.0 }
 0x277   : > { %v1314_v24 = vmax.f32 %v1308_v21, 0.0 }
 0x278   : > { %v1465_v25 = vpack.c.bf16 %v1313_v23, %v1312_v22 }
 0x279   : > { %v1466_v26 = vpack.c.bf16 %v1314_v24, %v1314_v24 }
 0x27a   : > { %1338 = vst [vmem:[%s170_s24 + $0xc] sm:$0xff] %v1465_v25 }
 0x27b   : > { %1339 = vst.msk [vmem:[%s170_s24 + $0x14] sm:$0xf] %vm1336_vm12, %v1466_v26 }
 0x27c PF: > { %s13_s12 = sadd.s32 1, %s1646_s12  }
 0x27d   : > { %p10_p4 = scmp.ge.s32.totalorder %s13_s12, 4  }
 0x27f   :  { %12 = sbr.rel (!%p10_p4) target bundleno = 1 (0x1), region = 70 }

// kernel: generator_forward.10
= control target key start
LH: loop header
LB: loop body
LE: loop exit
PB: predicated region body
PF: predicated region fallthrough
CT: control target
= control target key end

     0   :  { %s7596_s12 = smov 0   ;;  %s8580_s0 = inlined_call_operand.vmem [shape: bf16[49,8,3], index: 0, kind: input, shape index: {}]   ;;  %s8581_s1 = inlined_call_operand.vmem [shape: bf16[2,3,512], index: 1, kind: input, shape index: {}]   ;;  %s8582_s2 = inlined_call_operand.vmem [shape: f32[1,352], index: 2, kind: input, shape index: {}]   ;;  %s8583_s3 = inlined_call_operand.vmem [shape: bf16[2,8,352], index: 3, kind: output, shape index: {}]  }
   0x1 LB: > { %s6498_s13 = sadd.s32 4294967295, %s7524_s12   ;;  %p6502_p0 = scmp.ge.s32.totalorder %s7524_s12, 1  ;;  %s7524_s12 = sphi %s7596_s12, %s13_s12  }
   0x2   : > { %p137_p1 = scmp.lt.s32.totalorder %s7524_s12, 3 }
   0x4   : > { %p138_p2 = pnand %p6502_p0, %p137_p1 }
   0x5   : > { %p161_p3 = scmp.lt.s32.totalorder (!%p138_p2), %s6498_s13, 1  ;;  %v181_v0 = vlaneseq (!%p138_p2)  ;;  %v7526_v1 = vmov (!%p138_p2), 1983009808   ;;  %v7527_v4 = vmov (!%p138_p2), 0.0   ;;  %vm7528_vm0 = vmmov (!%p138_p2), 0   ;;  %s7529_s18 = smov (!%p138_p2), 127  }
   0x6   : > { %141 = sbr.rel (%p138_p2) target bundleno = 1112 (0x458), region = 32  ;;  %v179_v2 = vunpack.c.l.s4 (!%p138_p2), %v7526_v1  ;;  %6757 = vmatprep.subr.bf16.mxu1 (!%p138_p2), %v7527_v4  ;;  %6759 = vmatprep.mubr.msk.bf16.mxu1 (!%p138_p2), %vm7528_vm0, %v7527_v4  ;;  %s7530_s19 = smov (!%p138_p2), 126   ;;  %v7531_v23 = vmov (!%p138_p2), 0   ;;  %vm206_vm1 = vcmask (!%p138_p2), 1040384   ;;  %vm207_vm2 = vcmask (!%p138_p2), 1041408  }
   0x7   : > { %v7606_v3 = vshrl.u32 (!%p138_p2), %v181_v0, 7  ;;  %251 = vmatprep.mubr.bf16.mxu0 (!%p138_p2), %v7531_v23  ;;  %s7532_s20 = smov (!%p138_p2), 125   ;;  %s7533_s21 = smov (!%p138_p2), 124   ;;  %vm199_vm3 = vcmask (!%p138_p2), 1039360   ;;  %vm419_vm4 = vcmask (!%p138_p2), 1031168   ;;  %vm202_vm5 = vcmask (!%p138_p2), 23552  }
   0x8   : > { %v180_v5 = vunpack.c.0.s8 (!%p138_p2), %v179_v2  ;;  %s7534_s22 = smov (!%p138_p2), 123   ;;  %s7535_s23 = smov (!%p138_p2), 122   ;;  %vm544_vm6 = vcmask (!%p138_p2), 1022976   ;;  %vm669_vm7 = vcmask (!%p138_p2), 1014784   ;;  %vm794_vm8 = vcmask (!%p138_p2), 1006592  }
   0x9   : > { %s7536_s24 = smov (!%p138_p2), 106   ;;  %s7537_s25 = smov (!%p138_p2), 105   ;;  %vm919_vm9 = vcmask (!%p138_p2), 998400   ;;  %vm1044_vm10 = vcmask (!%p138_p2), 867328   ;;  %vm1169_vm11 = vcmask (!%p138_p2), 859136   ;;  %vm1294_vm12 = vcmask (!%p138_p2), 850944  }
   0xa   : > { %v7616_v6 = vsub.s32 (!%p138_p2), %v180_v5, %v7606_v3  ;;  %s7538_s26 = smov (!%p138_p2), 104   ;;  %s7539_s27 = smov (!%p138_p2), 103   ;;  %vm1419_vm13 = vcmask (!%p138_p2), 842752   ;;  %vm1544_vm14 = vcmask (!%p138_p2), 834560   ;;  %vm1669_vm15 = vcmask (!%p138_p2), 826368  }
   0xb   : > { %s7540_s28 = smov (!%p138_p2), 102   ;;  %s7541_s29 = smov (!%p138_p2), 101  }
   0xc   : > { %s7542_s30 = smov (!%p138_p2), 100   ;;  %s7543_s4 = smov (!%p138_p2), 84  }
   0xd   : > { %s8585_s13 = smov (!%p161_p3, %s6498_s13), 1  ;;  %s7544_s5 = smov 83  }
   0xe   : > { %s6656_s14 = sshll.u32 %s8585_s13, 3  ;;  %s7545_s6 = smov 82  }
   0xf   : > { %s7613_s17 = scalar_lea.vmem %s8581_s1, %s6656_s14  ;;  %s7546_s7 = smov 81  }
  0x10   : > { %v172_v7 = vld [vmem:[%s7613_s17] sm:$0x3f]  ;;  %s7547_s8 = smov 80   ;;  %s7548_s9 = smov 79  }
  0x11   : > { %v393_v8 = vld [vmem:[%s7613_s17] sm:$0x3f]  ;;  %v7623_v9 = vrot.slane %v172_v7, %v7616_v6  ;;  %v177_v10 = vcombine.high %v172_v7, %v172_v7  ;;  %s7550_s14 = smov 78   ;;  %s7557_s10 = smov 56  }
  0x12   : > { %v404_v11 = vrot.slane %v393_v8, %v7616_v6  ;;  %v397_v15 = vcombine.high %v393_v8, %v393_v8  ;;  %v518_v16 = vld [vmem:[%s7613_s17] sm:$0x3f]  ;;  %s7558_s11 = smov 40   ;;  %s7559_s16 = smov 39  }
  0x13   : > { %193 = vrot.lane.b32.xlu1 %v7623_v9, %s7529_s18  ;;  %v7629_v12 = vcombine.high %v7623_v9, %v7623_v9  ;;  %v7633_v14 = vrot.slane %v177_v10, %v7616_v6  ;;  %v522_v17 = vcombine.high %v518_v16, %v518_v16  ;;  %v643_v18 = vld [vmem:[%s7613_s17] sm:$0x3f]  ;;  %v529_v20 = vrot.slane %v518_v16, %v7616_v6 }
  0x14   : > { %v412_v13 = vcombine.high %v404_v11, %v404_v11  ;;  %v411_v19 = vrot.slane %v397_v15, %v7616_v6  ;;  %v654_v22 = vrot.slane %v643_v18, %v7616_v6  ;;  %v647_v26 = vcombine.high %v643_v18, %v643_v18  ;;  %v768_v27 = vld [vmem:[%s7613_s17] sm:$0x3f] }
  0x15   : > { %195 = vrot.lane.b32.xlu0 %v7629_v12, %s7529_s18  ;;  %v536_v21 = vrot.slane %v522_v17, %v7616_v6  ;;  %v537_v24 = vcombine.high %v529_v20, %v529_v20  ;;  %v772_v28 = vcombine.high %v768_v27, %v768_v27  ;;  %v893_v29 = vld [vmem:[%s7613_s17] sm:$0x3f]  ;;  %v779_v31 = vrot.slane %v768_v27, %v7616_v6 }
  0x16   : > { %v662_v25 = vcombine.high %v654_v22, %v654_v22  ;;  %v661_v30 = vrot.slane %v647_v26, %v7616_v6  ;;  %v904_v33 = vrot.slane %v893_v29, %v7616_v6  ;;  %v897_v36 = vcombine.high %v893_v29, %v893_v29  ;;  %v1018_v37 = vld [vmem:[%s7613_s17] sm:$0x3f] }
  0x17   : > { %415 = vrot.lane.b32.xlu1 %v412_v13, %s7530_s19  ;;  %v786_v32 = vrot.slane %v772_v28, %v7616_v6  ;;  %v787_v34 = vcombine.high %v779_v31, %v779_v31  ;;  %v1022_v38 = vcombine.high %v1018_v37, %v1018_v37  ;;  %v1143_v39 = vld [vmem:[%s7613_s17] sm:$0x3f]  ;;  %v1029_v41 = vrot.slane %v1018_v37, %v7616_v6 }
  0x18   : > { %v912_v35 = vcombine.high %v904_v33, %v904_v33  ;;  %v911_v40 = vrot.slane %v897_v36, %v7616_v6  ;;  %v1154_v43 = vrot.slane %v1143_v39, %v7616_v6  ;;  %v1147_v46 = vcombine.high %v1143_v39, %v1143_v39  ;;  %v1268_v47 = vld [vmem:[%s7613_s17] sm:$0x3f] }
  0x19   : > { %197 = vrot.lane.b32.xlu0 %v7633_v14, %s7529_s18  ;;  %v1036_v42 = vrot.slane %v1022_v38, %v7616_v6  ;;  %v1037_v44 = vcombine.high %v1029_v41, %v1029_v41  ;;  %v1272_v48 = vcombine.high %v1268_v47, %v1268_v47  ;;  %v1393_v49 = vld [vmem:[%s7613_s17] sm:$0x3f]  ;;  %v1279_v51 = vrot.slane %v1268_v47, %v7616_v6  ;;  %s7551_s18 = smov 62  }
  0x1a   : > { %v1162_v45 = vcombine.high %v1154_v43, %v1154_v43  ;;  %v1161_v50 = vrot.slane %v1147_v46, %v7616_v6  ;;  %v1404_v53 = vrot.slane %v1393_v49, %v7616_v6  ;;  %v1397_v56 = vcombine.high %v1393_v49, %v1393_v49  ;;  %v1518_v57 = vld [vmem:[%s7613_s17] sm:$0x3f] }
  0x1b   : > { %413 = vrot.lane.b32.xlu1 %v404_v11, %s7530_s19  ;;  %v1286_v52 = vrot.slane %v1272_v48, %v7616_v6  ;;  %v1287_v54 = vcombine.high %v1279_v51, %v1279_v51  ;;  %v1522_v58 = vcombine.high %v1518_v57, %v1518_v57  ;;  %v1643_v59 = vld [vmem:[%s7613_s17] sm:$0x3f]  ;;  %v1529_v61 = vrot.slane %v1518_v57, %v7616_v6 }
  0x1c   : > { %v1412_v55 = vcombine.high %v1404_v53, %v1404_v53  ;;  %v1411_v60 = vrot.slane %v1397_v56, %v7616_v6  ;;  %v1654_v63 = vrot.slane %v1643_v59, %v7616_v6  ;;  %v1647_v2 = vcombine.high %v1643_v59, %v1643_v59  ;;  %v1768_v5 = vld [vmem:[%s7613_s17] sm:$0x3f] }
  0x1d   : > { %417 = vrot.lane.b32.xlu0 %v411_v19, %s7530_s19  ;;  %v1536_v62 = vrot.slane %v1522_v58, %v7616_v6  ;;  %v1537_v0 = vcombine.high %v1529_v61, %v1529_v61  ;;  %v1772_v7 = vcombine.high %v1768_v5, %v1768_v5  ;;  %v1893_v8 = vld [vmem:[%s7613_s17] sm:$0xff]  ;;  %v1779_v11 = vrot.slane %v1768_v5, %v7616_v6 }
  0x1e   : > { %v1662_v1 = vcombine.high %v1654_v63, %v1654_v63  ;;  %v1661_v10 = vrot.slane %v1647_v2, %v7616_v6  ;;  %v7682_v15 = vrot.slane %v1893_v8, %v7616_v6  ;;  %v1897_v18 = vcombine.high %v1893_v8, %v1893_v8  ;;  %v6506_v36 = vld [vmem:[%s8580_s0 + $0x4] sm:$0xf] }
  0x1f   : > { %542 = vrot.lane.b32.xlu1 %v536_v21, %s7532_s20  ;;  %v1786_v13 = vrot.slane %v1772_v7, %v7616_v6  ;;  %v1787_v16 = vcombine.high %v1779_v11, %v1779_v11 }
  0x20   : > { %v7686_v17 = vcombine.high %v7682_v15, %v7682_v15  ;;  %v7690_v19 = vrot.slane %v1897_v18, %v7616_v6 }
  0x21   : > { %540 = vrot.lane.b32.xlu0 %v537_v24, %s7532_s20 }
  0x23   : > { %665 = vrot.lane.b32.xlu1 %v662_v25, %s7533_s21 }
  0x25   : > { %538 = vrot.lane.b32.xlu0 %v529_v20, %s7532_s20  ;;  %v7696_v20 = vcombine.high %v7690_v19, %v7690_v19  ;;  %s7560_s20 = smov 38  }
  0x27   : > { %663 = vrot.lane.b32.xlu1 %v654_v22, %s7533_s21  ;;  %v7549_v22 = vmov 65535  }
  0x28   : > { %v208_v24 = vsel %vm206_vm1, 4294967295, %v7549_v22  ;;  %vm1794_vm1 = vcmask 818176  }
  0x29   : > { %667 = vrot.lane.b32.xlu0 %v661_v30, %s7533_s21  ;;  %v7717_v26 = vsel %vm207_vm2, %v208_v24, 0  ;;  %vm1922_vm2 = vcmask 687104  }
  0x2a   : > { %v304_v37 = vand.u32 %v7717_v26, %v7623_v9 }
  0x2b   : > { %792 = vrot.lane.b32.xlu1 %v786_v32, %s7534_s22 }
  0x2d   : > { %790 = vrot.lane.b32.xlu0 %v787_v34, %s7534_s22  ;;  %v310_v34 = vand.u32 %v7717_v26, %v7633_v14 }
  0x2f   : > { %915 = vrot.lane.b32.xlu1 %v912_v35, %s7535_s23 }
  0x31   : > { %788 = vrot.lane.b32.xlu0 %v779_v31, %s7534_s22  ;;  %v307_v31 = vand.u32 %v7717_v26, %v7629_v12 }
  0x33   : > { %913 = vrot.lane.b32.xlu1 %v904_v33, %s7535_s23 }
  0x35   : > { %917 = vrot.lane.b32.xlu0 %v911_v40, %s7535_s23 }
  0x37   : > { %1042 = vrot.lane.b32.xlu1 %v1036_v42, %s7536_s24 }
  0x39   : > { %1040 = vrot.lane.b32.xlu0 %v1037_v44, %s7536_s24 }
  0x3b   : > { %1165 = vrot.lane.b32.xlu1 %v1162_v45, %s7537_s25 }
  0x3d   : > { %1038 = vrot.lane.b32.xlu0 %v1029_v41, %s7536_s24  ;;  %s7552_s24 = smov 61  }
  0x3f   : > { %1163 = vrot.lane.b32.xlu1 %v1154_v43, %s7537_s25  ;;  %v173_v43 = vld [vmem:[%s8580_s0] sm:$0xf] }
  0x41   : > { %1167 = vrot.lane.b32.xlu0 %v1161_v50, %s7537_s25  ;;  %s7553_s25 = smov 60  }
  0x43   : > { %1292 = vrot.lane.b32.xlu1 %v1286_v52, %s7538_s26  ;;  %v6511_v52 = vld [vmem:[%s8580_s0 + $0x8] sm:$0xf] }
  0x45   : > { %1290 = vrot.lane.b32.xlu0 %v1287_v54, %s7538_s26 }
  0x47   : > { %1415 = vrot.lane.b32.xlu1 %v1412_v55, %s7539_s27 }
  0x49   : > { %1288 = vrot.lane.b32.xlu0 %v1279_v51, %s7538_s26  ;;  %s7561_s26 = smov 37  }
  0x4b   : > { %1413 = vrot.lane.b32.xlu1 %v1404_v53, %s7539_s27 }
  0x4d   : > { %1417 = vrot.lane.b32.xlu0 %v1411_v60, %s7539_s27  ;;  %s7569_s27 = smov 14  }
  0x4f   : > { %1542 = vrot.lane.b32.xlu1 %v1536_v62, %s7540_s28 }
  0x51   : > { %1540 = vrot.lane.b32.xlu0 %v1537_v0, %s7540_s28 }
  0x53   : > { %1665 = vrot.lane.b32.xlu1 %v1662_v1, %s7541_s29 }
  0x55   : > { %1538 = vrot.lane.b32.xlu0 %v1529_v61, %s7540_s28  ;;  %v6514_v61 = vld [vmem:[%s8580_s0 + $0xc] sm:$0xf]  ;;  %s7554_s28 = smov 59  }
  0x57   : > { %1663 = vrot.lane.b32.xlu1 %v1654_v63, %s7541_s29 }
  0x59   : > { %1667 = vrot.lane.b32.xlu0 %v1661_v10, %s7541_s29  ;;  %v6517_v10 = vld [vmem:[%s8580_s0 + $0x10] sm:$0xf]  ;;  %s7562_s29 = smov 36  }
  0x5b   : > { %1792 = vrot.lane.b32.xlu1 %v1786_v13, %s7542_s30 }
  0x5d   : > { %1790 = vrot.lane.b32.xlu0 %v1787_v16, %s7542_s30 }
  0x5f   : > { %1916 = vrot.lane.b32.xlu1 %v7686_v17, %s7543_s4 }
  0x61   : > { %1788 = vrot.lane.b32.xlu0 %v1779_v11, %s7542_s30  ;;  %s7570_s30 = smov 13  }
  0x63   : > { %1914 = vrot.lane.b32.xlu1 %v7682_v15, %s7543_s4 }
  0x65   : > { %1918 = vrot.lane.b32.xlu0 %v7690_v19, %s7543_s4 }
  0x67   : > { %2045 = vrot.lane.b32.xlu1 %v7686_v17, %s7544_s5 }
  0x69   : > { %1920 = vrot.lane.b32.xlu0 %v7696_v20, %s7543_s4  ;;  %s7555_s4 = smov 58  }
  0x6b   : > { %2043 = vrot.lane.b32.xlu1 %v7682_v15, %s7544_s5 }
  0x6d   : > { %2047 = vrot.lane.b32.xlu0 %v7690_v19, %s7544_s5 }
  0x6f   : > { %2174 = vrot.lane.b32.xlu1 %v7686_v17, %s7545_s6 }
  0x71   : > { %2049 = vrot.lane.b32.xlu0 %v7696_v20, %s7544_s5  ;;  %s7563_s5 = smov 35  }
  0x73   : > { %2172 = vrot.lane.b32.xlu1 %v7682_v15, %s7545_s6 }
  0x75   : > { %2176 = vrot.lane.b32.xlu0 %v7690_v19, %s7545_s6 }
  0x77   : > { %2303 = vrot.lane.b32.xlu1 %v7686_v17, %s7546_s7 }
  0x79   : > { %2178 = vrot.lane.b32.xlu0 %v7696_v20, %s7545_s6  ;;  %s7571_s6 = smov 12  }
  0x7b   : > { %2301 = vrot.lane.b32.xlu1 %v7682_v15, %s7546_s7 }
  0x7d   : > { %2305 = vrot.lane.b32.xlu0 %v7690_v19, %s7546_s7 }
  0x7f   : > { %2432 = vrot.lane.b32.xlu1 %v7686_v17, %s7547_s8 }
  0x81   : > { %2307 = vrot.lane.b32.xlu0 %v7696_v20, %s7546_s7  ;;  %s7556_s7 = smov 57  }
  0x83   : > { %2430 = vrot.lane.b32.xlu1 %v7682_v15, %s7547_s8 }
  0x85   : > { %2434 = vrot.lane.b32.xlu0 %v7690_v19, %s7547_s8  ;;  %v194_v25 = vpop.permute.xlu1 %193 }
  0x87   : > { %v196_v21 = vpop.permute.xlu0 %195  ;;  %2561 = vrot.lane.b32.xlu1 %v7686_v17, %s7548_s9 }
  0x88   : > { %v200_v28 = vsel %vm199_vm3, %v194_v25, %v196_v21 }
  0x89   : > { %2436 = vrot.lane.b32.xlu0 %v7696_v20, %s7547_s8  ;;  %v416_v33 = vpop.permute.xlu1 %415  ;;  %v211_v35 = vand.u32 %v7717_v26, %v200_v28  ;;  %s7564_s8 = smov 34  }
  0x8b   : > { %v198_v27 = vpop.permute.xlu0 %197  ;;  %2559 = vrot.lane.b32.xlu1 %v7682_v15, %s7548_s9 }
  0x8c   : > { %v217_v29 = vand.u32 %v7717_v26, %v198_v27  ;;  %v201_v30 = vsel %vm199_vm3, %v196_v21, %v198_v27  ;;  %v6520_v27 = vld [vmem:[%s8580_s0 + $0x14] sm:$0xf]  ;;  %vm2051_vm3 = vcmask 678912  }
  0x8d   : > { %v214_v32 = vand.u32 %v7717_v26, %v201_v30  ;;  %2563 = vrot.lane.b32.xlu0 %v7690_v19, %s7548_s9  ;;  %v414_v39 = vpop.permute.xlu1 %413 }
  0x8e   : > { %6758 = vmatpush3.bf16.msra.mxu1 %v217_v29  ;;  %v420_v40 = vsel %vm419_vm4, %v414_v39, %v416_v33 }
  0x8f   : > { %219 = vmatprep.subr.bf16.mxu0 %v214_v32  ;;  %6763 = vmatprep.subr.bf16.mxu1 %v7527_v4  ;;  %v418_v12 = vpop.permute.xlu0 %417  ;;  %v426_v45 = vand.u32 %v420_v40, %v7717_v26 }
  0x90   : > { %220 = vmatpush1.bf16.msra.mxu0 %v211_v35  ;;  %v421_v38 = vsel %vm419_vm4, %v416_v33, %v418_v12  ;;  %2690 = vrot.lane.b32.xlu1 %v7686_v17, %s7550_s14  ;;  %v432_v42 = vand.u32 %v418_v12, %v7717_v26  ;;  %vm2180_vm4 = vcmask 670720  }
  0x91   : > { %6760 = vmatmul.mubr.msk.bf16.vlgmr.msra.gmra.mrb[0].mxu1 %vm202_vm5, %v6506_v36  ;;  %312 = vmatprep.subr.bf16.mxu0 %v307_v31  ;;  %v429_v14 = vand.u32 %v421_v38, %v7717_v26  ;;  %v543_v9 = vpop.permute.xlu1 %542 }
  0x92   : > { %6764 = vmatpush3.bf16.msra.mxu1 %v310_v34  ;;  %6765 = vmatprep.mubr.msk.bf16.mxu1 %vm7528_vm0, %v7527_v4  ;;  %v557_v51 = vand.u32 %v543_v9, %v7717_v26 }
  0x93   : > { %6507 = vmatmul.mubr.msk.bf16.vlgmr.msra.gmra.mrb[0].mxu0 %vm202_vm5, %v6506_v36  ;;  %6769 = vmatprep.subr.bf16.mxu1 %v7527_v4  ;;  %v541_v41 = vpop.permute.xlu0 %540  ;;  %v6523_v36 = vld [vmem:[%s8580_s0 + $0x18] sm:$0xf] }
  0x94   : > { %313 = vmatpush1.bf16.msra.mxu0 %v304_v37  ;;  %344 = vmatprep.mubr.bf16.mxu0 %v7531_v23  ;;  %v546_v44 = vsel %vm544_vm6, %v541_v41, %v543_v9 }
  0x95   : > { %434 = vmatprep.subr.bf16.mxu0 %v429_v14  ;;  %2565 = vrot.lane.b32.xlu0 %v7696_v20, %s7548_s9  ;;  %v554_v46 = vand.u32 %v546_v44, %v7717_v26  ;;  %v666_v50 = vpop.permute.xlu1 %665  ;;  %s7565_s9 = smov 18  }
  0x96   : > { %2688 = vrot.lane.b32.xlu1 %v7682_v15, %s7550_s14 }
  0x97   : > { %v539_v47 = vpop.permute.xlu0 %538 }
  0x98   : > { %v545_v49 = vsel %vm544_vm6, %v539_v47, %v541_v41  ;;  %vm2309_vm6 = vcmask 662528  }
  0x99   : > { %2692 = vrot.lane.b32.xlu0 %v7690_v19, %s7550_s14  ;;  %v551_v54 = vand.u32 %v545_v49, %v7717_v26  ;;  %v664_v56 = vpop.permute.xlu1 %663 }
  0x9a   : > { %2819 = vrot.lane.b32.xlu1 %v7686_v17, %s7551_s18  ;;  %v670_v58 = vsel %vm669_vm7, %v664_v56, %v666_v50 }
  0x9b   : > { %v668_v48 = vpop.permute.xlu0 %667  ;;  %v676_v63 = vand.u32 %v670_v58, %v7717_v26 }
  0x9c   : > { %v671_v53 = vsel %vm669_vm7, %v666_v50, %v668_v48  ;;  %v682_v60 = vand.u32 %v668_v48, %v7717_v26 }
  0x9d   : > { %6766 = vmatmul.mubr.msk.bf16.vlgmr.msra.gmra.mrb[0].mxu1 %vm202_vm5, %v173_v43  ;;  %2694 = vrot.lane.b32.xlu0 %v7696_v20, %s7550_s14  ;;  %v679_v55 = vand.u32 %v671_v53, %v7717_v26  ;;  %v793_v57 = vpop.permute.xlu1 %792  ;;  %s7566_s14 = smov 17  }
  0x9e   : > { %6770 = vmatpush3.bf16.msra.mxu1 %v432_v42  ;;  %6771 = vmatprep.mubr.msk.bf16.mxu1 %vm7528_vm0, %v7527_v4  ;;  %v807_v8 = vand.u32 %v793_v57, %v7717_v26  ;;  %v6526_v42 = vld [vmem:[%s8580_s0 + $0x1c] sm:$0xf] }
  0x9f   : > { %6509 = vmatmul.mubr.msk.bf16.vlgmr.msra.gmra.mrb[0].mxu0 %vm202_vm5, %v173_v43  ;;  %6775 = vmatprep.subr.bf16.mxu1 %v7527_v4  ;;  %v791_v59 = vpop.permute.xlu0 %790 }
  0xa0   : > { %435 = vmatpush1.bf16.msra.mxu0 %v426_v45  ;;  %466 = vmatprep.mubr.bf16.mxu0 %v7531_v23  ;;  %v796_v62 = vsel %vm794_vm8, %v791_v59, %v793_v57 }
  0xa1   : > { %559 = vmatprep.subr.bf16.mxu0 %v554_v46  ;;  %2821 = vrot.lane.b32.xlu0 %v7690_v19, %s7551_s18  ;;  %v804_v0 = vand.u32 %v796_v62, %v7717_v26  ;;  %v916_v7 = vpop.permute.xlu1 %915 }
  0xa2   : > { %2817 = vrot.lane.b32.xlu1 %v7682_v15, %s7551_s18 }
  0xa3   : > { %v789_v1 = vpop.permute.xlu0 %788 }
  0xa4   : > { %v795_v5 = vsel %vm794_vm8, %v789_v1, %v791_v59 }
  0xa5   : > { %2823 = vrot.lane.b32.xlu0 %v7696_v20, %s7551_s18  ;;  %v801_v13 = vand.u32 %v795_v5, %v7717_v26  ;;  %v914_v18 = vpop.permute.xlu1 %913  ;;  %s7567_s18 = smov 16  }
  0xa6   : > { %2948 = vrot.lane.b32.xlu1 %v7686_v17, %s7552_s24  ;;  %v920_v22 = vsel %vm919_vm9, %v914_v18, %v916_v7 }
  0xa7   : > { %v918_v2 = vpop.permute.xlu0 %917  ;;  %v926_v29 = vand.u32 %v920_v22, %v7717_v26 }
  0xa8   : > { %v921_v11 = vsel %vm919_vm9, %v916_v7, %v918_v2  ;;  %v932_v25 = vand.u32 %v918_v2, %v7717_v26 }
  0xa9   : > { %6772 = vmatmul.mubr.msk.bf16.vlgmr.msra.gmra.mrb[0].mxu1 %vm202_vm5, %v6511_v52  ;;  %2950 = vrot.lane.b32.xlu0 %v7690_v19, %s7552_s24  ;;  %v929_v16 = vand.u32 %v921_v11, %v7717_v26  ;;  %v1043_v21 = vpop.permute.xlu1 %1042 }
  0xaa   : > { %6776 = vmatpush3.bf16.msra.mxu1 %v557_v51  ;;  %6777 = vmatprep.mubr.msk.bf16.mxu1 %vm7528_vm0, %v7527_v4  ;;  %v1057_v35 = vand.u32 %v1043_v21, %v7717_v26  ;;  %v6529_v51 = vld [vmem:[%s8580_s0 + $0x20] sm:$0xf] }
  0xab   : > { %6512 = vmatmul.mubr.msk.bf16.vlgmr.msra.gmra.mrb[0].mxu0 %vm202_vm5, %v6511_v52  ;;  %6781 = vmatprep.subr.bf16.mxu1 %v7527_v4  ;;  %v1041_v24 = vpop.permute.xlu0 %1040 }
  0xac   : > { %560 = vmatpush1.bf16.msra.mxu0 %v551_v54  ;;  %591 = vmatprep.mubr.bf16.mxu0 %v7531_v23  ;;  %v1046_v28 = vsel %vm1044_vm10, %v1041_v24, %v1043_v21 }
  0xad   : > { %684 = vmatprep.subr.bf16.mxu0 %v679_v55  ;;  %2946 = vrot.lane.b32.xlu1 %v7682_v15, %s7552_s24  ;;  %v1054_v30 = vand.u32 %v1046_v28, %v7717_v26  ;;  %v1166_v34 = vpop.permute.xlu1 %1165  ;;  %v6538_v28 = vld [vmem:[%s8580_s0 + $0x2c] sm:$0xf] }
  0xae   : > { %2952 = vrot.lane.b32.xlu0 %v7696_v20, %s7552_s24  ;;  %s7568_s24 = smov 15  }
  0xaf   : > { %v1039_v31 = vpop.permute.xlu0 %1038 }
  0xb0   : > { %v1045_v33 = vsel %vm1044_vm10, %v1039_v31, %v1041_v24  ;;  %vm2438_vm10 = vcmask 654336  }
  0xb1   : > { %3077 = vrot.lane.b32.xlu1 %v7686_v17, %s7553_s25  ;;  %v1051_v37 = vand.u32 %v1045_v33, %v7717_v26  ;;  %v1164_v14 = vpop.permute.xlu1 %1163 }
  0xb2   : > { %3079 = vrot.lane.b32.xlu0 %v7690_v19, %s7553_s25  ;;  %v1170_v9 = vsel %vm1169_vm11, %v1164_v14, %v1166_v34 }
  0xb3   : > { %v1168_v32 = vpop.permute.xlu0 %1167  ;;  %v1176_v44 = vand.u32 %v1170_v9, %v7717_v26 }
  0xb4   : > { %v1171_v12 = vsel %vm1169_vm11, %v1166_v34, %v1168_v32  ;;  %v1182_v41 = vand.u32 %v1168_v32, %v7717_v26  ;;  %vm2567_vm11 = vcmask 646144  }
  0xb5   : > { %6778 = vmatmul.mubr.msk.bf16.vlgmr.msra.gmra.mrb[0].mxu1 %vm202_vm5, %v6514_v61  ;;  %3075 = vrot.lane.b32.xlu1 %v7682_v15, %s7553_s25  ;;  %v1179_v38 = vand.u32 %v1171_v12, %v7717_v26  ;;  %v1293_v39 = vpop.permute.xlu1 %1292  ;;  %v6541_v12 = vld [vmem:[%s8580_s0 + $0x30] sm:$0xf] }
  0xb6   : > { %6782 = vmatpush3.bf16.msra.mxu1 %v682_v60  ;;  %6783 = vmatprep.mubr.msk.bf16.mxu1 %vm7528_vm0, %v7527_v4  ;;  %v1307_v50 = vand.u32 %v1293_v39, %v7717_v26  ;;  %v6532_v60 = vld [vmem:[%s8580_s0 + $0x24] sm:$0xf] }
  0xb7   : > { %6515 = vmatmul.mubr.msk.bf16.vlgmr.msra.gmra.mrb[0].mxu0 %vm202_vm5, %v6514_v61  ;;  %6787 = vmatprep.subr.bf16.mxu1 %v7527_v4  ;;  %v1291_v40 = vpop.permute.xlu0 %1290 }
  0xb8   : > { %685 = vmatpush1.bf16.msra.mxu0 %v676_v63  ;;  %716 = vmatprep.mubr.bf16.mxu0 %v7531_v23  ;;  %v1296_v43 = vsel %vm1294_vm12, %v1291_v40, %v1293_v39 }
  0xb9   : > { %809 = vmatprep.subr.bf16.mxu0 %v804_v0  ;;  %3081 = vrot.lane.b32.xlu0 %v7696_v20, %s7553_s25  ;;  %v1304_v45 = vand.u32 %v1296_v43, %v7717_v26  ;;  %v1416_v49 = vpop.permute.xlu1 %1415 }
  0xba   : > { %3206 = vrot.lane.b32.xlu1 %v7686_v17, %s7554_s28 }
  0xbb   : > { %v1289_v46 = vpop.permute.xlu0 %1288 }
  0xbc   : > { %v1295_v48 = vsel %vm1294_vm12, %v1289_v46, %v1291_v40  ;;  %vm2696_vm12 = vcmask 637952  }
  0xbd   : > { %3208 = vrot.lane.b32.xlu0 %v7690_v19, %s7554_s28  ;;  %v1301_v53 = vand.u32 %v1295_v48, %v7717_v26  ;;  %v1414_v55 = vpop.permute.xlu1 %1413 }
  0xbe   : > { %3204 = vrot.lane.b32.xlu1 %v7682_v15, %s7554_s28  ;;  %v1420_v57 = vsel %vm1419_vm13, %v1414_v55, %v1416_v49 }
  0xbf   : > { %v1418_v47 = vpop.permute.xlu0 %1417  ;;  %v1426_v62 = vand.u32 %v1420_v57, %v7717_v26 }
  0xc0   : > { %v1421_v52 = vsel %vm1419_vm13, %v1416_v49, %v1418_v47  ;;  %v1432_v59 = vand.u32 %v1418_v47, %v7717_v26  ;;  %vm2825_vm13 = vcmask 506880  }
  0xc1   : > { %6784 = vmatmul.mubr.msk.bf16.vlgmr.msra.gmra.mrb[0].mxu1 %vm202_vm5, %v6517_v10  ;;  %3210 = vrot.lane.b32.xlu0 %v7696_v20, %s7554_s28  ;;  %v1429_v54 = vand.u32 %v1421_v52, %v7717_v26  ;;  %v1543_v56 = vpop.permute.xlu1 %1542 }
  0xc2   : > { %6788 = vmatpush3.bf16.msra.mxu1 %v807_v8  ;;  %6789 = vmatprep.mubr.msk.bf16.mxu1 %vm7528_vm0, %v7527_v4 }
  0xc3   : > { %6518 = vmatmul.mubr.msk.bf16.vlgmr.msra.gmra.mrb[0].mxu0 %vm202_vm5, %v6517_v10  ;;  %6793 = vmatprep.subr.bf16.mxu1 %v7527_v4  ;;  %v1541_v58 = vpop.permute.xlu0 %1540  ;;  %v1557_v10 = vand.u32 %v1543_v56, %v7717_v26 }
  0xc4   : > { %810 = vmatpush1.bf16.msra.mxu0 %v801_v13  ;;  %841 = vmatprep.mubr.bf16.mxu0 %v7531_v23  ;;  %v1546_v61 = vsel %vm1544_vm14, %v1541_v58, %v1543_v56  ;;  %v6547_v56 = vld [vmem:[%s8580_s0 + $0x38] sm:$0xf] }
  0xc5   : > { %934 = vmatprep.subr.bf16.mxu0 %v929_v16  ;;  %3335 = vrot.lane.b32.xlu1 %v7686_v17, %s7555_s4  ;;  %v1554_v63 = vand.u32 %v1546_v61, %v7717_v26  ;;  %v1666_v5 = vpop.permute.xlu1 %1665 }
  0xc6   : > { %3337 = vrot.lane.b32.xlu0 %v7690_v19, %s7555_s4 }
  0xc7   : > { %v1539_v0 = vpop.permute.xlu0 %1538 }
  0xc8   : > { %v1545_v2 = vsel %vm1544_vm14, %v1539_v0, %v1541_v58  ;;  %vm2954_vm14 = vcmask 498688  }
  0xc9   : > { %3333 = vrot.lane.b32.xlu1 %v7682_v15, %s7555_s4  ;;  %v1551_v13 = vand.u32 %v1545_v2, %v7717_v26  ;;  %v1664_v18 = vpop.permute.xlu1 %1663  ;;  %v6550_v2 = vld [vmem:[%s8580_s0 + $0x3c] sm:$0xf] }
  0xca   : > { %3339 = vrot.lane.b32.xlu0 %v7696_v20, %s7555_s4  ;;  %v1670_v24 = vsel %vm1669_vm15, %v1664_v18, %v1666_v5 }
  0xcb   : > { %v1668_v1 = vpop.permute.xlu0 %1667 }
  0xcd   : > { %6790 = vmatmul.mubr.msk.bf16.vlgmr.msra.gmra.mrb[0].mxu1 %vm202_vm5, %v6520_v27  ;;  %3464 = vrot.lane.b32.xlu1 %v7686_v17, %s7556_s7  ;;  %v1793_v21 = vpop.permute.xlu1 %1792 }
  0xce   : > { %6794 = vmatpush3.bf16.msra.mxu1 %v932_v25  ;;  %6795 = vmatprep.mubr.msk.bf16.mxu1 %vm7528_vm0, %v7527_v4 }
  0xcf   : > { %6521 = vmatmul.mubr.msk.bf16.vlgmr.msra.gmra.mrb[0].mxu0 %vm202_vm5, %v6520_v27  ;;  %6799 = vmatprep.subr.bf16.mxu1 %v7527_v4  ;;  %v1791_v25 = vpop.permute.xlu0 %1790  ;;  %v1682_v27 = vand.u32 %v1668_v1, %v7717_v26 }
  0xd0   : > { %935 = vmatpush1.bf16.msra.mxu0 %v926_v29  ;;  %966 = vmatprep.mubr.bf16.mxu0 %v7531_v23  ;;  %v1796_v29 = vsel %vm1794_vm1, %v1791_v25, %v1793_v21 }
  0xd1   : > { %1059 = vmatprep.subr.bf16.mxu0 %v1054_v30  ;;  %3466 = vrot.lane.b32.xlu0 %v7690_v19, %s7556_s7  ;;  %v1676_v30 = vand.u32 %v1670_v24, %v7717_v26  ;;  %v1804_v31 = vand.u32 %v1796_v29, %v7717_v26 }
  0xd2   : > { %3462 = vrot.lane.b32.xlu1 %v7682_v15, %s7556_s7 }
  0xd3   : > { %v1789_v32 = vpop.permute.xlu0 %1788 }
  0xd4   : > { %v1795_v34 = vsel %vm1794_vm1, %v1789_v32, %v1791_v25  ;;  %v6553_v25 = vld [vmem:[%s8580_s0 + $0x40] sm:$0xf]  ;;  %vm3212_vm1 = vcmask 482304  }
  0xd5   : > { %3468 = vrot.lane.b32.xlu0 %v7696_v20, %s7556_s7 }
  0xd6   : > { %3593 = vrot.lane.b32.xlu1 %v7686_v17, %s7557_s10 }
  0xd7   : > { %v1919_v33 = vpop.permute.xlu0 %1918 }
  0xd9   : > { %6796 = vmatmul.mubr.msk.bf16.vlgmr.msra.gmra.mrb[0].mxu1 %vm202_vm5, %v6523_v36  ;;  %3595 = vrot.lane.b32.xlu0 %v7690_v19, %s7557_s10 }
  0xda   : > { %6800 = vmatpush3.bf16.msra.mxu1 %v1057_v35  ;;  %6801 = vmatprep.mubr.msk.bf16.mxu1 %vm7528_vm0, %v7527_v4  ;;  %v1917_v35 = vpop.permute.xlu1 %1916 }
  0xdb   : > { %6524 = vmatmul.mubr.msk.bf16.vlgmr.msra.gmra.mrb[0].mxu0 %vm202_vm5, %v6523_v36  ;;  %6805 = vmatprep.subr.bf16.mxu1 %v7527_v4  ;;  %v1807_v36 = vand.u32 %v1793_v21, %v7717_v26  ;;  %v1921_v39 = vpop.permute.xlu0 %1920 }
  0xdc   : > { %1060 = vmatpush1.bf16.msra.mxu0 %v1051_v37  ;;  %1091 = vmatprep.mubr.bf16.mxu0 %v7531_v23  ;;  %v1924_v37 = vsel %vm1922_vm2, %v1917_v35, %v1919_v33  ;;  %v1925_v40 = vsel %vm1922_vm2, %v1919_v33, %v1921_v39 }
  0xdd   : > { %1184 = vmatprep.subr.bf16.mxu0 %v1179_v38  ;;  %3591 = vrot.lane.b32.xlu1 %v7682_v15, %s7557_s10  ;;  %v1801_v38 = vand.u32 %v1795_v34, %v7717_v26  ;;  %v1933_v14 = vand.u32 %v1924_v37, %v7717_v26 }
  0xde   : > { %3597 = vrot.lane.b32.xlu0 %v7696_v20, %s7557_s10  ;;  %v1915_v9 = vpop.permute.xlu1 %1914 }
  0xe1   : > { %3722 = vrot.lane.b32.xlu1 %v7686_v17, %s7558_s11 }
  0xe2   : > { %3724 = vrot.lane.b32.xlu0 %v7690_v19, %s7558_s11  ;;  %v2046_v43 = vpop.permute.xlu1 %2045 }
  0xe5   : > { %6802 = vmatmul.mubr.msk.bf16.vlgmr.msra.gmra.mrb[0].mxu1 %vm202_vm5, %v6526_v42  ;;  %3720 = vrot.lane.b32.xlu1 %v7682_v15, %s7558_s11 }
  0xe6   : > { %6806 = vmatpush3.bf16.msra.mxu1 %v1182_v41  ;;  %6807 = vmatprep.mubr.msk.bf16.mxu1 %vm7528_vm0, %v7527_v4  ;;  %v2048_v41 = vpop.permute.xlu0 %2047 }
  0xe7   : > { %6527 = vmatmul.mubr.msk.bf16.vlgmr.msra.gmra.mrb[0].mxu0 %vm202_vm5, %v6526_v42  ;;  %6811 = vmatprep.subr.bf16.mxu1 %v7527_v4  ;;  %v1923_v42 = vsel %vm1922_vm2, %v1915_v9, %v1917_v35  ;;  %v2053_v46 = vsel %vm2051_vm3, %v2046_v43, %v2048_v41  ;;  %vm3341_vm2 = vcmask 474112  }
  0xe8   : > { %1185 = vmatpush1.bf16.msra.mxu0 %v1176_v44  ;;  %1216 = vmatprep.mubr.bf16.mxu0 %v7531_v23  ;;  %v1936_v44 = vand.u32 %v1925_v40, %v7717_v26  ;;  %v1930_v47 = vand.u32 %v1923_v42, %v7717_v26  ;;  %v2062_v48 = vand.u32 %v2053_v46, %v7717_v26 }
  0xe9   : > { %1309 = vmatprep.subr.bf16.mxu0 %v1304_v45  ;;  %3726 = vrot.lane.b32.xlu0 %v7696_v20, %s7558_s11  ;;  %v6544_v45 = vld [vmem:[%s8580_s0 + $0x34] sm:$0xf] }
  0xea   : > { %3851 = vrot.lane.b32.xlu1 %v7686_v17, %s7559_s16  ;;  %v2050_v49 = vpop.permute.xlu0 %2049 }
  0xed   : > { %3853 = vrot.lane.b32.xlu0 %v7690_v19, %s7559_s16 }
  0xee   : > { %3849 = vrot.lane.b32.xlu1 %v7682_v15, %s7559_s16  ;;  %v2177_v52 = vpop.permute.xlu0 %2176 }
  0xf1   : > { %6808 = vmatmul.mubr.msk.bf16.vlgmr.msra.gmra.mrb[0].mxu1 %vm202_vm5, %v6529_v51  ;;  %3855 = vrot.lane.b32.xlu0 %v7696_v20, %s7559_s16 }
  0xf2   : > { %6812 = vmatpush3.bf16.msra.mxu1 %v1307_v50  ;;  %6813 = vmatprep.mubr.msk.bf16.mxu1 %vm7528_vm0, %v7527_v4  ;;  %v2044_v50 = vpop.permute.xlu1 %2043 }
  0xf3   : > { %6530 = vmatmul.mubr.msk.bf16.vlgmr.msra.gmra.mrb[0].mxu0 %vm202_vm5, %v6529_v51  ;;  %6817 = vmatprep.subr.bf16.mxu1 %v7527_v4  ;;  %v2054_v51 = vsel %vm2051_vm3, %v2048_v41, %v2050_v49 }
  0xf4   : > { %1310 = vmatpush1.bf16.msra.mxu0 %v1301_v53  ;;  %1341 = vmatprep.mubr.bf16.mxu0 %v7531_v23  ;;  %v2052_v53 = vsel %vm2051_vm3, %v2044_v50, %v2046_v43  ;;  %v2065_v55 = vand.u32 %v2054_v51, %v7717_v26  ;;  %vm3470_vm3 = vcmask 465920  }
  0xf5   : > { %1434 = vmatprep.subr.bf16.mxu0 %v1429_v54  ;;  %3980 = vrot.lane.b32.xlu1 %v7686_v17, %s7560_s20  ;;  %v2059_v58 = vand.u32 %v2052_v53, %v7717_v26 }
  0xf6   : > { %3982 = vrot.lane.b32.xlu0 %v7690_v19, %s7560_s20  ;;  %v2175_v54 = vpop.permute.xlu1 %2174 }
  0xf7   : > { %v2182_v57 = vsel %vm2180_vm4, %v2175_v54, %v2177_v52 }
  0xf9   : > { %3978 = vrot.lane.b32.xlu1 %v7682_v15, %s7560_s20 }
  0xfa   : > { %3984 = vrot.lane.b32.xlu0 %v7696_v20, %s7560_s20  ;;  %v2173_v61 = vpop.permute.xlu1 %2172  ;;  %s7573_s20 = smov 120  }
  0xfb   : > { %v2181_v0 = vsel %vm2180_vm4, %v2173_v61, %v2175_v54  ;;  %v5505_v61 = vld [vmem:[%s7613_s17 + $0x2] sm:$0x3f] }
  0xfd   : > { %6814 = vmatmul.mubr.msk.bf16.vlgmr.msra.gmra.mrb[0].mxu1 %vm202_vm5, %v6532_v60  ;;  %4109 = vrot.lane.b32.xlu1 %v7686_v17, %s7561_s26  ;;  %v4215_v17 = vld [vmem:[%s7613_s17] sm:$0xff] }
  0xfe   : > { %6818 = vmatpush3.bf16.msra.mxu1 %v1432_v59  ;;  %6819 = vmatprep.mubr.msk.bf16.mxu1 %vm7528_vm0, %v7527_v4  ;;  %v7923_v7 = vrot.slane %v4215_v17, %v7616_v6  ;;  %v4219_v8 = vcombine.high %v4215_v17, %v4215_v17  ;;  %v2191_v59 = vand.u32 %v2182_v57, %v7717_v26 }
  0xff   : > { %6533 = vmatmul.mubr.msk.bf16.vlgmr.msra.gmra.mrb[0].mxu0 %vm202_vm5, %v6532_v60  ;;  %6823 = vmatprep.subr.bf16.mxu1 %v7527_v4  ;;  %v2179_v60 = vpop.permute.xlu0 %2178 }
 0x100   : > { %1435 = vmatpush1.bf16.msra.mxu0 %v1426_v62  ;;  %1466 = vmatprep.mubr.bf16.mxu0 %v7531_v23  ;;  %v7932_v11 = vcombine.high %v7923_v7, %v7923_v7  ;;  %v7939_v16 = vrot.slane %v4219_v8, %v7616_v6  ;;  %v2183_v62 = vsel %vm2180_vm4, %v2177_v52, %v2179_v60  ;;  %vm3599_vm4 = vcmask 457728  }
 0x101   : > { %1559 = vmatprep.subr.bf16.mxu0 %v1554_v63  ;;  %4111 = vrot.lane.b32.xlu0 %v7690_v19, %s7561_s26  ;;  %v6535_v19 = vld [vmem:[%s8580_s0 + $0x28] sm:$0xf]  ;;  %v2194_v17 = vand.u32 %v2183_v62, %v7717_v26  ;;  %v2188_v8 = vand.u32 %v2181_v0, %v7717_v26  ;;  %v5516_v0 = vrot.slane %v5505_v61, %v7616_v6 }
 0x102   : > { %4107 = vrot.lane.b32.xlu1 %v7682_v15, %s7561_s26  ;;  %v1671_v15 = vsel %vm1669_vm15, %v1666_v5, %v1668_v1  ;;  %v7950_v22 = vcombine.high %v7939_v16, %v7939_v16  ;;  %v2304_v1 = vpop.permute.xlu1 %2303  ;;  %vm3083_vm15 = vcmask 490496  }
 0x103   : > { %v2306_v63 = vpop.permute.xlu0 %2305 }
 0x104   : > { %v2311_v5 = vsel %vm2309_vm6, %v2304_v1, %v2306_v63 }
 0x105   : > { %4113 = vrot.lane.b32.xlu0 %v7696_v20, %s7561_s26  ;;  %v1679_v20 = vand.u32 %v1671_v15, %v7717_v26  ;;  %s7574_s26 = smov 119  }
 0x106   : > { %4238 = vrot.lane.b32.xlu1 %v7932_v11, %s7562_s29  ;;  %v2302_v15 = vpop.permute.xlu1 %2301 }
 0x107   : > { %v2310_v18 = vsel %vm2309_vm6, %v2302_v15, %v2304_v1  ;;  %v5509_v15 = vcombine.high %v5505_v61, %v5505_v61 }
 0x109   : > { %6820 = vmatmul.mubr.msk.bf16.vlgmr.msra.gmra.mrb[0].mxu1 %vm202_vm5, %v6535_v19  ;;  %4240 = vrot.lane.b32.xlu0 %v7939_v16, %s7562_s29 }
 0x10a   : > { %6824 = vmatpush3.bf16.msra.mxu1 %v1557_v10  ;;  %6825 = vmatprep.mubr.msk.bf16.mxu1 %vm7528_vm0, %v7527_v4  ;;  %v2320_v10 = vand.u32 %v2311_v5, %v7717_v26  ;;  %v2433_v21 = vpop.permute.xlu1 %2432  ;;  %v5524_v5 = vcombine.high %v5516_v0, %v5516_v0 }
 0x10b   : > { %6536 = vmatmul.mubr.msk.bf16.vlgmr.msra.gmra.mrb[0].mxu0 %vm202_vm5, %v6535_v19  ;;  %6829 = vmatprep.subr.bf16.mxu1 %v7527_v4  ;;  %v2308_v19 = vpop.permute.xlu0 %2307 }
 0x10c   : > { %1560 = vmatpush1.bf16.msra.mxu0 %v1551_v13  ;;  %1591 = vmatprep.mubr.bf16.mxu0 %v7531_v23  ;;  %v2312_v13 = vsel %vm2309_vm6, %v2306_v63, %v2308_v19  ;;  %vm3728_vm6 = vcmask 326656  }
 0x10d   : > { %1684 = vmatprep.subr.bf16.mxu0 %v1679_v20  ;;  %4236 = vrot.lane.b32.xlu1 %v7923_v7, %s7562_s29  ;;  %v2323_v24 = vand.u32 %v2312_v13, %v7717_v26 }
 0x10e   : > { %4242 = vrot.lane.b32.xlu0 %v7950_v22, %s7562_s29 }
 0x10f   : > { %v2435_v20 = vpop.permute.xlu0 %2434 }
 0x111   : > { %4367 = vrot.lane.b32.xlu1 %v7932_v11, %s7563_s5 }
 0x112   : > { %4369 = vrot.lane.b32.xlu0 %v7939_v16, %s7563_s5 }
 0x115   : > { %6826 = vmatmul.mubr.msk.bf16.vlgmr.msra.gmra.mrb[0].mxu1 %vm202_vm5, %v6538_v28  ;;  %4365 = vrot.lane.b32.xlu1 %v7923_v7, %s7563_s5 }
 0x116   : > { %6830 = vmatpush3.bf16.msra.mxu1 %v1682_v27  ;;  %6831 = vmatprep.mubr.msk.bf16.mxu1 %vm7528_vm0, %v7527_v4  ;;  %v2440_v27 = vsel %vm2438_vm10, %v2433_v21, %v2435_v20 }
 0x117   : > { %6539 = vmatmul.mubr.msk.bf16.vlgmr.msra.gmra.mrb[0].mxu0 %vm202_vm5, %v6538_v28  ;;  %6835 = vmatprep.subr.bf16.mxu1 %v7527_v4  ;;  %v2317_v28 = vand.u32 %v2310_v18, %v7717_v26  ;;  %v2449_v29 = vand.u32 %v2440_v27, %v7717_v26  ;;  %v5523_v18 = vrot.slane %v5509_v15, %v7616_v6 }
 0x118   : > { %1685 = vmatpush1.bf16.msra.mxu0 %v1676_v30  ;;  %1716 = vmatprep.mubr.bf16.mxu0 %v7531_v23  ;;  %v2437_v30 = vpop.permute.xlu0 %2436 }
 0x119   : > { %1809 = vmatprep.subr.bf16.mxu0 %v1804_v31  ;;  %4371 = vrot.lane.b32.xlu0 %v7950_v22, %s7563_s5  ;;  %v2431_v31 = vpop.permute.xlu1 %2430  ;;  %v2441_v32 = vsel %vm2438_vm10, %v2435_v20, %v2437_v30 }
 0x11a   : > { %4496 = vrot.lane.b32.xlu1 %v7932_v11, %s7564_s8  ;;  %v2439_v34 = vsel %vm2438_vm10, %v2431_v31, %v2433_v21  ;;  %v5629_v21 = vld [vmem:[%s7613_s17 + $0x2] sm:$0x3f]  ;;  %vm3857_vm10 = vcmask 318464  }
 0x11b   : > { %v5640_v27 = vrot.slane %v5629_v21, %v7616_v6 }
 0x11c   : > { %v2564_v33 = vpop.permute.xlu0 %2563 }
 0x11d   : > { %4498 = vrot.lane.b32.xlu0 %v7939_v16, %s7564_s8  ;;  %v2562_v35 = vpop.permute.xlu1 %2561  ;;  %v5648_v31 = vcombine.high %v5640_v27, %v5640_v27 }
 0x11e   : > { %4494 = vrot.lane.b32.xlu1 %v7923_v7, %s7564_s8  ;;  %v2569_v37 = vsel %vm2567_vm11, %v2562_v35, %v2564_v33 }
 0x120   : > { %v2566_v39 = vpop.permute.xlu0 %2565 }
 0x121   : > { %6832 = vmatmul.mubr.msk.bf16.vlgmr.msra.gmra.mrb[0].mxu1 %vm202_vm5, %v6541_v12  ;;  %4500 = vrot.lane.b32.xlu0 %v7950_v22, %s7564_s8  ;;  %v2560_v9 = vpop.permute.xlu1 %2559  ;;  %v2570_v40 = vsel %vm2567_vm11, %v2564_v33, %v2566_v39 }
 0x122   : > { %6836 = vmatpush3.bf16.msra.mxu1 %v1807_v36  ;;  %6837 = vmatprep.mubr.msk.bf16.mxu1 %vm7528_vm0, %v7527_v4  ;;  %v2452_v36 = vand.u32 %v2441_v32, %v7717_v26  ;;  %v2568_v42 = vsel %vm2567_vm11, %v2560_v9, %v2562_v35  ;;  %vm3986_vm11 = vcmask 310272  }
 0x123   : > { %6542 = vmatmul.mubr.msk.bf16.vlgmr.msra.gmra.mrb[0].mxu0 %vm202_vm5, %v6541_v12  ;;  %6841 = vmatprep.subr.bf16.mxu1 %v7527_v4  ;;  %v6556_v12 = vld [vmem:[%s8580_s0 + $0x44] sm:$0xf] }
 0x124   : > { %1810 = vmatpush1.bf16.msra.mxu0 %v1801_v38  ;;  %1841 = vmatprep.mubr.bf16.mxu0 %v7531_v23  ;;  %v2446_v38 = vand.u32 %v2439_v34, %v7717_v26  ;;  %v2693_v41 = vpop.permute.xlu0 %2692 }
 0x125   : > { %1938 = vmatprep.subr.bf16.mxu0 %v1933_v14  ;;  %4625 = vrot.lane.b32.xlu1 %v7932_v11, %s7565_s9  ;;  %v2578_v14 = vand.u32 %v2569_v37, %v7717_v26  ;;  %v2691_v43 = vpop.permute.xlu1 %2690 }
 0x126   : > { %4627 = vrot.lane.b32.xlu0 %v7939_v16, %s7565_s9  ;;  %v2698_v46 = vsel %vm2696_vm12, %v2691_v43, %v2693_v41 }
 0x128   : > { %v2695_v49 = vpop.permute.xlu0 %2694 }
 0x129   : > { %4623 = vrot.lane.b32.xlu1 %v7923_v7, %s7565_s9  ;;  %v2689_v50 = vpop.permute.xlu1 %2688  ;;  %v2699_v51 = vsel %vm2696_vm12, %v2693_v41, %v2695_v49 }
 0x12a   : > { %4629 = vrot.lane.b32.xlu0 %v7950_v22, %s7565_s9  ;;  %v2697_v53 = vsel %vm2696_vm12, %v2689_v50, %v2691_v43  ;;  %vm4115_vm12 = vcmask 302080  }
 0x12c   : > { %v2822_v52 = vpop.permute.xlu0 %2821 }
 0x12d   : > { %6838 = vmatmul.mubr.msk.bf16.vlgmr.msra.gmra.mrb[0].mxu1 %vm202_vm5, %v6544_v45  ;;  %4754 = vrot.lane.b32.xlu1 %v7932_v11, %s7566_s14  ;;  %v2820_v54 = vpop.permute.xlu1 %2819 }
 0x12e   : > { %6842 = vmatpush3.bf16.msra.mxu1 %v1936_v44  ;;  %6843 = vmatprep.mubr.msk.bf16.mxu1 %vm7528_vm0, %v7527_v4  ;;  %v2581_v44 = vand.u32 %v2570_v40, %v7717_v26  ;;  %v2827_v57 = vsel %vm2825_vm13, %v2820_v54, %v2822_v52 }
 0x12f   : > { %6545 = vmatmul.mubr.msk.bf16.vlgmr.msra.gmra.mrb[0].mxu0 %vm202_vm5, %v6544_v45  ;;  %6847 = vmatprep.subr.bf16.mxu1 %v7527_v4  ;;  %v6559_v45 = vld [vmem:[%s8580_s0 + $0x48] sm:$0xf] }
 0x130   : > { %1939 = vmatpush1.bf16.msra.mxu0 %v1930_v47  ;;  %1970 = vmatprep.mubr.bf16.mxu0 %v7531_v23  ;;  %v2575_v47 = vand.u32 %v2568_v42, %v7717_v26  ;;  %v6571_v42 = vld [vmem:[%s8580_s0 + $0x58] sm:$0xf] }
 0x131   : > { %2067 = vmatprep.subr.bf16.mxu0 %v2062_v48  ;;  %4756 = vrot.lane.b32.xlu0 %v7939_v16, %s7566_s14  ;;  %v2707_v48 = vand.u32 %v2698_v46, %v7717_v26 }
 0x132   : > { %4752 = vrot.lane.b32.xlu1 %v7923_v7, %s7566_s14 }
 0x135   : > { %4758 = vrot.lane.b32.xlu0 %v7950_v22, %s7566_s14 }
 0x136   : > { %4883 = vrot.lane.b32.xlu1 %v7932_v11, %s7567_s18 }
 0x139   : > { %6844 = vmatmul.mubr.msk.bf16.vlgmr.msra.gmra.mrb[0].mxu1 %vm202_vm5, %v6547_v56  ;;  %4885 = vrot.lane.b32.xlu0 %v7939_v16, %s7567_s18 }
 0x13a   : > { %6848 = vmatpush3.bf16.msra.mxu1 %v2065_v55  ;;  %6849 = vmatprep.mubr.msk.bf16.mxu1 %vm7528_vm0, %v7527_v4  ;;  %v2710_v55 = vand.u32 %v2699_v51, %v7717_v26 }
 0x13b   : > { %6548 = vmatmul.mubr.msk.bf16.vlgmr.msra.gmra.mrb[0].mxu0 %vm202_vm5, %v6547_v56  ;;  %6853 = vmatprep.subr.bf16.mxu1 %v7527_v4  ;;  %v6562_v56 = vld [vmem:[%s8580_s0 + $0x4c] sm:$0xf] }
 0x13c   : > { %2068 = vmatpush1.bf16.msra.mxu0 %v2059_v58  ;;  %2099 = vmatprep.mubr.bf16.mxu0 %v7531_v23  ;;  %v2704_v58 = vand.u32 %v2697_v53, %v7717_v26  ;;  %v5877_v53 = vld [vmem:[%s7613_s17 + $0x2] sm:$0x3f] }
 0x13d   : > { %2196 = vmatprep.subr.bf16.mxu0 %v2191_v59  ;;  %4881 = vrot.lane.b32.xlu1 %v7923_v7, %s7567_s18  ;;  %v2836_v59 = vand.u32 %v2827_v57, %v7717_v26 }
 0x13e   : > { %4887 = vrot.lane.b32.xlu0 %v7950_v22, %s7567_s18  ;;  %s7572_s18 = smov 121  }
 0x141   : > { %5012 = vrot.lane.b32.xlu1 %v7932_v11, %s7568_s24 }
 0x142   : > { %5014 = vrot.lane.b32.xlu0 %v7939_v16, %s7568_s24 }
 0x145   : > { %6850 = vmatmul.mubr.msk.bf16.vlgmr.msra.gmra.mrb[0].mxu1 %vm202_vm5, %v6550_v2  ;;  %5010 = vrot.lane.b32.xlu1 %v7923_v7, %s7568_s24 }
 0x146   : > { %6854 = vmatpush3.bf16.msra.mxu1 %v2194_v17  ;;  %6855 = vmatprep.mubr.msk.bf16.mxu1 %vm7528_vm0, %v7527_v4  ;;  %v6565_v17 = vld [vmem:[%s8580_s0 + $0x50] sm:$0xf] }
 0x147   : > { %6551 = vmatmul.mubr.msk.bf16.vlgmr.msra.gmra.mrb[0].mxu0 %vm202_vm5, %v6550_v2  ;;  %6859 = vmatprep.subr.bf16.mxu1 %v7527_v4 }
 0x148   : > { %2197 = vmatpush1.bf16.msra.mxu0 %v2188_v8  ;;  %2228 = vmatprep.mubr.bf16.mxu0 %v7531_v23 }
 0x149   : > { %2325 = vmatprep.subr.bf16.mxu0 %v2320_v10  ;;  %5016 = vrot.lane.b32.xlu0 %v7950_v22, %s7568_s24 }
 0x14a   : > { %5141 = vrot.lane.b32.xlu1 %v7932_v11, %s7569_s27 }
 0x14d   : > { %5143 = vrot.lane.b32.xlu0 %v7939_v16, %s7569_s27 }
 0x14e   : > { %5139 = vrot.lane.b32.xlu1 %v7923_v7, %s7569_s27 }
 0x151   : > { %6856 = vmatmul.mubr.msk.bf16.vlgmr.msra.gmra.mrb[0].mxu1 %vm202_vm5, %v6553_v25  ;;  %5145 = vrot.lane.b32.xlu0 %v7950_v22, %s7569_s27 }
 0x152   : > { %6860 = vmatpush3.bf16.msra.mxu1 %v2323_v24  ;;  %6861 = vmatprep.mubr.msk.bf16.mxu1 %vm7528_vm0, %v7527_v4 }
 0x153   : > { %6554 = vmatmul.mubr.msk.bf16.vlgmr.msra.gmra.mrb[0].mxu0 %vm202_vm5, %v6553_v25  ;;  %6865 = vmatprep.subr.bf16.mxu1 %v7527_v4 }
 0x154   : > { %2326 = vmatpush1.bf16.msra.mxu0 %v2317_v28  ;;  %2357 = vmatprep.mubr.bf16.mxu0 %v7531_v23 }
 0x155   : > { %2454 = vmatprep.subr.bf16.mxu0 %v2449_v29  ;;  %5270 = vrot.lane.b32.xlu1 %v7932_v11, %s7570_s30  ;;  %v6568_v29 = vld [vmem:[%s8580_s0 + $0x54] sm:$0xf] }
 0x156   : > { %5272 = vrot.lane.b32.xlu0 %v7939_v16, %s7570_s30 }
 0x159   : > { %5268 = vrot.lane.b32.xlu1 %v7923_v7, %s7570_s30 }
 0x15a   : > { %5274 = vrot.lane.b32.xlu0 %v7950_v22, %s7570_s30 }
 0x15d   : > { %6862 = vmatmul.mubr.msk.bf16.vlgmr.msra.gmra.mrb[0].mxu1 %vm202_vm5, %v6556_v12  ;;  %5399 = vrot.lane.b32.xlu1 %v7932_v11, %s7571_s6  ;;  %v2824_v11 = vpop.permute.xlu0 %2823 }
 0x15e   : > { %6866 = vmatpush3.bf16.msra.mxu1 %v2452_v36  ;;  %6867 = vmatprep.mubr.msk.bf16.mxu1 %vm7528_vm0, %v7527_v4  ;;  %v2828_v60 = vsel %vm2825_vm13, %v2822_v52, %v2824_v11  ;;  %v5633_v36 = vcombine.high %v5629_v21, %v5629_v21 }
 0x15f   : > { %6557 = vmatmul.mubr.msk.bf16.vlgmr.msra.gmra.mrb[0].mxu0 %vm202_vm5, %v6556_v12  ;;  %6871 = vmatprep.subr.bf16.mxu1 %v7527_v4  ;;  %v2839_v1 = vand.u32 %v2828_v60, %v7717_v26 }
 0x160   : > { %2455 = vmatpush1.bf16.msra.mxu0 %v2446_v38  ;;  %2486 = vmatprep.mubr.bf16.mxu0 %v7531_v23  ;;  %v5647_v38 = vrot.slane %v5633_v36, %v7616_v6 }
 0x161   : > { %2583 = vmatprep.subr.bf16.mxu0 %v2578_v14  ;;  %5401 = vrot.lane.b32.xlu0 %v7939_v16, %s7571_s6  ;;  %v2818_v16 = vpop.permute.xlu1 %2817  ;;  %v5753_v14 = vld [vmem:[%s7613_s17 + $0x2] sm:$0x3f] }
 0x162   : > { %5397 = vrot.lane.b32.xlu1 %v7923_v7, %s7571_s6  ;;  %v2951_v7 = vpop.permute.xlu0 %2950  ;;  %v2826_v62 = vsel %vm2825_vm13, %v2818_v16, %v2820_v54  ;;  %v5764_v40 = vrot.slane %v5753_v14, %v7616_v6  ;;  %v5757_v49 = vcombine.high %v5753_v14, %v5753_v14  ;;  %vm4244_vm13 = vcmask 293888  }
 0x164   : > { %v5771_v52 = vrot.slane %v5757_v49, %v7616_v6 }
 0x165   : > { %5403 = vrot.lane.b32.xlu0 %v7950_v22, %s7571_s6  ;;  %v2949_v63 = vpop.permute.xlu1 %2948  ;;  %v2833_v22 = vand.u32 %v2826_v62, %v7717_v26  ;;  %v5881_v62 = vcombine.high %v5877_v53, %v5877_v53 }
 0x166   : > { %v2956_v2 = vsel %vm2954_vm14, %v2949_v63, %v2951_v7  ;;  %5527 = vrot.lane.b32.xlu1 %v5524_v5, %s7533_s21  ;;  %v2953_v10 = vpop.permute.xlu0 %2952 }
 0x167   : > { %v2965_v8 = vand.u32 %v2956_v2, %v7717_v26  ;;  %v2957_v13 = vsel %vm2954_vm14, %v2951_v7, %v2953_v10  ;;  %v6577_v10 = vld [vmem:[%s8580_s0 + $0x60] sm:$0xf] }
 0x168   : > { %v2968_v28 = vand.u32 %v2957_v13, %v7717_v26 }
 0x169   : > { %6868 = vmatmul.mubr.msk.bf16.vlgmr.msra.gmra.mrb[0].mxu1 %vm202_vm5, %v6559_v45  ;;  %v2947_v19 = vpop.permute.xlu1 %2946  ;;  %5529 = vrot.lane.b32.xlu0 %v5523_v18, %s7533_s21 }
 0x16a   : > { %6872 = vmatpush3.bf16.msra.mxu1 %v2581_v44  ;;  %6873 = vmatprep.mubr.msk.bf16.mxu1 %vm7528_vm0, %v7527_v4  ;;  %v3080_v20 = vpop.permute.xlu0 %3079  ;;  %v2955_v24 = vsel %vm2954_vm14, %v2947_v19, %v2949_v63  ;;  %v5772_v44 = vcombine.high %v5764_v40, %v5764_v40  ;;  %vm4373_vm14 = vcmask 285696  }
 0x16b   : > { %6560 = vmatmul.mubr.msk.bf16.vlgmr.msra.gmra.mrb[0].mxu0 %vm202_vm5, %v6559_v45  ;;  %6877 = vmatprep.subr.bf16.mxu1 %v7527_v4  ;;  %v2962_v32 = vand.u32 %v2955_v24, %v7717_v26 }
 0x16c   : > { %2584 = vmatpush1.bf16.msra.mxu0 %v2575_v47  ;;  %2615 = vmatprep.mubr.bf16.mxu0 %v7531_v23 }
 0x16d   : > { %2712 = vmatprep.subr.bf16.mxu0 %v2707_v48  ;;  %5525 = vrot.lane.b32.xlu1 %v5516_v0, %s7533_s21  ;;  %v3078_v25 = vpop.permute.xlu1 %3077 }
 0x16e   : > { %v3085_v30 = vsel %vm3083_vm15, %v3078_v25, %v3080_v20  ;;  %5651 = vrot.lane.b32.xlu0 %v5648_v31, %s7534_s22  ;;  %v3082_v34 = vpop.permute.xlu0 %3081 }
 0x16f   : > { %v3094_v33 = vand.u32 %v3085_v30, %v7717_v26  ;;  %v3086_v12 = vsel %vm3083_vm15, %v3080_v20, %v3082_v34  ;;  %v6580_v34 = vld [vmem:[%s8580_s0 + $0x64] sm:$0xf] }
 0x170   : > { %v3097_v41 = vand.u32 %v3086_v12, %v7717_v26 }
 0x171   : > { %v3076_v35 = vpop.permute.xlu1 %3075  ;;  %5653 = vrot.lane.b32.xlu1 %v5647_v38, %s7534_s22 }
 0x172   : > { %5649 = vrot.lane.b32.xlu0 %v5640_v27, %s7534_s22  ;;  %v3209_v37 = vpop.permute.xlu0 %3208  ;;  %v3084_v39 = vsel %vm3083_vm15, %v3076_v35, %v3078_v25  ;;  %vm4502_vm15 = vcmask 277504  }
 0x173   : > { %v3091_v45 = vand.u32 %v3084_v39, %v7717_v26 }
 0x175   : > { %6874 = vmatmul.mubr.msk.bf16.vlgmr.msra.gmra.mrb[0].mxu1 %vm202_vm5, %v6562_v56  ;;  %v3207_v9 = vpop.permute.xlu1 %3206  ;;  %5775 = vrot.lane.b32.xlu1 %v5772_v44, %s7535_s23 }
 0x176   : > { %6878 = vmatpush3.bf16.msra.mxu1 %v2710_v55  ;;  %6879 = vmatprep.mubr.msk.bf16.mxu1 %vm7528_vm0, %v7527_v4  ;;  %v3214_v43 = vsel %vm3212_vm1, %v3207_v9, %v3209_v37  ;;  %v3211_v47 = vpop.permute.xlu0 %3210 }
 0x177   : > { %6563 = vmatmul.mubr.msk.bf16.vlgmr.msra.gmra.mrb[0].mxu0 %vm202_vm5, %v6562_v56  ;;  %6883 = vmatprep.subr.bf16.mxu1 %v7527_v4  ;;  %v3223_v46 = vand.u32 %v3214_v43, %v7717_v26  ;;  %v3215_v50 = vsel %vm3212_vm1, %v3209_v37, %v3211_v47  ;;  %v5888_v56 = vrot.slane %v5877_v53, %v7616_v6  ;;  %v6583_v47 = vld [vmem:[%s8580_s0 + $0x68] sm:$0xf] }
 0x178   : > { %2713 = vmatpush1.bf16.msra.mxu0 %v2704_v58  ;;  %2744 = vmatprep.mubr.bf16.mxu0 %v7531_v23  ;;  %v3226_v57 = vand.u32 %v3215_v50, %v7717_v26  ;;  %v6574_v58 = vld [vmem:[%s8580_s0 + $0x5c] sm:$0xf] }
 0x179   : > { %2841 = vmatprep.subr.bf16.mxu0 %v2836_v59  ;;  %v3205_v48 = vpop.permute.xlu1 %3204  ;;  %5773 = vrot.lane.b32.xlu1 %v5764_v40, %s7535_s23  ;;  %v5896_v11 = vcombine.high %v5888_v56, %v5888_v56 }
 0x17a   : > { %v3338_v51 = vpop.permute.xlu0 %3337  ;;  %v3213_v54 = vsel %vm3212_vm1, %v3205_v48, %v3207_v9  ;;  %5777 = vrot.lane.b32.xlu0 %v5771_v52, %s7535_s23  ;;  %vm4631_vm1 = vcmask 146432  }
 0x17b   : > { %v3220_v16 = vand.u32 %v3213_v54, %v7717_v26 }
 0x17d   : > { %v3336_v55 = vpop.permute.xlu1 %3335 }
 0x17e   : > { %v3343_v59 = vsel %vm3341_vm2, %v3336_v55, %v3338_v51  ;;  %5899 = vrot.lane.b32.xlu0 %v5896_v11, %s7572_s18  ;;  %v3340_v7 = vpop.permute.xlu0 %3339 }
 0x17f   : > { %v3352_v60 = vand.u32 %v3343_v59, %v7717_v26  ;;  %v3344_v63 = vsel %vm3341_vm2, %v3338_v51, %v3340_v7 }
 0x181   : > { %6880 = vmatmul.mubr.msk.bf16.vlgmr.msra.gmra.mrb[0].mxu1 %vm202_vm5, %v6565_v17  ;;  %v3334_v61 = vpop.permute.xlu1 %3333 }
 0x182   : > { %6884 = vmatpush3.bf16.msra.mxu1 %v2839_v1  ;;  %6885 = vmatprep.mubr.msk.bf16.mxu1 %vm7528_vm0, %v7527_v4  ;;  %v3467_v0 = vpop.permute.xlu0 %3466  ;;  %v5895_v1 = vrot.slane %v5881_v62, %v7616_v6  ;;  %v3342_v2 = vsel %vm3341_vm2, %v3334_v61, %v3336_v55  ;;  %vm4760_vm2 = vcmask 138240  }
 0x183   : > { %6566 = vmatmul.mubr.msk.bf16.vlgmr.msra.gmra.mrb[0].mxu0 %vm202_vm5, %v6565_v17  ;;  %6889 = vmatprep.subr.bf16.mxu1 %v7527_v4  ;;  %v6002_v17 = vld [vmem:[%s7613_s17 + $0x2] sm:$0x3f]  ;;  %v3349_v13 = vand.u32 %v3342_v2, %v7717_v26 }
 0x184   : > { %2842 = vmatpush1.bf16.msra.mxu0 %v2833_v22  ;;  %2873 = vmatprep.mubr.bf16.mxu0 %v7531_v23  ;;  %v6013_v22 = vrot.slane %v6002_v17, %v7616_v6  ;;  %v6006_v24 = vcombine.high %v6002_v17, %v6002_v17 }
 0x185   : > { %2970 = vmatprep.subr.bf16.mxu0 %v2965_v8  ;;  %5897 = vrot.lane.b32.xlu0 %v5888_v56, %s7572_s18  ;;  %v3465_v5 = vpop.permute.xlu1 %3464  ;;  %v3355_v8 = vand.u32 %v3344_v63, %v7717_v26 }
 0x186   : > { %5901 = vrot.lane.b32.xlu1 %v5895_v1, %s7572_s18  ;;  %v3472_v19 = vsel %vm3470_vm3, %v3465_v5, %v3467_v0  ;;  %v6021_v15 = vcombine.high %v6013_v22, %v6013_v22  ;;  %v3469_v18 = vpop.permute.xlu0 %3468 }
 0x187   : > { %v3481_v20 = vand.u32 %v3472_v19, %v7717_v26  ;;  %v3473_v25 = vsel %vm3470_vm3, %v3467_v0, %v3469_v18 }
 0x189   : > { %v3463_v21 = vpop.permute.xlu1 %3462 }
 0x18a   : > { %6024 = vrot.lane.b32.xlu1 %v6021_v15, %s7573_s20  ;;  %v3596_v27 = vpop.permute.xlu0 %3595  ;;  %v3471_v30 = vsel %vm3470_vm3, %v3463_v21, %v3465_v5  ;;  %v6589_v5 = vld [vmem:[%s8580_s0 + $0x70] sm:$0xf]  ;;  %vm4889_vm3 = vcmask 130048  }
 0x18b   : > { %v3478_v12 = vand.u32 %v3471_v30, %v7717_v26 }
 0x18d   : > { %6886 = vmatmul.mubr.msk.bf16.vlgmr.msra.gmra.mrb[0].mxu1 %vm202_vm5, %v6568_v29  ;;  %v3594_v31 = vpop.permute.xlu1 %3593 }
 0x18e   : > { %6890 = vmatpush3.bf16.msra.mxu1 %v2968_v28  ;;  %6891 = vmatprep.mubr.msk.bf16.mxu1 %vm7528_vm0, %v7527_v4  ;;  %v6020_v28 = vrot.slane %v6006_v24, %v7616_v6  ;;  %v3601_v35 = vsel %vm3599_vm4, %v3594_v31, %v3596_v27  ;;  %v3598_v38 = vpop.permute.xlu0 %3597 }
 0x18f   : > { %6569 = vmatmul.mubr.msk.bf16.vlgmr.msra.gmra.mrb[0].mxu0 %vm202_vm5, %v6568_v29  ;;  %6895 = vmatprep.subr.bf16.mxu1 %v7527_v4  ;;  %v6127_v29 = vld [vmem:[%s7613_s17 + $0x2] sm:$0x3f]  ;;  %v3610_v37 = vand.u32 %v3601_v35, %v7717_v26  ;;  %v3602_v9 = vsel %vm3599_vm4, %v3596_v27, %v3598_v38 }
 0x190   : > { %2971 = vmatpush1.bf16.msra.mxu0 %v2962_v32  ;;  %3002 = vmatprep.mubr.bf16.mxu0 %v7531_v23  ;;  %v6138_v32 = vrot.slane %v6127_v29, %v7616_v6  ;;  %v6131_v39 = vcombine.high %v6127_v29, %v6127_v29 }
 0x191   : > { %3099 = vmatprep.subr.bf16.mxu0 %v3094_v33  ;;  %6022 = vrot.lane.b32.xlu1 %v6013_v22, %s7573_s20  ;;  %v3484_v33 = vand.u32 %v3473_v25, %v7717_v26  ;;  %v3592_v14 = vpop.permute.xlu1 %3591  ;;  %v6592_v25 = vld [vmem:[%s8580_s0 + $0x74] sm:$0xf] }
 0x192   : > { %6026 = vrot.lane.b32.xlu0 %v6020_v28, %s7573_s20  ;;  %v6146_v36 = vcombine.high %v6138_v32, %v6138_v32  ;;  %v3725_v40 = vpop.permute.xlu0 %3724  ;;  %v3600_v43 = vsel %vm3599_vm4, %v3592_v14, %v3594_v31  ;;  %vm5018_vm4 = vcmask 121856  }
 0x193   : > { %v3607_v50 = vand.u32 %v3600_v43, %v7717_v26 }
 0x195   : > { %v3723_v44 = vpop.permute.xlu1 %3722 }
 0x196   : > { %6149 = vrot.lane.b32.xlu0 %v6146_v36, %s7574_s26  ;;  %v3730_v48 = vsel %vm3728_vm6, %v3723_v44, %v3725_v40  ;;  %v3727_v52 = vpop.permute.xlu0 %3726 }
 0x197   : > { %v3739_v51 = vand.u32 %v3730_v48, %v7717_v26  ;;  %v3731_v55 = vsel %vm3728_vm6, %v3725_v40, %v3727_v52 }
 0x198   : > { %v3742_v11 = vand.u32 %v3731_v55, %v7717_v26 }
 0x199   : > { %6892 = vmatmul.mubr.msk.bf16.vlgmr.msra.gmra.mrb[0].mxu1 %vm202_vm5, %v6571_v42  ;;  %v3721_v53 = vpop.permute.xlu1 %3720 }
 0x19a   : > { %6896 = vmatpush3.bf16.msra.mxu1 %v3097_v41  ;;  %6897 = vmatprep.mubr.msk.bf16.mxu1 %vm7528_vm0, %v7527_v4  ;;  %v6145_v41 = vrot.slane %v6131_v39, %v7616_v6  ;;  %v3854_v56 = vpop.permute.xlu0 %3853 }
 0x19b   : > { %6572 = vmatmul.mubr.msk.bf16.vlgmr.msra.gmra.mrb[0].mxu0 %vm202_vm5, %v6571_v42  ;;  %6901 = vmatprep.subr.bf16.mxu1 %v7527_v4  ;;  %v6252_v42 = vld [vmem:[%s7613_s17 + $0x2] sm:$0x3f]  ;;  %s7575_s17 = smov 118  }
 0x19c   : > { %3100 = vmatpush1.bf16.msra.mxu0 %v3091_v45  ;;  %3131 = vmatprep.mubr.bf16.mxu0 %v7531_v23  ;;  %v6263_v45 = vrot.slane %v6252_v42, %v7616_v6  ;;  %v6256_v54 = vcombine.high %v6252_v42, %v6252_v42 }
 0x19d   : > { %3228 = vmatprep.subr.bf16.mxu0 %v3223_v46  ;;  %6147 = vrot.lane.b32.xlu0 %v6138_v32, %s7574_s26  ;;  %v3613_v46 = vand.u32 %v3602_v9, %v7717_v26  ;;  %v3852_v59 = vpop.permute.xlu1 %3851 }
 0x19e   : > { %6151 = vrot.lane.b32.xlu1 %v6145_v41, %s7574_s26  ;;  %v6271_v49 = vcombine.high %v6263_v45, %v6263_v45  ;;  %s7435_s26 = smul.u32 12, %s8585_s13 }
 0x1a1   : > { %v3850_v62 = vpop.permute.xlu1 %3849 }
 0x1a2   : > { %6274 = vrot.lane.b32.xlu1 %v6271_v49, %s7575_s17  ;;  %v3858_v1 = vsel %vm3857_vm10, %v3850_v62, %v3852_v59 }
 0x1a5   : > { %6898 = vmatmul.mubr.msk.bf16.vlgmr.msra.gmra.mrb[0].mxu1 %vm202_vm5, %v6574_v58  ;;  %v3981_v17 = vpop.permute.xlu1 %3980 }
 0x1a6   : > { %6902 = vmatpush3.bf16.msra.mxu1 %v3226_v57  ;;  %6903 = vmatprep.mubr.msk.bf16.mxu1 %vm7528_vm0, %v7527_v4  ;;  %v6270_v57 = vrot.slane %v6256_v54, %v7616_v6  ;;  %v3856_v6 = vpop.permute.xlu0 %3855 }
 0x1a7   : > { %6575 = vmatmul.mubr.msk.bf16.vlgmr.msra.gmra.mrb[0].mxu0 %vm202_vm5, %v6574_v58  ;;  %6907 = vmatprep.subr.bf16.mxu1 %v7527_v4  ;;  %v3729_v58 = vsel %vm3728_vm6, %v3721_v53, %v3723_v44  ;;  %v3860_v63 = vsel %vm3857_vm10, %v3854_v56, %v3856_v6  ;;  %vm5147_vm6 = vcmask 113664  }
 0x1a8   : > { %3229 = vmatpush1.bf16.msra.mxu0 %v3220_v16  ;;  %3260 = vmatprep.mubr.bf16.mxu0 %v7531_v23  ;;  %v6586_v16 = vld [vmem:[%s8580_s0 + $0x6c] sm:$0xf]  ;;  %v3736_v7 = vand.u32 %v3729_v58, %v7717_v26  ;;  %v3871_v2 = vand.u32 %v3860_v63, %v7717_v26  ;;  %v6604_v63 = vld [vmem:[%s8580_s0 + $0x84] sm:$0xf] }
 0x1a9   : > { %3357 = vmatprep.subr.bf16.mxu0 %v3352_v60  ;;  %6272 = vrot.lane.b32.xlu1 %v6263_v45, %s7575_s17  ;;  %v3859_v60 = vsel %vm3857_vm10, %v3852_v59, %v3854_v56  ;;  %v3979_v15 = vpop.permute.xlu1 %3978  ;;  %v6598_v45 = vld [vmem:[%s8580_s0 + $0x7c] sm:$0xf]  ;;  %v6601_v56 = vld [vmem:[%s8580_s0 + $0x80] sm:$0xf]  ;;  %vm5276_vm10 = vcmask 105472  }
 0x1aa   : > { %6276 = vrot.lane.b32.xlu0 %v6270_v57, %s7575_s17  ;;  %v3868_v61 = vand.u32 %v3859_v60, %v7717_v26  ;;  %v3983_v0 = vpop.permute.xlu0 %3982  ;;  %v3987_v18 = vsel %vm3986_vm11, %v3979_v15, %v3981_v17  ;;  %s170_s17 = scalar_lea.vmem %s8583_s3, %s7435_s26 }
 0x1ab   : > { %v3988_v22 = vsel %vm3986_vm11, %v3981_v17, %v3983_v0  ;;  %v3994_v28 = vand.u32 %v3987_v18, %v7717_v26 }
 0x1ad   : > { %v4110_v21 = vpop.permute.xlu1 %4109 }
 0x1ae   : > { %v3985_v19 = vpop.permute.xlu0 %3984 }
 0x1b1   : > { %6904 = vmatmul.mubr.msk.bf16.vlgmr.msra.gmra.mrb[0].mxu1 %vm202_vm5, %v6577_v10  ;;  %v4108_v31 = vpop.permute.xlu1 %4107 }
 0x1b2   : > { %6908 = vmatpush3.bf16.msra.mxu1 %v3355_v8  ;;  %6909 = vmatprep.mubr.msk.bf16.mxu1 %vm7528_vm0, %v7527_v4  ;;  %v3865_v8 = vand.u32 %v3858_v1, %v7717_v26 }
 0x1b3   : > { %6578 = vmatmul.mubr.msk.bf16.vlgmr.msra.gmra.mrb[0].mxu0 %vm202_vm5, %v6577_v10  ;;  %6913 = vmatprep.subr.bf16.mxu1 %v7527_v4  ;;  %v3997_v10 = vand.u32 %v3988_v22, %v7717_v26 }
 0x1b4   : > { %3358 = vmatpush1.bf16.msra.mxu0 %v3349_v13  ;;  %3389 = vmatprep.mubr.bf16.mxu0 %v7531_v23  ;;  %v3989_v13 = vsel %vm3986_vm11, %v3983_v0, %v3985_v19  ;;  %vm5405_vm11 = vcmask 97280  }
 0x1b5   : > { %3486 = vmatprep.subr.bf16.mxu0 %v3481_v20  ;;  %v4112_v20 = vpop.permute.xlu0 %4111  ;;  %v4000_v24 = vand.u32 %v3989_v13, %v7717_v26  ;;  %v4239_v35 = vpop.permute.xlu1 %4238  ;;  %v6607_v13 = vld [vmem:[%s8580_s0 + $0x88] sm:$0xf] }
 0x1b6   : > { %v4117_v27 = vsel %vm4115_vm12, %v4110_v21, %v4112_v20 }
 0x1b7   : > { %v4126_v29 = vand.u32 %v4117_v27, %v7717_v26 }
 0x1b9   : > { %v4114_v30 = vpop.permute.xlu0 %4113  ;;  %v4237_v9 = vpop.permute.xlu1 %4236 }
 0x1ba   : > { %v4118_v32 = vsel %vm4115_vm12, %v4112_v20, %v4114_v30  ;;  %v4245_v42 = vsel %vm4244_vm13, %v4237_v9, %v4239_v35 }
 0x1bb   : > { %v4129_v36 = vand.u32 %v4118_v32, %v7717_v26  ;;  %v6610_v32 = vld [vmem:[%s8580_s0 + $0x8c] sm:$0xf] }
 0x1bd   : > { %6910 = vmatmul.mubr.msk.bf16.vlgmr.msra.gmra.mrb[0].mxu1 %vm202_vm5, %v6580_v34  ;;  %v4368_v43 = vpop.permute.xlu1 %4367 }
 0x1be   : > { %6914 = vmatpush3.bf16.msra.mxu1 %v3484_v33  ;;  %6915 = vmatprep.mubr.msk.bf16.mxu1 %vm7528_vm0, %v7527_v4  ;;  %v4241_v33 = vpop.permute.xlu0 %4240 }
 0x1bf   : > { %6581 = vmatmul.mubr.msk.bf16.vlgmr.msra.gmra.mrb[0].mxu0 %vm202_vm5, %v6580_v34  ;;  %6919 = vmatprep.subr.bf16.mxu1 %v7527_v4  ;;  %v4116_v34 = vsel %vm4115_vm12, %v4108_v31, %v4110_v21  ;;  %vm6278_vm12 = vcmask 965632  }
 0x1c0   : > { %3487 = vmatpush1.bf16.msra.mxu0 %v3478_v12  ;;  %3518 = vmatprep.mubr.bf16.mxu0 %v7531_v23  ;;  %v6595_v12 = vld [vmem:[%s8580_s0 + $0x78] sm:$0xf]  ;;  %v4123_v38 = vand.u32 %v4116_v34, %v7717_v26 }
 0x1c1   : > { %3615 = vmatprep.subr.bf16.mxu0 %v3610_v37  ;;  %v4246_v37 = vsel %vm4244_vm13, %v4239_v35, %v4241_v33 }
 0x1c2   : > { %v4255_v14 = vand.u32 %v4246_v37, %v7717_v26  ;;  %v4243_v39 = vpop.permute.xlu0 %4242 }
 0x1c3   : > { %v4247_v40 = vsel %vm4244_vm13, %v4241_v33, %v4243_v39 }
 0x1c4   : > { %v4258_v44 = vand.u32 %v4247_v40, %v7717_v26  ;;  %v6613_v40 = vld [vmem:[%s8580_s0 + $0x90] sm:$0xf] }
 0x1c6   : > { %v4370_v41 = vpop.permute.xlu0 %4369 }
 0x1c9   : > { %6916 = vmatmul.mubr.msk.bf16.vlgmr.msra.gmra.mrb[0].mxu1 %vm202_vm5, %v6583_v47 }
 0x1ca   : > { %6920 = vmatpush3.bf16.msra.mxu1 %v3613_v46  ;;  %6921 = vmatprep.mubr.msk.bf16.mxu1 %vm7528_vm0, %v7527_v4  ;;  %v4375_v46 = vsel %vm4373_vm14, %v4368_v43, %v4370_v41  ;;  %v4372_v49 = vpop.permute.xlu0 %4371 }
 0x1cb   : > { %6584 = vmatmul.mubr.msk.bf16.vlgmr.msra.gmra.mrb[0].mxu0 %vm202_vm5, %v6583_v47  ;;  %6925 = vmatprep.subr.bf16.mxu1 %v7527_v4  ;;  %v4252_v47 = vand.u32 %v4245_v42, %v7717_v26  ;;  %v4384_v48 = vand.u32 %v4375_v46, %v7717_v26 }
 0x1cc   : > { %3616 = vmatpush1.bf16.msra.mxu0 %v3607_v50  ;;  %3647 = vmatprep.mubr.bf16.mxu0 %v7531_v23  ;;  %v4366_v50 = vpop.permute.xlu1 %4365 }
 0x1cd   : > { %3744 = vmatprep.subr.bf16.mxu0 %v3739_v51  ;;  %v4376_v51 = vsel %vm4373_vm14, %v4370_v41, %v4372_v49  ;;  %v4374_v53 = vsel %vm4373_vm14, %v4366_v50, %v4368_v43 }
 0x1ce   : > { %v4499_v52 = vpop.permute.xlu0 %4498  ;;  %v4387_v55 = vand.u32 %v4376_v51, %v7717_v26  ;;  %v4381_v58 = vand.u32 %v4374_v53, %v7717_v26  ;;  %v6616_v51 = vld [vmem:[%s8580_s0 + $0x94] sm:$0xf] }
 0x1d0   : > { %v4497_v54 = vpop.permute.xlu1 %4496 }
 0x1d1   : > { %v4504_v57 = vsel %vm4502_vm15, %v4497_v54, %v4499_v52 }
 0x1d2   : > { %v4513_v59 = vand.u32 %v4504_v57, %v7717_v26 }
 0x1d5   : > { %6922 = vmatmul.mubr.msk.bf16.vlgmr.msra.gmra.mrb[0].mxu1 %vm202_vm5, %v6586_v16 }
 0x1d6   : > { %6926 = vmatpush3.bf16.msra.mxu1 %v3742_v11  ;;  %6927 = vmatprep.mubr.msk.bf16.mxu1 %vm7528_vm0, %v7527_v4  ;;  %v4501_v11 = vpop.permute.xlu0 %4500 }
 0x1d7   : > { %6587 = vmatmul.mubr.msk.bf16.vlgmr.msra.gmra.mrb[0].mxu0 %vm202_vm5, %v6586_v16  ;;  %6931 = vmatprep.subr.bf16.mxu1 %v7527_v4  ;;  %v4495_v16 = vpop.permute.xlu1 %4494  ;;  %v4505_v60 = vsel %vm4502_vm15, %v4499_v52, %v4501_v11 }
 0x1d8   : > { %3745 = vmatpush1.bf16.msra.mxu0 %v3736_v7  ;;  %3776 = vmatprep.mubr.bf16.mxu0 %v7531_v23  ;;  %v4516_v62 = vand.u32 %v4505_v60, %v7717_v26  ;;  %v6619_v60 = vld [vmem:[%s8580_s0 + $0x98] sm:$0xf] }
 0x1d9   : > { %3873 = vmatprep.subr.bf16.mxu0 %v3868_v61  ;;  %v4503_v61 = vsel %vm4502_vm15, %v4495_v16, %v4497_v54 }
 0x1da   : > { %v4628_v7 = vpop.permute.xlu0 %4627  ;;  %v4510_v1 = vand.u32 %v4503_v61, %v7717_v26 }
 0x1db   : > { %v4626_v6 = vpop.permute.xlu1 %4625 }
 0x1dc   : > { %v4633_v0 = vsel %vm4631_vm1, %v4626_v6, %v4628_v7 }
 0x1dd   : > { %v4642_v17 = vand.u32 %v4633_v0, %v7717_v26 }
 0x1e1   : > { %6928 = vmatmul.mubr.msk.bf16.vlgmr.msra.gmra.mrb[0].mxu1 %vm202_vm5, %v6589_v5 }
 0x1e2   : > { %6932 = vmatpush3.bf16.msra.mxu1 %v3871_v2  ;;  %6933 = vmatprep.mubr.msk.bf16.mxu1 %vm7528_vm0, %v7527_v4  ;;  %v4630_v2 = vpop.permute.xlu0 %4629 }
 0x1e3   : > { %6590 = vmatmul.mubr.msk.bf16.vlgmr.msra.gmra.mrb[0].mxu0 %vm202_vm5, %v6589_v5  ;;  %6937 = vmatprep.subr.bf16.mxu1 %v7527_v4  ;;  %v4624_v5 = vpop.permute.xlu1 %4623  ;;  %v4634_v22 = vsel %vm4631_vm1, %v4628_v7, %v4630_v2 }
 0x1e4   : > { %3874 = vmatpush1.bf16.msra.mxu0 %v3865_v8  ;;  %3905 = vmatprep.mubr.bf16.mxu0 %v7531_v23  ;;  %v4645_v15 = vand.u32 %v4634_v22, %v7717_v26  ;;  %v6622_v22 = vld [vmem:[%s8580_s0 + $0x9c] sm:$0xf] }
 0x1e5   : > { %4002 = vmatprep.subr.bf16.mxu0 %v3997_v10  ;;  %v4632_v10 = vsel %vm4631_vm1, %v4624_v5, %v4626_v6 }
 0x1e6   : > { %v4757_v8 = vpop.permute.xlu0 %4756  ;;  %v4639_v18 = vand.u32 %v4632_v10, %v7717_v26 }
 0x1e7   : > { %v4755_v19 = vpop.permute.xlu1 %4754 }
 0x1e8   : > { %v4762_v20 = vsel %vm4760_vm2, %v4755_v19, %v4757_v8 }
 0x1e9   : > { %v4771_v21 = vand.u32 %v4762_v20, %v7717_v26 }
 0x1ed   : > { %6934 = vmatmul.mubr.msk.bf16.vlgmr.msra.gmra.mrb[0].mxu1 %vm202_vm5, %v6592_v25 }
 0x1ee   : > { %6938 = vmatpush3.bf16.msra.mxu1 %v4000_v24  ;;  %6939 = vmatprep.mubr.msk.bf16.mxu1 %vm7528_vm0, %v7527_v4  ;;  %v4759_v24 = vpop.permute.xlu0 %4758 }
 0x1ef   : > { %6593 = vmatmul.mubr.msk.bf16.vlgmr.msra.gmra.mrb[0].mxu0 %vm202_vm5, %v6592_v25  ;;  %6943 = vmatprep.subr.bf16.mxu1 %v7527_v4  ;;  %v4753_v25 = vpop.permute.xlu1 %4752  ;;  %v4763_v27 = vsel %vm4760_vm2, %v4757_v8, %v4759_v24 }
 0x1f0   : > { %4003 = vmatpush1.bf16.msra.mxu0 %v3994_v28  ;;  %4034 = vmatprep.mubr.bf16.mxu0 %v7531_v23  ;;  %v4774_v31 = vand.u32 %v4763_v27, %v7717_v26  ;;  %v6625_v27 = vld [vmem:[%s8580_s0 + $0xa0] sm:$0xf] }
 0x1f1   : > { %4131 = vmatprep.subr.bf16.mxu0 %v4126_v29  ;;  %v4761_v29 = vsel %vm4760_vm2, %v4753_v25, %v4755_v19 }
 0x1f2   : > { %v4886_v28 = vpop.permute.xlu0 %4885  ;;  %v4768_v34 = vand.u32 %v4761_v29, %v7717_v26 }
 0x1f3   : > { %v4884_v30 = vpop.permute.xlu1 %4883 }
 0x1f4   : > { %v4891_v33 = vsel %vm4889_vm3, %v4884_v30, %v4886_v28 }
 0x1f5   : > { %v4900_v35 = vand.u32 %v4891_v33, %v7717_v26 }
 0x1f9   : > { %6940 = vmatmul.mubr.msk.bf16.vlgmr.msra.gmra.mrb[0].mxu1 %vm202_vm5, %v6595_v12 }
 0x1fa   : > { %6944 = vmatpush3.bf16.msra.mxu1 %v4129_v36  ;;  %6945 = vmatprep.mubr.msk.bf16.mxu1 %vm7528_vm0, %v7527_v4  ;;  %v4888_v36 = vpop.permute.xlu0 %4887 }
 0x1fb   : > { %6596 = vmatmul.mubr.msk.bf16.vlgmr.msra.gmra.mrb[0].mxu0 %vm202_vm5, %v6595_v12  ;;  %6949 = vmatprep.subr.bf16.mxu1 %v7527_v4  ;;  %v4882_v12 = vpop.permute.xlu1 %4881  ;;  %v4892_v37 = vsel %vm4889_vm3, %v4886_v28, %v4888_v36  ;;  %v6628_v36 = vld [vmem:[%s8580_s0 + $0xa4] sm:$0xf] }
 0x1fc   : > { %4132 = vmatpush1.bf16.msra.mxu0 %v4123_v38  ;;  %4163 = vmatprep.mubr.bf16.mxu0 %v7531_v23  ;;  %v4903_v9 = vand.u32 %v4892_v37, %v7717_v26 }
 0x1fd   : > { %4260 = vmatprep.subr.bf16.mxu0 %v4255_v14  ;;  %v4890_v14 = vsel %vm4889_vm3, %v4882_v12, %v4884_v30 }
 0x1fe   : > { %v5015_v38 = vpop.permute.xlu0 %5014  ;;  %v4897_v42 = vand.u32 %v4890_v14, %v7717_v26 }
 0x1ff   : > { %v5013_v39 = vpop.permute.xlu1 %5012 }
 0x200   : > { %v5020_v41 = vsel %vm5018_vm4, %v5013_v39, %v5015_v38 }
 0x201   : > { %v5029_v43 = vand.u32 %v5020_v41, %v7717_v26 }
 0x205   : > { %6946 = vmatmul.mubr.msk.bf16.vlgmr.msra.gmra.mrb[0].mxu1 %vm202_vm5, %v6598_v45 }
 0x206   : > { %6950 = vmatpush3.bf16.msra.mxu1 %v4258_v44  ;;  %6951 = vmatprep.mubr.msk.bf16.mxu1 %vm7528_vm0, %v7527_v4  ;;  %v5017_v44 = vpop.permute.xlu0 %5016 }
 0x207   : > { %6599 = vmatmul.mubr.msk.bf16.vlgmr.msra.gmra.mrb[0].mxu0 %vm202_vm5, %v6598_v45  ;;  %6955 = vmatprep.subr.bf16.mxu1 %v7527_v4  ;;  %v5011_v45 = vpop.permute.xlu1 %5010  ;;  %v5021_v46 = vsel %vm5018_vm4, %v5015_v38, %v5017_v44 }
 0x208   : > { %4261 = vmatpush1.bf16.msra.mxu0 %v4252_v47  ;;  %4292 = vmatprep.mubr.bf16.mxu0 %v7531_v23  ;;  %v5032_v50 = vand.u32 %v5021_v46, %v7717_v26 }
 0x209   : > { %4389 = vmatprep.subr.bf16.mxu0 %v4384_v48  ;;  %v5019_v48 = vsel %vm5018_vm4, %v5011_v45, %v5013_v39 }
 0x20a   : > { %v5144_v47 = vpop.permute.xlu0 %5143  ;;  %v5026_v53 = vand.u32 %v5019_v48, %v7717_v26 }
 0x20b   : > { %v5142_v49 = vpop.permute.xlu1 %5141 }
 0x20c   : > { %v5149_v52 = vsel %vm5147_vm6, %v5142_v49, %v5144_v47 }
 0x20d   : > { %v5158_v54 = vand.u32 %v5149_v52, %v7717_v26 }
 0x211   : > { %6952 = vmatmul.mubr.msk.bf16.vlgmr.msra.gmra.mrb[0].mxu1 %vm202_vm5, %v6601_v56 }
 0x212   : > { %6956 = vmatpush3.bf16.msra.mxu1 %v4387_v55  ;;  %6957 = vmatprep.mubr.msk.bf16.mxu1 %vm7528_vm0, %v7527_v4  ;;  %v5146_v55 = vpop.permute.xlu0 %5145 }
 0x213   : > { %6602 = vmatmul.mubr.msk.bf16.vlgmr.msra.gmra.mrb[0].mxu0 %vm202_vm5, %v6601_v56  ;;  %6961 = vmatprep.subr.bf16.mxu1 %v7527_v4  ;;  %v5140_v56 = vpop.permute.xlu1 %5139  ;;  %v5150_v57 = vsel %vm5147_vm6, %v5144_v47, %v5146_v55 }
 0x214   : > { %4390 = vmatpush1.bf16.msra.mxu0 %v4381_v58  ;;  %4421 = vmatprep.mubr.bf16.mxu0 %v7531_v23  ;;  %v5161_v16 = vand.u32 %v5150_v57, %v7717_v26 }
 0x215   : > { %4518 = vmatprep.subr.bf16.mxu0 %v4513_v59  ;;  %v5148_v59 = vsel %vm5147_vm6, %v5140_v56, %v5142_v49 }
 0x216   : > { %v5273_v58 = vpop.permute.xlu0 %5272  ;;  %v5155_v61 = vand.u32 %v5148_v59, %v7717_v26 }
 0x217   : > { %v5271_v11 = vpop.permute.xlu1 %5270 }
 0x218   : > { %v5278_v7 = vsel %vm5276_vm10, %v5271_v11, %v5273_v58 }
 0x219   : > { %v5287_v6 = vand.u32 %v5278_v7, %v7717_v26 }
 0x21d   : > { %6958 = vmatmul.mubr.msk.bf16.vlgmr.msra.gmra.mrb[0].mxu1 %vm202_vm5, %v6604_v63 }
 0x21e   : > { %6962 = vmatpush3.bf16.msra.mxu1 %v4516_v62  ;;  %6963 = vmatprep.mubr.msk.bf16.mxu1 %vm7528_vm0, %v7527_v4  ;;  %v5275_v62 = vpop.permute.xlu0 %5274 }
 0x21f   : > { %6605 = vmatmul.mubr.msk.bf16.vlgmr.msra.gmra.mrb[0].mxu0 %vm202_vm5, %v6604_v63  ;;  %6967 = vmatprep.subr.bf16.mxu1 %v7527_v4  ;;  %v5269_v63 = vpop.permute.xlu1 %5268  ;;  %v5279_v0 = vsel %vm5276_vm10, %v5273_v58, %v5275_v62 }
 0x220   : > { %4519 = vmatpush1.bf16.msra.mxu0 %v4510_v1  ;;  %4550 = vmatprep.mubr.bf16.mxu0 %v7531_v23  ;;  %v5290_v5 = vand.u32 %v5279_v0, %v7717_v26 }
 0x221   : > { %4647 = vmatprep.subr.bf16.mxu0 %v4642_v17  ;;  %v5277_v17 = vsel %vm5276_vm10, %v5269_v63, %v5271_v11  ;;  %v6637_v11 = vld [vmem:[%s8580_s0 + $0xb0] sm:$0xf] }
 0x222   : > { %v5402_v1 = vpop.permute.xlu0 %5401  ;;  %v5284_v10 = vand.u32 %v5277_v17, %v7717_v26 }
 0x223   : > { %v5400_v2 = vpop.permute.xlu1 %5399 }
 0x224   : > { %v5407_v8 = vsel %vm5405_vm11, %v5400_v2, %v5402_v1 }
 0x225   : > { %v5416_v19 = vand.u32 %v5407_v8, %v7717_v26 }
 0x229   : > { %6964 = vmatmul.mubr.msk.bf16.vlgmr.msra.gmra.mrb[0].mxu1 %vm202_vm5, %v6607_v13 }
 0x22a   : > { %6968 = vmatpush3.bf16.msra.mxu1 %v4645_v15  ;;  %6969 = vmatprep.mubr.msk.bf16.mxu1 %vm7528_vm0, %v7527_v4  ;;  %v5404_v15 = vpop.permute.xlu0 %5403 }
 0x22b   : > { %6608 = vmatmul.mubr.msk.bf16.vlgmr.msra.gmra.mrb[0].mxu0 %vm202_vm5, %v6607_v13  ;;  %6973 = vmatprep.subr.bf16.mxu1 %v7527_v4  ;;  %v5398_v13 = vpop.permute.xlu1 %5397  ;;  %v5408_v20 = vsel %vm5405_vm11, %v5402_v1, %v5404_v15  ;;  %v6640_v1 = vld [vmem:[%s8580_s0 + $0xb4] sm:$0xf] }
 0x22c   : > { %4648 = vmatpush1.bf16.msra.mxu0 %v4639_v18  ;;  %4679 = vmatprep.mubr.bf16.mxu0 %v7531_v23  ;;  %v5419_v25 = vand.u32 %v5408_v20, %v7717_v26 }
 0x22d   : > { %4776 = vmatprep.subr.bf16.mxu0 %v4771_v21  ;;  %v5406_v21 = vsel %vm5405_vm11, %v5398_v13, %v5400_v2  ;;  %v6643_v13 = vld [vmem:[%s8580_s0 + $0xb8] sm:$0xf] }
 0x22e   : > { %v5530_v18 = vpop.permute.xlu0 %5529  ;;  %v5413_v29 = vand.u32 %v5406_v21, %v7717_v26 }
 0x22f   : > { %v5528_v24 = vpop.permute.xlu1 %5527 }
 0x230   : > { %v5532_v28 = vsel %vm669_vm7, %v5528_v24, %v5530_v18 }
 0x231   : > { %v5540_v30 = vand.u32 %v5532_v28, %v7717_v26  ;;  %v6646_v28 = vld [vmem:[%s8580_s0 + $0xbc] sm:$0xf] }
 0x235   : > { %6970 = vmatmul.mubr.msk.bf16.vlgmr.msra.gmra.mrb[0].mxu1 %vm202_vm5, %v6610_v32 }
 0x236   : > { %6974 = vmatpush3.bf16.msra.mxu1 %v4774_v31  ;;  %6975 = vmatprep.mubr.msk.bf16.mxu1 %vm7528_vm0, %v7527_v4  ;;  %v5526_v31 = vpop.permute.xlu1 %5525 }
 0x237   : > { %6611 = vmatmul.mubr.msk.bf16.vlgmr.msra.gmra.mrb[0].mxu0 %vm202_vm5, %v6610_v32  ;;  %6979 = vmatprep.subr.bf16.mxu1 %v7527_v4  ;;  %v5531_v33 = vsel %vm669_vm7, %v5526_v31, %v5528_v24  ;;  %vm5903_vm7 = vcmask 990208   ;;  %v6377_v31 = vld [vmem:[%s8582_s2] sm:$0x7] }
 0x238   : > { %4777 = vmatpush1.bf16.msra.mxu0 %v4768_v34  ;;  %4808 = vmatprep.mubr.bf16.mxu0 %v7531_v23  ;;  %v5652_v34 = vpop.permute.xlu0 %5651  ;;  %v5537_v37 = vand.u32 %v5531_v33, %v7717_v26 }
 0x239   : > { %4905 = vmatprep.subr.bf16.mxu0 %v4900_v35  ;;  %v5543_v35 = vand.u32 %v5530_v18, %v7717_v26 }
 0x23a   : > { %v5654_v32 = vpop.permute.xlu1 %5653 }
 0x23b   : > { %v5656_v12 = vsel %vm794_vm8, %v5652_v34, %v5654_v32  ;;  %v5667_v41 = vand.u32 %v5654_v32, %v7717_v26  ;;  %v6385_v32 = vsub.s32 1, %v7606_v3 }
 0x23c   : > { %v5664_v38 = vand.u32 %v5656_v12, %v7717_v26  ;;  %v5650_v14 = vpop.permute.xlu0 %5649 }
 0x240   : > { %v5778_v39 = vpop.permute.xlu0 %5777 }
 0x241   : > { %6976 = vmatmul.mubr.msk.bf16.vlgmr.msra.gmra.mrb[0].mxu1 %vm202_vm5, %v6613_v40 }
 0x242   : > { %6980 = vmatpush3.bf16.msra.mxu1 %v4903_v9  ;;  %6981 = vmatprep.mubr.msk.bf16.mxu1 %vm7528_vm0, %v7527_v4  ;;  %v5655_v9 = vsel %vm794_vm8, %v5650_v14, %v5652_v34  ;;  %vm6028_vm8 = vcmask 982016  }
 0x243   : > { %6614 = vmatmul.mubr.msk.bf16.vlgmr.msra.gmra.mrb[0].mxu0 %vm202_vm5, %v6613_v40  ;;  %6985 = vmatprep.subr.bf16.mxu1 %v7527_v4  ;;  %v5776_v40 = vpop.permute.xlu1 %5775  ;;  %v5661_v44 = vand.u32 %v5655_v9, %v7717_v26 }
 0x244   : > { %4906 = vmatpush1.bf16.msra.mxu0 %v4897_v42  ;;  %4937 = vmatprep.mubr.bf16.mxu0 %v7531_v23  ;;  %v6631_v42 = vld [vmem:[%s8580_s0 + $0xa8] sm:$0xf]  ;;  %v5900_v49 = vpop.permute.xlu0 %5899 }
 0x245   : > { %5034 = vmatprep.subr.bf16.mxu0 %v5029_v43  ;;  %v5780_v43 = vsel %vm919_vm9, %v5776_v40, %v5778_v39 }
 0x246   : > { %v5788_v45 = vand.u32 %v5780_v43, %v7717_v26 }
 0x247   : > { %v5774_v46 = vpop.permute.xlu1 %5773 }
 0x248   : > { %v5779_v48 = vsel %vm919_vm9, %v5774_v46, %v5776_v40  ;;  %v5898_v55 = vpop.permute.xlu0 %5897  ;;  %vm6153_vm9 = vcmask 973824  }
 0x249   : > { %v5904_v57 = vsel %vm5903_vm7, %v5898_v55, %v5900_v49 }
 0x24b   : > { %v5902_v47 = vpop.permute.xlu1 %5901 }
 0x24c   : > { %v5905_v52 = vsel %vm5903_vm7, %v5900_v49, %v5902_v47  ;;  %v6027_v56 = vpop.permute.xlu0 %6026  ;;  %v5916_v59 = vand.u32 %v5902_v47, %v7717_v26 }
 0x24d   : > { %6982 = vmatmul.mubr.msk.bf16.vlgmr.msra.gmra.mrb[0].mxu1 %vm202_vm5, %v6616_v51  ;;  %v6041_v0 = vand.u32 %v6027_v56, %v7717_v26 }
 0x24e   : > { %6986 = vmatpush3.bf16.msra.mxu1 %v5032_v50  ;;  %6987 = vmatprep.mubr.msk.bf16.mxu1 %vm7528_vm0, %v7527_v4  ;;  %v5791_v50 = vand.u32 %v5778_v39, %v7717_v26 }
 0x24f   : > { %6617 = vmatmul.mubr.msk.bf16.vlgmr.msra.gmra.mrb[0].mxu0 %vm202_vm5, %v6616_v51  ;;  %6991 = vmatprep.subr.bf16.mxu1 %v7527_v4  ;;  %v6634_v51 = vld [vmem:[%s8580_s0 + $0xac] sm:$0xf]  ;;  %v6025_v58 = vpop.permute.xlu1 %6024 }
 0x250   : > { %5035 = vmatpush1.bf16.msra.mxu0 %v5026_v53  ;;  %5066 = vmatprep.mubr.bf16.mxu0 %v7531_v23  ;;  %v5785_v53 = vand.u32 %v5779_v48, %v7717_v26  ;;  %v6150_v63 = vpop.permute.xlu0 %6149 }
 0x251   : > { %5163 = vmatprep.subr.bf16.mxu0 %v5158_v54  ;;  %v5913_v54 = vand.u32 %v5905_v52, %v7717_v26 }
 0x259   : > { %6988 = vmatmul.mubr.msk.bf16.vlgmr.msra.gmra.mrb[0].mxu1 %vm202_vm5, %v6619_v60 }
 0x25a   : > { %6992 = vmatpush3.bf16.msra.mxu1 %v5161_v16  ;;  %6993 = vmatprep.mubr.msk.bf16.mxu1 %vm7528_vm0, %v7527_v4  ;;  %v6030_v16 = vsel %vm6028_vm8, %v6025_v58, %v6027_v56 }
 0x25b   : > { %6620 = vmatmul.mubr.msk.bf16.vlgmr.msra.gmra.mrb[0].mxu0 %vm202_vm5, %v6619_v60  ;;  %6997 = vmatprep.subr.bf16.mxu1 %v7527_v4  ;;  %v5910_v60 = vand.u32 %v5904_v57, %v7717_v26  ;;  %v6038_v7 = vand.u32 %v6030_v16, %v7717_v26 }
 0x25c   : > { %5164 = vmatpush1.bf16.msra.mxu0 %v5155_v61  ;;  %5195 = vmatprep.mubr.bf16.mxu0 %v7531_v23  ;;  %v6023_v61 = vpop.permute.xlu1 %6022 }
 0x25d   : > { %5292 = vmatprep.subr.bf16.mxu0 %v5287_v6  ;;  %v6029_v62 = vsel %vm6028_vm8, %v6023_v61, %v6025_v58 }
 0x25e   : > { %v6035_v2 = vand.u32 %v6029_v62, %v7717_v26 }
 0x260   : > { %v6152_v6 = vpop.permute.xlu1 %6151 }
 0x261   : > { %v6155_v17 = vsel %vm6153_vm9, %v6150_v63, %v6152_v6  ;;  %v6166_v15 = vand.u32 %v6152_v6, %v7717_v26 }
 0x265   : > { %6994 = vmatmul.mubr.msk.bf16.vlgmr.msra.gmra.mrb[0].mxu1 %vm202_vm5, %v6622_v22 }
 0x266   : > { %6998 = vmatpush3.bf16.msra.mxu1 %v5290_v5  ;;  %6999 = vmatprep.mubr.msk.bf16.mxu1 %vm7528_vm0, %v7527_v4  ;;  %v6163_v5 = vand.u32 %v6155_v17, %v7717_v26 }
 0x267   : > { %6623 = vmatmul.mubr.msk.bf16.vlgmr.msra.gmra.mrb[0].mxu0 %vm202_vm5, %v6622_v22  ;;  %7003 = vmatprep.subr.bf16.mxu1 %v7527_v4  ;;  %v6148_v22 = vpop.permute.xlu0 %6147 }
 0x268   : > { %5293 = vmatpush1.bf16.msra.mxu0 %v5284_v10  ;;  %5324 = vmatprep.mubr.bf16.mxu0 %v7531_v23  ;;  %v6154_v10 = vsel %vm6153_vm9, %v6148_v22, %v6150_v63 }
 0x269   : > { %5421 = vmatprep.subr.bf16.mxu0 %v5416_v19  ;;  %v6275_v19 = vpop.permute.xlu1 %6274  ;;  %v6160_v18 = vand.u32 %v6154_v10, %v7717_v26 }
 0x26b   : > { %v6277_v8 = vpop.permute.xlu0 %6276 }
 0x26c   : > { %v6280_v20 = vsel %vm6278_vm12, %v6275_v19, %v6277_v8 }
 0x26d   : > { %v6288_v21 = vand.u32 %v6280_v20, %v7717_v26  ;;  %v6273_v24 = vpop.permute.xlu1 %6272 }
 0x271   : > { %7000 = vmatmul.mubr.msk.bf16.vlgmr.msra.gmra.mrb[0].mxu1 %vm202_vm5, %v6625_v27 }
 0x272   : > { %7004 = vmatpush3.bf16.msra.mxu1 %v5419_v25  ;;  %7005 = vmatprep.mubr.msk.bf16.mxu1 %vm7528_vm0, %v7527_v4  ;;  %v6279_v25 = vsel %vm6278_vm12, %v6273_v24, %v6275_v19 }
 0x273   : > { %6626 = vmatmul.mubr.msk.bf16.vlgmr.msra.gmra.mrb[0].mxu0 %vm202_vm5, %v6625_v27  ;;  %7009 = vmatprep.subr.bf16.mxu1 %v7527_v4  ;;  %v6291_v27 = vand.u32 %v6277_v8, %v7717_v26 }
 0x274   : > { %5422 = vmatpush1.bf16.msra.mxu0 %v5413_v29  ;;  %5453 = vmatprep.mubr.bf16.mxu0 %v7531_v23  ;;  %v6285_v29 = vand.u32 %v6279_v25, %v7717_v26  ;;  %v6389_v26 = vsub.s32 2, %v7606_v3 }
 0x275   : > { %5545 = vmatprep.subr.bf16.mxu0 %v5540_v30  ;;  %v6649_v30 = vld [vmem:[%s8580_s0 + $0xc0] sm:$0xf] }
 0x276   : > { %v6390_v33 = vrot.slane %v6377_v31, %v6389_v26 }
 0x27d   : > { %7006 = vmatmul.mubr.msk.bf16.vlgmr.msra.gmra.mrb[0].mxu1 %vm202_vm5, %v6628_v36 }
 0x27e   : > { %7010 = vmatpush3.bf16.msra.mxu1 %v5543_v35  ;;  %7011 = vmatprep.mubr.msk.bf16.mxu1 %vm7528_vm0, %v7527_v4  ;;  %v6386_v35 = vrot.slane %v6377_v31, %v6385_v32 }
 0x27f   : > { %6629 = vmatmul.mubr.msk.bf16.vlgmr.msra.gmra.mrb[0].mxu0 %vm202_vm5, %v6628_v36  ;;  %7015 = vmatprep.subr.bf16.mxu1 %v7527_v4 }
 0x280   : > { %5546 = vmatpush1.bf16.msra.mxu0 %v5537_v37  ;;  %5577 = vmatprep.mubr.bf16.mxu0 %v7531_v23 }
 0x281   : > { %5669 = vmatprep.subr.bf16.mxu0 %v5664_v38 }
 0x289   : > { %7012 = vmatmul.mubr.msk.bf16.vlgmr.msra.gmra.mrb[0].mxu1 %vm202_vm5, %v6631_v42 }
 0x28a   : > { %7016 = vmatpush3.bf16.msra.mxu1 %v5667_v41  ;;  %7017 = vmatprep.mubr.msk.bf16.mxu1 %vm7528_vm0, %v7527_v4 }
 0x28b   : > { %6632 = vmatmul.mubr.msk.bf16.vlgmr.msra.gmra.mrb[0].mxu0 %vm202_vm5, %v6631_v42  ;;  %7021 = vmatprep.subr.bf16.mxu1 %v7527_v4 }
 0x28c   : > { %5670 = vmatpush1.bf16.msra.mxu0 %v5661_v44  ;;  %5701 = vmatprep.mubr.bf16.mxu0 %v7531_v23 }
 0x28d   : > { %5793 = vmatprep.subr.bf16.mxu0 %v5788_v45 }
 0x295   : > { %7018 = vmatmul.mubr.msk.bf16.vlgmr.msra.gmra.mrb[0].mxu1 %vm202_vm5, %v6634_v51 }
 0x296   : > { %7022 = vmatpush3.bf16.msra.mxu1 %v5791_v50  ;;  %7023 = vmatprep.mubr.msk.bf16.mxu1 %vm7528_vm0, %v7527_v4 }
 0x297   : > { %6635 = vmatmul.mubr.msk.bf16.vlgmr.msra.gmra.mrb[0].mxu0 %vm202_vm5, %v6634_v51  ;;  %7027 = vmatprep.subr.bf16.mxu1 %v7527_v4 }
 0x298   : > { %5794 = vmatpush1.bf16.msra.mxu0 %v5785_v53  ;;  %5825 = vmatprep.mubr.bf16.mxu0 %v7531_v23 }
 0x299   : > { %5918 = vmatprep.subr.bf16.mxu0 %v5913_v54 }
 0x2a1   : > { %7024 = vmatmul.mubr.msk.bf16.vlgmr.msra.gmra.mrb[0].mxu1 %vm202_vm5, %v6637_v11 }
 0x2a2   : > { %7028 = vmatpush3.bf16.msra.mxu1 %v5916_v59  ;;  %7029 = vmatprep.mubr.msk.bf16.mxu1 %vm7528_vm0, %v7527_v4 }
 0x2a3   : > { %6638 = vmatmul.mubr.msk.bf16.vlgmr.msra.gmra.mrb[0].mxu0 %vm202_vm5, %v6637_v11  ;;  %7033 = vmatprep.subr.bf16.mxu1 %v7527_v4 }
 0x2a4   : > { %5919 = vmatpush1.bf16.msra.mxu0 %v5910_v60  ;;  %5950 = vmatprep.mubr.bf16.mxu0 %v7531_v23 }
 0x2a5   : > { %6043 = vmatprep.subr.bf16.mxu0 %v6038_v7 }
 0x2ad   : > { %7030 = vmatmul.mubr.msk.bf16.vlgmr.msra.gmra.mrb[0].mxu1 %vm202_vm5, %v6640_v1 }
 0x2ae   : > { %7034 = vmatpush3.bf16.msra.mxu1 %v6041_v0  ;;  %7035 = vmatprep.mubr.msk.bf16.mxu1 %vm7528_vm0, %v7527_v4 }
 0x2af   : > { %6641 = vmatmul.mubr.msk.bf16.vlgmr.msra.gmra.mrb[0].mxu0 %vm202_vm5, %v6640_v1  ;;  %7039 = vmatprep.subr.bf16.mxu1 %v7527_v4 }
 0x2b0   : > { %6044 = vmatpush1.bf16.msra.mxu0 %v6035_v2  ;;  %6075 = vmatprep.mubr.bf16.mxu0 %v7531_v23 }
 0x2b1   : > { %6168 = vmatprep.subr.bf16.mxu0 %v6163_v5 }
 0x2b9   : > { %7036 = vmatmul.mubr.msk.bf16.vlgmr.msra.gmra.mrb[0].mxu1 %vm202_vm5, %v6643_v13 }
 0x2ba   : > { %7040 = vmatpush3.bf16.msra.mxu1 %v6166_v15  ;;  %7041 = vmatprep.mubr.msk.bf16.mxu1 %vm7528_vm0, %v7527_v4 }
 0x2bb   : > { %6644 = vmatmul.mubr.msk.bf16.vlgmr.msra.gmra.mrb[0].mxu0 %vm202_vm5, %v6643_v13  ;;  %7045 = vmatprep.subr.bf16.mxu1 %v7527_v4 }
 0x2bc   : > { %6169 = vmatpush1.bf16.msra.mxu0 %v6160_v18  ;;  %6200 = vmatprep.mubr.bf16.mxu0 %v7531_v23 }
 0x2bd   : > { %6293 = vmatprep.subr.bf16.mxu0 %v6288_v21 }
 0x2c5   : > { %7042 = vmatmul.mubr.msk.bf16.vlgmr.msra.gmra.mrb[0].mxu1 %vm202_vm5, %v6646_v28 }
 0x2c6   : > { %7046 = vmatpush3.bf16.msra.mxu1 %v6291_v27  ;;  %7047 = vmatprep.mubr.msk.bf16.mxu1 %vm7528_vm0, %v7527_v4  ;;  %v6381_v4 = vsub.s32 0, %v7606_v3  ;;  %vm6398_vm0 = vcmask 785408  }
 0x2c7   : > { %6647 = vmatmul.mubr.msk.bf16.vlgmr.msra.gmra.mrb[0].mxu0 %vm202_vm5, %v6646_v28 }
 0x2c8   : > { %6294 = vmatpush1.bf16.msra.mxu0 %v6285_v29  ;;  %6325 = vmatprep.mubr.bf16.mxu0 %v7531_v23  ;;  %v6382_v23 = vrot.slane %v6377_v31, %v6381_v4 }
 0x2d1   : > { %7048 = vmatmul.mubr.msk.bf16.vlgmr.msra.gmra.mrb[0].mxu1 %vm202_vm5, %v6649_v30 }
 0x2d3   : > { %6650 = vmatmul.mubr.msk.bf16.vlgmr.msra.gmra.mrb[0].mxu0 %vm202_vm5, %v6649_v30  ;;  %vm6441_vm5 = vcmask 781312  }
 0x3a4   : > { %v6368_v34 = vpop.f32.mrb[0].mxu1 }
 0x3a5   : > { %v6396_v36 = vmul.f32 %v6390_v33, %v6368_v34  ;;  %v7049_v12 = vpop.f32.mrb[1].mxu1 }
 0x3a6   : > { %v6327_v37 = vpop.f32.mrb[0].mxu0  ;;  %v6371_v38 = vpop.f32.mrb[2].mxu1 }
 0x3a7   : > { %v6394_v14 = vmul.f32 %v6382_v23, %v6327_v37  ;;  %v6329_v39 = vpop.f32.mrb[1].mxu0  ;;  %v7050_v9 = vpop.f32.mrb[3].mxu1  ;;  %v6406_v42 = vmul.f32 %v6396_v36, %v6368_v34  ;;  %v6399_v3 = vsel %vm6398_vm0, %v6396_v36, 0.0 }
 0x3a8   : > { %v6395_v40 = vmul.f32 %v6386_v35, %v6329_v39  ;;  %v6331_v41 = vpop.f32.mrb[2].mxu0 }
 0x3a9   : > { %v6404_v43 = vmul.f32 %v6394_v14, %v6327_v37  ;;  %v6332_v44 = vpop.f32.mrb[3].mxu0  ;;  %v6408_v49 = vsel %vm6398_vm0, %v6406_v42, 0.0 }
 0x3aa   : > { %v6397_v45 = vadd.f32 %v6395_v40, %v6394_v14  ;;  %v6405_v46 = vmul.f32 %v6395_v40, %v6329_v39 }
 0x3ac   : > { %v6407_v47 = vadd.f32 %v6405_v46, %v6404_v43  ;;  %v6400_v48 = vadd.f32 %v6399_v3, %v6397_v45 }
 0x3ae   : > { %6401 = vadd.xlane.f32.xlu0 %v6400_v48  ;;  %v6409_v50 = vadd.f32 %v6408_v49, %v6407_v47 }
 0x3b0   : > { %6410 = vadd.xlane.f32.xlu1 %v6409_v50 }
 0x43b   : > { %v6402_v51 = vpop.xlane.xlu0 %6401 }
 0x43c   : > { %v6403_v52 = vmul.f32 0.00390625, %v6402_v51 }
 0x43d   : > { %v6411_v53 = vpop.xlane.xlu1 %6410 }
 0x43e   : > { %v6412_v54 = vmul.f32 0.00390625, %v6411_v53  ;;  %v6413_v55 = vmul.f32 %v6403_v52, %v6403_v52  ;;  %v6415_v59 = vsub.f32 %v6327_v37, %v6403_v52  ;;  %v6416_v11 = vsub.f32 %v6329_v39, %v6403_v52 }
 0x43f   : > { %v6417_v16 = vsub.f32 %v6368_v34, %v6403_v52 }
 0x440   : > { %v6414_v56 = vsub.f32 %v6412_v54, %v6413_v55 }
 0x442   : > { %v6418_v57 = vmax.f32 %v6414_v56, 0.0 }
 0x444   : > { %v6419_v58 = vadd.f32 1e-05, %v6418_v57 }
 0x446   : > { %7516 = vrsqrt.f32 %v6419_v58 }
 0x450   : > { %v7517_v60 = vpop.eup %7516 }
 0x451   : > { %v6421_v7 = vmul.f32 %v7517_v60, %v6415_v59  ;;  %v6422_v61 = vmul.f32 %v7517_v60, %v6416_v11  ;;  %v6423_v6 = vmul.f32 %v7517_v60, %v6417_v16 }
 0x453   : > { %v6424_v62 = vmax.f32 %v6421_v7, 0.0  ;;  %v6425_v63 = vmax.f32 %v6422_v61, 0.0  ;;  %v6426_v0 = vmax.f32 %v6423_v6, 0.0 }
 0x455   : > { %v6657_v1 = vpack.c.bf16 %v6425_v63, %v6424_v62  ;;  %v6658_v17 = vpack.c.bf16 %v6426_v0, %v6426_v0 }
 0x457   : > { %6440 = vst [vmem:[%s170_s17] sm:$0xff] %v6657_v1  ;;  %6442 = vst.msk [vmem:[%s170_s17 + $0x8] sm:$0xf] %vm6441_vm5, %v6658_v17 }
 0x458 PF: > { %s13_s12 = sadd.s32 1, %s7524_s12  }
 0x459   : > { %p10_p4 = scmp.ge.s32.totalorder %s13_s12, 4  }
 0x45b   :  { %12 = sbr.rel (!%p10_p4) target bundleno = 1 (0x1), region = 110 }

// kernel: generator_forward.12
= control target key start
LH: loop header
LB: loop body
LE: loop exit
PB: predicated region body
PF: predicated region fallthrough
CT: control target
= control target key end

     0   :  { %s1301_s12 = smov 0   ;;  %s1429_s0 = inlined_call_operand.vmem [shape: bf16[9,32,16], index: 0, kind: input, shape index: {}]   ;;  %s1430_s1 = inlined_call_operand.vmem [shape: bf16[2,16,128], index: 1, kind: input, shape index: {}]   ;;  %s1431_s2 = inlined_call_operand.vmem [shape: f32[1,80], index: 2, kind: input, shape index: {}]   ;;  %s1432_s3 = inlined_call_operand.vmem [shape: bf16[2,32,80], index: 3, kind: output, shape index: {}]  }
   0x1 LB: > { %s1018_s13 = sadd.s32 4294967295, %s1271_s12   ;;  %p1022_p0 = scmp.ge.s32.totalorder %s1271_s12, 1  ;;  %s1271_s12 = sphi %s1301_s12, %s13_s12  }
   0x2   : > { %p137_p1 = scmp.lt.s32.totalorder %s1271_s12, 3 }
   0x4   : > { %p138_p2 = pnand %p1022_p0, %p137_p1 }
   0x5   : > { %p161_p3 = scmp.lt.s32.totalorder (!%p138_p2), %s1018_s13, 1  ;;  %vm201_vm0 = vcmask (!%p138_p2), 130048   ;;  %v1239_v0 = vld [vmem:[%s1429_s0 + $0x40] sm:$0xff] (!%p138_p2)   ;;  %v1241_v1 = vld [vmem:[%s1429_s0 + $0x10] sm:$0xff] (!%p138_p2)   ;;  %s1273_s22 = smov (!%p138_p2), 117   ;;  %v1240_v5 = vld [vmem:[%s1429_s0 + $0x48] sm:$0xff] (!%p138_p2)  }
   0x6   : > { %141 = sbr.rel (%p138_p2) target bundleno = 585 (0x249), region = 32  ;;  %1162 = vmatprep.mubr.msk.bf16.mxu0 (!%p138_p2), %vm201_vm0, %v1239_v0  ;;  %1138 = vmatprep.mubr.msk.bf16.mxu1 (!%p138_p2), %vm201_vm0, %v1241_v1  ;;  %s1274_s23 = smov (!%p138_p2), 116   ;;  %v1243_v6 = vld [vmem:[%s1429_s0 + $0x50] sm:$0xff] (!%p138_p2)   ;;  %v1242_v9 = vld [vmem:[%s1429_s0 + $0x18] sm:$0xff] (!%p138_p2)   ;;  %v1245_v10 = vld [vmem:[%s1429_s0] sm:$0xff] (!%p138_p2)   ;;  %vm873_vm1 = vcmask (!%p138_p2), 654336  }
   0x7   : > { %s1275_s24 = smov (!%p138_p2), 127   ;;  %s1276_s25 = smov (!%p138_p2), 108   ;;  %v1244_v12 = vld [vmem:[%s1429_s0 + $0x58] sm:$0xff] (!%p138_p2)   ;;  %v1247_v13 = vld [vmem:[%s1429_s0 + $0x60] sm:$0xff] (!%p138_p2)   ;;  %v1246_v15 = vld [vmem:[%s1429_s0 + $0x8] sm:$0xff] (!%p138_p2)   ;;  %vm958_vm2 = vcmask (!%p138_p2), 650240  }
   0x8   : > { %s1277_s26 = smov (!%p138_p2), 107   ;;  %s1278_s27 = smov (!%p138_p2), 126   ;;  %v1249_v16 = vld [vmem:[%s1429_s0 + $0x20] sm:$0xff] (!%p138_p2)   ;;  %v1248_v18 = vld [vmem:[%s1429_s0 + $0x68] sm:$0xff] (!%p138_p2)   ;;  %v1251_v19 = vld [vmem:[%s1429_s0 + $0x70] sm:$0xff] (!%p138_p2)  }
   0x9   : > { %s1279_s28 = smov (!%p138_p2), 106   ;;  %s1280_s29 = smov (!%p138_p2), 118   ;;  %v1250_v21 = vld [vmem:[%s1429_s0 + $0x28] sm:$0xff] (!%p138_p2)   ;;  %v1253_v22 = vld [vmem:[%s1429_s0 + $0x30] sm:$0xff] (!%p138_p2)   ;;  %v1252_v23 = vld [vmem:[%s1429_s0 + $0x78] sm:$0xff] (!%p138_p2)  }
   0xa   : > { %v1255_v24 = vld [vmem:[%s1429_s0 + $0x80] sm:$0xff] (!%p138_p2)   ;;  %v1254_v25 = vld [vmem:[%s1429_s0 + $0x38] sm:$0xff] (!%p138_p2)   ;;  %v1256_v26 = vld [vmem:[%s1429_s0 + $0x88] sm:$0xff] (!%p138_p2)  }
   0xb   : > { %v1096_v32 = vld [vmem:[%s1431_s2] ss:$0 sm:$0xff] (!%p138_p2) }
   0xd   : > { %s1434_s13 = smov (!%p161_p3, %s1018_s13), 1 }
   0xe   : > { %s1103_s18 = sshll.u32 %s1434_s13, 3  ;;  %s1104_s14 = sshll.u32 %s1434_s13, 4 }
   0xf   : > { %s165_s21 = scalar_lea.vmem %s1430_s1, %s1103_s18  ;;  %s170_s17 = scalar_lea.vmem %s1432_s3, %s1104_s14 }
  0x10   : > { %v1238_v2 = vld [vmem:[%s165_s21] sm:$0xff]  }
  0x11   : > { %492 = vrot.lane.b32.xlu0 %v1238_v2, %s1273_s22  ;;  %569 = vrot.lane.b32.xlu1 %v1238_v2, %s1274_s23 }
  0x15   : > { %198 = vrot.lane.b32.xlu0 %v1238_v2, %s1275_s24  ;;  %646 = vrot.lane.b32.xlu1 %v1238_v2, %s1276_s25 }
  0x19   : > { %723 = vrot.lane.b32.xlu1 %v1238_v2, %s1277_s26  ;;  %338 = vrot.lane.b32.xlu0 %v1238_v2, %s1278_s27 }
  0x1d   : > { %800 = vrot.lane.b32.xlu1 %v1238_v2, %s1279_s28  ;;  %415 = vrot.lane.b32.xlu0 %v1238_v2, %s1280_s29 }
  0x83   : > { %v493_v3 = vpop.permute.xlu0 %492  ;;  %v570_v4 = vpop.permute.xlu1 %569 }
  0x84   : > { %1160 = vmatprep.subr.bf16.mxu0 %v493_v3 }
  0x85   : > { %1161 = vmatpush3.bf16.msra.mxu0 %v493_v3 }
  0x86   : > { %1166 = vmatprep.subr.bf16.mxu0 %v570_v4 }
  0x87   : > { %v199_v7 = vpop.permute.xlu0 %198  ;;  %v647_v8 = vpop.permute.xlu1 %646 }
  0x88   : > { %1136 = vmatprep.subr.bf16.mxu1 %v199_v7  ;;  %1163 = vmatmul.mubr.msk.bf16.vlgmr.msra.gmra.mrb[0].mxu0 %vm201_vm0, %v1240_v5 }
  0x89   : > { %1137 = vmatpush3.bf16.msra.mxu1 %v199_v7  ;;  %1167 = vmatpush3.bf16.msra.mxu0 %v570_v4 }
  0x8a   : > { %1168 = vmatprep.mubr.msk.bf16.mxu0 %vm201_vm0, %v1243_v6  ;;  %1172 = vmatprep.subr.bf16.mxu0 %v647_v8 }
  0x8b   : > { %1142 = vmatprep.subr.bf16.mxu1 %v1238_v2  ;;  %v339_v11 = vpop.permute.xlu0 %338  ;;  %v724_v14 = vpop.permute.xlu1 %723 }
  0x8c   : > { %1139 = vmatmul.mubr.msk.bf16.vlgmr.msra.gmra.mrb[0].mxu1 %vm201_vm0, %v1242_v9 }
  0x8d   : > { %1143 = vmatpush3.bf16.msra.mxu1 %v1238_v2  ;;  %1144 = vmatprep.mubr.msk.bf16.mxu1 %vm201_vm0, %v1245_v10 }
  0x8e   : > { %1148 = vmatprep.subr.bf16.mxu1 %v339_v11 }
  0x8f   : > { %v416_v17 = vpop.permute.xlu0 %415  ;;  %v801_v20 = vpop.permute.xlu1 %800 }
  0x94   : > { %1169 = vmatmul.mubr.msk.bf16.vlgmr.msra.gmra.mrb[0].mxu0 %vm201_vm0, %v1244_v12 }
  0x95   : > { %1173 = vmatpush3.bf16.msra.mxu0 %v647_v8  ;;  %1174 = vmatprep.mubr.msk.bf16.mxu0 %vm201_vm0, %v1247_v13 }
  0x96   : > { %1178 = vmatprep.subr.bf16.mxu0 %v724_v14 }
  0x98   : > { %1145 = vmatmul.mubr.msk.bf16.vlgmr.msra.gmra.mrb[0].mxu1 %vm201_vm0, %v1246_v15 }
  0x99   : > { %1149 = vmatpush3.bf16.msra.mxu1 %v339_v11  ;;  %1150 = vmatprep.mubr.msk.bf16.mxu1 %vm201_vm0, %v1249_v16 }
  0x9a   : > { %1154 = vmatprep.subr.bf16.mxu1 %v416_v17 }
  0xa0   : > { %1175 = vmatmul.mubr.msk.bf16.vlgmr.msra.gmra.mrb[0].mxu0 %vm201_vm0, %v1248_v18 }
  0xa1   : > { %1179 = vmatpush3.bf16.msra.mxu0 %v724_v14  ;;  %1180 = vmatprep.mubr.msk.bf16.mxu0 %vm201_vm0, %v1251_v19 }
  0xa2   : > { %1184 = vmatprep.subr.bf16.mxu0 %v801_v20 }
  0xa4   : > { %1151 = vmatmul.mubr.msk.bf16.vlgmr.msra.gmra.mrb[0].mxu1 %vm201_vm0, %v1250_v21 }
  0xa5   : > { %1155 = vmatpush3.bf16.msra.mxu1 %v416_v17  ;;  %1156 = vmatprep.mubr.msk.bf16.mxu1 %vm201_vm0, %v1253_v22 }
  0xac   : > { %1181 = vmatmul.mubr.msk.bf16.vlgmr.msra.gmra.mrb[0].mxu0 %vm201_vm0, %v1252_v23 }
  0xad   : > { %1185 = vmatpush3.bf16.msra.mxu0 %v801_v20  ;;  %1186 = vmatprep.mubr.msk.bf16.mxu0 %vm201_vm0, %v1255_v24 }
  0xb0   : > { %1157 = vmatmul.mubr.msk.bf16.vlgmr.msra.gmra.mrb[0].mxu1 %vm201_vm0, %v1254_v25 }
  0xb8   : > { %1187 = vmatmul.mubr.msk.bf16.vlgmr.msra.gmra.mrb[0].mxu0 %vm201_vm0, %v1256_v26 }
 0x183   : > { %v1158_v27 = vpop.f32.mrb[0].mxu1 }
 0x184   : > { %v458_v28 = vpop.f32.mrb[1].mxu1 }
 0x185   : > { %v1159_v29 = vpop.f32.mrb[2].mxu1 }
 0x186   : > { %v461_v30 = vpop.f32.mrb[3].mxu1 }
 0x18b   : > { %v1188_v31 = vpop.f32.mrb[0].mxu0 }
 0x18c   : > { %v1390_v33 = vadd.f32 %v1188_v31, %v1158_v27  ;;  %v843_v34 = vpop.f32.mrb[1].mxu0 }
 0x18d   : > { %v1392_v35 = vadd.f32 %v843_v34, %v458_v28  ;;  %v1189_v36 = vpop.f32.mrb[2].mxu0 }
 0x18e   : > { %v1394_v37 = vadd.f32 %v1189_v36, %v1159_v29  ;;  %v846_v38 = vpop.f32.mrb[3].mxu0  ;;  %v871_v39 = vmul.f32 %v1390_v33, %v1096_v32 }
 0x18f   : > { %v1397_v40 = vadd.f32 %v846_v38, %v461_v30  ;;  %v869_v41 = vmul.f32 %v1392_v35, %v1096_v32 }
 0x190   : > { %v880_v42 = vsel %vm873_vm1, %v871_v39, 0.0  ;;  %v872_v47 = vmul.f32 %v1394_v37, %v1096_v32  ;;  %v892_v49 = vmul.f32 %v1390_v33, %v871_v39 }
 0x191   : > { %881 = vadd.xlane.f32.xlu0 %v880_v42  ;;  %v870_v43 = vmul.f32 %v1397_v40, %v1096_v32  ;;  %v890_v45 = vmul.f32 %v1392_v35, %v869_v41  ;;  %v874_v46 = vsel %vm873_vm1, %v869_v41, 0.0 }
 0x192   : > { %v883_v50 = vsel %vm873_vm1, %v872_v47, 0.0  ;;  %v900_v52 = vsel %vm873_vm1, %v892_v49, 0.0  ;;  %v893_v54 = vmul.f32 %v1394_v37, %v872_v47 }
 0x193   : > { %v877_v44 = vsel %vm873_vm1, %v870_v43, 0.0  ;;  %v894_v48 = vsel %vm873_vm1, %v890_v45, 0.0  ;;  %v891_v51 = vmul.f32 %v1397_v40, %v870_v43 }
 0x194   : > { %878 = vadd.xlane.f32.xlu1 %v877_v44  ;;  %v903_v55 = vsel %vm873_vm1, %v893_v54, 0.0 }
 0x195   : > { %875 = vadd.xlane.f32.xlu0 %v874_v46  ;;  %v897_v53 = vsel %vm873_vm1, %v891_v51, 0.0 }
 0x198   : > { %895 = vadd.xlane.f32.xlu1 %v894_v48 }
 0x199   : > { %884 = vadd.xlane.f32.xlu0 %v883_v50 }
 0x19c   : > { %901 = vadd.xlane.f32.xlu1 %v900_v52 }
 0x19d   : > { %898 = vadd.xlane.f32.xlu0 %v897_v53 }
 0x1a1   : > { %904 = vadd.xlane.f32.xlu0 %v903_v55 }
 0x21e   : > { %v882_v56 = vpop.xlane.xlu0 %881 }
 0x21f   : > { %v888_v62 = vmul.f32 0.0625, %v882_v56 }
 0x221   : > { %v879_v57 = vpop.xlane.xlu1 %878  ;;  %v912_v4 = vmul.f32 %v888_v62, %v888_v62  ;;  %v920_v27 = vsub.f32 %v1390_v33, %v888_v62 }
 0x222   : > { %v876_v58 = vpop.xlane.xlu0 %875  ;;  %v887_v1 = vmul.f32 0.0625, %v879_v57 }
 0x223   : > { %v886_v59 = vmul.f32 0.0625, %v876_v58 }
 0x224   : > { %v911_v8 = vmul.f32 %v887_v1, %v887_v1  ;;  %v919_v30 = vsub.f32 %v1397_v40, %v887_v1 }
 0x225   : > { %v910_v60 = vmul.f32 %v886_v59, %v886_v59  ;;  %v896_v61 = vpop.xlane.xlu1 %895  ;;  %v918_v24 = vsub.f32 %v1392_v35, %v886_v59 }
 0x226   : > { %v906_v63 = vmul.f32 0.0625, %v896_v61  ;;  %v885_v0 = vpop.xlane.xlu0 %884 }
 0x227   : > { %v889_v9 = vmul.f32 0.0625, %v885_v0 }
 0x228   : > { %v914_v2 = vsub.f32 %v906_v63, %v910_v60 }
 0x229   : > { %v902_v3 = vpop.xlane.xlu1 %901  ;;  %v913_v16 = vmul.f32 %v889_v9, %v889_v9  ;;  %v921_v38 = vsub.f32 %v1394_v37, %v889_v9 }
 0x22a   : > { %v922_v5 = vmax.f32 %v914_v2, 0.0  ;;  %v908_v6 = vmul.f32 0.0625, %v902_v3  ;;  %v899_v7 = vpop.xlane.xlu0 %898 }
 0x22b   : > { %v907_v10 = vmul.f32 0.0625, %v899_v7 }
 0x22c   : > { %v926_v11 = vadd.f32 1e-05, %v922_v5  ;;  %v916_v12 = vsub.f32 %v908_v6, %v912_v4 }
 0x22d   : > { %v915_v13 = vsub.f32 %v907_v10, %v911_v8 }
 0x22e   : > { %1257 = vrsqrt.f32 %v926_v11  ;;  %v924_v14 = vmax.f32 %v916_v12, 0.0  ;;  %v905_v15 = vpop.xlane.xlu0 %904 }
 0x22f   : > { %v923_v17 = vmax.f32 %v915_v13, 0.0  ;;  %v909_v18 = vmul.f32 0.0625, %v905_v15 }
 0x230   : > { %v928_v19 = vadd.f32 1e-05, %v924_v14 }
 0x231   : > { %v927_v20 = vadd.f32 1e-05, %v923_v17  ;;  %v917_v21 = vsub.f32 %v909_v18, %v913_v16 }
 0x232   : > { %1259 = vrsqrt.f32 %v928_v19 }
 0x233   : > { %1261 = vrsqrt.f32 %v927_v20  ;;  %v925_v22 = vmax.f32 %v917_v21, 0.0 }
 0x235   : > { %v929_v23 = vadd.f32 1e-05, %v925_v22 }
 0x237   : > { %1263 = vrsqrt.f32 %v929_v23 }
 0x238   : > { %v1258_v25 = vpop.eup %1257 }
 0x239   : > { %v934_v26 = vmul.f32 %v1258_v25, %v918_v24 }
 0x23b   : > { %v938_v28 = vmax.f32 %v934_v26, 0.0 }
 0x23c   : > { %v1260_v29 = vpop.eup %1259 }
 0x23d   : > { %v1262_v31 = vpop.eup %1261  ;;  %v1105_v32 = vpack.c.bf16 %v938_v28, %v938_v28  ;;  %v936_v34 = vmul.f32 %v1260_v29, %v920_v27 }
 0x23e   : > { %v935_v36 = vmul.f32 %v1262_v31, %v919_v30 }
 0x23f   : > { %959 = vst.msk [vmem:[%s170_s17] sm:$0xf] %vm958_vm2, %v1105_v32  ;;  %v940_v35 = vmax.f32 %v936_v34, 0.0 }
 0x240   : > { %v939_v39 = vmax.f32 %v935_v36, 0.0 }
 0x241   : > { %v1264_v33 = vpop.eup %1263  ;;  %v1107_v41 = vpack.c.bf16 %v940_v35, %v940_v35 }
 0x242   : > { %v1106_v42 = vpack.c.bf16 %v939_v39, %v939_v39  ;;  %v937_v43 = vmul.f32 %v1264_v33, %v921_v38 }
 0x243   : > { %961 = vst.msk [vmem:[%s170_s17 + $0x8] sm:$0xf] %vm958_vm2, %v1107_v41 }
 0x244   : > { %960 = vst.msk [vmem:[%s170_s17 + $0x4] sm:$0xf] %vm958_vm2, %v1106_v42  ;;  %v941_v40 = vmax.f32 %v937_v43, 0.0 }
 0x246   : > { %v1108_v44 = vpack.c.bf16 %v941_v40, %v941_v40 }
 0x248   : > { %962 = vst.msk [vmem:[%s170_s17 + $0xc] sm:$0xf] %vm958_vm2, %v1108_v44 }
 0x249 PF: > { %s13_s12 = sadd.s32 1, %s1271_s12  }
 0x24a   : > { %p10_p4 = scmp.ge.s32.totalorder %s13_s12, 4  }
 0x24c   :  { %12 = sbr.rel (!%p10_p4) target bundleno = 1 (0x1), region = 70 }

// kernel: generator_forward.13
= control target key start
LH: loop header
LB: loop body
LE: loop exit
PB: predicated region body
PF: predicated region fallthrough
CT: control target
= control target key end

     0   :  { %s1362_s12 = smov 0   ;;  %s1493_s0 = inlined_call_operand.vmem [shape: bf16[9,32,32], index: 0, kind: input, shape index: {}]   ;;  %s1494_s1 = inlined_call_operand.vmem [shape: bf16[2,32,128], index: 1, kind: input, shape index: {}]   ;;  %s1495_s2 = inlined_call_operand.vmem [shape: f32[1,24], index: 2, kind: input, shape index: {}]   ;;  %s1496_s3 = inlined_call_operand.vmem [shape: bf16[2,32,24], index: 3, kind: output, shape index: {}]  }
   0x1 LB: > { %s1050_s13 = sadd.s32 4294967295, %s1332_s12   ;;  %p1054_p0 = scmp.ge.s32.totalorder %s1332_s12, 1  ;;  %s1332_s12 = sphi %s1362_s12, %s13_s12  }
   0x2   : > { %p137_p1 = scmp.lt.s32.totalorder %s1332_s12, 3 }
   0x4   : > { %p138_p2 = pnand %p1054_p0, %p137_p1 }
   0x5   : > { %p161_p3 = scmp.lt.s32.totalorder (!%p138_p2), %s1050_s13, 1  ;;  %vm211_vm0 = vcmask (!%p138_p2), 261120   ;;  %v1300_v0 = vld [vmem:[%s1493_s0 + $0x40] sm:$0xff] (!%p138_p2)   ;;  %v1302_v1 = vld [vmem:[%s1493_s0 + $0x10] sm:$0xff] (!%p138_p2)   ;;  %s1334_s22 = smov (!%p138_p2), 121   ;;  %v1301_v8 = vld [vmem:[%s1493_s0 + $0x48] sm:$0xff] (!%p138_p2)  }
   0x6   : > { %141 = sbr.rel (%p138_p2) target bundleno = 589 (0x24d), region = 32  ;;  %1214 = vmatprep.mubr.msk.bf16.mxu0 (!%p138_p2), %vm211_vm0, %v1300_v0  ;;  %1182 = vmatprep.mubr.msk.bf16.mxu1 (!%p138_p2), %vm211_vm0, %v1302_v1  ;;  %s1335_s23 = smov (!%p138_p2), 127   ;;  %v1304_v11 = vld [vmem:[%s1493_s0 + $0x50] sm:$0xff] (!%p138_p2)   ;;  %v1303_v12 = vld [vmem:[%s1493_s0 + $0x18] sm:$0xff] (!%p138_p2)   ;;  %v1306_v14 = vld [vmem:[%s1493_s0] sm:$0xff] (!%p138_p2)   ;;  %vm905_vm1 = vcmask (!%p138_p2), 195584  }
   0x7   : > { %s1336_s24 = smov (!%p138_p2), 120   ;;  %s1337_s25 = smov (!%p138_p2), 116   ;;  %v1305_v16 = vld [vmem:[%s1493_s0 + $0x58] sm:$0xff] (!%p138_p2)   ;;  %v1308_v17 = vld [vmem:[%s1493_s0 + $0x60] sm:$0xff] (!%p138_p2)   ;;  %v1307_v19 = vld [vmem:[%s1493_s0 + $0x8] sm:$0xff] (!%p138_p2)   ;;  %vm990_vm2 = vcmask (!%p138_p2), 191488  }
   0x8   : > { %s1338_s26 = smov (!%p138_p2), 126   ;;  %s1339_s27 = smov (!%p138_p2), 115   ;;  %v1310_v22 = vld [vmem:[%s1493_s0 + $0x20] sm:$0xff] (!%p138_p2)   ;;  %v1309_v24 = vld [vmem:[%s1493_s0 + $0x68] sm:$0xff] (!%p138_p2)   ;;  %v1312_v25 = vld [vmem:[%s1493_s0 + $0x70] sm:$0xff] (!%p138_p2)  }
   0x9   : > { %s1340_s28 = smov (!%p138_p2), 122   ;;  %s1341_s29 = smov (!%p138_p2), 114   ;;  %v1311_v27 = vld [vmem:[%s1493_s0 + $0x28] sm:$0xff] (!%p138_p2)   ;;  %v1314_v30 = vld [vmem:[%s1493_s0 + $0x30] sm:$0xff] (!%p138_p2)   ;;  %v1313_v31 = vld [vmem:[%s1493_s0 + $0x78] sm:$0xff] (!%p138_p2)  }
   0xa   : > { %v1316_v32 = vld [vmem:[%s1493_s0 + $0x80] sm:$0xff] (!%p138_p2)   ;;  %v1315_v34 = vld [vmem:[%s1493_s0 + $0x38] sm:$0xff] (!%p138_p2)   ;;  %v1317_v35 = vld [vmem:[%s1493_s0 + $0x88] sm:$0xff] (!%p138_p2)  }
   0xb   : > { %v1129_v41 = vld [vmem:[%s1495_s2] ss:$0 sm:$0xff] (!%p138_p2) }
   0xd   : > { %s1498_s13 = smov (!%p161_p3, %s1050_s13), 1 }
   0xe   : > { %s1136_s16 = sshll.u32 %s1498_s13, 4 }
   0xf   : > { %s165_s21 = scalar_lea.vmem %s1494_s1, %s1136_s16  ;;  %s170_s18 = scalar_lea.vmem %s1496_s3, %s1136_s16 }
  0x10   : > { %v1298_v2 = vld [vmem:[%s165_s21] sm:$0xff]   ;;  %v1299_v3 = vld [vmem:[%s165_s21 + $0x8] sm:$0xff]  }
  0x11   : > { %509 = vrot.lane.b32.xlu0 %v1298_v2, %s1334_s22  ;;  %205 = vrot.lane.b32.xlu1 %v1298_v2, %s1335_s23 }
  0x15   : > { %511 = vrot.lane.b32.xlu0 %v1299_v3, %s1334_s22  ;;  %589 = vrot.lane.b32.xlu1 %v1298_v2, %s1336_s24 }
  0x19   : > { %207 = vrot.lane.b32.xlu0 %v1299_v3, %s1335_s23  ;;  %591 = vrot.lane.b32.xlu1 %v1299_v3, %s1336_s24 }
  0x1d   : > { %669 = vrot.lane.b32.xlu0 %v1298_v2, %s1337_s25  ;;  %671 = vrot.lane.b32.xlu1 %v1299_v3, %s1337_s25 }
  0x21   : > { %349 = vrot.lane.b32.xlu0 %v1298_v2, %s1338_s26  ;;  %749 = vrot.lane.b32.xlu1 %v1298_v2, %s1339_s27 }
  0x25   : > { %351 = vrot.lane.b32.xlu0 %v1299_v3, %s1338_s26  ;;  %751 = vrot.lane.b32.xlu1 %v1299_v3, %s1339_s27 }
  0x29   : > { %429 = vrot.lane.b32.xlu0 %v1298_v2, %s1340_s28  ;;  %829 = vrot.lane.b32.xlu1 %v1298_v2, %s1341_s29 }
  0x2d   : > { %431 = vrot.lane.b32.xlu0 %v1299_v3, %s1340_s28  ;;  %831 = vrot.lane.b32.xlu1 %v1299_v3, %s1341_s29 }
  0x83   : > { %v510_v4 = vpop.permute.xlu0 %509  ;;  %v206_v5 = vpop.permute.xlu1 %205 }
  0x84   : > { %1210 = vmatprep.subr.bf16.mxu0 %v510_v4  ;;  %1178 = vmatprep.subr.bf16.mxu1 %v206_v5 }
  0x85   : > { %1211 = vmatpush3.bf16.msra.mxu0 %v510_v4  ;;  %1179 = vmatpush3.bf16.msra.mxu1 %v206_v5 }
  0x87   : > { %v512_v6 = vpop.permute.xlu0 %511  ;;  %v590_v7 = vpop.permute.xlu1 %589 }
  0x88   : > { %1212 = vmatprep.subr.bf16.mxu0 %v512_v6 }
  0x89   : > { %1213 = vmatpush3.bf16.msra.mxu0 %v512_v6 }
  0x8a   : > { %1218 = vmatprep.subr.bf16.mxu0 %v590_v7 }
  0x8b   : > { %v208_v9 = vpop.permute.xlu0 %207  ;;  %v592_v10 = vpop.permute.xlu1 %591 }
  0x8c   : > { %1180 = vmatprep.subr.bf16.mxu1 %v208_v9  ;;  %1215 = vmatmul.mubr.msk.bf16.vlgmr.msra.gmra.mrb[0].mxu0 %vm211_vm0, %v1301_v8 }
  0x8d   : > { %1181 = vmatpush3.bf16.msra.mxu1 %v208_v9  ;;  %1219 = vmatpush3.bf16.msra.mxu0 %v590_v7 }
  0x8e   : > { %1220 = vmatprep.subr.bf16.mxu0 %v592_v10  ;;  %1186 = vmatprep.subr.bf16.mxu1 %v1298_v2 }
  0x8f   : > { %v670_v13 = vpop.permute.xlu0 %669  ;;  %1222 = vmatprep.mubr.msk.bf16.mxu0 %vm211_vm0, %v1304_v11  ;;  %v672_v18 = vpop.permute.xlu1 %671 }
  0x90   : > { %1183 = vmatmul.mubr.msk.bf16.vlgmr.msra.gmra.mrb[0].mxu1 %vm211_vm0, %v1303_v12 }
  0x91   : > { %1221 = vmatpush3.bf16.msra.mxu0 %v592_v10  ;;  %1187 = vmatpush3.bf16.msra.mxu1 %v1298_v2 }
  0x92   : > { %1226 = vmatprep.subr.bf16.mxu0 %v670_v13  ;;  %1188 = vmatprep.subr.bf16.mxu1 %v1299_v3 }
  0x93   : > { %1190 = vmatprep.mubr.msk.bf16.mxu1 %vm211_vm0, %v1306_v14  ;;  %v350_v15 = vpop.permute.xlu0 %349  ;;  %v750_v20 = vpop.permute.xlu1 %749 }
  0x95   : > { %1189 = vmatpush3.bf16.msra.mxu1 %v1299_v3 }
  0x96   : > { %1194 = vmatprep.subr.bf16.mxu1 %v350_v15 }
  0x97   : > { %v352_v21 = vpop.permute.xlu0 %351  ;;  %v752_v26 = vpop.permute.xlu1 %751 }
  0x98   : > { %1223 = vmatmul.mubr.msk.bf16.vlgmr.msra.gmra.mrb[0].mxu0 %vm211_vm0, %v1305_v16 }
  0x99   : > { %1227 = vmatpush3.bf16.msra.mxu0 %v670_v13  ;;  %1230 = vmatprep.mubr.msk.bf16.mxu0 %vm211_vm0, %v1308_v17 }
  0x9a   : > { %1228 = vmatprep.subr.bf16.mxu0 %v672_v18 }
  0x9b   : > { %v430_v23 = vpop.permute.xlu0 %429  ;;  %v830_v28 = vpop.permute.xlu1 %829 }
  0x9c   : > { %1191 = vmatmul.mubr.msk.bf16.vlgmr.msra.gmra.mrb[0].mxu1 %vm211_vm0, %v1307_v19 }
  0x9d   : > { %1229 = vmatpush3.bf16.msra.mxu0 %v672_v18  ;;  %1195 = vmatpush3.bf16.msra.mxu1 %v350_v15 }
  0x9e   : > { %1234 = vmatprep.subr.bf16.mxu0 %v750_v20  ;;  %1196 = vmatprep.subr.bf16.mxu1 %v352_v21 }
  0x9f   : > { %1198 = vmatprep.mubr.msk.bf16.mxu1 %vm211_vm0, %v1310_v22  ;;  %v432_v29 = vpop.permute.xlu0 %431  ;;  %v832_v33 = vpop.permute.xlu1 %831 }
  0xa1   : > { %1197 = vmatpush3.bf16.msra.mxu1 %v352_v21 }
  0xa2   : > { %1202 = vmatprep.subr.bf16.mxu1 %v430_v23 }
  0xa4   : > { %1231 = vmatmul.mubr.msk.bf16.vlgmr.msra.gmra.mrb[0].mxu0 %vm211_vm0, %v1309_v24 }
  0xa5   : > { %1235 = vmatpush3.bf16.msra.mxu0 %v750_v20  ;;  %1238 = vmatprep.mubr.msk.bf16.mxu0 %vm211_vm0, %v1312_v25 }
  0xa6   : > { %1236 = vmatprep.subr.bf16.mxu0 %v752_v26 }
  0xa8   : > { %1199 = vmatmul.mubr.msk.bf16.vlgmr.msra.gmra.mrb[0].mxu1 %vm211_vm0, %v1311_v27 }
  0xa9   : > { %1237 = vmatpush3.bf16.msra.mxu0 %v752_v26  ;;  %1203 = vmatpush3.bf16.msra.mxu1 %v430_v23 }
  0xaa   : > { %1242 = vmatprep.subr.bf16.mxu0 %v830_v28  ;;  %1204 = vmatprep.subr.bf16.mxu1 %v432_v29 }
  0xab   : > { %1206 = vmatprep.mubr.msk.bf16.mxu1 %vm211_vm0, %v1314_v30 }
  0xad   : > { %1205 = vmatpush3.bf16.msra.mxu1 %v432_v29 }
  0xb0   : > { %1239 = vmatmul.mubr.msk.bf16.vlgmr.msra.gmra.mrb[0].mxu0 %vm211_vm0, %v1313_v31 }
  0xb1   : > { %1243 = vmatpush3.bf16.msra.mxu0 %v830_v28  ;;  %1246 = vmatprep.mubr.msk.bf16.mxu0 %vm211_vm0, %v1316_v32 }
  0xb2   : > { %1244 = vmatprep.subr.bf16.mxu0 %v832_v33 }
  0xb4   : > { %1207 = vmatmul.mubr.msk.bf16.vlgmr.msra.gmra.mrb[0].mxu1 %vm211_vm0, %v1315_v34 }
  0xb5   : > { %1245 = vmatpush3.bf16.msra.mxu0 %v832_v33 }
  0xbc   : > { %1247 = vmatmul.mubr.msk.bf16.vlgmr.msra.gmra.mrb[0].mxu0 %vm211_vm0, %v1317_v35 }
 0x187   : > { %v1208_v36 = vpop.f32.mrb[0].mxu1 }
 0x188   : > { %v475_v37 = vpop.f32.mrb[1].mxu1 }
 0x189   : > { %v1209_v38 = vpop.f32.mrb[2].mxu1 }
 0x18a   : > { %v478_v39 = vpop.f32.mrb[3].mxu1 }
 0x18f   : > { %v1248_v40 = vpop.f32.mrb[0].mxu0 }
 0x190   : > { %v1453_v42 = vadd.f32 %v1248_v40, %v1208_v36  ;;  %v875_v43 = vpop.f32.mrb[1].mxu0 }
 0x191   : > { %v1455_v44 = vadd.f32 %v875_v43, %v475_v37  ;;  %v1249_v45 = vpop.f32.mrb[2].mxu0 }
 0x192   : > { %v1457_v46 = vadd.f32 %v1249_v45, %v1209_v38  ;;  %v878_v47 = vpop.f32.mrb[3].mxu0  ;;  %v903_v48 = vmul.f32 %v1453_v42, %v1129_v41 }
 0x193   : > { %v1460_v49 = vadd.f32 %v878_v47, %v478_v39  ;;  %v901_v50 = vmul.f32 %v1455_v44, %v1129_v41 }
 0x194   : > { %v912_v51 = vsel %vm905_vm1, %v903_v48, 0.0  ;;  %v904_v56 = vmul.f32 %v1457_v46, %v1129_v41  ;;  %v924_v58 = vmul.f32 %v1453_v42, %v903_v48 }
 0x195   : > { %913 = vadd.xlane.f32.xlu0 %v912_v51  ;;  %v902_v52 = vmul.f32 %v1460_v49, %v1129_v41  ;;  %v922_v54 = vmul.f32 %v1455_v44, %v901_v50  ;;  %v906_v55 = vsel %vm905_vm1, %v901_v50, 0.0 }
 0x196   : > { %v915_v59 = vsel %vm905_vm1, %v904_v56, 0.0  ;;  %v932_v61 = vsel %vm905_vm1, %v924_v58, 0.0  ;;  %v925_v63 = vmul.f32 %v1457_v46, %v904_v56 }
 0x197   : > { %v909_v53 = vsel %vm905_vm1, %v902_v52, 0.0  ;;  %v926_v57 = vsel %vm905_vm1, %v922_v54, 0.0  ;;  %v923_v60 = vmul.f32 %v1460_v49, %v902_v52 }
 0x198   : > { %910 = vadd.xlane.f32.xlu1 %v909_v53  ;;  %v935_v0 = vsel %vm905_vm1, %v925_v63, 0.0 }
 0x199   : > { %907 = vadd.xlane.f32.xlu0 %v906_v55  ;;  %v929_v62 = vsel %vm905_vm1, %v923_v60, 0.0 }
 0x19c   : > { %927 = vadd.xlane.f32.xlu1 %v926_v57 }
 0x19d   : > { %916 = vadd.xlane.f32.xlu0 %v915_v59 }
 0x1a0   : > { %933 = vadd.xlane.f32.xlu1 %v932_v61 }
 0x1a1   : > { %930 = vadd.xlane.f32.xlu0 %v929_v62 }
 0x1a5   : > { %936 = vadd.xlane.f32.xlu0 %v935_v0 }
 0x222   : > { %v914_v1 = vpop.xlane.xlu0 %913 }
 0x223   : > { %v920_v7 = vmul.f32 0.0625, %v914_v1 }
 0x225   : > { %v911_v2 = vpop.xlane.xlu1 %910  ;;  %v944_v13 = vmul.f32 %v920_v7, %v920_v7  ;;  %v952_v36 = vsub.f32 %v1453_v42, %v920_v7 }
 0x226   : > { %v908_v3 = vpop.xlane.xlu0 %907  ;;  %v919_v10 = vmul.f32 0.0625, %v911_v2 }
 0x227   : > { %v918_v4 = vmul.f32 0.0625, %v908_v3 }
 0x228   : > { %v943_v17 = vmul.f32 %v919_v10, %v919_v10  ;;  %v951_v39 = vsub.f32 %v1460_v49, %v919_v10 }
 0x229   : > { %v942_v5 = vmul.f32 %v918_v4, %v918_v4  ;;  %v928_v6 = vpop.xlane.xlu1 %927  ;;  %v950_v33 = vsub.f32 %v1455_v44, %v918_v4 }
 0x22a   : > { %v938_v8 = vmul.f32 0.0625, %v928_v6  ;;  %v917_v9 = vpop.xlane.xlu0 %916 }
 0x22b   : > { %v921_v18 = vmul.f32 0.0625, %v917_v9 }
 0x22c   : > { %v946_v11 = vsub.f32 %v938_v8, %v942_v5 }
 0x22d   : > { %v934_v12 = vpop.xlane.xlu1 %933  ;;  %v945_v25 = vmul.f32 %v921_v18, %v921_v18  ;;  %v953_v47 = vsub.f32 %v1457_v46, %v921_v18 }
 0x22e   : > { %v954_v14 = vmax.f32 %v946_v11, 0.0  ;;  %v940_v15 = vmul.f32 0.0625, %v934_v12  ;;  %v931_v16 = vpop.xlane.xlu0 %930 }
 0x22f   : > { %v939_v19 = vmul.f32 0.0625, %v931_v16 }
 0x230   : > { %v958_v20 = vadd.f32 1e-05, %v954_v14  ;;  %v948_v21 = vsub.f32 %v940_v15, %v944_v13 }
 0x231   : > { %v947_v22 = vsub.f32 %v939_v19, %v943_v17 }
 0x232   : > { %1318 = vrsqrt.f32 %v958_v20  ;;  %v956_v23 = vmax.f32 %v948_v21, 0.0  ;;  %v937_v24 = vpop.xlane.xlu0 %936 }
 0x233   : > { %v955_v26 = vmax.f32 %v947_v22, 0.0  ;;  %v941_v27 = vmul.f32 0.0625, %v937_v24 }
 0x234   : > { %v960_v28 = vadd.f32 1e-05, %v956_v23 }
 0x235   : > { %v959_v29 = vadd.f32 1e-05, %v955_v26  ;;  %v949_v30 = vsub.f32 %v941_v27, %v945_v25 }
 0x236   : > { %1320 = vrsqrt.f32 %v960_v28 }
 0x237   : > { %1322 = vrsqrt.f32 %v959_v29  ;;  %v957_v31 = vmax.f32 %v949_v30, 0.0 }
 0x239   : > { %v961_v32 = vadd.f32 1e-05, %v957_v31 }
 0x23b   : > { %1324 = vrsqrt.f32 %v961_v32 }
 0x23c   : > { %v1319_v34 = vpop.eup %1318 }
 0x23d   : > { %v966_v35 = vmul.f32 %v1319_v34, %v950_v33 }
 0x23f   : > { %v970_v37 = vmax.f32 %v966_v35, 0.0 }
 0x240   : > { %v1321_v38 = vpop.eup %1320 }
 0x241   : > { %v1323_v40 = vpop.eup %1322  ;;  %v1138_v41 = vpack.c.bf16 %v970_v37, %v970_v37  ;;  %v968_v43 = vmul.f32 %v1321_v38, %v952_v36 }
 0x242   : > { %v967_v45 = vmul.f32 %v1323_v40, %v951_v39 }
 0x243   : > { %991 = vst.msk [vmem:[%s170_s18] sm:$0xf] %vm990_vm2, %v1138_v41  ;;  %v972_v44 = vmax.f32 %v968_v43, 0.0 }
 0x244   : > { %v971_v42 = vmax.f32 %v967_v45, 0.0 }
 0x245   : > { %v1325_v48 = vpop.eup %1324  ;;  %v1140_v50 = vpack.c.bf16 %v972_v44, %v972_v44 }
 0x246   : > { %v1139_v51 = vpack.c.bf16 %v971_v42, %v971_v42  ;;  %v969_v49 = vmul.f32 %v1325_v48, %v953_v47 }
 0x247   : > { %993 = vst.msk [vmem:[%s170_s18 + $0x8] sm:$0xf] %vm990_vm2, %v1140_v50 }
 0x248   : > { %992 = vst.msk [vmem:[%s170_s18 + $0x4] sm:$0xf] %vm990_vm2, %v1139_v51  ;;  %v973_v52 = vmax.f32 %v969_v49, 0.0 }
 0x24a   : > { %v1141_v53 = vpack.c.bf16 %v973_v52, %v973_v52 }
 0x24c   : > { %994 = vst.msk [vmem:[%s170_s18 + $0xc] sm:$0xf] %vm990_vm2, %v1141_v53 }
 0x24d PF: > { %s13_s12 = sadd.s32 1, %s1332_s12  }
 0x24e   : > { %p10_p4 = scmp.ge.s32.totalorder %s13_s12, 4  }
 0x250   :  { %12 = sbr.rel (!%p10_p4) target bundleno = 1 (0x1), region = 70 }

// kernel: generator_forward.14
= control target key start
LH: loop header
LB: loop body
LE: loop exit
PB: predicated region body
PF: predicated region fallthrough
CT: control target
= control target key end

     0   :  { %s1446_s15 = smov 0   ;;  %s1578_s0 = inlined_call_operand.vmem [shape: bf16[9,32,32], index: 0, kind: input, shape index: {}]   ;;  %s1579_s1 = inlined_call_operand.vmem [shape: bf16[2,32,128], index: 1, kind: input, shape index: {}]   ;;  %s1580_s2 = inlined_call_operand.vmem [shape: f32[1,24], index: 2, kind: input, shape index: {}]   ;;  %s1581_s3 = inlined_call_operand.vmem [shape: bf16[2,32,24], index: 3, kind: input, shape index: {}]   ;;  %s1582_s4 = inlined_call_operand.vmem [shape: bf16[2,32,24], index: 4, kind: output, shape index: {}]  }
   0x1 LB: > { %s1117_s16 = sadd.s32 4294967295, %s1411_s15   ;;  %p1121_p0 = scmp.ge.s32.totalorder %s1411_s15, 1  ;;  %s1411_s15 = sphi %s1446_s15, %s14_s15  }
   0x2   : > { %p172_p1 = scmp.lt.s32.totalorder %s1411_s15, 3 }
   0x4   : > { %p173_p2 = pnand %p1121_p0, %p172_p1 }
   0x5   : > { %p203_p3 = scmp.lt.s32.totalorder (!%p173_p2), %s1117_s16, 1  ;;  %vm258_vm0 = vcmask (!%p173_p2), 261120   ;;  %v1379_v0 = vld [vmem:[%s1578_s0 + $0x40] sm:$0xff] (!%p173_p2)   ;;  %v1381_v1 = vld [vmem:[%s1578_s0 + $0x10] sm:$0xff] (!%p173_p2)   ;;  %s1413_s25 = smov (!%p173_p2), 121   ;;  %v1380_v8 = vld [vmem:[%s1578_s0 + $0x48] sm:$0xff] (!%p173_p2)  }
   0x6   : > { %176 = sbr.rel (%p173_p2) target bundleno = 589 (0x24d), region = 36  ;;  %1293 = vmatprep.mubr.msk.bf16.mxu0 (!%p173_p2), %vm258_vm0, %v1379_v0  ;;  %1261 = vmatprep.mubr.msk.bf16.mxu1 (!%p173_p2), %vm258_vm0, %v1381_v1  ;;  %s1414_s26 = smov (!%p173_p2), 127   ;;  %v1383_v11 = vld [vmem:[%s1578_s0 + $0x50] sm:$0xff] (!%p173_p2)   ;;  %v1382_v12 = vld [vmem:[%s1578_s0 + $0x18] sm:$0xff] (!%p173_p2)   ;;  %v1385_v14 = vld [vmem:[%s1578_s0] sm:$0xff] (!%p173_p2)   ;;  %vm952_vm1 = vcmask (!%p173_p2), 195584  }
   0x7   : > { %s1415_s27 = smov (!%p173_p2), 120   ;;  %s1416_s28 = smov (!%p173_p2), 116   ;;  %v1384_v16 = vld [vmem:[%s1578_s0 + $0x58] sm:$0xff] (!%p173_p2)   ;;  %v1387_v17 = vld [vmem:[%s1578_s0 + $0x60] sm:$0xff] (!%p173_p2)   ;;  %v1386_v19 = vld [vmem:[%s1578_s0 + $0x8] sm:$0xff] (!%p173_p2)   ;;  %vm1045_vm2 = vcmask (!%p173_p2), 191488  }
   0x8   : > { %s1417_s29 = smov (!%p173_p2), 126   ;;  %s1418_s30 = smov (!%p173_p2), 115   ;;  %v1389_v22 = vld [vmem:[%s1578_s0 + $0x20] sm:$0xff] (!%p173_p2)   ;;  %v1388_v24 = vld [vmem:[%s1578_s0 + $0x68] sm:$0xff] (!%p173_p2)   ;;  %v1391_v25 = vld [vmem:[%s1578_s0 + $0x70] sm:$0xff] (!%p173_p2)  }
   0x9   : > { %s1419_s5 = smov (!%p173_p2), 122   ;;  %s1420_s6 = smov (!%p173_p2), 114   ;;  %v1390_v27 = vld [vmem:[%s1578_s0 + $0x28] sm:$0xff] (!%p173_p2)   ;;  %v1393_v30 = vld [vmem:[%s1578_s0 + $0x30] sm:$0xff] (!%p173_p2)   ;;  %v1392_v31 = vld [vmem:[%s1578_s0 + $0x78] sm:$0xff] (!%p173_p2)  }
   0xa   : > { %v1395_v32 = vld [vmem:[%s1578_s0 + $0x80] sm:$0xff] (!%p173_p2)   ;;  %v1394_v34 = vld [vmem:[%s1578_s0 + $0x38] sm:$0xff] (!%p173_p2)   ;;  %v1396_v35 = vld [vmem:[%s1578_s0 + $0x88] sm:$0xff] (!%p173_p2)  }
   0xb   : > { %v1198_v41 = vld [vmem:[%s1580_s2] ss:$0 sm:$0xff] (!%p173_p2) }
   0xd   : > { %s1584_s16 = smov (!%p203_p3, %s1117_s16), 1 }
   0xe   : > { %s1458_s19 = sshll.u32 %s1584_s16, 4 }
   0xf   : > { %s207_s24 = scalar_lea.vmem %s1579_s1, %s1458_s19  ;;  %s212_s21 = scalar_lea.vmem %s1581_s3, %s1458_s19 }
  0x10   : > { %v1377_v2 = vld [vmem:[%s207_s24] sm:$0xff]   ;;  %v1378_v3 = vld [vmem:[%s207_s24 + $0x8] sm:$0xff]   ;;  %s217_s24 = scalar_lea.vmem %s1582_s4, %s1458_s19 }
  0x11   : > { %556 = vrot.lane.b32.xlu0 %v1377_v2, %s1413_s25  ;;  %252 = vrot.lane.b32.xlu1 %v1377_v2, %s1414_s26 }
  0x15   : > { %558 = vrot.lane.b32.xlu0 %v1378_v3, %s1413_s25  ;;  %636 = vrot.lane.b32.xlu1 %v1377_v2, %s1415_s27 }
  0x19   : > { %254 = vrot.lane.b32.xlu0 %v1378_v3, %s1414_s26  ;;  %638 = vrot.lane.b32.xlu1 %v1378_v3, %s1415_s27 }
  0x1d   : > { %716 = vrot.lane.b32.xlu0 %v1377_v2, %s1416_s28  ;;  %718 = vrot.lane.b32.xlu1 %v1378_v3, %s1416_s28 }
  0x21   : > { %396 = vrot.lane.b32.xlu0 %v1377_v2, %s1417_s29  ;;  %796 = vrot.lane.b32.xlu1 %v1377_v2, %s1418_s30 }
  0x25   : > { %398 = vrot.lane.b32.xlu0 %v1378_v3, %s1417_s29  ;;  %798 = vrot.lane.b32.xlu1 %v1378_v3, %s1418_s30 }
  0x29   : > { %476 = vrot.lane.b32.xlu0 %v1377_v2, %s1419_s5  ;;  %876 = vrot.lane.b32.xlu1 %v1377_v2, %s1420_s6 }
  0x2d   : > { %478 = vrot.lane.b32.xlu0 %v1378_v3, %s1419_s5  ;;  %878 = vrot.lane.b32.xlu1 %v1378_v3, %s1420_s6 }
  0x83   : > { %v557_v4 = vpop.permute.xlu0 %556  ;;  %v253_v5 = vpop.permute.xlu1 %252 }
  0x84   : > { %1289 = vmatprep.subr.bf16.mxu0 %v557_v4  ;;  %1257 = vmatprep.subr.bf16.mxu1 %v253_v5 }
  0x85   : > { %1290 = vmatpush3.bf16.msra.mxu0 %v557_v4  ;;  %1258 = vmatpush3.bf16.msra.mxu1 %v253_v5 }
  0x87   : > { %v559_v6 = vpop.permute.xlu0 %558  ;;  %v637_v7 = vpop.permute.xlu1 %636 }
  0x88   : > { %1291 = vmatprep.subr.bf16.mxu0 %v559_v6 }
  0x89   : > { %1292 = vmatpush3.bf16.msra.mxu0 %v559_v6 }
  0x8a   : > { %1297 = vmatprep.subr.bf16.mxu0 %v637_v7 }
  0x8b   : > { %v255_v9 = vpop.permute.xlu0 %254  ;;  %v639_v10 = vpop.permute.xlu1 %638 }
  0x8c   : > { %1259 = vmatprep.subr.bf16.mxu1 %v255_v9  ;;  %1294 = vmatmul.mubr.msk.bf16.vlgmr.msra.gmra.mrb[0].mxu0 %vm258_vm0, %v1380_v8 }
  0x8d   : > { %1260 = vmatpush3.bf16.msra.mxu1 %v255_v9  ;;  %1298 = vmatpush3.bf16.msra.mxu0 %v637_v7 }
  0x8e   : > { %1299 = vmatprep.subr.bf16.mxu0 %v639_v10  ;;  %1265 = vmatprep.subr.bf16.mxu1 %v1377_v2 }
  0x8f   : > { %v717_v13 = vpop.permute.xlu0 %716  ;;  %1301 = vmatprep.mubr.msk.bf16.mxu0 %vm258_vm0, %v1383_v11  ;;  %v719_v18 = vpop.permute.xlu1 %718 }
  0x90   : > { %1262 = vmatmul.mubr.msk.bf16.vlgmr.msra.gmra.mrb[0].mxu1 %vm258_vm0, %v1382_v12 }
  0x91   : > { %1300 = vmatpush3.bf16.msra.mxu0 %v639_v10  ;;  %1266 = vmatpush3.bf16.msra.mxu1 %v1377_v2 }
  0x92   : > { %1305 = vmatprep.subr.bf16.mxu0 %v717_v13  ;;  %1267 = vmatprep.subr.bf16.mxu1 %v1378_v3 }
  0x93   : > { %1269 = vmatprep.mubr.msk.bf16.mxu1 %vm258_vm0, %v1385_v14  ;;  %v397_v15 = vpop.permute.xlu0 %396  ;;  %v797_v20 = vpop.permute.xlu1 %796 }
  0x95   : > { %1268 = vmatpush3.bf16.msra.mxu1 %v1378_v3 }
  0x96   : > { %1273 = vmatprep.subr.bf16.mxu1 %v397_v15 }
  0x97   : > { %v399_v21 = vpop.permute.xlu0 %398  ;;  %v799_v26 = vpop.permute.xlu1 %798 }
  0x98   : > { %1302 = vmatmul.mubr.msk.bf16.vlgmr.msra.gmra.mrb[0].mxu0 %vm258_vm0, %v1384_v16 }
  0x99   : > { %1306 = vmatpush3.bf16.msra.mxu0 %v717_v13  ;;  %1309 = vmatprep.mubr.msk.bf16.mxu0 %vm258_vm0, %v1387_v17 }
  0x9a   : > { %1307 = vmatprep.subr.bf16.mxu0 %v719_v18 }
  0x9b   : > { %v477_v23 = vpop.permute.xlu0 %476  ;;  %v877_v28 = vpop.permute.xlu1 %876 }
  0x9c   : > { %1270 = vmatmul.mubr.msk.bf16.vlgmr.msra.gmra.mrb[0].mxu1 %vm258_vm0, %v1386_v19 }
  0x9d   : > { %1308 = vmatpush3.bf16.msra.mxu0 %v719_v18  ;;  %1274 = vmatpush3.bf16.msra.mxu1 %v397_v15 }
  0x9e   : > { %1313 = vmatprep.subr.bf16.mxu0 %v797_v20  ;;  %1275 = vmatprep.subr.bf16.mxu1 %v399_v21 }
  0x9f   : > { %1277 = vmatprep.mubr.msk.bf16.mxu1 %vm258_vm0, %v1389_v22  ;;  %v479_v29 = vpop.permute.xlu0 %478  ;;  %v879_v33 = vpop.permute.xlu1 %878 }
  0xa1   : > { %1276 = vmatpush3.bf16.msra.mxu1 %v399_v21 }
  0xa2   : > { %1281 = vmatprep.subr.bf16.mxu1 %v477_v23 }
  0xa4   : > { %1310 = vmatmul.mubr.msk.bf16.vlgmr.msra.gmra.mrb[0].mxu0 %vm258_vm0, %v1388_v24 }
  0xa5   : > { %1314 = vmatpush3.bf16.msra.mxu0 %v797_v20  ;;  %1317 = vmatprep.mubr.msk.bf16.mxu0 %vm258_vm0, %v1391_v25 }
  0xa6   : > { %1315 = vmatprep.subr.bf16.mxu0 %v799_v26 }
  0xa8   : > { %1278 = vmatmul.mubr.msk.bf16.vlgmr.msra.gmra.mrb[0].mxu1 %vm258_vm0, %v1390_v27 }
  0xa9   : > { %1316 = vmatpush3.bf16.msra.mxu0 %v799_v26  ;;  %1282 = vmatpush3.bf16.msra.mxu1 %v477_v23 }
  0xaa   : > { %1321 = vmatprep.subr.bf16.mxu0 %v877_v28  ;;  %1283 = vmatprep.subr.bf16.mxu1 %v479_v29 }
  0xab   : > { %1285 = vmatprep.mubr.msk.bf16.mxu1 %vm258_vm0, %v1393_v30 }
  0xad   : > { %1284 = vmatpush3.bf16.msra.mxu1 %v479_v29 }
  0xb0   : > { %1318 = vmatmul.mubr.msk.bf16.vlgmr.msra.gmra.mrb[0].mxu0 %vm258_vm0, %v1392_v31 }
  0xb1   : > { %1322 = vmatpush3.bf16.msra.mxu0 %v877_v28  ;;  %1325 = vmatprep.mubr.msk.bf16.mxu0 %vm258_vm0, %v1395_v32  ;;  %v1213_v32 = vld [vmem:[%s212_s21] sm:$0xff]  }
  0xb2   : > { %1323 = vmatprep.subr.bf16.mxu0 %v879_v33 }
  0xb4   : > { %1286 = vmatmul.mubr.msk.bf16.vlgmr.msra.gmra.mrb[0].mxu1 %vm258_vm0, %v1394_v34 }
  0xb5   : > { %1324 = vmatpush3.bf16.msra.mxu0 %v879_v33 }
  0xbc   : > { %1326 = vmatmul.mubr.msk.bf16.vlgmr.msra.gmra.mrb[0].mxu0 %vm258_vm0, %v1396_v35  ;;  %v1214_v35 = vunpack.c.l.bf16 %v1213_v32 }
 0x187   : > { %v1287_v36 = vpop.f32.mrb[0].mxu1 }
 0x188   : > { %v522_v37 = vpop.f32.mrb[1].mxu1 }
 0x189   : > { %v1288_v38 = vpop.f32.mrb[2].mxu1 }
 0x18a   : > { %v525_v39 = vpop.f32.mrb[3].mxu1 }
 0x18f   : > { %v1327_v40 = vpop.f32.mrb[0].mxu0 }
 0x190   : > { %v1535_v42 = vadd.f32 %v1327_v40, %v1287_v36  ;;  %v922_v43 = vpop.f32.mrb[1].mxu0 }
 0x191   : > { %v1537_v44 = vadd.f32 %v922_v43, %v522_v37  ;;  %v1328_v45 = vpop.f32.mrb[2].mxu0  ;;  %v1220_v37 = vld [vmem:[%s212_s21 + $0x8] sm:$0xff]  }
 0x192   : > { %v1539_v46 = vadd.f32 %v1328_v45, %v1288_v38  ;;  %v925_v47 = vpop.f32.mrb[3].mxu0  ;;  %v950_v48 = vmul.f32 %v1535_v42, %v1198_v41 }
 0x193   : > { %v1542_v49 = vadd.f32 %v925_v47, %v525_v39  ;;  %v948_v50 = vmul.f32 %v1537_v44, %v1198_v41  ;;  %v1215_v47 = vunpack.c.h.bf16 %v1213_v32 }
 0x194   : > { %v959_v51 = vsel %vm952_vm1, %v950_v48, 0.0  ;;  %v951_v56 = vmul.f32 %v1539_v46, %v1198_v41  ;;  %v971_v58 = vmul.f32 %v1535_v42, %v950_v48 }
 0x195   : > { %960 = vadd.xlane.f32.xlu0 %v959_v51  ;;  %v949_v52 = vmul.f32 %v1542_v49, %v1198_v41  ;;  %v969_v54 = vmul.f32 %v1537_v44, %v948_v50  ;;  %v953_v55 = vsel %vm952_vm1, %v948_v50, 0.0  ;;  %v1218_v41 = vunpack.c.l.bf16 %v1220_v37 }
 0x196   : > { %v962_v59 = vsel %vm952_vm1, %v951_v56, 0.0  ;;  %v979_v61 = vsel %vm952_vm1, %v971_v58, 0.0  ;;  %v972_v63 = vmul.f32 %v1539_v46, %v951_v56 }
 0x197   : > { %v956_v53 = vsel %vm952_vm1, %v949_v52, 0.0  ;;  %v973_v57 = vsel %vm952_vm1, %v969_v54, 0.0  ;;  %v970_v60 = vmul.f32 %v1542_v49, %v949_v52  ;;  %v1219_v54 = vunpack.c.h.bf16 %v1220_v37 }
 0x198   : > { %957 = vadd.xlane.f32.xlu1 %v956_v53  ;;  %v982_v0 = vsel %vm952_vm1, %v972_v63, 0.0 }
 0x199   : > { %954 = vadd.xlane.f32.xlu0 %v953_v55  ;;  %v976_v62 = vsel %vm952_vm1, %v970_v60, 0.0 }
 0x19c   : > { %974 = vadd.xlane.f32.xlu1 %v973_v57 }
 0x19d   : > { %963 = vadd.xlane.f32.xlu0 %v962_v59 }
 0x1a0   : > { %980 = vadd.xlane.f32.xlu1 %v979_v61 }
 0x1a1   : > { %977 = vadd.xlane.f32.xlu0 %v976_v62 }
 0x1a5   : > { %983 = vadd.xlane.f32.xlu0 %v982_v0 }
 0x222   : > { %v961_v1 = vpop.xlane.xlu0 %960 }
 0x223   : > { %v967_v7 = vmul.f32 0.0625, %v961_v1 }
 0x225   : > { %v958_v2 = vpop.xlane.xlu1 %957  ;;  %v991_v13 = vmul.f32 %v967_v7, %v967_v7  ;;  %v999_v39 = vsub.f32 %v1535_v42, %v967_v7 }
 0x226   : > { %v955_v3 = vpop.xlane.xlu0 %954  ;;  %v966_v10 = vmul.f32 0.0625, %v958_v2 }
 0x227   : > { %v965_v4 = vmul.f32 0.0625, %v955_v3 }
 0x228   : > { %v990_v17 = vmul.f32 %v966_v10, %v966_v10  ;;  %v998_v45 = vsub.f32 %v1542_v49, %v966_v10 }
 0x229   : > { %v989_v5 = vmul.f32 %v965_v4, %v965_v4  ;;  %v975_v6 = vpop.xlane.xlu1 %974  ;;  %v997_v34 = vsub.f32 %v1537_v44, %v965_v4 }
 0x22a   : > { %v985_v8 = vmul.f32 0.0625, %v975_v6  ;;  %v964_v9 = vpop.xlane.xlu0 %963 }
 0x22b   : > { %v968_v18 = vmul.f32 0.0625, %v964_v9 }
 0x22c   : > { %v993_v11 = vsub.f32 %v985_v8, %v989_v5 }
 0x22d   : > { %v981_v12 = vpop.xlane.xlu1 %980  ;;  %v992_v25 = vmul.f32 %v968_v18, %v968_v18  ;;  %v1000_v42 = vsub.f32 %v1539_v46, %v968_v18 }
 0x22e   : > { %v1001_v14 = vmax.f32 %v993_v11, 0.0  ;;  %v987_v15 = vmul.f32 0.0625, %v981_v12  ;;  %v978_v16 = vpop.xlane.xlu0 %977 }
 0x22f   : > { %v986_v19 = vmul.f32 0.0625, %v978_v16 }
 0x230   : > { %v1005_v20 = vadd.f32 1e-05, %v1001_v14  ;;  %v995_v21 = vsub.f32 %v987_v15, %v991_v13 }
 0x231   : > { %v994_v22 = vsub.f32 %v986_v19, %v990_v17 }
 0x232   : > { %1397 = vrsqrt.f32 %v1005_v20  ;;  %v1003_v23 = vmax.f32 %v995_v21, 0.0  ;;  %v984_v24 = vpop.xlane.xlu0 %983 }
 0x233   : > { %v1002_v26 = vmax.f32 %v994_v22, 0.0  ;;  %v988_v27 = vmul.f32 0.0625, %v984_v24 }
 0x234   : > { %v1007_v28 = vadd.f32 1e-05, %v1003_v23 }
 0x235   : > { %v1006_v29 = vadd.f32 1e-05, %v1002_v26  ;;  %v996_v30 = vsub.f32 %v988_v27, %v992_v25 }
 0x236   : > { %1399 = vrsqrt.f32 %v1007_v28 }
 0x237   : > { %1401 = vrsqrt.f32 %v1006_v29  ;;  %v1004_v31 = vmax.f32 %v996_v30, 0.0 }
 0x239   : > { %v1008_v33 = vadd.f32 1e-05, %v1004_v31 }
 0x23b   : > { %1403 = vrsqrt.f32 %v1008_v33 }
 0x23c   : > { %v1398_v36 = vpop.eup %1397 }
 0x23d   : > { %v1013_v38 = vmul.f32 %v1398_v36, %v997_v34 }
 0x23f   : > { %v1025_v40 = vadd.f32 %v1214_v35, %v1013_v38 }
 0x240   : > { %v1400_v43 = vpop.eup %1399 }
 0x241   : > { %v1402_v48 = vpop.eup %1401  ;;  %v1208_v44 = vpack.c.bf16 %v1025_v40, %v1025_v40  ;;  %v1015_v50 = vmul.f32 %v1400_v43, %v999_v39 }
 0x242   : > { %v1014_v51 = vmul.f32 %v1402_v48, %v998_v45 }
 0x243   : > { %1046 = vst.msk [vmem:[%s217_s24] sm:$0xf] %vm1045_vm2, %v1208_v44  ;;  %v1027_v52 = vadd.f32 %v1218_v41, %v1015_v50 }
 0x244   : > { %v1026_v53 = vadd.f32 %v1215_v47, %v1014_v51 }
 0x245   : > { %v1404_v55 = vpop.eup %1403  ;;  %v1210_v56 = vpack.c.bf16 %v1027_v52, %v1027_v52 }
 0x246   : > { %v1209_v49 = vpack.c.bf16 %v1026_v53, %v1026_v53  ;;  %v1016_v57 = vmul.f32 %v1404_v55, %v1000_v42 }
 0x247   : > { %1048 = vst.msk [vmem:[%s217_s24 + $0x8] sm:$0xf] %vm1045_vm2, %v1210_v56 }
 0x248   : > { %1047 = vst.msk [vmem:[%s217_s24 + $0x4] sm:$0xf] %vm1045_vm2, %v1209_v49  ;;  %v1028_v58 = vadd.f32 %v1219_v54, %v1016_v57 }
 0x24a   : > { %v1211_v59 = vpack.c.bf16 %v1028_v58, %v1028_v58 }
 0x24c   : > { %1049 = vst.msk [vmem:[%s217_s24 + $0xc] sm:$0xf] %vm1045_vm2, %v1211_v59 }
 0x24d PF: > { %s14_s15 = sadd.s32 1, %s1411_s15  }
 0x24e   : > { %p11_p4 = scmp.ge.s32.totalorder %s14_s15, 4  }
 0x250   :  { %13 = sbr.rel (!%p11_p4) target bundleno = 1 (0x1), region = 77 }

// kernel: generator_forward.17
= control target key start
LH: loop header
LB: loop body
LE: loop exit
PB: predicated region body
PF: predicated region fallthrough
CT: control target
= control target key end

     0   :  { %s1116_s12 = smov 0   ;;  %s1268_s0 = inlined_call_operand.vmem [shape: bf16[4,64,32], index: 0, kind: input, shape index: {}]   ;;  %s1269_s1 = inlined_call_operand.vmem [shape: bf16[2,32,128], index: 1, kind: input, shape index: {}]   ;;  %s1270_s2 = inlined_call_operand.vmem [shape: f32[1,20], index: 2, kind: input, shape index: {}]   ;;  %s1271_s3 = inlined_call_operand.vmem [shape: bf16[2,64,20], index: 3, kind: output, shape index: {}]  }
   0x1 LB: > { %s868_s13 = sadd.s32 4294967295, %s1091_s12   ;;  %p872_p0 = scmp.ge.s32.totalorder %s1091_s12, 1  ;;  %s1091_s12 = sphi %s1116_s12, %s13_s12  }
   0x2   : > { %p137_p1 = scmp.lt.s32.totalorder %s1091_s12, 3 }
   0x4   : > { %p138_p2 = pnand %p872_p0, %p137_p1 }
   0x5   : > { %p161_p3 = scmp.lt.s32.totalorder (!%p138_p2), %s868_s13, 1  ;;  %v1065_v0 = vld [vmem:[%s1268_s0 + $0x20] sm:$0xff] (!%p138_p2)   ;;  %vm229_vm0 = vcmask (!%p138_p2), 261120   ;;  %s1093_s22 = smov (!%p138_p2), 127   ;;  %v1066_v8 = vld [vmem:[%s1268_s0 + $0x28] sm:$0xff] (!%p138_p2)   ;;  %v1069_v9 = vld [vmem:[%s1268_s0 + $0x30] sm:$0xff] (!%p138_p2)  }
   0x6   : > { %141 = sbr.rel (%p138_p2) target bundleno = 580 (0x244), region = 32  ;;  %984 = vmatprep.mubr.msk.bf16.mxu1 (!%p138_p2), %vm229_vm0, %v1065_v0  ;;  %v1067_v1 = vld [vmem:[%s1268_s0 + $0x40] sm:$0xff] (!%p138_p2)   ;;  %s1094_s23 = smov (!%p138_p2), 123   ;;  %v1068_v11 = vld [vmem:[%s1268_s0 + $0x48] sm:$0xff] (!%p138_p2)   ;;  %v1071_v12 = vld [vmem:[%s1268_s0 + $0x50] sm:$0xff] (!%p138_p2)   ;;  %vm655_vm1 = vcmask (!%p138_p2), 162816  }
   0x7   : > { %1008 = vmatprep.mubr.msk.bf16.mxu0 (!%p138_p2), %vm229_vm0, %v1067_v1  ;;  %s1095_s24 = smov (!%p138_p2), 122   ;;  %v1070_v14 = vld [vmem:[%s1268_s0 + $0x38] sm:$0xff] (!%p138_p2)   ;;  %v1073_v15 = vld [vmem:[%s1268_s0] sm:$0xff] (!%p138_p2)   ;;  %v1074_v18 = vld [vmem:[%s1268_s0 + $0x8] sm:$0xff] (!%p138_p2)   ;;  %vm762_vm2 = vcmask (!%p138_p2), 158720  }
   0x8   : > { %v1072_v16 = vld [vmem:[%s1268_s0 + $0x58] sm:$0xff] (!%p138_p2)   ;;  %v1075_v17 = vld [vmem:[%s1268_s0 + $0x60] sm:$0xff] (!%p138_p2)   ;;  %v1077_v19 = vld [vmem:[%s1268_s0 + $0x10] sm:$0xff] (!%p138_p2)  }
   0x9   : > { %v1076_v20 = vld [vmem:[%s1268_s0 + $0x68] sm:$0xff] (!%p138_p2)   ;;  %v1079_v21 = vld [vmem:[%s1268_s0 + $0x70] sm:$0xff] (!%p138_p2)   ;;  %v1078_v22 = vld [vmem:[%s1268_s0 + $0x18] sm:$0xff] (!%p138_p2)  }
   0xa   : > { %v1080_v23 = vld [vmem:[%s1268_s0 + $0x78] sm:$0xff] (!%p138_p2)   ;;  %v935_v29 = vld [vmem:[%s1270_s2] ss:$0 sm:$0xff] (!%p138_p2) }
   0xd   : > { %s1273_s13 = smov (!%p161_p3, %s868_s13), 1 }
   0xe   : > { %s946_s16 = sshll.u32 %s1273_s13, 4  ;;  %s947_s30 = sshll.u32 %s1273_s13, 5 }
   0xf   : > { %s165_s21 = scalar_lea.vmem %s1269_s1, %s946_s16  ;;  %s170_s6 = scalar_lea.vmem %s1271_s3, %s947_s30 }
  0x10   : > { %v1063_v2 = vld [vmem:[%s165_s21] sm:$0xff]   ;;  %v1064_v3 = vld [vmem:[%s165_s21 + $0x8] sm:$0xff]  }
  0x11   : > { %223 = vrot.lane.b32.xlu0 %v1063_v2, %s1093_s22  ;;  %225 = vrot.lane.b32.xlu1 %v1064_v3, %s1093_s22 }
  0x15   : > { %435 = vrot.lane.b32.xlu0 %v1063_v2, %s1094_s23  ;;  %437 = vrot.lane.b32.xlu1 %v1064_v3, %s1094_s23 }
  0x19   : > { %555 = vrot.lane.b32.xlu0 %v1063_v2, %s1095_s24  ;;  %557 = vrot.lane.b32.xlu1 %v1064_v3, %s1095_s24 }
  0x83   : > { %v224_v4 = vpop.permute.xlu0 %223  ;;  %v226_v5 = vpop.permute.xlu1 %225 }
  0x84   : > { %980 = vmatprep.subr.bf16.mxu1 %v224_v4 }
  0x85   : > { %981 = vmatpush3.bf16.msra.mxu1 %v224_v4 }
  0x86   : > { %982 = vmatprep.subr.bf16.mxu1 %v226_v5 }
  0x87   : > { %v436_v6 = vpop.permute.xlu0 %435  ;;  %v438_v7 = vpop.permute.xlu1 %437 }
  0x88   : > { %1004 = vmatprep.subr.bf16.mxu0 %v436_v6 }
  0x89   : > { %983 = vmatpush3.bf16.msra.mxu1 %v226_v5  ;;  %1005 = vmatpush3.bf16.msra.mxu0 %v436_v6 }
  0x8a   : > { %1006 = vmatprep.subr.bf16.mxu0 %v438_v7  ;;  %992 = vmatprep.subr.bf16.mxu1 %v1063_v2 }
  0x8b   : > { %v556_v10 = vpop.permute.xlu0 %555  ;;  %v558_v13 = vpop.permute.xlu1 %557 }
  0x8c   : > { %985 = vmatmul.mubr.msk.bf16.vlgmr.msra.gmra.mrb[0].mxu1 %vm229_vm0, %v1066_v8 }
  0x8d   : > { %1007 = vmatpush3.bf16.msra.mxu0 %v438_v7  ;;  %993 = vmatpush3.bf16.msra.mxu1 %v1063_v2 }
  0x8e   : > { %1016 = vmatprep.subr.bf16.mxu0 %v556_v10  ;;  %988 = vmatprep.mubr.msk.bf16.mxu1 %vm229_vm0, %v1069_v9 }
  0x8f   : > { %994 = vmatprep.subr.bf16.mxu1 %v1064_v3 }
  0x90   : > { %1009 = vmatmul.mubr.msk.bf16.vlgmr.msra.gmra.mrb[0].mxu0 %vm229_vm0, %v1068_v11 }
  0x91   : > { %1017 = vmatpush3.bf16.msra.mxu0 %v556_v10  ;;  %1012 = vmatprep.mubr.msk.bf16.mxu0 %vm229_vm0, %v1071_v12 }
  0x92   : > { %1018 = vmatprep.subr.bf16.mxu0 %v558_v13  ;;  %995 = vmatpush3.bf16.msra.mxu1 %v1064_v3 }
  0x94   : > { %989 = vmatmul.mubr.msk.bf16.gmra.mrb[4].mxu1 %vm229_vm0, %v1070_v14 }
  0x95   : > { %1019 = vmatpush3.bf16.msra.mxu0 %v558_v13  ;;  %996 = vmatprep.mubr.msk.bf16.mxu1 %vm229_vm0, %v1073_v15 }
  0x98   : > { %1013 = vmatmul.mubr.msk.bf16.gmra.mrb[4].mxu0 %vm229_vm0, %v1072_v16 }
  0x99   : > { %1020 = vmatprep.mubr.msk.bf16.mxu0 %vm229_vm0, %v1075_v17 }
  0x9c   : > { %997 = vmatmul.mubr.msk.bf16.vlgmr.msra.gmra.mrb[0].mxu1 %vm229_vm0, %v1074_v18 }
  0x9d   : > { %1000 = vmatprep.mubr.msk.bf16.mxu1 %vm229_vm0, %v1077_v19 }
  0xa0   : > { %1021 = vmatmul.mubr.msk.bf16.vlgmr.msra.gmra.mrb[0].mxu0 %vm229_vm0, %v1076_v20 }
  0xa1   : > { %1024 = vmatprep.mubr.msk.bf16.mxu0 %vm229_vm0, %v1079_v21 }
  0xa4   : > { %1001 = vmatmul.mubr.msk.bf16.gmra.mrb[4].mxu1 %vm229_vm0, %v1078_v22 }
  0xa8   : > { %1025 = vmatmul.mubr.msk.bf16.gmra.mrb[4].mxu0 %vm229_vm0, %v1080_v23 }
 0x16f   : > { %v998_v24 = vpop.f32.mrb[0].mxu1 }
 0x170   : > { %v375_v25 = vpop.f32.mrb[1].mxu1 }
 0x171   : > { %v999_v26 = vpop.f32.mrb[2].mxu1 }
 0x172   : > { %v378_v27 = vpop.f32.mrb[3].mxu1 }
 0x173   : > { %v1022_v28 = vpop.f32.mrb[0].mxu0 }
 0x174   : > { %v1197_v30 = vadd.f32 %v1022_v28, %v998_v24  ;;  %v607_v31 = vpop.f32.mrb[1].mxu0 }
 0x175   : > { %v1199_v32 = vadd.f32 %v607_v31, %v375_v25  ;;  %v1023_v33 = vpop.f32.mrb[2].mxu0 }
 0x176   : > { %v1201_v34 = vadd.f32 %v1023_v33, %v999_v26  ;;  %v610_v35 = vpop.f32.mrb[3].mxu0  ;;  %v674_v36 = vmul.f32 %v1197_v30, %v935_v29 }
 0x177   : > { %v1204_v37 = vadd.f32 %v610_v35, %v378_v27  ;;  %v1002_v38 = vpop.f32.mrb[4].mxu1  ;;  %v653_v42 = vmul.f32 %v1199_v32, %v935_v29 }
 0x178   : > { %v391_v39 = vpop.f32.mrb[5].mxu1  ;;  %v676_v40 = vsel %vm655_vm1, %v674_v36, 0.0  ;;  %v684_v41 = vmul.f32 %v1197_v30, %v674_v36  ;;  %v675_v51 = vmul.f32 %v1201_v34, %v935_v29 }
 0x179   : > { %v1003_v43 = vpop.f32.mrb[6].mxu1  ;;  %677 = vadd.xlane.f32.xlu0 %v676_v40  ;;  %v654_v46 = vmul.f32 %v1204_v37, %v935_v29  ;;  %v656_v50 = vsel %vm655_vm1, %v653_v42, 0.0  ;;  %v664_v57 = vmul.f32 %v1199_v32, %v653_v42 }
 0x17a   : > { %v394_v44 = vpop.f32.mrb[7].mxu1  ;;  %v686_v45 = vsel %vm655_vm1, %v684_v41, 0.0  ;;  %v679_v59 = vsel %vm655_vm1, %v675_v51, 0.0  ;;  %v685_v60 = vmul.f32 %v1201_v34, %v675_v51 }
 0x17b   : > { %687 = vadd.xlane.f32.xlu1 %v686_v45  ;;  %v1026_v47 = vpop.f32.mrb[4].mxu0  ;;  %v659_v56 = vsel %vm655_vm1, %v654_v46, 0.0  ;;  %v666_v61 = vsel %vm655_vm1, %v664_v57, 0.0  ;;  %v665_v0 = vmul.f32 %v1204_v37, %v654_v46 }
 0x17c   : > { %v1211_v48 = vadd.f32 %v1026_v47, %v1002_v38  ;;  %v623_v49 = vpop.f32.mrb[5].mxu0  ;;  %v689_v63 = vsel %vm655_vm1, %v685_v60, 0.0 }
 0x17d   : > { %v1215_v52 = vadd.f32 %v623_v49, %v391_v39  ;;  %657 = vadd.xlane.f32.xlu0 %v656_v50  ;;  %v1027_v53 = vpop.f32.mrb[6].mxu0  ;;  %v669_v3 = vsel %vm655_vm1, %v665_v0, 0.0 }
 0x17e   : > { %v1217_v54 = vadd.f32 %v1027_v53, %v1003_v43  ;;  %v626_v55 = vpop.f32.mrb[7].mxu0  ;;  %v714_v62 = vmul.f32 %v1211_v48, %v935_v29 }
 0x17f   : > { %v1221_v58 = vadd.f32 %v626_v55, %v394_v44  ;;  %660 = vadd.xlane.f32.xlu1 %v659_v56  ;;  %v694_v2 = vmul.f32 %v1215_v52, %v935_v29 }
 0x180   : > { %v716_v1 = vsel %vm655_vm1, %v714_v62, 0.0  ;;  %v715_v4 = vmul.f32 %v1217_v54, %v935_v29  ;;  %v724_v10 = vmul.f32 %v1211_v48, %v714_v62 }
 0x181   : > { %680 = vadd.xlane.f32.xlu0 %v679_v59  ;;  %v696_v5 = vsel %vm655_vm1, %v694_v2, 0.0  ;;  %v704_v6 = vmul.f32 %v1215_v52, %v694_v2  ;;  %v695_v8 = vmul.f32 %v1221_v58, %v935_v29 }
 0x182   : > { %v719_v7 = vsel %vm655_vm1, %v715_v4, 0.0  ;;  %v726_v13 = vsel %vm655_vm1, %v724_v10, 0.0  ;;  %v725_v15 = vmul.f32 %v1217_v54, %v715_v4 }
 0x183   : > { %667 = vadd.xlane.f32.xlu1 %v666_v61  ;;  %v706_v9 = vsel %vm655_vm1, %v704_v6, 0.0  ;;  %v699_v11 = vsel %vm655_vm1, %v695_v8, 0.0  ;;  %v705_v12 = vmul.f32 %v1221_v58, %v695_v8 }
 0x184   : > { %v729_v16 = vsel %vm655_vm1, %v725_v15, 0.0 }
 0x185   : > { %690 = vadd.xlane.f32.xlu0 %v689_v63  ;;  %v709_v14 = vsel %vm655_vm1, %v705_v12, 0.0 }
 0x187   : > { %717 = vadd.xlane.f32.xlu1 %v716_v1 }
 0x189   : > { %670 = vadd.xlane.f32.xlu0 %v669_v3 }
 0x18b   : > { %697 = vadd.xlane.f32.xlu1 %v696_v5 }
 0x18d   : > { %720 = vadd.xlane.f32.xlu0 %v719_v7 }
 0x18f   : > { %707 = vadd.xlane.f32.xlu1 %v706_v9 }
 0x191   : > { %700 = vadd.xlane.f32.xlu0 %v699_v11 }
 0x193   : > { %727 = vadd.xlane.f32.xlu1 %v726_v13 }
 0x195   : > { %710 = vadd.xlane.f32.xlu0 %v709_v14 }
 0x199   : > { %730 = vadd.xlane.f32.xlu0 %v729_v16 }
 0x206   : > { %v678_v17 = vpop.xlane.xlu0 %677 }
 0x208   : > { %v688_v18 = vpop.xlane.xlu1 %687 }
 0x20a   : > { %v658_v19 = vpop.xlane.xlu0 %657 }
 0x20b   : > { %v682_v26 = vadd.f32 %v678_v17, %v658_v19 }
 0x20c   : > { %v661_v20 = vpop.xlane.xlu1 %660 }
 0x20e   : > { %v681_v21 = vpop.xlane.xlu0 %680 }
 0x20f   : > { %v683_v36 = vadd.f32 %v681_v21, %v661_v20 }
 0x210   : > { %v668_v22 = vpop.xlane.xlu1 %667 }
 0x211   : > { %v692_v35 = vadd.f32 %v688_v18, %v668_v22 }
 0x212   : > { %v691_v23 = vpop.xlane.xlu0 %690 }
 0x214   : > { %v718_v24 = vpop.xlane.xlu1 %717 }
 0x216   : > { %v671_v25 = vpop.xlane.xlu0 %670 }
 0x217   : > { %v693_v46 = vadd.f32 %v691_v23, %v671_v25 }
 0x218   : > { %v698_v27 = vpop.xlane.xlu1 %697 }
 0x219   : > { %v702_v28 = vadd.f32 %v698_v27, %v682_v26 }
 0x21a   : > { %v721_v29 = vpop.xlane.xlu0 %720 }
 0x21b   : > { %v722_v31 = vadd.f32 %v718_v24, %v702_v28 }
 0x21c   : > { %v708_v33 = vpop.xlane.xlu1 %707 }
 0x21d   : > { %v734_v39 = vmul.f32 0.015625, %v722_v31  ;;  %v712_v40 = vadd.f32 %v708_v33, %v692_v35 }
 0x21e   : > { %v701_v38 = vpop.xlane.xlu0 %700 }
 0x21f   : > { %v703_v41 = vadd.f32 %v701_v38, %v683_v36  ;;  %v738_v47 = vmul.f32 %v734_v39, %v734_v39  ;;  %v748_v1 = vsub.f32 %v1199_v32, %v734_v39  ;;  %v765_v2 = vsub.f32 %v1197_v30, %v734_v39 }
 0x220   : > { %v728_v42 = vpop.xlane.xlu1 %727  ;;  %v781_v3 = vsub.f32 %v1215_v52, %v734_v39  ;;  %v797_v4 = vsub.f32 %v1211_v48, %v734_v39 }
 0x221   : > { %v732_v43 = vadd.f32 %v728_v42, %v712_v40  ;;  %v723_v44 = vadd.f32 %v721_v29, %v703_v41 }
 0x222   : > { %v711_v45 = vpop.xlane.xlu0 %710 }
 0x223   : > { %v736_v49 = vmul.f32 0.015625, %v732_v43  ;;  %v735_v50 = vmul.f32 0.015625, %v723_v44  ;;  %v713_v53 = vadd.f32 %v711_v45, %v693_v46 }
 0x225   : > { %v740_v51 = vsub.f32 %v736_v49, %v738_v47  ;;  %v739_v60 = vmul.f32 %v735_v50, %v735_v50  ;;  %v749_v30 = vsub.f32 %v1204_v37, %v735_v50  ;;  %v766_v32 = vsub.f32 %v1201_v34, %v735_v50 }
 0x226   : > { %v731_v55 = vpop.xlane.xlu0 %730  ;;  %v782_v48 = vsub.f32 %v1221_v58, %v735_v50  ;;  %v798_v52 = vsub.f32 %v1217_v54, %v735_v50 }
 0x227   : > { %v742_v56 = vmax.f32 %v740_v51, 0.0  ;;  %v733_v57 = vadd.f32 %v731_v55, %v713_v53 }
 0x229   : > { %v744_v59 = vadd.f32 1e-05, %v742_v56  ;;  %v737_v61 = vmul.f32 0.015625, %v733_v57 }
 0x22b   : > { %1081 = vrsqrt.f32 %v744_v59  ;;  %v741_v62 = vsub.f32 %v737_v61, %v739_v60 }
 0x22d   : > { %v743_v63 = vmax.f32 %v741_v62, 0.0 }
 0x22f   : > { %v745_v0 = vadd.f32 1e-05, %v743_v63 }
 0x231   : > { %1083 = vrsqrt.f32 %v745_v0 }
 0x235   : > { %v1082_v5 = vpop.eup %1081 }
 0x236   : > { %v750_v6 = vmul.f32 %v1082_v5, %v748_v1  ;;  %v767_v7 = vmul.f32 %v1082_v5, %v765_v2  ;;  %v783_v8 = vmul.f32 %v1082_v5, %v781_v3  ;;  %v799_v9 = vmul.f32 %v1082_v5, %v797_v4 }
 0x238   : > { %v752_v10 = vmax.f32 %v750_v6, 0.0  ;;  %v769_v11 = vmax.f32 %v767_v7, 0.0  ;;  %v785_v12 = vmax.f32 %v783_v8, 0.0  ;;  %v801_v13 = vmax.f32 %v799_v9, 0.0 }
 0x23a   : > { %v948_v14 = vpack.c.bf16 %v752_v10, %v752_v10  ;;  %v950_v15 = vpack.c.bf16 %v769_v11, %v769_v11  ;;  %v952_v16 = vpack.c.bf16 %v785_v12, %v785_v12  ;;  %v954_v17 = vpack.c.bf16 %v801_v13, %v801_v13 }
 0x23b   : > { %v1084_v18 = vpop.eup %1083 }
 0x23c   : > { %763 = vst.msk [vmem:[%s170_s6] sm:$0xf] %vm762_vm2, %v948_v14  ;;  %779 = vst.msk [vmem:[%s170_s6 + $0x8] sm:$0xf] %vm762_vm2, %v950_v15  ;;  %v751_v37 = vmul.f32 %v1084_v18, %v749_v30  ;;  %v768_v19 = vmul.f32 %v1084_v18, %v766_v32  ;;  %v784_v34 = vmul.f32 %v1084_v18, %v782_v48 }
 0x23d   : > { %795 = vst.msk [vmem:[%s170_s6 + $0x10] sm:$0xf] %vm762_vm2, %v952_v16  ;;  %811 = vst.msk [vmem:[%s170_s6 + $0x18] sm:$0xf] %vm762_vm2, %v954_v17  ;;  %v800_v20 = vmul.f32 %v1084_v18, %v798_v52 }
 0x23e   : > { %v753_v58 = vmax.f32 %v751_v37, 0.0  ;;  %v770_v21 = vmax.f32 %v768_v19, 0.0  ;;  %v786_v54 = vmax.f32 %v784_v34, 0.0 }
 0x23f   : > { %v802_v22 = vmax.f32 %v800_v20, 0.0 }
 0x240   : > { %v949_v23 = vpack.c.bf16 %v753_v58, %v753_v58  ;;  %v951_v24 = vpack.c.bf16 %v770_v21, %v770_v21  ;;  %v953_v25 = vpack.c.bf16 %v786_v54, %v786_v54 }
 0x241   : > { %v955_v26 = vpack.c.bf16 %v802_v22, %v802_v22 }
 0x242   : > { %764 = vst.msk [vmem:[%s170_s6 + $0x4] sm:$0xf] %vm762_vm2, %v949_v23  ;;  %780 = vst.msk [vmem:[%s170_s6 + $0xc] sm:$0xf] %vm762_vm2, %v951_v24 }
 0x243   : > { %796 = vst.msk [vmem:[%s170_s6 + $0x14] sm:$0xf] %vm762_vm2, %v953_v25  ;;  %812 = vst.msk [vmem:[%s170_s6 + $0x1c] sm:$0xf] %vm762_vm2, %v955_v26 }
 0x244 PF: > { %s13_s12 = sadd.s32 1, %s1091_s12  }
 0x245   : > { %p10_p4 = scmp.ge.s32.totalorder %s13_s12, 4  }
 0x247   :  { %12 = sbr.rel (!%p10_p4) target bundleno = 1 (0x1), region = 65 }

// kernel: generator_forward.18
= control target key start
LH: loop header
LB: loop body
LE: loop exit
PB: predicated region body
PF: predicated region fallthrough
CT: control target
= control target key end

     0   :  { %s752_s12 = smov 0   ;;  %s816_s0 = inlined_call_operand.vmem [shape: bf16[4,32,16], index: 0, kind: input, shape index: {}]   ;;  %s817_s1 = inlined_call_operand.vmem [shape: bf16[2,16,128], index: 1, kind: input, shape index: {}]   ;;  %s818_s2 = inlined_call_operand.vmem [shape: f32[1,72], index: 2, kind: input, shape index: {}]   ;;  %s819_s3 = inlined_call_operand.vmem [shape: bf16[2,32,72], index: 3, kind: output, shape index: {}]  }
   0x1 LB: > { %s608_s13 = sadd.s32 4294967295, %s727_s12   ;;  %p612_p0 = scmp.ge.s32.totalorder %s727_s12, 1  ;;  %s727_s12 = sphi %s752_s12, %s13_s12  }
   0x2   : > { %p137_p1 = scmp.lt.s32.totalorder %s727_s12, 3 }
   0x4   : > { %p138_p2 = pnand %p612_p0, %p137_p1 }
   0x5   : > { %p161_p3 = scmp.lt.s32.totalorder (!%p138_p2), %s608_s13, 1  ;;  %v711_v0 = vld [vmem:[%s816_s0 + $0x10] sm:$0xff] (!%p138_p2)   ;;  %vm201_vm0 = vcmask (!%p138_p2), 130048   ;;  %v713_v1 = vld [vmem:[%s816_s0 + $0x20] sm:$0xff] (!%p138_p2)   ;;  %s729_s22 = smov (!%p138_p2), 127   ;;  %v712_v4 = vld [vmem:[%s816_s0 + $0x18] sm:$0xff] (!%p138_p2)  }
   0x6   : > { %141 = sbr.rel (%p138_p2) target bundleno = 554 (0x22a), region = 32  ;;  %665 = vmatprep.mubr.msk.bf16.mxu1 (!%p138_p2), %vm201_vm0, %v711_v0  ;;  %677 = vmatprep.mubr.msk.bf16.mxu0 (!%p138_p2), %vm201_vm0, %v713_v1  ;;  %s730_s23 = smov (!%p138_p2), 118   ;;  %v715_v5 = vld [vmem:[%s816_s0] sm:$0xff] (!%p138_p2)   ;;  %v714_v8 = vld [vmem:[%s816_s0 + $0x28] sm:$0xff] (!%p138_p2)   ;;  %v717_v9 = vld [vmem:[%s816_s0 + $0x30] sm:$0xff] (!%p138_p2)   ;;  %vm485_vm1 = vcmask (!%p138_p2), 588800  }
   0x7   : > { %s731_s24 = smov (!%p138_p2), 119   ;;  %v716_v10 = vld [vmem:[%s816_s0 + $0x8] sm:$0xff] (!%p138_p2)   ;;  %v718_v11 = vld [vmem:[%s816_s0 + $0x38] sm:$0xff] (!%p138_p2)   ;;  %v646_v17 = vld [vmem:[%s818_s2] ss:$0 sm:$0xff] (!%p138_p2)  ;;  %vm536_vm2 = vcmask (!%p138_p2), 584704  }
   0xd   : > { %s821_s13 = smov (!%p161_p3, %s608_s13), 1 }
   0xe   : > { %s649_s18 = sshll.u32 %s821_s13, 3  ;;  %s650_s14 = sshll.u32 %s821_s13, 4 }
   0xf   : > { %s165_s21 = scalar_lea.vmem %s817_s1, %s649_s18  ;;  %s170_s17 = scalar_lea.vmem %s819_s3, %s650_s14 }
  0x10   : > { %v710_v2 = vld [vmem:[%s165_s21] sm:$0xff]  }
  0x11   : > { %198 = vrot.lane.b32.xlu0 %v710_v2, %s729_s22  ;;  %415 = vrot.lane.b32.xlu1 %v710_v2, %s730_s23 }
  0x15   : > { %338 = vrot.lane.b32.xlu0 %v710_v2, %s731_s24 }
  0x83   : > { %v199_v3 = vpop.permute.xlu0 %198  ;;  %v416_v7 = vpop.permute.xlu1 %415 }
  0x84   : > { %663 = vmatprep.subr.bf16.mxu1 %v199_v3 }
  0x85   : > { %664 = vmatpush3.bf16.msra.mxu1 %v199_v3 }
  0x86   : > { %669 = vmatprep.subr.bf16.mxu1 %v710_v2 }
  0x87   : > { %v339_v6 = vpop.permute.xlu0 %338 }
  0x88   : > { %666 = vmatmul.mubr.msk.bf16.vlgmr.msra.gmra.mrb[0].mxu1 %vm201_vm0, %v712_v4  ;;  %675 = vmatprep.subr.bf16.mxu0 %v339_v6 }
  0x89   : > { %676 = vmatpush3.bf16.msra.mxu0 %v339_v6  ;;  %670 = vmatpush3.bf16.msra.mxu1 %v710_v2 }
  0x8a   : > { %681 = vmatprep.subr.bf16.mxu0 %v416_v7  ;;  %671 = vmatprep.mubr.msk.bf16.mxu1 %vm201_vm0, %v715_v5 }
  0x8c   : > { %678 = vmatmul.mubr.msk.bf16.vlgmr.msra.gmra.mrb[0].mxu0 %vm201_vm0, %v714_v8 }
  0x8d   : > { %682 = vmatpush3.bf16.msra.mxu0 %v416_v7  ;;  %683 = vmatprep.mubr.msk.bf16.mxu0 %vm201_vm0, %v717_v9 }
  0x94   : > { %672 = vmatmul.mubr.msk.bf16.vlgmr.msra.gmra.mrb[0].mxu1 %vm201_vm0, %v716_v10 }
  0x98   : > { %684 = vmatmul.mubr.msk.bf16.vlgmr.msra.gmra.mrb[0].mxu0 %vm201_vm0, %v718_v11 }
 0x167   : > { %v673_v12 = vpop.f32.mrb[0].mxu1 }
 0x168   : > { %v308_v13 = vpop.f32.mrb[1].mxu1 }
 0x169   : > { %v674_v14 = vpop.f32.mrb[2].mxu1 }
 0x16a   : > { %v311_v15 = vpop.f32.mrb[3].mxu1 }
 0x16b   : > { %v685_v16 = vpop.f32.mrb[0].mxu0 }
 0x16c   : > { %v687_v18 = vadd.f32 %v685_v16, %v673_v12  ;;  %v458_v19 = vpop.f32.mrb[1].mxu0 }
 0x16d   : > { %v688_v20 = vadd.f32 %v458_v19, %v308_v13  ;;  %v686_v21 = vpop.f32.mrb[2].mxu0 }
 0x16e   : > { %v689_v22 = vadd.f32 %v686_v21, %v674_v14  ;;  %v461_v23 = vpop.f32.mrb[3].mxu0  ;;  %v505_v24 = vmul.f32 %v687_v18, %v646_v17 }
 0x16f   : > { %v690_v25 = vadd.f32 %v461_v23, %v311_v15  ;;  %v484_v26 = vmul.f32 %v688_v20, %v646_v17 }
 0x170   : > { %v506_v27 = vsel %vm485_vm1, %v505_v24, 0.0  ;;  %v510_v30 = vmul.f32 %v687_v18, %v505_v24  ;;  %v515_v35 = vmul.f32 %v689_v22, %v646_v17 }
 0x171   : > { %507 = vadd.xlane.f32.xlu0 %v506_v27  ;;  %v486_v28 = vsel %vm485_vm1, %v484_v26, 0.0  ;;  %v495_v29 = vmul.f32 %v690_v25, %v646_v17  ;;  %v490_v32 = vmul.f32 %v688_v20, %v484_v26 }
 0x172   : > { %487 = vadd.xlane.f32.xlu1 %v486_v28  ;;  %v511_v33 = vsel %vm485_vm1, %v510_v30, 0.0  ;;  %v520_v38 = vmul.f32 %v689_v22, %v515_v35  ;;  %v516_v39 = vsel %vm485_vm1, %v515_v35, 0.0 }
 0x173   : > { %v496_v31 = vsel %vm485_vm1, %v495_v29, 0.0  ;;  %v500_v34 = vmul.f32 %v690_v25, %v495_v29  ;;  %v491_v36 = vsel %vm485_vm1, %v490_v32, 0.0 }
 0x174   : > { %v521_v40 = vsel %vm485_vm1, %v520_v38, 0.0 }
 0x175   : > { %497 = vadd.xlane.f32.xlu0 %v496_v31  ;;  %v501_v37 = vsel %vm485_vm1, %v500_v34, 0.0 }
 0x176   : > { %512 = vadd.xlane.f32.xlu1 %v511_v33 }
 0x179   : > { %492 = vadd.xlane.f32.xlu0 %v491_v36 }
 0x17a   : > { %502 = vadd.xlane.f32.xlu1 %v501_v37 }
 0x17d   : > { %517 = vadd.xlane.f32.xlu0 %v516_v39 }
 0x17e   : > { %522 = vadd.xlane.f32.xlu1 %v521_v40 }
 0x1fe   : > { %v508_v41 = vpop.xlane.xlu0 %507 }
 0x1ff   : > { %v488_v42 = vpop.xlane.xlu1 %487 }
 0x202   : > { %v498_v43 = vpop.xlane.xlu0 %497 }
 0x203   : > { %v513_v44 = vpop.xlane.xlu1 %512  ;;  %v499_v45 = vadd.f32 %v498_v43, %v488_v42 }
 0x205   : > { %v509_v49 = vadd.f32 %v508_v41, %v499_v45 }
 0x206   : > { %v493_v46 = vpop.xlane.xlu0 %492 }
 0x207   : > { %v503_v47 = vpop.xlane.xlu1 %502 }
 0x208   : > { %v504_v48 = vadd.f32 %v503_v47, %v493_v46 }
 0x20a   : > { %v518_v50 = vpop.xlane.xlu0 %517  ;;  %v514_v51 = vadd.f32 %v513_v44, %v504_v48 }
 0x20b   : > { %v519_v52 = vadd.f32 %v518_v50, %v509_v49  ;;  %v523_v53 = vpop.xlane.xlu1 %522 }
 0x20c   : > { %v524_v54 = vadd.f32 %v523_v53, %v514_v51 }
 0x20d   : > { %v525_v55 = vmul.f32 0.00390625, %v519_v52 }
 0x20e   : > { %v526_v56 = vmul.f32 0.00390625, %v524_v54 }
 0x20f   : > { %v527_v57 = vmul.f32 %v525_v55, %v525_v55  ;;  %v532_v61 = vsub.f32 %v688_v20, %v525_v55  ;;  %v538_v62 = vsub.f32 %v690_v25, %v525_v55  ;;  %v543_v63 = vsub.f32 %v687_v18, %v525_v55 }
 0x210   : > { %v548_v0 = vsub.f32 %v689_v22, %v525_v55 }
 0x211   : > { %v528_v58 = vsub.f32 %v526_v56, %v527_v57 }
 0x213   : > { %v529_v59 = vmax.f32 %v528_v58, 0.0 }
 0x215   : > { %v530_v60 = vadd.f32 1e-05, %v529_v59 }
 0x217   : > { %719 = vrsqrt.f32 %v530_v60 }
 0x221   : > { %v720_v1 = vpop.eup %719 }
 0x222   : > { %v533_v2 = vmul.f32 %v720_v1, %v532_v61  ;;  %v539_v3 = vmul.f32 %v720_v1, %v538_v62  ;;  %v544_v4 = vmul.f32 %v720_v1, %v543_v63  ;;  %v549_v5 = vmul.f32 %v720_v1, %v548_v0 }
 0x224   : > { %v534_v6 = vmax.f32 %v533_v2, 0.0  ;;  %v540_v7 = vmax.f32 %v539_v3, 0.0  ;;  %v545_v8 = vmax.f32 %v544_v4, 0.0  ;;  %v550_v9 = vmax.f32 %v549_v5, 0.0 }
 0x226   : > { %v535_v10 = vpack.c.bf16 %v534_v6, %v534_v6  ;;  %v541_v11 = vpack.c.bf16 %v540_v7, %v540_v7  ;;  %v546_v12 = vpack.c.bf16 %v545_v8, %v545_v8  ;;  %v551_v13 = vpack.c.bf16 %v550_v9, %v550_v9 }
 0x228   : > { %537 = vst.msk [vmem:[%s170_s17] sm:$0xf] %vm536_vm2, %v535_v10  ;;  %542 = vst.msk [vmem:[%s170_s17 + $0x4] sm:$0xf] %vm536_vm2, %v541_v11 }
 0x229   : > { %547 = vst.msk [vmem:[%s170_s17 + $0x8] sm:$0xf] %vm536_vm2, %v546_v12  ;;  %552 = vst.msk [vmem:[%s170_s17 + $0xc] sm:$0xf] %vm536_vm2, %v551_v13 }
 0x22a PF: > { %s13_s12 = sadd.s32 1, %s727_s12  }
 0x22b   : > { %p10_p4 = scmp.ge.s32.totalorder %s13_s12, 4  }
 0x22d   :  { %12 = sbr.rel (!%p10_p4) target bundleno = 1 (0x1), region = 65 }

// kernel: generator_forward.19
= control target key start
LH: loop header
LB: loop body
LE: loop exit
PB: predicated region body
PF: predicated region fallthrough
CT: control target
= control target key end

     0   :  { %s6344_s12 = smov 0   ;;  %s7391_s0 = inlined_call_operand.vmem [shape: bf16[49,3,8], index: 0, kind: input, shape index: {}]   ;;  %s7392_s1 = inlined_call_operand.vmem [shape: bf16[2,8,512], index: 1, kind: input, shape index: {}]   ;;  %s7393_s2 = inlined_call_operand.vmem [shape: f32[3,1], index: 2, kind: input, shape index: {}]   ;;  %s7394_s3 = inlined_call_operand.vmem [shape: f32[2,3,352], index: 3, kind: output, shape index: {}]  }
   0x1 LB: > { %s5588_s13 = sadd.s32 4294967295, %s6274_s12   ;;  %p5592_p0 = scmp.ge.s32.totalorder %s6274_s12, 1  ;;  %s6274_s12 = sphi %s6344_s12, %s13_s12  }
   0x2   : > { %p137_p1 = scmp.lt.s32.totalorder %s6274_s12, 3 }
   0x4   : > { %p138_p2 = pnand %p5592_p0, %p137_p1 }
   0x5   : > { %p161_p3 = scmp.lt.s32.totalorder (!%p138_p2), %s5588_s13, 1  ;;  %v6276_v0 = vmov (!%p138_p2), 0.0   ;;  %vm6277_vm0 = vmmov (!%p138_p2), 0   ;;  %v6278_v1 = vmov (!%p138_p2), 0   ;;  %s6279_s18 = smov (!%p138_p2), 127   ;;  %vm198_vm1 = vcmask (!%p138_p2), 1043456  }
   0x6   : > { %141 = sbr.rel (%p138_p2) target bundleno = 758 (0x2f6), region = 32  ;;  %5902 = vmatprep.subr.bf16.mxu1 (!%p138_p2), %v6276_v0  ;;  %5904 = vmatprep.mubr.msk.bf16.mxu1 (!%p138_p2), %vm6277_vm0, %v6276_v0  ;;  %s6280_s19 = smov (!%p138_p2), 126   ;;  %v5596_v12 = vld [vmem:[%s7391_s0 + $0x2] sm:$0x3] (!%p138_p2)  ;;  %vm194_vm2 = vcmask (!%p138_p2), 64512   ;;  %vm191_vm3 = vcmask (!%p138_p2), 1039360  }
   0x7   : > { %240 = vmatprep.mubr.bf16.mxu0 (!%p138_p2), %v6278_v1  ;;  %6253 = vset.pattern.permute.xlu0 (!%p138_p2), %v6278_v1  ;;  %s6281_s20 = smov (!%p138_p2), 125   ;;  %s6282_s21 = smov (!%p138_p2), 124   ;;  %vm390_vm4 = vcmask (!%p138_p2), 1031168   ;;  %v174_v22 = vld [vmem:[%s7391_s0] sm:$0x3] (!%p138_p2)  ;;  %vm497_vm5 = vcmask (!%p138_p2), 1022976  }
   0x8   : > { %s6283_s22 = smov (!%p138_p2), 123   ;;  %s6284_s23 = smov (!%p138_p2), 122   ;;  %v5606_v31 = vld [vmem:[%s7391_s0 + $0x4] sm:$0x3] (!%p138_p2)  ;;  %vm604_vm6 = vcmask (!%p138_p2), 1014784   ;;  %vm711_vm7 = vcmask (!%p138_p2), 1006592  }
   0x9   : > { %s6285_s24 = smov (!%p138_p2), 106   ;;  %s6286_s25 = smov (!%p138_p2), 105   ;;  %v5610_v40 = vld [vmem:[%s7391_s0 + $0x6] sm:$0x3] (!%p138_p2)  ;;  %v5614_v49 = vld [vmem:[%s7391_s0 + $0x8] sm:$0x3] (!%p138_p2) }
   0xa   : > { %s6287_s26 = smov (!%p138_p2), 104   ;;  %s6288_s27 = smov (!%p138_p2), 103   ;;  %vm818_vm8 = vcmask (!%p138_p2), 998400   ;;  %v5618_v58 = vld [vmem:[%s7391_s0 + $0xa] sm:$0x3] (!%p138_p2)  ;;  %vm925_vm9 = vcmask (!%p138_p2), 867328  }
   0xb   : > { %s6289_s28 = smov (!%p138_p2), 102   ;;  %s6290_s29 = smov (!%p138_p2), 101   ;;  %vm1032_vm10 = vcmask (!%p138_p2), 859136   ;;  %vm1139_vm11 = vcmask (!%p138_p2), 850944   ;;  %vm1246_vm12 = vcmask (!%p138_p2), 842752   ;;  %vm1353_vm13 = vcmask (!%p138_p2), 834560  }
   0xc   : > { %s6291_s30 = smov (!%p138_p2), 100   ;;  %s6292_s4 = smov (!%p138_p2), 84   ;;  %vm1460_vm14 = vcmask (!%p138_p2), 826368   ;;  %vm1567_vm15 = vcmask (!%p138_p2), 818176  }
   0xd   : > { %s7396_s13 = smov (!%p161_p3, %s5588_s13), 1  ;;  %s6293_s5 = smov 83  }
   0xe   : > { %s5803_s14 = sshll.u32 %s7396_s13, 4  ;;  %s6294_s6 = smov 82  }
   0xf   : > { %s6363_s17 = scalar_lea.vmem %s7392_s1, %s5803_s14  ;;  %s6295_s7 = smov 81  }
  0x10   : > { %v6366_v2 = vld [vmem:[%s6363_s17 + $0x8] ss:$0 sps:$4 sm:$0xff]   ;;  %v1666_v3 = vld [vmem:[%s6363_s17] sm:$0xff]  ;;  %s6296_s8 = smov 80   ;;  %s6297_s11 = smov 79  }
  0x11   : > { %v6369_v4 = vcombine.low %v1666_v3, %v1666_v3  ;;  %189 = vrot.lane.b32.xlu1 %v6366_v2, %s6279_s18  ;;  %v6372_v5 = vcombine.high %v1666_v3, %v1666_v3  ;;  %v1667_v6 = vld [vmem:[%s6363_s17 + $0x8] sm:$0xff]  ;;  %v299_v13 = vsel %vm198_vm1, %v6366_v2, 0  ;;  %s6298_s16 = smov 78   ;;  %s6302_s9 = smov 59  }
  0x12   : > { %v6421_v7 = vcombine.low %v1667_v6, %v1667_v6  ;;  %v6426_v8 = vcombine.high %v1667_v6, %v1667_v6  ;;  %s6303_s14 = smov 58  }
  0x13   : > { %185 = vrot.lane.b32.xlu0 %v6369_v4, %s6279_s18  ;;  %v293_v20 = vsel %vm198_vm1, %v6369_v4, 0 }
  0x15   : > { %384 = vrot.lane.b32.xlu1 %v6369_v4, %s6280_s19 }
  0x17   : > { %187 = vrot.lane.b32.xlu0 %v6372_v5, %s6279_s18  ;;  %s6304_s18 = smov 57  }
  0x19   : > { %388 = vrot.lane.b32.xlu1 %v6366_v2, %s6280_s19 }
  0x1b   : > { %386 = vrot.lane.b32.xlu0 %v6372_v5, %s6280_s19 }
  0x1d   : > { %493 = vrot.lane.b32.xlu1 %v6372_v5, %s6281_s20 }
  0x1f   : > { %491 = vrot.lane.b32.xlu0 %v6369_v4, %s6281_s20 }
  0x21   : > { %598 = vrot.lane.b32.xlu1 %v6369_v4, %s6282_s21 }
  0x23   : > { %495 = vrot.lane.b32.xlu0 %v6366_v2, %s6281_s20  ;;  %s6311_s20 = smov 35  }
  0x25   : > { %602 = vrot.lane.b32.xlu1 %v6366_v2, %s6282_s21 }
  0x27   : > { %600 = vrot.lane.b32.xlu0 %v6372_v5, %s6282_s21 }
  0x29   : > { %707 = vrot.lane.b32.xlu1 %v6372_v5, %s6283_s22 }
  0x2b   : > { %705 = vrot.lane.b32.xlu0 %v6369_v4, %s6283_s22 }
  0x2d   : > { %812 = vrot.lane.b32.xlu1 %v6369_v4, %s6284_s23 }
  0x2f   : > { %709 = vrot.lane.b32.xlu0 %v6366_v2, %s6283_s22 }
  0x31   : > { %816 = vrot.lane.b32.xlu1 %v6366_v2, %s6284_s23 }
  0x33   : > { %814 = vrot.lane.b32.xlu0 %v6372_v5, %s6284_s23 }
  0x35   : > { %921 = vrot.lane.b32.xlu1 %v6372_v5, %s6285_s24 }
  0x37   : > { %919 = vrot.lane.b32.xlu0 %v6369_v4, %s6285_s24 }
  0x39   : > { %1026 = vrot.lane.b32.xlu1 %v6369_v4, %s6286_s25 }
  0x3b   : > { %923 = vrot.lane.b32.xlu0 %v6366_v2, %s6285_s24 }
  0x3d   : > { %1030 = vrot.lane.b32.xlu1 %v6366_v2, %s6286_s25 }
  0x3f   : > { %1028 = vrot.lane.b32.xlu0 %v6372_v5, %s6286_s25  ;;  %s6299_s25 = smov 62  }
  0x41   : > { %1135 = vrot.lane.b32.xlu1 %v6372_v5, %s6287_s26 }
  0x43   : > { %1133 = vrot.lane.b32.xlu0 %v6369_v4, %s6287_s26 }
  0x45   : > { %1240 = vrot.lane.b32.xlu1 %v6369_v4, %s6288_s27 }
  0x47   : > { %1137 = vrot.lane.b32.xlu0 %v6366_v2, %s6287_s26  ;;  %s6305_s26 = smov 56  }
  0x49   : > { %1244 = vrot.lane.b32.xlu1 %v6366_v2, %s6288_s27 }
  0x4b   : > { %1242 = vrot.lane.b32.xlu0 %v6372_v5, %s6288_s27 }
  0x4d   : > { %1349 = vrot.lane.b32.xlu1 %v6372_v5, %s6289_s28 }
  0x4f   : > { %1347 = vrot.lane.b32.xlu0 %v6369_v4, %s6289_s28 }
  0x51   : > { %1454 = vrot.lane.b32.xlu1 %v6369_v4, %s6290_s29 }
  0x53   : > { %1351 = vrot.lane.b32.xlu0 %v6366_v2, %s6289_s28  ;;  %s6300_s28 = smov 61  }
  0x55   : > { %1458 = vrot.lane.b32.xlu1 %v6366_v2, %s6290_s29 }
  0x57   : > { %1456 = vrot.lane.b32.xlu0 %v6372_v5, %s6290_s29  ;;  %s6306_s29 = smov 40  }
  0x59   : > { %1563 = vrot.lane.b32.xlu1 %v6372_v5, %s6291_s30 }
  0x5b   : > { %1561 = vrot.lane.b32.xlu0 %v6369_v4, %s6291_s30 }
  0x5d   : > { %1680 = vrot.lane.b32.xlu1 %v6369_v4, %s6292_s4 }
  0x5f   : > { %1565 = vrot.lane.b32.xlu0 %v6366_v2, %s6291_s30 }
  0x61   : > { %1684 = vrot.lane.b32.xlu1 %v6421_v7, %s6292_s4 }
  0x63   : > { %1682 = vrot.lane.b32.xlu0 %v6372_v5, %s6292_s4 }
  0x65   : > { %1790 = vrot.lane.b32.xlu1 %v6369_v4, %s6293_s5 }
  0x67   : > { %1686 = vrot.lane.b32.xlu0 %v6426_v8, %s6292_s4  ;;  %s6301_s4 = smov 60  }
  0x69   : > { %1794 = vrot.lane.b32.xlu1 %v6421_v7, %s6293_s5 }
  0x6b   : > { %1792 = vrot.lane.b32.xlu0 %v6372_v5, %s6293_s5 }
  0x6d   : > { %1900 = vrot.lane.b32.xlu1 %v6369_v4, %s6294_s6 }
  0x6f   : > { %1796 = vrot.lane.b32.xlu0 %v6426_v8, %s6293_s5  ;;  %s6307_s5 = smov 39  }
  0x71   : > { %1904 = vrot.lane.b32.xlu1 %v6421_v7, %s6294_s6 }
  0x73   : > { %1902 = vrot.lane.b32.xlu0 %v6372_v5, %s6294_s6 }
  0x75   : > { %2010 = vrot.lane.b32.xlu1 %v6369_v4, %s6295_s7 }
  0x77   : > { %1906 = vrot.lane.b32.xlu0 %v6426_v8, %s6294_s6 }
  0x79   : > { %2014 = vrot.lane.b32.xlu1 %v6421_v7, %s6295_s7 }
  0x7b   : > { %2012 = vrot.lane.b32.xlu0 %v6372_v5, %s6295_s7 }
  0x7d   : > { %2120 = vrot.lane.b32.xlu1 %v6369_v4, %s6296_s8 }
  0x7f   : > { %2016 = vrot.lane.b32.xlu0 %v6426_v8, %s6295_s7 }
  0x81   : > { %2124 = vrot.lane.b32.xlu1 %v6421_v7, %s6296_s8 }
  0x83   : > { %2122 = vrot.lane.b32.xlu0 %v6372_v5, %s6296_s8  ;;  %v190_v9 = vpop.permute.xlu1 %189 }
  0x84   : > { %v206_v11 = vsel %vm198_vm1, %v190_v9, 0 }
  0x85   : > { %v186_v10 = vpop.permute.xlu0 %185  ;;  %5903 = vmatpush3.bf16.msra.mxu1 %v206_v11  ;;  %2230 = vrot.lane.b32.xlu1 %v6369_v4, %s6297_s11 }
  0x86   : > { %5908 = vmatprep.subr.bf16.mxu1 %v6276_v0 }
  0x87   : > { %2126 = vrot.lane.b32.xlu0 %v6426_v8, %s6296_s8  ;;  %v385_v14 = vpop.permute.xlu1 %384  ;;  %s6308_s8 = smov 38  }
  0x88   : > { %5905 = vmatmul.mubr.msk.bf16.vlgmr.msra.gmra.mrb[0].mxu1 %vm194_vm2, %v5596_v12 }
  0x89   : > { %v188_v15 = vpop.permute.xlu0 %187  ;;  %5909 = vmatpush3.bf16.msra.mxu1 %v299_v13  ;;  %5910 = vmatprep.mubr.msk.bf16.mxu1 %vm6277_vm0, %v6276_v0 }
  0x8a   : > { %v193_v16 = vsel %vm191_vm3, %v188_v15, %v190_v9  ;;  %v192_v17 = vsel %vm191_vm3, %v186_v10, %v188_v15  ;;  %5914 = vmatprep.subr.bf16.mxu1 %v6276_v0  ;;  %2234 = vrot.lane.b32.xlu1 %v6421_v7, %s6297_s11  ;;  %v5622_v9 = vld [vmem:[%s7391_s0 + $0xc] sm:$0x3]  ;;  %vm1688_vm3 = vcmask 687104  }
  0x8b   : > { %5600 = vmatprep.subr.msk.bf16.mxu0 %vm198_vm1, %v193_v16  ;;  %v200_v18 = vsel %vm198_vm1, %v192_v17, 0  ;;  %v389_v19 = vpop.permute.xlu1 %388  ;;  %2232 = vrot.lane.b32.xlu0 %v6372_v5, %s6297_s11 }
  0x8c   : > { %209 = vmatpush1.bf16.msra.mxu0 %v200_v18  ;;  %v403_v24 = vsel %vm198_vm1, %v389_v19, 0  ;;  %v5626_v18 = vld [vmem:[%s7391_s0 + $0xe] sm:$0x3] }
  0x8d   : > { %5603 = vmatprep.subr.msk.bf16.mxu0 %vm198_vm1, %v6372_v5  ;;  %v387_v21 = vpop.permute.xlu0 %386 }
  0x8e   : > { %v392_v23 = vsel %vm390_vm4, %v387_v21, %v389_v19  ;;  %v391_v27 = vsel %vm390_vm4, %v385_v14, %v387_v21  ;;  %2340 = vrot.lane.b32.xlu1 %v6369_v4, %s6298_s16  ;;  %vm1798_vm4 = vcmask 678912  }
  0x8f   : > { %5601 = vmatmul.mubr.msk.bf16.vlgmr.msra.gmra.mrb[0].mxu0 %vm194_vm2, %v5596_v12  ;;  %v494_v25 = vpop.permute.xlu1 %493  ;;  %2236 = vrot.lane.b32.xlu0 %v6426_v8, %s6297_s11  ;;  %v397_v29 = vsel %vm198_vm1, %v391_v27, 0  ;;  %v5630_v27 = vld [vmem:[%s7391_s0 + $0x10] sm:$0x3]  ;;  %s6309_s11 = smov 37  }
  0x90   : > { %302 = vmatpush1.bf16.msra.mxu0 %v293_v20  ;;  %333 = vmatprep.mubr.bf16.mxu0 %v6278_v1 }
  0x91   : > { %5911 = vmatmul.mubr.msk.bf16.vlgmr.msra.gmra.mrb[4].mxu1 %vm194_vm2, %v174_v22  ;;  %5607 = vmatprep.subr.msk.bf16.mxu0 %vm198_vm1, %v392_v23  ;;  %v492_v26 = vpop.permute.xlu0 %491 }
  0x92   : > { %5915 = vmatpush3.bf16.msra.mxu1 %v403_v24  ;;  %5916 = vmatprep.mubr.msk.bf16.mxu1 %vm6277_vm0, %v6276_v0  ;;  %v498_v36 = vsel %vm497_vm5, %v492_v26, %v494_v25 }
  0x93   : > { %5920 = vmatprep.subr.bf16.mxu1 %v6276_v0  ;;  %v599_v28 = vpop.permute.xlu1 %598  ;;  %2342 = vrot.lane.b32.xlu0 %v6372_v5, %s6298_s16  ;;  %v504_v38 = vsel %vm198_vm1, %v498_v36, 0  ;;  %v5634_v36 = vld [vmem:[%s7391_s0 + $0x12] sm:$0x3] }
  0x94   : > { %2344 = vrot.lane.b32.xlu1 %v6421_v7, %s6298_s16 }
  0x95   : > { %v496_v30 = vpop.permute.xlu0 %495 }
  0x96   : > { %v499_v32 = vsel %vm497_vm5, %v494_v25, %v496_v30  ;;  %v510_v33 = vsel %vm198_vm1, %v496_v30, 0  ;;  %vm1908_vm5 = vcmask 670720  }
  0x97   : > { %5604 = vmatmul.mubr.msk.bf16.vlgmr.msra.gmra.mrb[4].mxu0 %vm194_vm2, %v174_v22  ;;  %v603_v34 = vpop.permute.xlu1 %602  ;;  %2346 = vrot.lane.b32.xlu0 %v6426_v8, %s6298_s16  ;;  %s6310_s16 = smov 36  }
  0x98   : > { %406 = vmatpush1.bf16.msra.mxu0 %v397_v29  ;;  %437 = vmatprep.mubr.bf16.mxu0 %v6278_v1  ;;  %v617_v42 = vsel %vm198_vm1, %v603_v34, 0 }
  0x99   : > { %5917 = vmatmul.mubr.msk.bf16.vlgmr.msra.gmra.mrb[8].mxu1 %vm194_vm2, %v5606_v31  ;;  %5611 = vmatprep.subr.msk.bf16.mxu0 %vm198_vm1, %v499_v32  ;;  %v601_v35 = vpop.permute.xlu0 %600 }
  0x9a   : > { %5921 = vmatpush3.bf16.msra.mxu1 %v510_v33  ;;  %5922 = vmatprep.mubr.msk.bf16.mxu1 %vm6277_vm0, %v6276_v0  ;;  %v606_v41 = vsel %vm604_vm6, %v601_v35, %v603_v34  ;;  %v605_v45 = vsel %vm604_vm6, %v599_v28, %v601_v35 }
  0x9b   : > { %5926 = vmatprep.subr.bf16.mxu1 %v6276_v0  ;;  %v708_v37 = vpop.permute.xlu1 %707  ;;  %2450 = vrot.lane.b32.xlu1 %v6369_v4, %s6299_s25  ;;  %v611_v47 = vsel %vm198_vm1, %v605_v45, 0  ;;  %v5638_v45 = vld [vmem:[%s7391_s0 + $0x14] sm:$0x3] }
  0x9c   : > { %2452 = vrot.lane.b32.xlu0 %v6372_v5, %s6299_s25 }
  0x9d   : > { %v706_v39 = vpop.permute.xlu0 %705 }
  0x9e   : > { %v712_v54 = vsel %vm711_vm7, %v706_v39, %v708_v37 }
  0x9f   : > { %5608 = vmatmul.mubr.msk.bf16.vlgmr.msra.gmra.mrb[8].mxu0 %vm194_vm2, %v5606_v31  ;;  %v813_v43 = vpop.permute.xlu1 %812  ;;  %2454 = vrot.lane.b32.xlu1 %v6421_v7, %s6299_s25  ;;  %v718_v56 = vsel %vm198_vm1, %v712_v54, 0  ;;  %v5642_v54 = vld [vmem:[%s7391_s0 + $0x16] sm:$0x3] }
  0xa0   : > { %513 = vmatpush1.bf16.msra.mxu0 %v504_v38  ;;  %544 = vmatprep.mubr.bf16.mxu0 %v6278_v1 }
  0xa1   : > { %5923 = vmatmul.mubr.msk.bf16.vlgmr.msra.gmra.mrb[12].mxu1 %vm194_vm2, %v5610_v40  ;;  %5615 = vmatprep.subr.msk.bf16.mxu0 %vm198_vm1, %v606_v41  ;;  %v710_v44 = vpop.permute.xlu0 %709 }
  0xa2   : > { %5927 = vmatpush3.bf16.msra.mxu1 %v617_v42  ;;  %5928 = vmatprep.mubr.msk.bf16.mxu1 %vm6277_vm0, %v6276_v0  ;;  %v713_v50 = vsel %vm711_vm7, %v708_v37, %v710_v44  ;;  %v724_v51 = vsel %vm198_vm1, %v710_v44, 0 }
  0xa3   : > { %5932 = vmatprep.subr.bf16.mxu1 %v6276_v0  ;;  %v817_v46 = vpop.permute.xlu1 %816  ;;  %2456 = vrot.lane.b32.xlu0 %v6426_v8, %s6299_s25 }
  0xa4   : > { %2560 = vrot.lane.b32.xlu1 %v6369_v4, %s6300_s28  ;;  %v831_v60 = vsel %vm198_vm1, %v817_v46, 0 }
  0xa5   : > { %v815_v48 = vpop.permute.xlu0 %814 }
  0xa6   : > { %v820_v59 = vsel %vm818_vm8, %v815_v48, %v817_v46  ;;  %v819_v63 = vsel %vm818_vm8, %v813_v43, %v815_v48 }
  0xa7   : > { %5612 = vmatmul.mubr.msk.bf16.vlgmr.msra.gmra.mrb[12].mxu0 %vm194_vm2, %v5610_v40  ;;  %v922_v52 = vpop.permute.xlu1 %921  ;;  %2562 = vrot.lane.b32.xlu0 %v6372_v5, %s6300_s28  ;;  %v825_v3 = vsel %vm198_vm1, %v819_v63, 0  ;;  %v5646_v63 = vld [vmem:[%s7391_s0 + $0x18] sm:$0x3] }
  0xa8   : > { %620 = vmatpush1.bf16.msra.mxu0 %v611_v47  ;;  %651 = vmatprep.mubr.bf16.mxu0 %v6278_v1 }
  0xa9   : > { %5929 = vmatmul.mubr.msk.bf16.vlgmr.msra.gmra.mrb[16].mxu1 %vm194_vm2, %v5614_v49  ;;  %5619 = vmatprep.subr.msk.bf16.mxu0 %vm198_vm1, %v713_v50  ;;  %v920_v53 = vpop.permute.xlu0 %919 }
  0xaa   : > { %5933 = vmatpush3.bf16.msra.mxu1 %v724_v51  ;;  %5934 = vmatprep.mubr.msk.bf16.mxu1 %vm6277_vm0, %v6276_v0  ;;  %v926_v14 = vsel %vm925_vm9, %v920_v53, %v922_v52 }
  0xab   : > { %5938 = vmatprep.subr.bf16.mxu1 %v6276_v0  ;;  %v1027_v55 = vpop.permute.xlu1 %1026  ;;  %2564 = vrot.lane.b32.xlu1 %v6421_v7, %s6300_s28  ;;  %v932_v16 = vsel %vm198_vm1, %v926_v14, 0 }
  0xac   : > { %2566 = vrot.lane.b32.xlu0 %v6426_v8, %s6300_s28 }
  0xad   : > { %v924_v57 = vpop.permute.xlu0 %923 }
  0xae   : > { %v927_v10 = vsel %vm925_vm9, %v922_v52, %v924_v57  ;;  %v938_v11 = vsel %vm198_vm1, %v924_v57, 0  ;;  %vm2018_vm9 = vcmask 662528  }
  0xaf   : > { %5616 = vmatmul.mubr.msk.bf16.vlgmr.msra.gmra.mrb[16].mxu0 %vm194_vm2, %v5614_v49  ;;  %v1031_v61 = vpop.permute.xlu1 %1030  ;;  %2670 = vrot.lane.b32.xlu1 %v6369_v4, %s6301_s4 }
  0xb0   : > { %727 = vmatpush1.bf16.msra.mxu0 %v718_v56  ;;  %758 = vmatprep.mubr.bf16.mxu0 %v6278_v1  ;;  %v1045_v20 = vsel %vm198_vm1, %v1031_v61, 0 }
  0xb1   : > { %5935 = vmatmul.mubr.msk.bf16.vlgmr.msra.gmra.mrb[20].mxu1 %vm194_vm2, %v5618_v58  ;;  %5623 = vmatprep.subr.msk.bf16.mxu0 %vm198_vm1, %v820_v59  ;;  %v1029_v62 = vpop.permute.xlu0 %1028 }
  0xb2   : > { %5939 = vmatpush3.bf16.msra.mxu1 %v831_v60  ;;  %5940 = vmatprep.mubr.msk.bf16.mxu1 %vm6277_vm0, %v6276_v0  ;;  %v1034_v19 = vsel %vm1032_vm10, %v1029_v62, %v1031_v61  ;;  %v1033_v23 = vsel %vm1032_vm10, %v1027_v55, %v1029_v62  ;;  %vm2128_vm10 = vcmask 654336  }
  0xb3   : > { %5944 = vmatprep.subr.bf16.mxu1 %v6276_v0  ;;  %v1136_v2 = vpop.permute.xlu1 %1135  ;;  %2672 = vrot.lane.b32.xlu0 %v6372_v5, %s6301_s4  ;;  %v1039_v25 = vsel %vm198_vm1, %v1033_v23, 0 }
  0xb4   : > { %2674 = vrot.lane.b32.xlu1 %v6421_v7, %s6301_s4 }
  0xb5   : > { %v1134_v6 = vpop.permute.xlu0 %1133 }
  0xb6   : > { %v1140_v32 = vsel %vm1139_vm11, %v1134_v6, %v1136_v2 }
  0xb7   : > { %5620 = vmatmul.mubr.msk.bf16.vlgmr.msra.gmra.mrb[20].mxu0 %vm194_vm2, %v5618_v58  ;;  %v6562_v12 = vpop.permute.xlu1 %1240  ;;  %2676 = vrot.lane.b32.xlu0 %v6426_v8, %s6301_s4  ;;  %v1146_v34 = vsel %vm198_vm1, %v1140_v32, 0 }
  0xb8   : > { %834 = vmatpush1.bf16.msra.mxu0 %v825_v3  ;;  %865 = vmatprep.mubr.bf16.mxu0 %v6278_v1 }
  0xb9   : > { %5941 = vmatmul.mubr.msk.bf16.vlgmr.msra.gmra.mrb[24].mxu1 %vm194_vm2, %v5622_v9  ;;  %5627 = vmatprep.subr.msk.bf16.mxu0 %vm198_vm1, %v927_v10  ;;  %v1138_v13 = vpop.permute.xlu0 %1137 }
  0xba   : > { %5945 = vmatpush3.bf16.msra.mxu1 %v938_v11  ;;  %5946 = vmatprep.mubr.msk.bf16.mxu1 %vm6277_vm0, %v6276_v0  ;;  %v1141_v28 = vsel %vm1139_vm11, %v1136_v2, %v1138_v13  ;;  %v1152_v29 = vsel %vm198_vm1, %v1138_v13, 0  ;;  %vm2238_vm11 = vcmask 646144  }
  0xbb   : > { %5950 = vmatprep.subr.bf16.mxu1 %v6276_v0  ;;  %v1245_v15 = vpop.permute.xlu1 %1244  ;;  %2780 = vrot.lane.b32.xlu1 %v6369_v4, %s6302_s9 }
  0xbc   : > { %2782 = vrot.lane.b32.xlu0 %v6372_v5, %s6302_s9  ;;  %v1259_v38 = vsel %vm198_vm1, %v1245_v15, 0 }
  0xbd   : > { %v1243_v17 = vpop.permute.xlu0 %1242 }
  0xbe   : > { %v1248_v37 = vsel %vm1246_vm12, %v1243_v17, %v1245_v15  ;;  %v1247_v41 = vsel %vm1246_vm12, %v6562_v12, %v1243_v17  ;;  %v5650_v15 = vld [vmem:[%s7391_s0 + $0x1a] sm:$0x3]  ;;  %vm2348_vm12 = vcmask 637952  }
  0xbf   : > { %5624 = vmatmul.mubr.msk.bf16.vlgmr.msra.gmra.mrb[24].mxu0 %vm194_vm2, %v5622_v9  ;;  %v6581_v21 = vpop.permute.xlu1 %1349  ;;  %2784 = vrot.lane.b32.xlu1 %v6421_v7, %s6302_s9  ;;  %v1253_v43 = vsel %vm198_vm1, %v1247_v41, 0 }
  0xc0   : > { %941 = vmatpush1.bf16.msra.mxu0 %v932_v16  ;;  %972 = vmatprep.mubr.bf16.mxu0 %v6278_v1 }
  0xc1   : > { %5947 = vmatmul.mubr.msk.bf16.vlgmr.msra.gmra.mrb[28].mxu1 %vm194_vm2, %v5626_v18  ;;  %5631 = vmatprep.subr.msk.bf16.mxu0 %vm198_vm1, %v1034_v19  ;;  %v6585_v22 = vpop.permute.xlu0 %1347 }
  0xc2   : > { %5951 = vmatpush3.bf16.msra.mxu1 %v1045_v20  ;;  %5952 = vmatprep.mubr.msk.bf16.mxu1 %vm6277_vm0, %v6276_v0  ;;  %v1354_v50 = vsel %vm1353_vm13, %v6585_v22, %v6581_v21 }
  0xc3   : > { %5956 = vmatprep.subr.bf16.mxu1 %v6276_v0  ;;  %v6593_v24 = vpop.permute.xlu1 %1454  ;;  %2786 = vrot.lane.b32.xlu0 %v6426_v8, %s6302_s9  ;;  %v1360_v52 = vsel %vm198_vm1, %v1354_v50, 0 }
  0xc4   : > { %2890 = vrot.lane.b32.xlu1 %v6369_v4, %s6303_s14 }
  0xc5   : > { %v1352_v26 = vpop.permute.xlu0 %1351 }
  0xc6   : > { %v1355_v46 = vsel %vm1353_vm13, %v6581_v21, %v1352_v26  ;;  %v1366_v47 = vsel %vm198_vm1, %v1352_v26, 0  ;;  %vm2458_vm13 = vcmask 506880  }
  0xc7   : > { %5628 = vmatmul.mubr.msk.bf16.vlgmr.msra.gmra.mrb[28].mxu0 %vm194_vm2, %v5626_v18  ;;  %v6604_v30 = vpop.permute.xlu1 %1458  ;;  %2892 = vrot.lane.b32.xlu0 %v6372_v5, %s6303_s14 }
  0xc8   : > { %1048 = vmatpush1.bf16.msra.mxu0 %v1039_v25  ;;  %1079 = vmatprep.mubr.bf16.mxu0 %v6278_v1  ;;  %v1473_v56 = vsel %vm198_vm1, %v6604_v30, 0  ;;  %v5654_v25 = vld [vmem:[%s7391_s0 + $0x1c] sm:$0x3] }
  0xc9   : > { %5953 = vmatmul.mubr.msk.bf16.vlgmr.msra.gmra.mrb[32].mxu1 %vm194_vm2, %v5630_v27  ;;  %5635 = vmatprep.subr.msk.bf16.mxu0 %vm198_vm1, %v1141_v28  ;;  %v6608_v31 = vpop.permute.xlu0 %1456 }
  0xca   : > { %5957 = vmatpush3.bf16.msra.mxu1 %v1152_v29  ;;  %5958 = vmatprep.mubr.msk.bf16.mxu1 %vm6277_vm0, %v6276_v0  ;;  %v1462_v55 = vsel %vm1460_vm14, %v6608_v31, %v6604_v30  ;;  %v1461_v59 = vsel %vm1460_vm14, %v6593_v24, %v6608_v31  ;;  %vm2568_vm14 = vcmask 498688  }
  0xcb   : > { %5962 = vmatprep.subr.bf16.mxu1 %v6276_v0  ;;  %v6616_v33 = vpop.permute.xlu1 %1563  ;;  %2894 = vrot.lane.b32.xlu1 %v6421_v7, %s6303_s14  ;;  %v1467_v61 = vsel %vm198_vm1, %v1461_v59, 0 }
  0xcc   : > { %2896 = vrot.lane.b32.xlu0 %v6426_v8, %s6303_s14 }
  0xcd   : > { %v6619_v35 = vpop.permute.xlu0 %1561 }
  0xce   : > { %v1568_v10 = vsel %vm1567_vm15, %v6619_v35, %v6616_v33 }
  0xcf   : > { %5632 = vmatmul.mubr.msk.bf16.vlgmr.msra.gmra.mrb[32].mxu0 %vm194_vm2, %v5630_v27  ;;  %v6629_v39 = vpop.permute.xlu1 %1680  ;;  %3000 = vrot.lane.b32.xlu1 %v6369_v4, %s6304_s18  ;;  %v1574_v13 = vsel %vm198_vm1, %v1568_v10, 0 }
  0xd0   : > { %1155 = vmatpush1.bf16.msra.mxu0 %v1146_v34  ;;  %1186 = vmatprep.mubr.bf16.mxu0 %v6278_v1 }
  0xd1   : > { %5959 = vmatmul.mubr.msk.bf16.vlgmr.msra.gmra.mrb[36].mxu1 %vm194_vm2, %v5634_v36  ;;  %5639 = vmatprep.subr.msk.bf16.mxu0 %vm198_vm1, %v1248_v37  ;;  %v1566_v40 = vpop.permute.xlu0 %1565 }
  0xd2   : > { %5963 = vmatpush3.bf16.msra.mxu1 %v1259_v38  ;;  %5964 = vmatprep.mubr.msk.bf16.mxu1 %vm6277_vm0, %v6276_v0  ;;  %v1569_v2 = vsel %vm1567_vm15, %v6616_v33, %v1566_v40  ;;  %v1580_v3 = vsel %vm198_vm1, %v1566_v40, 0  ;;  %v5662_v33 = vld [vmem:[%s7391_s0 + $0x1e] sm:$0x3]  ;;  %vm2678_vm15 = vcmask 490496  }
  0xd3   : > { %5968 = vmatprep.subr.bf16.mxu1 %v6276_v0  ;;  %v6640_v42 = vpop.permute.xlu1 %1684  ;;  %3002 = vrot.lane.b32.xlu0 %v6372_v5, %s6304_s18 }
  0xd4   : > { %3004 = vrot.lane.b32.xlu1 %v6421_v7, %s6304_s18 }
  0xd5   : > { %v6643_v44 = vpop.permute.xlu0 %1682 }
  0xd6   : > { %v1690_v17 = vsel %vm1688_vm3, %v6643_v44, %v6640_v42  ;;  %v1689_v20 = vsel %vm1688_vm3, %v6629_v39, %v6643_v44 }
  0xd7   : > { %5636 = vmatmul.mubr.msk.bf16.vlgmr.msra.gmra.mrb[36].mxu0 %vm194_vm2, %v5634_v36  ;;  %v6654_v48 = vpop.permute.xlu1 %1790  ;;  %3006 = vrot.lane.b32.xlu0 %v6426_v8, %s6304_s18  ;;  %v1696_v22 = vsel %vm198_vm1, %v1689_v20, 0  ;;  %v5682_v20 = vld [vmem:[%s7391_s0 + $0x28] sm:$0x3] }
  0xd8   : > { %1262 = vmatpush1.bf16.msra.mxu0 %v1253_v43  ;;  %1293 = vmatprep.mubr.bf16.mxu0 %v6278_v1 }
  0xd9   : > { %5965 = vmatmul.mubr.msk.bf16.vlgmr.msra.gmra.mrb[40].mxu1 %vm194_vm2, %v5638_v45  ;;  %5643 = vmatprep.subr.msk.bf16.mxu0 %vm198_vm1, %v1355_v46  ;;  %v1687_v49 = vpop.permute.xlu0 %1686 }
  0xda   : > { %5969 = vmatpush3.bf16.msra.mxu1 %v1366_v47  ;;  %5970 = vmatprep.mubr.msk.bf16.mxu1 %vm6277_vm0, %v6276_v0  ;;  %v1691_v11 = vsel %vm1688_vm3, %v6640_v42, %v1687_v49  ;;  %v5666_v42 = vld [vmem:[%s7391_s0 + $0x20] sm:$0x3]  ;;  %vm2788_vm3 = vcmask 482304  }
  0xdb   : > { %5974 = vmatprep.subr.bf16.mxu1 %v6276_v0  ;;  %v6666_v51 = vpop.permute.xlu1 %1794  ;;  %3110 = vrot.lane.b32.xlu1 %v6369_v4, %s6305_s26  ;;  %v1702_v16 = vsel %vm198_vm1, %v1691_v11, 0  ;;  %v5678_v11 = vld [vmem:[%s7391_s0 + $0x26] sm:$0x3] }
  0xdc   : > { %3112 = vrot.lane.b32.xlu0 %v6372_v5, %s6305_s26 }
  0xdd   : > { %v6669_v53 = vpop.permute.xlu0 %1792 }
  0xde   : > { %v1800_v27 = vsel %vm1798_vm4, %v6669_v53, %v6666_v51  ;;  %v1799_v29 = vsel %vm1798_vm4, %v6654_v48, %v6669_v53 }
  0xdf   : > { %5640 = vmatmul.mubr.msk.bf16.vlgmr.msra.gmra.mrb[40].mxu0 %vm194_vm2, %v5638_v45  ;;  %v6682_v57 = vpop.permute.xlu1 %1900  ;;  %3114 = vrot.lane.b32.xlu1 %v6421_v7, %s6305_s26  ;;  %v1806_v32 = vsel %vm198_vm1, %v1799_v29, 0  ;;  %v5686_v29 = vld [vmem:[%s7391_s0 + $0x2a] sm:$0x3] }
  0xe0   : > { %1369 = vmatpush1.bf16.msra.mxu0 %v1360_v52  ;;  %1400 = vmatprep.mubr.bf16.mxu0 %v6278_v1 }
  0xe1   : > { %5971 = vmatmul.mubr.msk.bf16.vlgmr.msra.gmra.mrb[44].mxu1 %vm194_vm2, %v5642_v54  ;;  %v1797_v58 = vpop.permute.xlu0 %1796  ;;  %5647 = vmatprep.subr.msk.bf16.mxu0 %vm198_vm1, %v1462_v55 }
  0xe2   : > { %5975 = vmatpush3.bf16.msra.mxu1 %v1473_v56  ;;  %5976 = vmatprep.mubr.msk.bf16.mxu1 %vm6277_vm0, %v6276_v0  ;;  %v1801_v21 = vsel %vm1798_vm4, %v6666_v51, %v1797_v58  ;;  %v5670_v51 = vld [vmem:[%s7391_s0 + $0x22] sm:$0x3]  ;;  %vm2898_vm4 = vcmask 474112  }
  0xe3   : > { %3116 = vrot.lane.b32.xlu0 %v6426_v8, %s6305_s26  ;;  %5980 = vmatprep.subr.bf16.mxu1 %v6276_v0  ;;  %v6695_v60 = vpop.permute.xlu1 %1904  ;;  %v1812_v26 = vsel %vm198_vm1, %v1801_v21, 0  ;;  %s6312_s26 = smov 34  }
  0xe4   : > { %3220 = vrot.lane.b32.xlu1 %v6369_v4, %s6306_s29 }
  0xe5   : > { %v6698_v62 = vpop.permute.xlu0 %1902 }
  0xe6   : > { %v1910_v35 = vsel %vm1908_vm5, %v6698_v62, %v6695_v60  ;;  %v1909_v38 = vsel %vm1908_vm5, %v6682_v57, %v6698_v62 }
  0xe7   : > { %5644 = vmatmul.mubr.msk.bf16.vlgmr.msra.gmra.mrb[44].mxu0 %vm194_vm2, %v5642_v54  ;;  %3222 = vrot.lane.b32.xlu0 %v6372_v5, %s6306_s29  ;;  %v6709_v6 = vpop.permute.xlu1 %2010  ;;  %v1916_v40 = vsel %vm198_vm1, %v1909_v38, 0  ;;  %v5690_v38 = vld [vmem:[%s7391_s0 + $0x2c] sm:$0x3] }
  0xe8   : > { %1476 = vmatpush1.bf16.msra.mxu0 %v1467_v61  ;;  %1507 = vmatprep.mubr.bf16.mxu0 %v6278_v1 }
  0xe9   : > { %5977 = vmatmul.mubr.msk.bf16.vlgmr.msra.gmra.mrb[48].mxu1 %vm194_vm2, %v5646_v63  ;;  %v1907_v9 = vpop.permute.xlu0 %1906  ;;  %5651 = vmatprep.subr.msk.bf16.mxu0 %vm198_vm1, %v1569_v2 }
  0xea   : > { %5981 = vmatpush3.bf16.msra.mxu1 %v1580_v3  ;;  %5982 = vmatprep.mubr.msk.bf16.mxu1 %vm6277_vm0, %v6276_v0  ;;  %v1911_v31 = vsel %vm1908_vm5, %v6695_v60, %v1907_v9  ;;  %v5674_v60 = vld [vmem:[%s7391_s0 + $0x24] sm:$0x3]  ;;  %vm3008_vm5 = vcmask 465920  }
  0xeb   : > { %3224 = vrot.lane.b32.xlu1 %v6421_v7, %s6306_s29  ;;  %3226 = vrot.lane.b32.xlu0 %v6426_v8, %s6306_s29  ;;  %v6724_v12 = vpop.permute.xlu1 %2014  ;;  %v1922_v34 = vsel %vm198_vm1, %v1911_v31, 0  ;;  %s6313_s29 = smov 18  }
  0xec   : > { %5986 = vmatprep.subr.bf16.mxu1 %v6276_v0 }
  0xed   : > { %v6727_v14 = vpop.permute.xlu0 %2012 }
  0xee   : > { %v2020_v44 = vsel %vm2018_vm9, %v6727_v14, %v6724_v12  ;;  %v2019_v47 = vsel %vm2018_vm9, %v6709_v6, %v6727_v14 }
  0xef   : > { %5648 = vmatmul.mubr.msk.bf16.vlgmr.msra.gmra.mrb[48].mxu0 %vm194_vm2, %v5646_v63  ;;  %3330 = vrot.lane.b32.xlu1 %v6369_v4, %s6307_s5  ;;  %v6739_v18 = vpop.permute.xlu1 %2120  ;;  %v2026_v49 = vsel %vm198_vm1, %v2019_v47, 0  ;;  %v5694_v47 = vld [vmem:[%s7391_s0 + $0x2e] sm:$0x3] }
  0xf0   : > { %1583 = vmatpush1.bf16.msra.mxu0 %v1574_v13  ;;  %3332 = vrot.lane.b32.xlu0 %v6372_v5, %s6307_s5 }
  0xf1   : > { %5983 = vmatmul.mubr.msk.bf16.vlgmr.msra.gmra.mrb[52].mxu1 %vm194_vm2, %v5650_v15  ;;  %1614 = vmatprep.mubr.bf16.mxu0 %v6278_v1  ;;  %v2017_v19 = vpop.permute.xlu0 %2016 }
  0xf2   : > { %5659 = vmatprep.subr.msk.bf16.mxu0 %vm198_vm1, %v1690_v17  ;;  %5987 = vmatpush3.bf16.msra.mxu1 %v1702_v16  ;;  %v2021_v39 = vsel %vm2018_vm9, %v6724_v12, %v2017_v19  ;;  %vm3118_vm9 = vcmask 457728  }
  0xf3   : > { %5988 = vmatprep.mubr.msk.bf16.mxu1 %vm6277_vm0, %v6276_v0  ;;  %3334 = vrot.lane.b32.xlu1 %v6421_v7, %s6307_s5  ;;  %v6757_v24 = vpop.permute.xlu1 %2124  ;;  %v2032_v43 = vsel %vm198_vm1, %v2021_v39, 0 }
  0xf4   : > { %3336 = vrot.lane.b32.xlu0 %v6426_v8, %s6307_s5  ;;  %5992 = vmatprep.subr.bf16.mxu1 %v6276_v0  ;;  %s6314_s5 = smov 17  }
  0xf5   : > { %v6755_v23 = vpop.permute.xlu0 %2122 }
  0xf6   : > { %v2130_v53 = vsel %vm2128_vm10, %v6755_v23, %v6757_v24  ;;  %v2129_v56 = vsel %vm2128_vm10, %v6739_v18, %v6755_v23 }
  0xf7   : > { %5652 = vmatmul.mubr.msk.bf16.vlgmr.msra.gmra.mrb[52].mxu0 %vm194_vm2, %v5650_v15  ;;  %3440 = vrot.lane.b32.xlu1 %v6369_v4, %s6308_s8  ;;  %v6778_v30 = vpop.permute.xlu1 %2230  ;;  %v2136_v58 = vsel %vm198_vm1, %v2129_v56, 0 }
  0xf8   : > { %1705 = vmatpush1.bf16.msra.mxu0 %v1696_v22  ;;  %3442 = vrot.lane.b32.xlu0 %v6372_v5, %s6308_s8 }
  0xf9   : > { %5989 = vmatmul.mubr.msk.bf16.vlgmr.msra.gmra.mrb[56].mxu1 %vm194_vm2, %v5654_v25  ;;  %1736 = vmatprep.mubr.bf16.mxu0 %v6278_v1  ;;  %v2127_v28 = vpop.permute.xlu0 %2126 }
  0xfa   : > { %5663 = vmatprep.subr.msk.bf16.mxu0 %vm198_vm1, %v1800_v27  ;;  %5993 = vmatpush3.bf16.msra.mxu1 %v1812_v26  ;;  %v2131_v48 = vsel %vm2128_vm10, %v6757_v24, %v2127_v28  ;;  %vm3228_vm10 = vcmask 326656  }
  0xfb   : > { %5994 = vmatprep.mubr.msk.bf16.mxu1 %vm6277_vm0, %v6276_v0  ;;  %3444 = vrot.lane.b32.xlu1 %v6421_v7, %s6308_s8  ;;  %v2142_v52 = vsel %vm198_vm1, %v2131_v48, 0 }
  0xfc   : > { %3446 = vrot.lane.b32.xlu0 %v6426_v8, %s6308_s8  ;;  %5998 = vmatprep.subr.bf16.mxu1 %v6276_v0  ;;  %v6799_v37 = vpop.permute.xlu1 %2234  ;;  %s6315_s8 = smov 16  }
  0xfd   : > { %v6794_v36 = vpop.permute.xlu0 %2232 }
  0xfe   : > { %v2240_v62 = vsel %vm2238_vm11, %v6794_v36, %v6799_v37  ;;  %v2239_v3 = vsel %vm2238_vm11, %v6778_v30, %v6794_v36 }
  0xff   : > { %5660 = vmatmul.mubr.msk.bf16.vlgmr.msra.gmra.mrb[56].mxu0 %vm194_vm2, %v5654_v25  ;;  %3550 = vrot.lane.b32.xlu1 %v6369_v4, %s6309_s11  ;;  %v2246_v9 = vsel %vm198_vm1, %v2239_v3, 0  ;;  %v5702_v3 = vld [vmem:[%s7391_s0 + $0x32] sm:$0x3] }
 0x100   : > { %1815 = vmatpush1.bf16.msra.mxu0 %v1806_v32  ;;  %3552 = vrot.lane.b32.xlu0 %v6372_v5, %s6309_s11  ;;  %v6822_v45 = vpop.permute.xlu1 %2340 }
 0x101   : > { %5995 = vmatmul.mubr.msk.bf16.vlgmr.msra.gmra.mrb[60].mxu1 %vm194_vm2, %v5662_v33  ;;  %1846 = vmatprep.mubr.bf16.mxu0 %v6278_v1  ;;  %v2237_v41 = vpop.permute.xlu0 %2236 }
 0x102   : > { %5667 = vmatprep.subr.msk.bf16.mxu0 %vm198_vm1, %v1910_v35  ;;  %5999 = vmatpush3.bf16.msra.mxu1 %v1922_v34  ;;  %v2241_v57 = vsel %vm2238_vm11, %v6799_v37, %v2237_v41  ;;  %vm3338_vm11 = vcmask 318464  }
 0x103   : > { %6000 = vmatprep.mubr.msk.bf16.mxu1 %vm6277_vm0, %v6276_v0  ;;  %3554 = vrot.lane.b32.xlu1 %v6421_v7, %s6309_s11  ;;  %v2252_v61 = vsel %vm198_vm1, %v2241_v57, 0 }
 0x104   : > { %3556 = vrot.lane.b32.xlu0 %v6426_v8, %s6309_s11  ;;  %6004 = vmatprep.subr.bf16.mxu1 %v6276_v0  ;;  %s6316_s11 = smov 15  }
 0x105   : > { %v6827_v46 = vpop.permute.xlu0 %2342 }
 0x106   : > { %v2345_v50 = vpop.permute.xlu1 %2344  ;;  %v2349_v16 = vsel %vm2348_vm12, %v6822_v45, %v6827_v46 }
 0x107   : > { %5664 = vmatmul.mubr.msk.bf16.vlgmr.msra.gmra.mrb[60].mxu0 %vm194_vm2, %v5662_v33  ;;  %3660 = vrot.lane.b32.xlu1 %v6369_v4, %s6310_s16  ;;  %v2350_v13 = vsel %vm2348_vm12, %v6827_v46, %v2345_v50  ;;  %v2356_v18 = vsel %vm198_vm1, %v2349_v16, 0  ;;  %v5706_v16 = vld [vmem:[%s7391_s0 + $0x34] sm:$0x3] }
 0x108   : > { %1925 = vmatpush1.bf16.msra.mxu0 %v1916_v40  ;;  %3662 = vrot.lane.b32.xlu0 %v6372_v5, %s6310_s16 }
 0x109   : > { %6001 = vmatmul.mubr.msk.bf16.vlgmr.msra.gmra.mrb[64].mxu1 %vm194_vm2, %v5666_v42  ;;  %1956 = vmatprep.mubr.bf16.mxu0 %v6278_v1  ;;  %v2347_v54 = vpop.permute.xlu0 %2346 }
 0x10a   : > { %5671 = vmatprep.subr.msk.bf16.mxu0 %vm198_vm1, %v2020_v44  ;;  %6005 = vmatpush3.bf16.msra.mxu1 %v2032_v43  ;;  %v2351_v6 = vsel %vm2348_vm12, %v2345_v50, %v2347_v54  ;;  %vm3448_vm12 = vcmask 310272  }
 0x10b   : > { %6006 = vmatprep.mubr.msk.bf16.mxu1 %vm6277_vm0, %v6276_v0  ;;  %3664 = vrot.lane.b32.xlu1 %v6421_v7, %s6310_s16  ;;  %v2362_v12 = vsel %vm198_vm1, %v2351_v6, 0 }
 0x10c   : > { %3666 = vrot.lane.b32.xlu0 %v6426_v8, %s6310_s16  ;;  %6010 = vmatprep.subr.bf16.mxu1 %v6276_v0  ;;  %s6317_s16 = smov 14  }
 0x10d   : > { %v6853_v55 = vpop.permute.xlu1 %2450 }
 0x10e   : > { %v2453_v59 = vpop.permute.xlu0 %2452 }
 0x10f   : > { %5668 = vmatmul.mubr.msk.bf16.vlgmr.msra.gmra.mrb[64].mxu0 %vm194_vm2, %v5666_v42  ;;  %3770 = vrot.lane.b32.xlu1 %v6369_v4, %s6311_s20  ;;  %v2459_v25 = vsel %vm2458_vm13, %v6853_v55, %v2453_v59  ;;  %v5698_v55 = vld [vmem:[%s7391_s0 + $0x30] sm:$0x3] }
 0x110   : > { %2035 = vmatpush1.bf16.msra.mxu0 %v2026_v49  ;;  %3772 = vrot.lane.b32.xlu0 %v6372_v5, %s6311_s20  ;;  %v2466_v27 = vsel %vm198_vm1, %v2459_v25, 0 }
 0x111   : > { %6007 = vmatmul.mubr.msk.bf16.vlgmr.msra.gmra.mrb[68].mxu1 %vm194_vm2, %v5670_v51  ;;  %2066 = vmatprep.mubr.bf16.mxu0 %v6278_v1  ;;  %v2455_v63 = vpop.permute.xlu1 %2454 }
 0x112   : > { %5675 = vmatprep.subr.msk.bf16.mxu0 %vm198_vm1, %v2130_v53  ;;  %6011 = vmatpush3.bf16.msra.mxu1 %v2142_v52  ;;  %v2460_v22 = vsel %vm2458_vm13, %v2453_v59, %v2455_v63 }
 0x113   : > { %6012 = vmatprep.mubr.msk.bf16.mxu1 %vm6277_vm0, %v6276_v0  ;;  %3774 = vrot.lane.b32.xlu1 %v6421_v7, %s6311_s20 }
 0x114   : > { %3776 = vrot.lane.b32.xlu0 %v6426_v8, %s6311_s20  ;;  %6016 = vmatprep.subr.bf16.mxu1 %v6276_v0  ;;  %s6318_s20 = smov 13  }
 0x115   : > { %v2457_v2 = vpop.permute.xlu0 %2456 }
 0x116   : > { %v2561_v10 = vpop.permute.xlu1 %2560  ;;  %v2461_v17 = vsel %vm2458_vm13, %v2455_v63, %v2457_v2  ;;  %vm3558_vm13 = vcmask 302080  }
 0x117   : > { %5672 = vmatmul.mubr.msk.bf16.vlgmr.msra.gmra.mrb[68].mxu0 %vm194_vm2, %v5670_v51  ;;  %3880 = vrot.lane.b32.xlu1 %v6369_v4, %s6312_s26  ;;  %v2472_v21 = vsel %vm198_vm1, %v2461_v17, 0 }
 0x118   : > { %2145 = vmatpush1.bf16.msra.mxu0 %v2136_v58  ;;  %3882 = vrot.lane.b32.xlu0 %v6372_v5, %s6312_s26 }
 0x119   : > { %6013 = vmatmul.mubr.msk.bf16.vlgmr.msra.gmra.mrb[72].mxu1 %vm194_vm2, %v5674_v60  ;;  %2176 = vmatprep.mubr.bf16.mxu0 %v6278_v1  ;;  %v2563_v14 = vpop.permute.xlu0 %2562 }
 0x11a   : > { %5679 = vmatprep.subr.msk.bf16.mxu0 %vm198_vm1, %v2240_v62  ;;  %6017 = vmatpush3.bf16.msra.mxu1 %v2252_v61  ;;  %v2569_v34 = vsel %vm2568_vm14, %v2561_v10, %v2563_v14 }
 0x11b   : > { %6018 = vmatprep.mubr.msk.bf16.mxu1 %vm6277_vm0, %v6276_v0  ;;  %3884 = vrot.lane.b32.xlu1 %v6421_v7, %s6312_s26  ;;  %v2576_v36 = vsel %vm198_vm1, %v2569_v34, 0 }
 0x11c   : > { %3886 = vrot.lane.b32.xlu0 %v6426_v8, %s6312_s26  ;;  %6022 = vmatprep.subr.bf16.mxu1 %v6276_v0  ;;  %s6319_s26 = smov 12  }
 0x11d   : > { %v2565_v15 = vpop.permute.xlu1 %2564 }
 0x11e   : > { %v2567_v19 = vpop.permute.xlu0 %2566  ;;  %v2570_v31 = vsel %vm2568_vm14, %v2563_v14, %v2565_v15 }
 0x11f   : > { %5676 = vmatmul.mubr.msk.bf16.vlgmr.msra.gmra.mrb[72].mxu0 %vm194_vm2, %v5674_v60  ;;  %3990 = vrot.lane.b32.xlu1 %v6369_v4, %s6313_s29  ;;  %v2571_v26 = vsel %vm2568_vm14, %v2565_v15, %v2567_v19  ;;  %vm3668_vm14 = vcmask 293888  }
 0x120   : > { %2255 = vmatpush1.bf16.msra.mxu0 %v2246_v9  ;;  %3992 = vrot.lane.b32.xlu0 %v6372_v5, %s6313_s29  ;;  %v2582_v30 = vsel %vm198_vm1, %v2571_v26, 0 }
 0x121   : > { %6019 = vmatmul.mubr.msk.bf16.vlgmr.msra.gmra.mrb[76].mxu1 %vm194_vm2, %v5678_v11  ;;  %2286 = vmatprep.mubr.bf16.mxu0 %v6278_v1  ;;  %v2671_v23 = vpop.permute.xlu1 %2670 }
 0x122   : > { %5683 = vmatprep.subr.msk.bf16.mxu0 %vm198_vm1, %v2350_v13  ;;  %6023 = vmatpush3.bf16.msra.mxu1 %v2362_v12 }
 0x123   : > { %6024 = vmatprep.mubr.msk.bf16.mxu1 %vm6277_vm0, %v6276_v0  ;;  %3994 = vrot.lane.b32.xlu1 %v6421_v7, %s6313_s29 }
 0x124   : > { %3996 = vrot.lane.b32.xlu0 %v6426_v8, %s6313_s29  ;;  %6028 = vmatprep.subr.bf16.mxu1 %v6276_v0 }
 0x125   : > { %v2673_v24 = vpop.permute.xlu0 %2672 }
 0x126   : > { %v2675_v28 = vpop.permute.xlu1 %2674  ;;  %v2679_v43 = vsel %vm2678_vm15, %v2671_v23, %v2673_v24 }
 0x127   : > { %5680 = vmatmul.mubr.msk.bf16.vlgmr.msra.gmra.mrb[76].mxu0 %vm194_vm2, %v5678_v11  ;;  %4100 = vrot.lane.b32.xlu1 %v6369_v4, %s6314_s5  ;;  %v2680_v39 = vsel %vm2678_vm15, %v2673_v24, %v2675_v28  ;;  %v2686_v45 = vsel %vm198_vm1, %v2679_v43, 0  ;;  %v4758_v11 = vld [vmem:[%s6363_s17 + $0x4] sm:$0xff] }
 0x128   : > { %2365 = vmatpush1.bf16.msra.mxu0 %v2356_v18  ;;  %4102 = vrot.lane.b32.xlu0 %v6372_v5, %s6314_s5  ;;  %v7033_v19 = vcombine.high %v4758_v11, %v4758_v11 }
 0x129   : > { %6025 = vmatmul.mubr.msk.bf16.vlgmr.msra.gmra.mrb[80].mxu1 %vm194_vm2, %v5682_v20  ;;  %2396 = vmatprep.mubr.bf16.mxu0 %v6278_v1  ;;  %v2677_v32 = vpop.permute.xlu0 %2676 }
 0x12a   : > { %5687 = vmatprep.subr.msk.bf16.mxu0 %vm198_vm1, %v2460_v22  ;;  %6029 = vmatpush3.bf16.msra.mxu1 %v2472_v21  ;;  %v2681_v35 = vsel %vm2678_vm15, %v2675_v28, %v2677_v32  ;;  %v5710_v28 = vld [vmem:[%s7391_s0 + $0x36] sm:$0x3]  ;;  %vm3778_vm15 = vcmask 285696  }
 0x12b   : > { %6030 = vmatprep.mubr.msk.bf16.mxu1 %vm6277_vm0, %v6276_v0  ;;  %4104 = vrot.lane.b32.xlu1 %v6421_v7, %s6314_s5  ;;  %v2692_v40 = vsel %vm198_vm1, %v2681_v35, 0 }
 0x12c   : > { %4106 = vrot.lane.b32.xlu0 %v6426_v8, %s6314_s5  ;;  %6034 = vmatprep.subr.bf16.mxu1 %v6276_v0 }
 0x12d   : > { %v2781_v33 = vpop.permute.xlu1 %2780 }
 0x12e   : > { %v2783_v37 = vpop.permute.xlu0 %2782 }
 0x12f   : > { %5684 = vmatmul.mubr.msk.bf16.vlgmr.msra.gmra.mrb[80].mxu0 %vm194_vm2, %v5682_v20  ;;  %4210 = vrot.lane.b32.xlu1 %v6369_v4, %s6315_s8  ;;  %v2789_v52 = vsel %vm2788_vm3, %v2781_v33, %v2783_v37 }
 0x130   : > { %2475 = vmatpush1.bf16.msra.mxu0 %v2466_v27  ;;  %4212 = vrot.lane.b32.xlu0 %v6372_v5, %s6315_s8  ;;  %v2796_v53 = vsel %vm198_vm1, %v2789_v52, 0 }
 0x131   : > { %6031 = vmatmul.mubr.msk.bf16.vlgmr.msra.gmra.mrb[84].mxu1 %vm194_vm2, %v5686_v29  ;;  %2506 = vmatprep.mubr.bf16.mxu0 %v6278_v1  ;;  %v2785_v41 = vpop.permute.xlu1 %2784 }
 0x132   : > { %5691 = vmatprep.subr.msk.bf16.mxu0 %vm198_vm1, %v2570_v31  ;;  %6035 = vmatpush3.bf16.msra.mxu1 %v2582_v30  ;;  %v2790_v48 = vsel %vm2788_vm3, %v2783_v37, %v2785_v41 }
 0x133   : > { %6036 = vmatprep.mubr.msk.bf16.mxu1 %vm6277_vm0, %v6276_v0  ;;  %4214 = vrot.lane.b32.xlu1 %v6421_v7, %s6315_s8 }
 0x134   : > { %4216 = vrot.lane.b32.xlu0 %v6426_v8, %s6315_s8  ;;  %6040 = vmatprep.subr.bf16.mxu1 %v6276_v0  ;;  %s6322_s8 = smov 119  }
 0x135   : > { %v2787_v42 = vpop.permute.xlu0 %2786 }
 0x136   : > { %v2791_v44 = vsel %vm2788_vm3, %v2785_v41, %v2787_v42  ;;  %v2891_v46 = vpop.permute.xlu1 %2890  ;;  %vm3888_vm3 = vcmask 277504  }
 0x137   : > { %5688 = vmatmul.mubr.msk.bf16.vlgmr.msra.gmra.mrb[84].mxu0 %vm194_vm2, %v5686_v29  ;;  %4320 = vrot.lane.b32.xlu1 %v6369_v4, %s6316_s11  ;;  %v2802_v49 = vsel %vm198_vm1, %v2791_v44, 0 }
 0x138   : > { %2585 = vmatpush1.bf16.msra.mxu0 %v2576_v36  ;;  %4322 = vrot.lane.b32.xlu0 %v6372_v5, %s6316_s11 }
 0x139   : > { %6037 = vmatmul.mubr.msk.bf16.vlgmr.msra.gmra.mrb[88].mxu1 %vm194_vm2, %v5690_v38  ;;  %2616 = vmatprep.mubr.bf16.mxu0 %v6278_v1  ;;  %v2893_v50 = vpop.permute.xlu0 %2892 }
 0x13a   : > { %5695 = vmatprep.subr.msk.bf16.mxu0 %vm198_vm1, %v2680_v39  ;;  %6041 = vmatpush3.bf16.msra.mxu1 %v2692_v40  ;;  %v2899_v61 = vsel %vm2898_vm4, %v2891_v46, %v2893_v50  ;;  %v5714_v46 = vld [vmem:[%s7391_s0 + $0x38] sm:$0x3] }
 0x13b   : > { %6042 = vmatprep.mubr.msk.bf16.mxu1 %vm6277_vm0, %v6276_v0  ;;  %4324 = vrot.lane.b32.xlu1 %v6421_v7, %s6316_s11  ;;  %v2906_v62 = vsel %vm198_vm1, %v2899_v61, 0 }
 0x13c   : > { %4326 = vrot.lane.b32.xlu0 %v6426_v8, %s6316_s11  ;;  %6046 = vmatprep.subr.bf16.mxu1 %v6276_v0  ;;  %s6323_s11 = smov 118  }
 0x13d   : > { %v2895_v51 = vpop.permute.xlu1 %2894 }
 0x13e   : > { %v2897_v54 = vpop.permute.xlu0 %2896  ;;  %v2900_v57 = vsel %vm2898_vm4, %v2893_v50, %v2895_v51 }
 0x13f   : > { %5692 = vmatmul.mubr.msk.bf16.vlgmr.msra.gmra.mrb[88].mxu0 %vm194_vm2, %v5690_v38  ;;  %4430 = vrot.lane.b32.xlu1 %v6369_v4, %s6317_s16  ;;  %v2901_v56 = vsel %vm2898_vm4, %v2895_v51, %v2897_v54  ;;  %vm3998_vm4 = vcmask 146432  }
 0x140   : > { %2695 = vmatpush1.bf16.msra.mxu0 %v2686_v45  ;;  %4432 = vrot.lane.b32.xlu0 %v6372_v5, %s6317_s16  ;;  %v2912_v58 = vsel %vm198_vm1, %v2901_v56, 0 }
 0x141   : > { %6043 = vmatmul.mubr.msk.bf16.vlgmr.msra.gmra.mrb[92].mxu1 %vm194_vm2, %v5694_v47  ;;  %2726 = vmatprep.mubr.bf16.mxu0 %v6278_v1  ;;  %v3001_v59 = vpop.permute.xlu1 %3000 }
 0x142   : > { %5699 = vmatprep.subr.msk.bf16.mxu0 %vm198_vm1, %v2790_v48  ;;  %6047 = vmatpush3.bf16.msra.mxu1 %v2802_v49 }
 0x143   : > { %6048 = vmatprep.mubr.msk.bf16.mxu1 %vm6277_vm0, %v6276_v0  ;;  %4434 = vrot.lane.b32.xlu1 %v6421_v7, %s6317_s16 }
 0x144   : > { %4436 = vrot.lane.b32.xlu0 %v6426_v8, %s6317_s16  ;;  %6052 = vmatprep.subr.bf16.mxu1 %v6276_v0 }
 0x145   : > { %v3003_v60 = vpop.permute.xlu0 %3002 }
 0x146   : > { %v3005_v63 = vpop.permute.xlu1 %3004  ;;  %v3009_v13 = vsel %vm3008_vm5, %v3001_v59, %v3003_v60 }
 0x147   : > { %5696 = vmatmul.mubr.msk.bf16.vlgmr.msra.gmra.mrb[92].mxu0 %vm194_vm2, %v5694_v47  ;;  %4540 = vrot.lane.b32.xlu1 %v6369_v4, %s6318_s20  ;;  %v3010_v9 = vsel %vm3008_vm5, %v3003_v60, %v3005_v63 }
 0x148   : > { %2805 = vmatpush1.bf16.msra.mxu0 %v2796_v53  ;;  %4542 = vrot.lane.b32.xlu0 %v6372_v5, %s6318_s20 }
 0x149   : > { %6049 = vmatmul.mubr.msk.bf16.vlgmr.msra.gmra.mrb[96].mxu1 %vm194_vm2, %v5698_v55  ;;  %2836 = vmatprep.mubr.bf16.mxu0 %v6278_v1  ;;  %v3007_v2 = vpop.permute.xlu0 %3006 }
 0x14a   : > { %5703 = vmatprep.subr.msk.bf16.mxu0 %vm198_vm1, %v2900_v57  ;;  %6053 = vmatpush3.bf16.msra.mxu1 %v2912_v58  ;;  %v3011_v6 = vsel %vm3008_vm5, %v3005_v63, %v3007_v2  ;;  %vm4108_vm5 = vcmask 138240  }
 0x14b   : > { %6054 = vmatprep.mubr.msk.bf16.mxu1 %vm6277_vm0, %v6276_v0  ;;  %4544 = vrot.lane.b32.xlu1 %v6421_v7, %s6318_s20  ;;  %v3022_v10 = vsel %vm198_vm1, %v3011_v6, 0 }
 0x14c   : > { %4546 = vrot.lane.b32.xlu0 %v6426_v8, %s6318_s20  ;;  %6058 = vmatprep.subr.bf16.mxu1 %v6276_v0 }
 0x14d   : > { %v3111_v12 = vpop.permute.xlu1 %3110 }
 0x14e   : > { %v3113_v14 = vpop.permute.xlu0 %3112 }
 0x14f   : > { %5700 = vmatmul.mubr.msk.bf16.vlgmr.msra.gmra.mrb[96].mxu0 %vm194_vm2, %v5698_v55  ;;  %4650 = vrot.lane.b32.xlu1 %v6369_v4, %s6319_s26  ;;  %v7024_v4 = vcombine.low %v4758_v11, %v4758_v11  ;;  %v3119_v22 = vsel %vm3118_vm9, %v3111_v12, %v3113_v14 }
 0x150   : > { %2915 = vmatpush1.bf16.msra.mxu0 %v2906_v62  ;;  %4652 = vrot.lane.b32.xlu0 %v6372_v5, %s6319_s26  ;;  %v3016_v5 = vsel %vm198_vm1, %v3009_v13, 0  ;;  %v3126_v25 = vsel %vm198_vm1, %v3119_v22, 0 }
 0x151   : > { %6055 = vmatmul.mubr.msk.bf16.vlgmr.msra.gmra.mrb[100].mxu1 %vm194_vm2, %v5702_v3  ;;  %2946 = vmatprep.mubr.bf16.mxu0 %v6278_v1  ;;  %v3115_v15 = vpop.permute.xlu1 %3114 }
 0x152   : > { %5707 = vmatprep.subr.msk.bf16.mxu0 %vm198_vm1, %v3010_v9  ;;  %6059 = vmatpush3.bf16.msra.mxu1 %v3022_v10  ;;  %v3120_v17 = vsel %vm3118_vm9, %v3113_v14, %v3115_v15  ;;  %v5718_v9 = vld [vmem:[%s7391_s0 + $0x3a] sm:$0x3] }
 0x153   : > { %6060 = vmatprep.mubr.msk.bf16.mxu1 %vm6277_vm0, %v6276_v0  ;;  %4654 = vrot.lane.b32.xlu1 %v6421_v7, %s6319_s26 }
 0x154   : > { %4656 = vrot.lane.b32.xlu0 %v6426_v8, %s6319_s26  ;;  %6064 = vmatprep.subr.bf16.mxu1 %v6276_v0  ;;  %v7040_v8 = vld [vmem:[%s6363_s17 + $0xc] ss:$0 sps:$4 sm:$0xff]   ;;  %s6196_s17 = smul.u32 12, %s7396_s13 }
 0x155   : > { %v3117_v18 = vpop.permute.xlu0 %3116 }
 0x156   : > { %v3121_v7 = vsel %vm3118_vm9, %v3115_v15, %v3117_v18  ;;  %v3221_v21 = vpop.permute.xlu1 %3220  ;;  %vm4218_vm9 = vcmask 130048   ;;  %s170_s30 = scalar_lea.vmem %s7394_s3, %s6196_s17 }
 0x157   : > { %5704 = vmatmul.mubr.msk.bf16.vlgmr.msra.gmra.mrb[100].mxu0 %vm194_vm2, %v5702_v3  ;;  %4770 = vrot.lane.b32.xlu1 %v7024_v4, %s6282_s21  ;;  %v3132_v20 = vsel %vm198_vm1, %v3121_v7, 0 }
 0x158   : > { %3025 = vmatpush1.bf16.msra.mxu0 %v3016_v5  ;;  %3056 = vmatprep.mubr.bf16.mxu0 %v6278_v1 }
 0x159   : > { %6061 = vmatmul.mubr.msk.bf16.vlgmr.msra.gmra.mrb[104].mxu1 %vm194_vm2, %v5706_v16  ;;  %5711 = vmatprep.subr.msk.bf16.mxu0 %vm198_vm1, %v3120_v17  ;;  %v3223_v23 = vpop.permute.xlu0 %3222 }
 0x15a   : > { %4772 = vrot.lane.b32.xlu0 %v7033_v19, %s6282_s21  ;;  %6065 = vmatpush3.bf16.msra.mxu1 %v3132_v20  ;;  %v3229_v36 = vsel %vm3228_vm10, %v3221_v21, %v3223_v23 }
 0x15b   : > { %6066 = vmatprep.mubr.msk.bf16.mxu1 %vm6277_vm0, %v6276_v0  ;;  %4774 = vrot.lane.b32.xlu1 %v7040_v8, %s6282_s21  ;;  %v283_v24 = vpop.f32.mrb[0].mxu1  ;;  %v3236_v42 = vsel %vm198_vm1, %v3229_v36, 0 }
 0x15c   : > { %6070 = vmatprep.subr.bf16.mxu1 %v6276_v0  ;;  %v5906_v26 = vpop.f32.mrb[1].mxu1 }
 0x15d   : > { %v3225_v27 = vpop.permute.xlu1 %3224  ;;  %v286_v29 = vpop.f32.mrb[2].mxu1 }
 0x15e   : > { %v3230_v30 = vsel %vm3228_vm10, %v3223_v23, %v3225_v27  ;;  %v3227_v31 = vpop.permute.xlu0 %3226  ;;  %4876 = vrot.lane.b32.xlu0 %v7024_v4, %s6283_s22  ;;  %v5907_v33 = vpop.f32.mrb[3].mxu1  ;;  %v5722_v29 = vld [vmem:[%s7391_s0 + $0x3c] sm:$0x3] }
 0x15f   : > { %5708 = vmatmul.mubr.msk.bf16.vlgmr.msra.gmra.mrb[104].mxu0 %vm194_vm2, %v5706_v16  ;;  %v3231_v32 = vsel %vm3228_vm10, %v3225_v27, %v3227_v31  ;;  %4878 = vrot.lane.b32.xlu1 %v7033_v19, %s6283_s22  ;;  %vm4328_vm10 = vcmask 121856  }
 0x160   : > { %3135 = vmatpush1.bf16.msra.mxu0 %v3126_v25  ;;  %v3242_v34 = vsel %vm198_vm1, %v3231_v32, 0  ;;  %3166 = vmatprep.mubr.bf16.mxu0 %v6278_v1 }
 0x161   : > { %6067 = vmatmul.mubr.msk.bf16.vlgmr.msra.gmra.mrb[108].mxu1 %vm194_vm2, %v5710_v28  ;;  %5715 = vmatprep.subr.msk.bf16.mxu0 %vm198_vm1, %v3230_v30  ;;  %v3331_v35 = vpop.permute.xlu1 %3330 }
 0x162   : > { %v242_v37 = vpop.f32.mrb[0].mxu0  ;;  %6071 = vmatpush3.bf16.msra.mxu1 %v3242_v34  ;;  %v3333_v38 = vpop.permute.xlu0 %3332  ;;  %6072 = vmatprep.mubr.msk.bf16.mxu1 %vm6277_vm0, %v6276_v0 }
 0x163   : > { %v244_v39 = vpop.f32.mrb[1].mxu0  ;;  %4880 = vrot.lane.b32.xlu0 %v7040_v8, %s6283_s22  ;;  %4982 = vrot.lane.b32.xlu1 %v7024_v4, %s6284_s23  ;;  %v3339_v54 = vsel %vm3338_vm11, %v3331_v35, %v3333_v38  ;;  %s6320_s22 = smov 121  }
 0x164   : > { %v246_v40 = vpop.f32.mrb[2].mxu0  ;;  %v376_v41 = vpop.f32.mrb[4].mxu1  ;;  %6076 = vmatprep.subr.bf16.mxu1 %v6276_v0  ;;  %v3346_v63 = vsel %vm198_vm1, %v3339_v54, 0 }
 0x165   : > { %v247_v43 = vpop.f32.mrb[3].mxu0  ;;  %v377_v44 = vadd.f32 %v376_v41, %v283_v24  ;;  %v5912_v45 = vpop.f32.mrb[5].mxu1 }
 0x166   : > { %v379_v47 = vpop.f32.mrb[6].mxu1  ;;  %v3335_v48 = vpop.permute.xlu1 %3334 }
 0x167   : > { %5712 = vmatmul.mubr.msk.bf16.vlgmr.msra.gmra.mrb[108].mxu0 %vm194_vm2, %v5710_v28  ;;  %v5913_v49 = vpop.f32.mrb[7].mxu1  ;;  %v3340_v50 = vsel %vm3338_vm11, %v3333_v38, %v3335_v48  ;;  %v3337_v51 = vpop.permute.xlu0 %3336  ;;  %4984 = vrot.lane.b32.xlu0 %v7033_v19, %s6284_s23 }
 0x168   : > { %3245 = vmatpush1.bf16.msra.mxu0 %v3236_v42  ;;  %v3341_v52 = vsel %vm3338_vm11, %v3335_v48, %v3337_v51  ;;  %3276 = vmatprep.mubr.bf16.mxu0 %v6278_v1  ;;  %vm4438_vm11 = vcmask 113664  }
 0x169   : > { %6073 = vmatmul.mubr.msk.bf16.vlgmr.msra.gmra.mrb[112].mxu1 %vm194_vm2, %v5714_v46  ;;  %v3352_v53 = vsel %vm198_vm1, %v3341_v52, 0  ;;  %5719 = vmatprep.subr.msk.bf16.mxu0 %vm198_vm1, %v3340_v50  ;;  %v5726_v50 = vld [vmem:[%s7391_s0 + $0x3e] sm:$0x3] }
 0x16a   : > { %v335_v55 = vpop.f32.mrb[4].mxu0  ;;  %6077 = vmatpush3.bf16.msra.mxu1 %v3352_v53  ;;  %v3441_v56 = vpop.permute.xlu1 %3440  ;;  %6078 = vmatprep.mubr.msk.bf16.mxu1 %vm6277_vm0, %v6276_v0 }
 0x16b   : > { %v336_v57 = vadd.f32 %v335_v55, %v242_v37  ;;  %v337_v58 = vpop.f32.mrb[5].mxu0  ;;  %v3443_v59 = vpop.permute.xlu0 %3442  ;;  %4986 = vrot.lane.b32.xlu1 %v7040_v8, %s6284_s23  ;;  %5088 = vrot.lane.b32.xlu0 %v7024_v4, %s6320_s22  ;;  %s6321_s23 = smov 120  }
 0x16c   : > { %v338_v60 = vadd.f32 %v337_v58, %v244_v39  ;;  %v339_v61 = vpop.f32.mrb[6].mxu0  ;;  %v480_v62 = vpop.f32.mrb[8].mxu1  ;;  %6082 = vmatprep.subr.bf16.mxu1 %v6276_v0  ;;  %v3449_v16 = vsel %vm3448_vm12, %v3441_v56, %v3443_v59 }
 0x16d   : > { %v340_v2 = vpop.f32.mrb[7].mxu0  ;;  %v488_v3 = vadd.f32 %v480_v62, %v377_v44  ;;  %v5918_v6 = vpop.f32.mrb[9].mxu1  ;;  %v3456_v25 = vsel %vm198_vm1, %v3449_v16, 0 }
 0x16e   : > { %v483_v10 = vpop.f32.mrb[10].mxu1  ;;  %v3445_v11 = vpop.permute.xlu1 %3444 }
 0x16f   : > { %5716 = vmatmul.mubr.msk.bf16.vlgmr.msra.gmra.mrb[112].mxu0 %vm194_vm2, %v5714_v46  ;;  %v5919_v12 = vpop.f32.mrb[11].mxu1  ;;  %v3450_v13 = vsel %vm3448_vm12, %v3443_v59, %v3445_v11  ;;  %v3447_v14 = vpop.permute.xlu0 %3446  ;;  %5090 = vrot.lane.b32.xlu1 %v7033_v19, %s6320_s22 }
 0x170   : > { %3355 = vmatpush1.bf16.msra.mxu0 %v3346_v63  ;;  %v3451_v5 = vsel %vm3448_vm12, %v3445_v11, %v3447_v14  ;;  %3386 = vmatprep.mubr.bf16.mxu0 %v6278_v1  ;;  %vm4548_vm12 = vcmask 105472  }
 0x171   : > { %6079 = vmatmul.mubr.msk.bf16.vlgmr.msra.gmra.mrb[116].mxu1 %vm194_vm2, %v5718_v9  ;;  %v3462_v15 = vsel %vm198_vm1, %v3451_v5, 0  ;;  %5723 = vmatprep.subr.msk.bf16.mxu0 %vm198_vm1, %v3450_v13  ;;  %v5730_v13 = vld [vmem:[%s7391_s0 + $0x40] sm:$0x3] }
 0x172   : > { %v439_v17 = vpop.f32.mrb[8].mxu0  ;;  %6083 = vmatpush3.bf16.msra.mxu1 %v3462_v15  ;;  %v3551_v18 = vpop.permute.xlu1 %3550  ;;  %6084 = vmatprep.mubr.msk.bf16.mxu1 %vm6277_vm0, %v6276_v0 }
 0x173   : > { %v486_v7 = vadd.f32 %v439_v17, %v336_v57  ;;  %v441_v20 = vpop.f32.mrb[9].mxu0  ;;  %v3553_v21 = vpop.permute.xlu0 %3552  ;;  %5092 = vrot.lane.b32.xlu0 %v7040_v8, %s6320_s22  ;;  %5195 = vrot.lane.b32.xlu1 %v7024_v4, %s6321_s23 }
 0x174   : > { %v487_v22 = vadd.f32 %v441_v20, %v338_v60  ;;  %v443_v23 = vpop.f32.mrb[10].mxu0  ;;  %v587_v24 = vpop.f32.mrb[12].mxu1  ;;  %6088 = vmatprep.subr.bf16.mxu1 %v6276_v0  ;;  %v3559_v37 = vsel %vm3558_vm13, %v3551_v18, %v3553_v21 }
 0x175   : > { %v444_v26 = vpop.f32.mrb[11].mxu0  ;;  %v595_v27 = vadd.f32 %v587_v24, %v488_v3  ;;  %v5924_v28 = vpop.f32.mrb[13].mxu1  ;;  %v3566_v46 = vsel %vm198_vm1, %v3559_v37, 0 }
 0x176   : > { %v590_v30 = vpop.f32.mrb[14].mxu1  ;;  %v3555_v31 = vpop.permute.xlu1 %3554 }
 0x177   : > { %5720 = vmatmul.mubr.msk.bf16.vlgmr.msra.gmra.mrb[116].mxu0 %vm194_vm2, %v5718_v9  ;;  %v3560_v32 = vsel %vm3558_vm13, %v3553_v21, %v3555_v31  ;;  %v5925_v33 = vpop.f32.mrb[15].mxu1  ;;  %v3557_v34 = vpop.permute.xlu0 %3556  ;;  %5197 = vrot.lane.b32.xlu0 %v7033_v19, %s6321_s23 }
 0x178   : > { %3465 = vmatpush1.bf16.msra.mxu0 %v3456_v25  ;;  %v3561_v35 = vsel %vm3558_vm13, %v3555_v31, %v3557_v34  ;;  %3496 = vmatprep.mubr.bf16.mxu0 %v6278_v1  ;;  %v5734_v31 = vld [vmem:[%s7391_s0 + $0x42] sm:$0x3]  ;;  %vm4658_vm13 = vcmask 97280  }
 0x179   : > { %6085 = vmatmul.mubr.msk.bf16.vlgmr.msra.gmra.mrb[120].mxu1 %vm194_vm2, %v5722_v29  ;;  %v3572_v36 = vsel %vm198_vm1, %v3561_v35, 0  ;;  %5727 = vmatprep.subr.msk.bf16.mxu0 %vm198_vm1, %v3560_v32 }
 0x17a   : > { %v546_v38 = vpop.f32.mrb[12].mxu0  ;;  %6089 = vmatpush3.bf16.msra.mxu1 %v3572_v36  ;;  %v3661_v39 = vpop.permute.xlu1 %3660  ;;  %6090 = vmatprep.mubr.msk.bf16.mxu1 %vm6277_vm0, %v6276_v0 }
 0x17b   : > { %v593_v40 = vadd.f32 %v546_v38, %v486_v7  ;;  %v548_v41 = vpop.f32.mrb[13].mxu0  ;;  %v3663_v42 = vpop.permute.xlu0 %3662  ;;  %5199 = vrot.lane.b32.xlu1 %v7040_v8, %s6321_s23  ;;  %5302 = vrot.lane.b32.xlu0 %v7024_v4, %s6322_s8 }
 0x17c   : > { %v594_v43 = vadd.f32 %v548_v41, %v487_v22  ;;  %v550_v44 = vpop.f32.mrb[14].mxu0  ;;  %v694_v45 = vpop.f32.mrb[16].mxu1  ;;  %6094 = vmatprep.subr.bf16.mxu1 %v6276_v0  ;;  %v3669_v58 = vsel %vm3668_vm14, %v3661_v39, %v3663_v42 }
 0x17d   : > { %v551_v47 = vpop.f32.mrb[15].mxu0  ;;  %v702_v48 = vadd.f32 %v694_v45, %v595_v27  ;;  %v5930_v49 = vpop.f32.mrb[17].mxu1  ;;  %v3676_v9 = vsel %vm198_vm1, %v3669_v58, 0 }
 0x17e   : > { %v697_v51 = vpop.f32.mrb[18].mxu1  ;;  %v3665_v52 = vpop.permute.xlu1 %3664 }
 0x17f   : > { %5724 = vmatmul.mubr.msk.bf16.vlgmr.msra.gmra.mrb[120].mxu0 %vm194_vm2, %v5722_v29  ;;  %v3670_v53 = vsel %vm3668_vm14, %v3663_v42, %v3665_v52  ;;  %v5931_v54 = vpop.f32.mrb[19].mxu1  ;;  %v3667_v55 = vpop.permute.xlu0 %3666  ;;  %5304 = vrot.lane.b32.xlu1 %v7033_v19, %s6322_s8  ;;  %v5738_v51 = vld [vmem:[%s7391_s0 + $0x44] sm:$0x3] }
 0x180   : > { %3575 = vmatpush1.bf16.msra.mxu0 %v3566_v46  ;;  %v3671_v56 = vsel %vm3668_vm14, %v3665_v52, %v3667_v55  ;;  %3606 = vmatprep.mubr.bf16.mxu0 %v6278_v1  ;;  %vm5415_vm14 = vcmask 965632  }
 0x181   : > { %6091 = vmatmul.mubr.msk.bf16.vlgmr.msra.gmra.mrb[124].mxu1 %vm194_vm2, %v5726_v50  ;;  %v3682_v57 = vsel %vm198_vm1, %v3671_v56, 0  ;;  %5731 = vmatprep.subr.msk.bf16.mxu0 %vm198_vm1, %v3670_v53 }
 0x182   : > { %v653_v59 = vpop.f32.mrb[16].mxu0  ;;  %6095 = vmatpush3.bf16.msra.mxu1 %v3682_v57  ;;  %v3771_v60 = vpop.permute.xlu1 %3770  ;;  %6096 = vmatprep.mubr.msk.bf16.mxu1 %vm6277_vm0, %v6276_v0 }
 0x183   : > { %v700_v61 = vadd.f32 %v653_v59, %v593_v40  ;;  %v655_v62 = vpop.f32.mrb[17].mxu0  ;;  %v3773_v63 = vpop.permute.xlu0 %3772  ;;  %5306 = vrot.lane.b32.xlu0 %v7040_v8, %s6322_s8  ;;  %5409 = vrot.lane.b32.xlu1 %v7024_v4, %s6323_s11 }
 0x184   : > { %v701_v2 = vadd.f32 %v655_v62, %v594_v43  ;;  %v657_v3 = vpop.f32.mrb[18].mxu0  ;;  %v801_v6 = vpop.f32.mrb[20].mxu1  ;;  %6100 = vmatprep.subr.bf16.mxu1 %v6276_v0  ;;  %v3779_v7 = vsel %vm3778_vm15, %v3771_v60, %v3773_v63 }
 0x185   : > { %v658_v10 = vpop.f32.mrb[19].mxu0  ;;  %v809_v11 = vadd.f32 %v801_v6, %v702_v48  ;;  %v5936_v12 = vpop.f32.mrb[21].mxu1  ;;  %v3786_v27 = vsel %vm198_vm1, %v3779_v7, 0 }
 0x186   : > { %v804_v14 = vpop.f32.mrb[22].mxu1  ;;  %v3775_v5 = vpop.permute.xlu1 %3774 }
 0x187   : > { %5728 = vmatmul.mubr.msk.bf16.vlgmr.msra.gmra.mrb[124].mxu0 %vm194_vm2, %v5726_v50  ;;  %v3780_v4 = vsel %vm3778_vm15, %v3773_v63, %v3775_v5  ;;  %v5937_v15 = vpop.f32.mrb[23].mxu1  ;;  %v3777_v16 = vpop.permute.xlu0 %3776  ;;  %5411 = vrot.lane.b32.xlu0 %v7033_v19, %s6323_s11  ;;  %v5742_v14 = vld [vmem:[%s7391_s0 + $0x46] sm:$0x3] }
 0x188   : > { %3685 = vmatpush1.bf16.msra.mxu0 %v3676_v9  ;;  %v3781_v17 = vsel %vm3778_vm15, %v3775_v5, %v3777_v16  ;;  %3716 = vmatprep.mubr.bf16.mxu0 %v6278_v1 }
 0x189   : > { %6097 = vmatmul.mubr.msk.bf16.vlgmr.msra.gmra.mrb[128].mxu1 %vm194_vm2, %v5730_v13  ;;  %v3792_v18 = vsel %vm198_vm1, %v3781_v17, 0  ;;  %5735 = vmatprep.subr.msk.bf16.mxu0 %vm198_vm1, %v3780_v4 }
 0x18a   : > { %v760_v20 = vpop.f32.mrb[20].mxu0  ;;  %6101 = vmatpush3.bf16.msra.mxu1 %v3792_v18  ;;  %v3881_v21 = vpop.permute.xlu1 %3880  ;;  %6102 = vmatprep.mubr.msk.bf16.mxu1 %vm6277_vm0, %v6276_v0 }
 0x18b   : > { %v807_v19 = vadd.f32 %v760_v20, %v700_v61  ;;  %v762_v22 = vpop.f32.mrb[21].mxu0  ;;  %v3883_v23 = vpop.permute.xlu0 %3882  ;;  %5413 = vrot.lane.b32.xlu1 %v7040_v8, %s6323_s11  ;;  %6106 = vmatprep.subr.bf16.mxu1 %v6276_v0 }
 0x18c   : > { %v808_v24 = vadd.f32 %v762_v22, %v701_v2  ;;  %v764_v25 = vpop.f32.mrb[22].mxu0  ;;  %v908_v26 = vpop.f32.mrb[24].mxu1  ;;  %v3889_v38 = vsel %vm3888_vm3, %v3881_v21, %v3883_v23 }
 0x18d   : > { %v765_v28 = vpop.f32.mrb[23].mxu0  ;;  %v916_v29 = vadd.f32 %v908_v26, %v809_v11  ;;  %v5942_v30 = vpop.f32.mrb[25].mxu1  ;;  %v3896_v47 = vsel %vm198_vm1, %v3889_v38, 0 }
 0x18e   : > { %v911_v32 = vpop.f32.mrb[26].mxu1  ;;  %v3885_v33 = vpop.permute.xlu1 %3884 }
 0x18f   : > { %5732 = vmatmul.mubr.msk.bf16.vlgmr.msra.gmra.mrb[128].mxu0 %vm194_vm2, %v5730_v13  ;;  %v3890_v8 = vsel %vm3888_vm3, %v3883_v23, %v3885_v33  ;;  %v5943_v34 = vpop.f32.mrb[27].mxu1  ;;  %v3887_v35 = vpop.permute.xlu0 %3886  ;;  %v5746_v32 = vld [vmem:[%s7391_s0 + $0x48] sm:$0x3] }
 0x190   : > { %3795 = vmatpush1.bf16.msra.mxu0 %v3786_v27  ;;  %v3891_v36 = vsel %vm3888_vm3, %v3885_v33, %v3887_v35  ;;  %3826 = vmatprep.mubr.bf16.mxu0 %v6278_v1 }
 0x191   : > { %6103 = vmatmul.mubr.msk.bf16.vlgmr.msra.gmra.mrb[132].mxu1 %vm194_vm2, %v5734_v31  ;;  %v3902_v37 = vsel %vm198_vm1, %v3891_v36, 0  ;;  %5739 = vmatprep.subr.msk.bf16.mxu0 %vm198_vm1, %v3890_v8 }
 0x192   : > { %v867_v39 = vpop.f32.mrb[24].mxu0  ;;  %6107 = vmatpush3.bf16.msra.mxu1 %v3902_v37  ;;  %v3991_v40 = vpop.permute.xlu1 %3990  ;;  %6108 = vmatprep.mubr.msk.bf16.mxu1 %vm6277_vm0, %v6276_v0 }
 0x193   : > { %v914_v41 = vadd.f32 %v867_v39, %v807_v19  ;;  %v869_v42 = vpop.f32.mrb[25].mxu0  ;;  %v3993_v43 = vpop.permute.xlu0 %3992  ;;  %6112 = vmatprep.subr.bf16.mxu1 %v6276_v0 }
 0x194   : > { %v915_v44 = vadd.f32 %v869_v42, %v808_v24  ;;  %v871_v45 = vpop.f32.mrb[26].mxu0  ;;  %v1015_v46 = vpop.f32.mrb[28].mxu1  ;;  %v3999_v59 = vsel %vm3998_vm4, %v3991_v40, %v3993_v43 }
 0x195   : > { %v872_v48 = vpop.f32.mrb[27].mxu0  ;;  %v1023_v49 = vadd.f32 %v1015_v46, %v916_v29  ;;  %v5948_v50 = vpop.f32.mrb[29].mxu1  ;;  %v4006_v10 = vsel %vm198_vm1, %v3999_v59, 0 }
 0x196   : > { %v1018_v52 = vpop.f32.mrb[30].mxu1  ;;  %v3995_v53 = vpop.permute.xlu1 %3994 }
 0x197   : > { %5736 = vmatmul.mubr.msk.bf16.vlgmr.msra.gmra.mrb[132].mxu0 %vm194_vm2, %v5734_v31  ;;  %v4000_v54 = vsel %vm3998_vm4, %v3993_v43, %v3995_v53  ;;  %v5949_v55 = vpop.f32.mrb[31].mxu1  ;;  %v3997_v56 = vpop.permute.xlu0 %3996  ;;  %v5750_v52 = vld [vmem:[%s7391_s0 + $0x4a] sm:$0x3] }
 0x198   : > { %3905 = vmatpush1.bf16.msra.mxu0 %v3896_v47  ;;  %v4001_v57 = vsel %vm3998_vm4, %v3995_v53, %v3997_v56  ;;  %3936 = vmatprep.mubr.bf16.mxu0 %v6278_v1 }
 0x199   : > { %6109 = vmatmul.mubr.msk.bf16.vlgmr.msra.gmra.mrb[136].mxu1 %vm194_vm2, %v5738_v51  ;;  %v4012_v58 = vsel %vm198_vm1, %v4001_v57, 0  ;;  %5743 = vmatprep.subr.msk.bf16.mxu0 %vm198_vm1, %v4000_v54 }
 0x19a   : > { %v974_v60 = vpop.f32.mrb[28].mxu0  ;;  %6113 = vmatpush3.bf16.msra.mxu1 %v4012_v58  ;;  %v4101_v61 = vpop.permute.xlu1 %4100  ;;  %6114 = vmatprep.mubr.msk.bf16.mxu1 %vm6277_vm0, %v6276_v0 }
 0x19b   : > { %v1021_v62 = vadd.f32 %v974_v60, %v914_v41  ;;  %v976_v63 = vpop.f32.mrb[29].mxu0  ;;  %v4103_v2 = vpop.permute.xlu0 %4102  ;;  %6118 = vmatprep.subr.bf16.mxu1 %v6276_v0 }
 0x19c   : > { %v1022_v3 = vadd.f32 %v976_v63, %v915_v44  ;;  %v978_v6 = vpop.f32.mrb[30].mxu0  ;;  %v1122_v9 = vpop.f32.mrb[32].mxu1  ;;  %v4109_v20 = vsel %vm4108_vm5, %v4101_v61, %v4103_v2 }
 0x19d   : > { %v979_v11 = vpop.f32.mrb[31].mxu0  ;;  %v1130_v12 = vadd.f32 %v1122_v9, %v1023_v49  ;;  %v5954_v13 = vpop.f32.mrb[33].mxu1  ;;  %v4116_v28 = vsel %vm198_vm1, %v4109_v20, 0 }
 0x19e   : > { %v1125_v5 = vpop.f32.mrb[34].mxu1  ;;  %v4105_v4 = vpop.permute.xlu1 %4104 }
 0x19f   : > { %5740 = vmatmul.mubr.msk.bf16.vlgmr.msra.gmra.mrb[136].mxu0 %vm194_vm2, %v5738_v51  ;;  %v4110_v15 = vsel %vm4108_vm5, %v4103_v2, %v4105_v4  ;;  %v5955_v16 = vpop.f32.mrb[35].mxu1  ;;  %v4107_v17 = vpop.permute.xlu0 %4106  ;;  %v5754_v5 = vld [vmem:[%s7391_s0 + $0x4c] sm:$0x3] }
 0x1a0   : > { %4015 = vmatpush1.bf16.msra.mxu0 %v4006_v10  ;;  %v4111_v18 = vsel %vm4108_vm5, %v4105_v4, %v4107_v17  ;;  %4046 = vmatprep.mubr.bf16.mxu0 %v6278_v1 }
 0x1a1   : > { %6115 = vmatmul.mubr.msk.bf16.vlgmr.msra.gmra.mrb[140].mxu1 %vm194_vm2, %v5742_v14  ;;  %v4122_v7 = vsel %vm198_vm1, %v4111_v18, 0  ;;  %5747 = vmatprep.subr.msk.bf16.mxu0 %vm198_vm1, %v4110_v15 }
 0x1a2   : > { %v1081_v21 = vpop.f32.mrb[32].mxu0  ;;  %6119 = vmatpush3.bf16.msra.mxu1 %v4122_v7  ;;  %v4211_v19 = vpop.permute.xlu1 %4210  ;;  %6120 = vmatprep.mubr.msk.bf16.mxu1 %vm6277_vm0, %v6276_v0 }
 0x1a3   : > { %v1128_v22 = vadd.f32 %v1081_v21, %v1021_v62  ;;  %v1083_v23 = vpop.f32.mrb[33].mxu0  ;;  %v4213_v24 = vpop.permute.xlu0 %4212  ;;  %6124 = vmatprep.subr.bf16.mxu1 %v6276_v0 }
 0x1a4   : > { %v1129_v25 = vadd.f32 %v1083_v23, %v1022_v3  ;;  %v1085_v26 = vpop.f32.mrb[34].mxu0  ;;  %v1229_v27 = vpop.f32.mrb[36].mxu1  ;;  %v4219_v39 = vsel %vm4218_vm9, %v4211_v19, %v4213_v24 }
 0x1a5   : > { %v1086_v29 = vpop.f32.mrb[35].mxu0  ;;  %v1237_v30 = vadd.f32 %v1229_v27, %v1130_v12  ;;  %v5960_v31 = vpop.f32.mrb[37].mxu1  ;;  %v4226_v48 = vsel %vm198_vm1, %v4219_v39, 0 }
 0x1a6   : > { %v1232_v33 = vpop.f32.mrb[38].mxu1  ;;  %v4215_v8 = vpop.permute.xlu1 %4214 }
 0x1a7   : > { %5744 = vmatmul.mubr.msk.bf16.vlgmr.msra.gmra.mrb[140].mxu0 %vm194_vm2, %v5742_v14  ;;  %v4220_v34 = vsel %vm4218_vm9, %v4213_v24, %v4215_v8  ;;  %v5961_v35 = vpop.f32.mrb[39].mxu1  ;;  %v4217_v36 = vpop.permute.xlu0 %4216  ;;  %v5758_v33 = vld [vmem:[%s7391_s0 + $0x4e] sm:$0x3] }
 0x1a8   : > { %4125 = vmatpush1.bf16.msra.mxu0 %v4116_v28  ;;  %v4221_v37 = vsel %vm4218_vm9, %v4215_v8, %v4217_v36  ;;  %4156 = vmatprep.mubr.bf16.mxu0 %v6278_v1 }
 0x1a9   : > { %6121 = vmatmul.mubr.msk.bf16.vlgmr.msra.gmra.mrb[144].mxu1 %vm194_vm2, %v5746_v32  ;;  %v4232_v38 = vsel %vm198_vm1, %v4221_v37, 0  ;;  %5751 = vmatprep.subr.msk.bf16.mxu0 %vm198_vm1, %v4220_v34 }
 0x1aa   : > { %v1188_v40 = vpop.f32.mrb[36].mxu0  ;;  %6125 = vmatpush3.bf16.msra.mxu1 %v4232_v38  ;;  %v4321_v41 = vpop.permute.xlu1 %4320  ;;  %6126 = vmatprep.mubr.msk.bf16.mxu1 %vm6277_vm0, %v6276_v0 }
 0x1ab   : > { %v1235_v42 = vadd.f32 %v1188_v40, %v1128_v22  ;;  %v1190_v43 = vpop.f32.mrb[37].mxu0  ;;  %v4323_v44 = vpop.permute.xlu0 %4322  ;;  %6130 = vmatprep.subr.bf16.mxu1 %v6276_v0 }
 0x1ac   : > { %v1236_v45 = vadd.f32 %v1190_v43, %v1129_v25  ;;  %v1192_v46 = vpop.f32.mrb[38].mxu0  ;;  %v1336_v47 = vpop.f32.mrb[40].mxu1  ;;  %v4329_v60 = vsel %vm4328_vm10, %v4321_v41, %v4323_v44 }
 0x1ad   : > { %v1193_v49 = vpop.f32.mrb[39].mxu0  ;;  %v1344_v50 = vadd.f32 %v1336_v47, %v1237_v30  ;;  %v5966_v51 = vpop.f32.mrb[41].mxu1  ;;  %v4336_v11 = vsel %vm198_vm1, %v4329_v60, 0 }
 0x1ae   : > { %v1339_v53 = vpop.f32.mrb[42].mxu1  ;;  %v4325_v54 = vpop.permute.xlu1 %4324 }
 0x1af   : > { %5748 = vmatmul.mubr.msk.bf16.vlgmr.msra.gmra.mrb[144].mxu0 %vm194_vm2, %v5746_v32  ;;  %v4330_v55 = vsel %vm4328_vm10, %v4323_v44, %v4325_v54  ;;  %v5967_v56 = vpop.f32.mrb[43].mxu1  ;;  %v4327_v57 = vpop.permute.xlu0 %4326  ;;  %v5762_v53 = vld [vmem:[%s7391_s0 + $0x50] sm:$0x3] }
 0x1b0   : > { %4235 = vmatpush1.bf16.msra.mxu0 %v4226_v48  ;;  %v4331_v58 = vsel %vm4328_vm10, %v4325_v54, %v4327_v57  ;;  %4266 = vmatprep.mubr.bf16.mxu0 %v6278_v1 }
 0x1b1   : > { %6127 = vmatmul.mubr.msk.bf16.vlgmr.msra.gmra.mrb[148].mxu1 %vm194_vm2, %v5750_v52  ;;  %v4342_v59 = vsel %vm198_vm1, %v4331_v58, 0  ;;  %5755 = vmatprep.subr.msk.bf16.mxu0 %vm198_vm1, %v4330_v55 }
 0x1b2   : > { %v1295_v61 = vpop.f32.mrb[40].mxu0  ;;  %6131 = vmatpush3.bf16.msra.mxu1 %v4342_v59  ;;  %v4431_v62 = vpop.permute.xlu1 %4430  ;;  %6132 = vmatprep.mubr.msk.bf16.mxu1 %vm6277_vm0, %v6276_v0 }
 0x1b3   : > { %v1342_v63 = vadd.f32 %v1295_v61, %v1235_v42  ;;  %v1297_v2 = vpop.f32.mrb[41].mxu0  ;;  %v4433_v3 = vpop.permute.xlu0 %4432  ;;  %6136 = vmatprep.subr.bf16.mxu1 %v6276_v0 }
 0x1b4   : > { %v1343_v6 = vadd.f32 %v1297_v2, %v1236_v45  ;;  %v1299_v9 = vpop.f32.mrb[42].mxu0  ;;  %v1443_v10 = vpop.f32.mrb[44].mxu1  ;;  %v4439_v21 = vsel %vm4438_vm11, %v4431_v62, %v4433_v3 }
 0x1b5   : > { %v1300_v12 = vpop.f32.mrb[43].mxu0  ;;  %v1451_v13 = vadd.f32 %v1443_v10, %v1344_v50  ;;  %v5972_v14 = vpop.f32.mrb[45].mxu1  ;;  %v4446_v29 = vsel %vm198_vm1, %v4439_v21, 0 }
 0x1b6   : > { %v1446_v4 = vpop.f32.mrb[46].mxu1  ;;  %v4435_v15 = vpop.permute.xlu1 %4434 }
 0x1b7   : > { %5752 = vmatmul.mubr.msk.bf16.vlgmr.msra.gmra.mrb[148].mxu0 %vm194_vm2, %v5750_v52  ;;  %v4440_v16 = vsel %vm4438_vm11, %v4433_v3, %v4435_v15  ;;  %v5973_v17 = vpop.f32.mrb[47].mxu1  ;;  %v4437_v18 = vpop.permute.xlu0 %4436  ;;  %v5766_v4 = vld [vmem:[%s7391_s0 + $0x52] sm:$0x3] }
 0x1b8   : > { %4345 = vmatpush1.bf16.msra.mxu0 %v4336_v11  ;;  %v4441_v7 = vsel %vm4438_vm11, %v4435_v15, %v4437_v18  ;;  %4376 = vmatprep.mubr.bf16.mxu0 %v6278_v1 }
 0x1b9   : > { %6133 = vmatmul.mubr.msk.bf16.vlgmr.msra.gmra.mrb[152].mxu1 %vm194_vm2, %v5754_v5  ;;  %v4452_v20 = vsel %vm198_vm1, %v4441_v7, 0  ;;  %5759 = vmatprep.subr.msk.bf16.mxu0 %vm198_vm1, %v4440_v16 }
 0x1ba   : > { %v1402_v19 = vpop.f32.mrb[44].mxu0  ;;  %6137 = vmatpush3.bf16.msra.mxu1 %v4452_v20  ;;  %v4541_v22 = vpop.permute.xlu1 %4540  ;;  %6138 = vmatprep.mubr.msk.bf16.mxu1 %vm6277_vm0, %v6276_v0 }
 0x1bb   : > { %v1449_v23 = vadd.f32 %v1402_v19, %v1342_v63  ;;  %v1404_v24 = vpop.f32.mrb[45].mxu0  ;;  %v4543_v25 = vpop.permute.xlu0 %4542  ;;  %6142 = vmatprep.subr.bf16.mxu1 %v6276_v0 }
 0x1bc   : > { %v1450_v26 = vadd.f32 %v1404_v24, %v1343_v6  ;;  %v1406_v27 = vpop.f32.mrb[46].mxu0  ;;  %v1550_v28 = vpop.f32.mrb[48].mxu1  ;;  %v4549_v40 = vsel %vm4548_vm12, %v4541_v22, %v4543_v25 }
 0x1bd   : > { %v1407_v30 = vpop.f32.mrb[47].mxu0  ;;  %v1558_v31 = vadd.f32 %v1550_v28, %v1451_v13  ;;  %v5978_v32 = vpop.f32.mrb[49].mxu1  ;;  %v4556_v49 = vsel %vm198_vm1, %v4549_v40, 0 }
 0x1be   : > { %v1553_v8 = vpop.f32.mrb[50].mxu1  ;;  %v4545_v34 = vpop.permute.xlu1 %4544  ;;  %v5770_v32 = vld [vmem:[%s7391_s0 + $0x54] sm:$0x3] }
 0x1bf   : > { %5756 = vmatmul.mubr.msk.bf16.vlgmr.msra.gmra.mrb[152].mxu0 %vm194_vm2, %v5754_v5  ;;  %v4550_v35 = vsel %vm4548_vm12, %v4543_v25, %v4545_v34  ;;  %v5979_v36 = vpop.f32.mrb[51].mxu1  ;;  %v4547_v37 = vpop.permute.xlu0 %4546 }
 0x1c0   : > { %4455 = vmatpush1.bf16.msra.mxu0 %v4446_v29  ;;  %v4551_v38 = vsel %vm4548_vm12, %v4545_v34, %v4547_v37  ;;  %4486 = vmatprep.mubr.bf16.mxu0 %v6278_v1 }
 0x1c1   : > { %6139 = vmatmul.mubr.msk.bf16.vlgmr.msra.gmra.mrb[156].mxu1 %vm194_vm2, %v5758_v33  ;;  %v4562_v39 = vsel %vm198_vm1, %v4551_v38, 0  ;;  %5763 = vmatprep.subr.msk.bf16.mxu0 %vm198_vm1, %v4550_v35 }
 0x1c2   : > { %v1509_v41 = vpop.f32.mrb[48].mxu0  ;;  %6143 = vmatpush3.bf16.msra.mxu1 %v4562_v39  ;;  %v4651_v42 = vpop.permute.xlu1 %4650  ;;  %6144 = vmatprep.mubr.msk.bf16.mxu1 %vm6277_vm0, %v6276_v0 }
 0x1c3   : > { %v1556_v43 = vadd.f32 %v1509_v41, %v1449_v23  ;;  %v1511_v44 = vpop.f32.mrb[49].mxu0  ;;  %v4653_v45 = vpop.permute.xlu0 %4652  ;;  %6148 = vmatprep.subr.bf16.mxu1 %v6276_v0 }
 0x1c4   : > { %v1557_v46 = vadd.f32 %v1511_v44, %v1450_v26  ;;  %v1513_v47 = vpop.f32.mrb[50].mxu0  ;;  %v1657_v48 = vpop.f32.mrb[52].mxu1  ;;  %v4659_v61 = vsel %vm4658_vm13, %v4651_v42, %v4653_v45 }
 0x1c5   : > { %v1514_v50 = vpop.f32.mrb[51].mxu0  ;;  %v1665_v51 = vadd.f32 %v1657_v48, %v1558_v31  ;;  %v5984_v52 = vpop.f32.mrb[53].mxu1  ;;  %v4666_v11 = vsel %vm198_vm1, %v4659_v61, 0 }
 0x1c6   : > { %v1660_v54 = vpop.f32.mrb[54].mxu1  ;;  %v4655_v55 = vpop.permute.xlu1 %4654  ;;  %v5514_v50 = vld [vmem:[%s7393_s2] sm:$0x7] }
 0x1c7   : > { %5760 = vmatmul.mubr.msk.bf16.vlgmr.msra.gmra.mrb[156].mxu0 %vm194_vm2, %v5758_v33  ;;  %v4660_v56 = vsel %vm4658_vm13, %v4653_v45, %v4655_v55  ;;  %v5985_v57 = vpop.f32.mrb[55].mxu1  ;;  %v4657_v58 = vpop.permute.xlu0 %4656  ;;  %5517 = vperm.xlu0 %6253, %v5514_v50  }
 0x1c8   : > { %4565 = vmatpush1.bf16.msra.mxu0 %v4556_v49  ;;  %v4661_v59 = vsel %vm4658_vm13, %v4655_v55, %v4657_v58  ;;  %4596 = vmatprep.mubr.bf16.mxu0 %v6278_v1 }
 0x1c9   : > { %6145 = vmatmul.mubr.msk.bf16.vlgmr.msra.gmra.mrb[160].mxu1 %vm194_vm2, %v5762_v53  ;;  %v4672_v60 = vsel %vm198_vm1, %v4661_v59, 0  ;;  %5767 = vmatprep.subr.msk.bf16.mxu0 %vm198_vm1, %v4660_v56 }
 0x1ca   : > { %v1616_v62 = vpop.f32.mrb[52].mxu0  ;;  %6149 = vmatpush3.bf16.msra.mxu1 %v4672_v60  ;;  %v4771_v63 = vpop.permute.xlu1 %4770  ;;  %6150 = vmatprep.mubr.msk.bf16.mxu1 %vm6277_vm0, %v6276_v0 }
 0x1cb   : > { %v1663_v2 = vadd.f32 %v1616_v62, %v1556_v43  ;;  %v1618_v3 = vpop.f32.mrb[53].mxu0  ;;  %6154 = vmatprep.subr.bf16.mxu1 %v6276_v0 }
 0x1cc   : > { %v1664_v6 = vadd.f32 %v1618_v3, %v1557_v46  ;;  %v1620_v9 = vpop.f32.mrb[54].mxu0  ;;  %v1779_v10 = vpop.f32.mrb[56].mxu1 }
 0x1cd   : > { %v1621_v12 = vpop.f32.mrb[55].mxu0  ;;  %v1787_v13 = vadd.f32 %v1779_v10, %v1665_v51  ;;  %v4773_v14 = vpop.permute.xlu0 %4772  ;;  %v5777_v51 = vld [vmem:[%s7391_s0 + $0x56] sm:$0x3] }
 0x1ce   : > { %v5990_v5 = vpop.f32.mrb[57].mxu1  ;;  %v4775_v15 = vpop.permute.xlu1 %4774  ;;  %v4776_v21 = vsel %vm604_vm6, %v4771_v63, %v4773_v14  ;;  %v5781_v12 = vld [vmem:[%s7391_s0 + $0x58] sm:$0x3] }
 0x1cf   : > { %5764 = vmatmul.mubr.msk.bf16.vlgmr.msra.gmra.mrb[160].mxu0 %vm194_vm2, %v5762_v53  ;;  %v1782_v16 = vpop.f32.mrb[58].mxu1  ;;  %v4777_v17 = vsel %vm604_vm6, %v4773_v14, %v4775_v15  ;;  %v4788_v18 = vsel %vm198_vm1, %v4775_v15, 0  ;;  %v4782_v28 = vsel %vm198_vm1, %v4776_v21, 0  ;;  %vm5094_vm6 = vcmask 990208  }
 0x1d0   : > { %4675 = vmatpush1.bf16.msra.mxu0 %v4666_v11  ;;  %v5991_v7 = vpop.f32.mrb[59].mxu1  ;;  %4706 = vmatprep.mubr.bf16.mxu0 %v6278_v1 }
 0x1d1   : > { %6151 = vmatmul.mubr.msk.bf16.vlgmr.msra.gmra.mrb[164].mxu1 %vm194_vm2, %v5766_v4  ;;  %5774 = vmatprep.subr.msk.bf16.mxu0 %vm198_vm1, %v4777_v17  ;;  %v4877_v20 = vpop.permute.xlu0 %4876 }
 0x1d2   : > { %v1738_v19 = vpop.f32.mrb[56].mxu0  ;;  %6155 = vmatpush3.bf16.msra.mxu1 %v4788_v18  ;;  %v4879_v22 = vpop.permute.xlu1 %4878  ;;  %6156 = vmatprep.mubr.msk.bf16.mxu1 %vm6277_vm0, %v6276_v0 }
 0x1d3   : > { %v1785_v23 = vadd.f32 %v1738_v19, %v1663_v2  ;;  %v1740_v24 = vpop.f32.mrb[57].mxu0  ;;  %6160 = vmatprep.subr.bf16.mxu1 %v6276_v0  ;;  %v4882_v38 = vsel %vm711_vm7, %v4877_v20, %v4879_v22 }
 0x1d4   : > { %v1786_v25 = vadd.f32 %v1740_v24, %v1664_v6  ;;  %v1742_v26 = vpop.f32.mrb[58].mxu0  ;;  %v1889_v27 = vpop.f32.mrb[60].mxu1  ;;  %v4888_v46 = vsel %vm198_vm1, %v4882_v38, 0 }
 0x1d5   : > { %v1743_v29 = vpop.f32.mrb[59].mxu0  ;;  %v1897_v30 = vadd.f32 %v1889_v27, %v1787_v13  ;;  %v5996_v31 = vpop.f32.mrb[61].mxu1 }
 0x1d6   : > { %v1892_v33 = vpop.f32.mrb[62].mxu1  ;;  %v4881_v8 = vpop.permute.xlu0 %4880 }
 0x1d7   : > { %5768 = vmatmul.mubr.msk.bf16.vlgmr.msra.gmra.mrb[164].mxu0 %vm194_vm2, %v5766_v4  ;;  %v5997_v34 = vpop.f32.mrb[63].mxu1  ;;  %v4883_v35 = vsel %vm711_vm7, %v4879_v22, %v4881_v8  ;;  %v4894_v36 = vsel %vm198_vm1, %v4881_v8, 0  ;;  %v4983_v37 = vpop.permute.xlu1 %4982  ;;  %vm5201_vm7 = vcmask 982016  }
 0x1d8   : > { %4791 = vmatpush1.bf16.msra.mxu0 %v4782_v28  ;;  %4822 = vmatprep.mubr.bf16.mxu0 %v6278_v1  ;;  %v5785_v28 = vld [vmem:[%s7391_s0 + $0x5a] sm:$0x3] }
 0x1d9   : > { %6157 = vmatmul.mubr.msk.bf16.vlgmr.msra.gmra.mrb[168].mxu1 %vm194_vm2, %v5770_v32  ;;  %5778 = vmatprep.subr.msk.bf16.mxu0 %vm198_vm1, %v4883_v35 }
 0x1da   : > { %v1848_v39 = vpop.f32.mrb[60].mxu0  ;;  %6161 = vmatpush3.bf16.msra.mxu1 %v4894_v36  ;;  %6162 = vmatprep.mubr.msk.bf16.mxu1 %vm6277_vm0, %v6276_v0  ;;  %v4985_v40 = vpop.permute.xlu0 %4984 }
 0x1db   : > { %v1895_v41 = vadd.f32 %v1848_v39, %v1785_v23  ;;  %v1850_v42 = vpop.f32.mrb[61].mxu0  ;;  %6166 = vmatprep.subr.bf16.mxu1 %v6276_v0  ;;  %v4988_v58 = vsel %vm818_vm8, %v4983_v37, %v4985_v40 }
 0x1dc   : > { %v1896_v43 = vadd.f32 %v1850_v42, %v1786_v25  ;;  %v1852_v44 = vpop.f32.mrb[62].mxu0  ;;  %v1999_v45 = vpop.f32.mrb[64].mxu1  ;;  %v4994_v6 = vsel %vm198_vm1, %v4988_v58, 0 }
 0x1dd   : > { %v1853_v47 = vpop.f32.mrb[63].mxu0  ;;  %v2007_v48 = vadd.f32 %v1999_v45, %v1897_v30  ;;  %v6002_v49 = vpop.f32.mrb[65].mxu1 }
 0x1de   : > { %v2002_v52 = vpop.f32.mrb[66].mxu1  ;;  %v4987_v53 = vpop.permute.xlu1 %4986 }
 0x1df   : > { %5775 = vmatmul.mubr.msk.bf16.vlgmr.msra.gmra.mrb[168].mxu0 %vm194_vm2, %v5770_v32  ;;  %v4989_v54 = vsel %vm818_vm8, %v4985_v40, %v4987_v53  ;;  %v5000_v55 = vsel %vm198_vm1, %v4987_v53, 0  ;;  %v6003_v56 = vpop.f32.mrb[67].mxu1  ;;  %v5089_v57 = vpop.permute.xlu0 %5088  ;;  %vm5308_vm8 = vcmask 973824  }
 0x1e0   : > { %4897 = vmatpush1.bf16.msra.mxu0 %v4888_v46  ;;  %4928 = vmatprep.mubr.bf16.mxu0 %v6278_v1  ;;  %v5789_v46 = vld [vmem:[%s7391_s0 + $0x5c] sm:$0x3] }
 0x1e1   : > { %6163 = vmatmul.mubr.msk.bf16.vlgmr.msra.gmra.mrb[172].mxu1 %vm194_vm2, %v5777_v51  ;;  %5782 = vmatprep.subr.msk.bf16.mxu0 %vm198_vm1, %v4989_v54 }
 0x1e2   : > { %v1958_v59 = vpop.f32.mrb[64].mxu0  ;;  %6167 = vmatpush3.bf16.msra.mxu1 %v5000_v55  ;;  %v5091_v60 = vpop.permute.xlu1 %5090  ;;  %6168 = vmatprep.mubr.msk.bf16.mxu1 %vm6277_vm0, %v6276_v0 }
 0x1e3   : > { %v2005_v61 = vadd.f32 %v1958_v59, %v1895_v41  ;;  %v1960_v62 = vpop.f32.mrb[65].mxu0  ;;  %6172 = vmatprep.subr.bf16.mxu1 %v6276_v0  ;;  %v5095_v17 = vsel %vm5094_vm6, %v5089_v57, %v5091_v60 }
 0x1e4   : > { %v2006_v63 = vadd.f32 %v1960_v62, %v1896_v43  ;;  %v1962_v2 = vpop.f32.mrb[66].mxu0  ;;  %v2109_v3 = vpop.f32.mrb[68].mxu1  ;;  %v5101_v24 = vsel %vm198_vm1, %v5095_v17, 0 }
 0x1e5   : > { %v1963_v9 = vpop.f32.mrb[67].mxu0  ;;  %v2117_v10 = vadd.f32 %v2109_v3, %v2007_v48  ;;  %v6008_v11 = vpop.f32.mrb[69].mxu1  ;;  %v5793_v3 = vld [vmem:[%s7391_s0 + $0x5e] sm:$0x3] }
 0x1e6   : > { %v2112_v13 = vpop.f32.mrb[70].mxu1  ;;  %v5093_v14 = vpop.permute.xlu0 %5092 }
 0x1e7   : > { %5779 = vmatmul.mubr.msk.bf16.vlgmr.msra.gmra.mrb[172].mxu0 %vm194_vm2, %v5777_v51  ;;  %v6009_v5 = vpop.f32.mrb[71].mxu1  ;;  %v5096_v4 = vsel %vm5094_vm6, %v5091_v60, %v5093_v14  ;;  %v5107_v15 = vsel %vm198_vm1, %v5093_v14, 0  ;;  %v5196_v16 = vpop.permute.xlu1 %5195 }
 0x1e8   : > { %5003 = vmatpush1.bf16.msra.mxu0 %v4994_v6  ;;  %5034 = vmatprep.mubr.bf16.mxu0 %v6278_v1 }
 0x1e9   : > { %6169 = vmatmul.mubr.msk.bf16.vlgmr.msra.gmra.mrb[176].mxu1 %vm194_vm2, %v5781_v12  ;;  %5786 = vmatprep.subr.msk.bf16.mxu0 %vm198_vm1, %v5096_v4 }
 0x1ea   : > { %v2068_v18 = vpop.f32.mrb[68].mxu0  ;;  %6173 = vmatpush3.bf16.msra.mxu1 %v5107_v15  ;;  %6174 = vmatprep.mubr.msk.bf16.mxu1 %vm6277_vm0, %v6276_v0  ;;  %v5198_v7 = vpop.permute.xlu0 %5197 }
 0x1eb   : > { %v2115_v20 = vadd.f32 %v2068_v18, %v2005_v61  ;;  %v2070_v21 = vpop.f32.mrb[69].mxu0  ;;  %6178 = vmatprep.subr.bf16.mxu1 %v6276_v0  ;;  %v5202_v34 = vsel %vm5201_vm7, %v5196_v16, %v5198_v7 }
 0x1ec   : > { %v2116_v19 = vadd.f32 %v2070_v21, %v2006_v63  ;;  %v2072_v22 = vpop.f32.mrb[70].mxu0  ;;  %v2219_v23 = vpop.f32.mrb[72].mxu1  ;;  %v5208_v42 = vsel %vm198_vm1, %v5202_v34, 0 }
 0x1ed   : > { %v2073_v25 = vpop.f32.mrb[71].mxu0  ;;  %v2227_v26 = vadd.f32 %v2219_v23, %v2117_v10  ;;  %v6014_v27 = vpop.f32.mrb[73].mxu1 }
 0x1ee   : > { %v2222_v29 = vpop.f32.mrb[74].mxu1  ;;  %v5200_v30 = vpop.permute.xlu1 %5199 }
 0x1ef   : > { %5783 = vmatmul.mubr.msk.bf16.vlgmr.msra.gmra.mrb[176].mxu0 %vm194_vm2, %v5781_v12  ;;  %v5203_v31 = vsel %vm5201_vm7, %v5198_v7, %v5200_v30  ;;  %v5214_v32 = vsel %vm198_vm1, %v5200_v30, 0  ;;  %v6015_v33 = vpop.f32.mrb[75].mxu1  ;;  %v5303_v8 = vpop.permute.xlu0 %5302 }
 0x1f0   : > { %5110 = vmatpush1.bf16.msra.mxu0 %v5101_v24  ;;  %5141 = vmatprep.mubr.bf16.mxu0 %v6278_v1 }
 0x1f1   : > { %6175 = vmatmul.mubr.msk.bf16.vlgmr.msra.gmra.mrb[180].mxu1 %vm194_vm2, %v5785_v28  ;;  %5790 = vmatprep.subr.msk.bf16.mxu0 %vm198_vm1, %v5203_v31 }
 0x1f2   : > { %v2178_v35 = vpop.f32.mrb[72].mxu0  ;;  %6179 = vmatpush3.bf16.msra.mxu1 %v5214_v32  ;;  %v5305_v36 = vpop.permute.xlu1 %5304  ;;  %6180 = vmatprep.mubr.msk.bf16.mxu1 %vm6277_vm0, %v6276_v0 }
 0x1f3   : > { %v2225_v37 = vadd.f32 %v2178_v35, %v2115_v20  ;;  %v2180_v38 = vpop.f32.mrb[73].mxu0  ;;  %6184 = vmatprep.subr.bf16.mxu1 %v6276_v0  ;;  %v5309_v53 = vsel %vm5308_vm8, %v5303_v8, %v5305_v36 }
 0x1f4   : > { %v2226_v39 = vadd.f32 %v2180_v38, %v2116_v19  ;;  %v2182_v40 = vpop.f32.mrb[74].mxu0  ;;  %v2329_v41 = vpop.f32.mrb[76].mxu1  ;;  %v5315_v61 = vsel %vm198_vm1, %v5309_v53, 0  ;;  %v5797_v19 = vld [vmem:[%s7391_s0 + $0x60] sm:$0x3] }
 0x1f5   : > { %v2183_v43 = vpop.f32.mrb[75].mxu0  ;;  %v2337_v44 = vadd.f32 %v2329_v41, %v2227_v26  ;;  %v6020_v45 = vpop.f32.mrb[77].mxu1 }
 0x1f6   : > { %v2332_v47 = vpop.f32.mrb[78].mxu1  ;;  %v5307_v48 = vpop.permute.xlu0 %5306 }
 0x1f7   : > { %5787 = vmatmul.mubr.msk.bf16.vlgmr.msra.gmra.mrb[180].mxu0 %vm194_vm2, %v5785_v28  ;;  %v6021_v49 = vpop.f32.mrb[79].mxu1  ;;  %v5310_v50 = vsel %vm5308_vm8, %v5305_v36, %v5307_v48  ;;  %v5321_v51 = vsel %vm198_vm1, %v5307_v48, 0  ;;  %v5410_v52 = vpop.permute.xlu1 %5409 }
 0x1f8   : > { %5217 = vmatpush1.bf16.msra.mxu0 %v5208_v42  ;;  %5248 = vmatprep.mubr.bf16.mxu0 %v6278_v1 }
 0x1f9   : > { %6181 = vmatmul.mubr.msk.bf16.vlgmr.msra.gmra.mrb[184].mxu1 %vm194_vm2, %v5789_v46  ;;  %5794 = vmatprep.subr.msk.bf16.mxu0 %vm198_vm1, %v5310_v50 }
 0x1fa   : > { %v2288_v54 = vpop.f32.mrb[76].mxu0  ;;  %6185 = vmatpush3.bf16.msra.mxu1 %v5321_v51  ;;  %6186 = vmatprep.mubr.msk.bf16.mxu1 %vm6277_vm0, %v6276_v0  ;;  %v5412_v57 = vpop.permute.xlu0 %5411 }
 0x1fb   : > { %v2335_v55 = vadd.f32 %v2288_v54, %v2225_v37  ;;  %v2290_v56 = vpop.f32.mrb[77].mxu0  ;;  %6190 = vmatprep.subr.bf16.mxu1 %v6276_v0  ;;  %v5416_v13 = vsel %vm5415_vm14, %v5410_v52, %v5412_v57 }
 0x1fc   : > { %v2336_v58 = vadd.f32 %v2290_v56, %v2226_v39  ;;  %v2292_v59 = vpop.f32.mrb[78].mxu0  ;;  %v2439_v60 = vpop.f32.mrb[80].mxu1  ;;  %v5422_v18 = vsel %vm198_vm1, %v5416_v13, 0 }
 0x1fd   : > { %v2293_v62 = vpop.f32.mrb[79].mxu0  ;;  %v2447_v63 = vadd.f32 %v2439_v60, %v2337_v44  ;;  %v6026_v2 = vpop.f32.mrb[81].mxu1 }
 0x1fe   : > { %v2442_v6 = vpop.f32.mrb[82].mxu1  ;;  %v5414_v9 = vpop.permute.xlu1 %5413 }
 0x1ff   : > { %5791 = vmatmul.mubr.msk.bf16.vlgmr.msra.gmra.mrb[184].mxu0 %vm194_vm2, %v5789_v46  ;;  %v5417_v10 = vsel %vm5415_vm14, %v5412_v57, %v5414_v9  ;;  %v5428_v11 = vsel %vm198_vm1, %v5414_v9, 0  ;;  %v6027_v12 = vpop.f32.mrb[83].mxu1 }
 0x200   : > { %5324 = vmatpush1.bf16.msra.mxu0 %v5315_v61  ;;  %5355 = vmatprep.mubr.bf16.mxu0 %v6278_v1 }
 0x201   : > { %6187 = vmatmul.mubr.msk.bf16.vlgmr.msra.gmra.mrb[188].mxu1 %vm194_vm2, %v5793_v3  ;;  %5798 = vmatprep.subr.msk.bf16.mxu0 %vm198_vm1, %v5417_v10 }
 0x202   : > { %v2398_v14 = vpop.f32.mrb[80].mxu0  ;;  %6191 = vmatpush3.bf16.msra.mxu1 %v5428_v11  ;;  %6192 = vmatprep.mubr.msk.bf16.mxu1 %vm6277_vm0, %v6276_v0  ;;  %vm5531_vm0 = vcmask 780288  }
 0x203   : > { %v2445_v5 = vadd.f32 %v2398_v14, %v2335_v55  ;;  %v2400_v4 = vpop.f32.mrb[81].mxu0 }
 0x204   : > { %v2446_v15 = vadd.f32 %v2400_v4, %v2336_v58  ;;  %v2402_v16 = vpop.f32.mrb[82].mxu0  ;;  %v2549_v17 = vpop.f32.mrb[84].mxu1 }
 0x205   : > { %v2403_v7 = vpop.f32.mrb[83].mxu0  ;;  %v2557_v20 = vadd.f32 %v2549_v17, %v2447_v63  ;;  %v6032_v21 = vpop.f32.mrb[85].mxu1 }
 0x206   : > { %v2552_v22 = vpop.f32.mrb[86].mxu1 }
 0x207   : > { %5795 = vmatmul.mubr.msk.bf16.vlgmr.msra.gmra.mrb[188].mxu0 %vm194_vm2, %v5793_v3  ;;  %v6033_v23 = vpop.f32.mrb[87].mxu1 }
 0x208   : > { %5431 = vmatpush1.bf16.msra.mxu0 %v5422_v18  ;;  %5462 = vmatprep.mubr.bf16.mxu0 %v6278_v1 }
 0x209   : > { %6193 = vmatmul.mubr.msk.bf16.vlgmr.msra.gmra.mrb[192].mxu1 %vm194_vm2, %v5797_v19 }
 0x20a   : > { %v2508_v0 = vpop.f32.mrb[84].mxu0 }
 0x20b   : > { %v2555_v24 = vadd.f32 %v2508_v0, %v2445_v5  ;;  %v2510_v25 = vpop.f32.mrb[85].mxu0 }
 0x20c   : > { %v2556_v26 = vadd.f32 %v2510_v25, %v2446_v15  ;;  %v2512_v27 = vpop.f32.mrb[86].mxu0  ;;  %v2659_v28 = vpop.f32.mrb[88].mxu1 }
 0x20d   : > { %v2513_v29 = vpop.f32.mrb[87].mxu0  ;;  %v2667_v30 = vadd.f32 %v2659_v28, %v2557_v20  ;;  %v6038_v31 = vpop.f32.mrb[89].mxu1 }
 0x20e   : > { %v2662_v32 = vpop.f32.mrb[90].mxu1 }
 0x20f   : > { %5799 = vmatmul.mubr.msk.bf16.vlgmr.msra.gmra.mrb[192].mxu0 %vm194_vm2, %v5797_v19  ;;  %v6039_v33 = vpop.f32.mrb[91].mxu1 }
 0x212   : > { %v2618_v8 = vpop.f32.mrb[88].mxu0 }
 0x213   : > { %v2665_v34 = vadd.f32 %v2618_v8, %v2555_v24  ;;  %v2620_v35 = vpop.f32.mrb[89].mxu0 }
 0x214   : > { %v2666_v36 = vadd.f32 %v2620_v35, %v2556_v26  ;;  %v2622_v1 = vpop.f32.mrb[90].mxu0  ;;  %v2769_v37 = vpop.f32.mrb[92].mxu1 }
 0x215   : > { %v2623_v38 = vpop.f32.mrb[91].mxu0  ;;  %v2777_v39 = vadd.f32 %v2769_v37, %v2667_v30  ;;  %v6044_v40 = vpop.f32.mrb[93].mxu1 }
 0x216   : > { %v2772_v41 = vpop.f32.mrb[94].mxu1 }
 0x217   : > { %v6045_v42 = vpop.f32.mrb[95].mxu1 }
 0x21a   : > { %v2728_v43 = vpop.f32.mrb[92].mxu0 }
 0x21b   : > { %v2775_v44 = vadd.f32 %v2728_v43, %v2665_v34  ;;  %v2730_v45 = vpop.f32.mrb[93].mxu0 }
 0x21c   : > { %v2776_v46 = vadd.f32 %v2730_v45, %v2666_v36  ;;  %v2732_v47 = vpop.f32.mrb[94].mxu0  ;;  %v2879_v48 = vpop.f32.mrb[96].mxu1 }
 0x21d   : > { %v2733_v49 = vpop.f32.mrb[95].mxu0  ;;  %v2887_v50 = vadd.f32 %v2879_v48, %v2777_v39  ;;  %v6050_v51 = vpop.f32.mrb[97].mxu1 }
 0x21e   : > { %v2882_v52 = vpop.f32.mrb[98].mxu1 }
 0x21f   : > { %v6051_v53 = vpop.f32.mrb[99].mxu1 }
 0x222   : > { %v2838_v54 = vpop.f32.mrb[96].mxu0 }
 0x223   : > { %v2885_v55 = vadd.f32 %v2838_v54, %v2775_v44  ;;  %v2840_v56 = vpop.f32.mrb[97].mxu0 }
 0x224   : > { %v2886_v57 = vadd.f32 %v2840_v56, %v2776_v46  ;;  %v2842_v58 = vpop.f32.mrb[98].mxu0  ;;  %v2989_v59 = vpop.f32.mrb[100].mxu1 }
 0x225   : > { %v2843_v60 = vpop.f32.mrb[99].mxu0  ;;  %v2997_v61 = vadd.f32 %v2989_v59, %v2887_v50  ;;  %v6056_v62 = vpop.f32.mrb[101].mxu1 }
 0x226   : > { %v2992_v63 = vpop.f32.mrb[102].mxu1 }
 0x227   : > { %v6057_v2 = vpop.f32.mrb[103].mxu1 }
 0x22a   : > { %v2948_v3 = vpop.f32.mrb[100].mxu0 }
 0x22b   : > { %v2995_v6 = vadd.f32 %v2948_v3, %v2885_v55  ;;  %v2950_v9 = vpop.f32.mrb[101].mxu0 }
 0x22c   : > { %v2996_v10 = vadd.f32 %v2950_v9, %v2886_v57  ;;  %v2952_v11 = vpop.f32.mrb[102].mxu0  ;;  %v3099_v12 = vpop.f32.mrb[104].mxu1 }
 0x22d   : > { %v2953_v13 = vpop.f32.mrb[103].mxu0  ;;  %v3107_v14 = vadd.f32 %v3099_v12, %v2997_v61  ;;  %v6062_v5 = vpop.f32.mrb[105].mxu1 }
 0x22e   : > { %v3102_v4 = vpop.f32.mrb[106].mxu1 }
 0x22f   : > { %v6063_v15 = vpop.f32.mrb[107].mxu1 }
 0x232   : > { %v3058_v16 = vpop.f32.mrb[104].mxu0 }
 0x233   : > { %v3105_v17 = vadd.f32 %v3058_v16, %v2995_v6  ;;  %v3060_v18 = vpop.f32.mrb[105].mxu0 }
 0x234   : > { %v3106_v7 = vadd.f32 %v3060_v18, %v2996_v10  ;;  %v3062_v20 = vpop.f32.mrb[106].mxu0  ;;  %v3209_v21 = vpop.f32.mrb[108].mxu1 }
 0x235   : > { %v3063_v19 = vpop.f32.mrb[107].mxu0  ;;  %v3217_v22 = vadd.f32 %v3209_v21, %v3107_v14  ;;  %v6068_v23 = vpop.f32.mrb[109].mxu1 }
 0x236   : > { %v3212_v0 = vpop.f32.mrb[110].mxu1 }
 0x237   : > { %v6069_v24 = vpop.f32.mrb[111].mxu1 }
 0x23a   : > { %v3168_v25 = vpop.f32.mrb[108].mxu0 }
 0x23b   : > { %v3215_v26 = vadd.f32 %v3168_v25, %v3105_v17  ;;  %v3170_v27 = vpop.f32.mrb[109].mxu0 }
 0x23c   : > { %v3216_v28 = vadd.f32 %v3170_v27, %v3106_v7  ;;  %v3172_v29 = vpop.f32.mrb[110].mxu0  ;;  %v3319_v30 = vpop.f32.mrb[112].mxu1 }
 0x23d   : > { %v3173_v31 = vpop.f32.mrb[111].mxu0  ;;  %v3327_v32 = vadd.f32 %v3319_v30, %v3217_v22  ;;  %v6074_v33 = vpop.f32.mrb[113].mxu1 }
 0x23e   : > { %v3322_v8 = vpop.f32.mrb[114].mxu1 }
 0x23f   : > { %v6075_v34 = vpop.f32.mrb[115].mxu1 }
 0x242   : > { %v3278_v35 = vpop.f32.mrb[112].mxu0 }
 0x243   : > { %v3325_v36 = vadd.f32 %v3278_v35, %v3215_v26  ;;  %v3280_v1 = vpop.f32.mrb[113].mxu0 }
 0x244   : > { %v3326_v37 = vadd.f32 %v3280_v1, %v3216_v28  ;;  %v3282_v38 = vpop.f32.mrb[114].mxu0  ;;  %v3429_v39 = vpop.f32.mrb[116].mxu1 }
 0x245   : > { %v3283_v40 = vpop.f32.mrb[115].mxu0  ;;  %v3437_v41 = vadd.f32 %v3429_v39, %v3327_v32  ;;  %v6080_v42 = vpop.f32.mrb[117].mxu1 }
 0x246   : > { %v3432_v43 = vpop.f32.mrb[118].mxu1 }
 0x247   : > { %v6081_v44 = vpop.f32.mrb[119].mxu1 }
 0x24a   : > { %v3388_v45 = vpop.f32.mrb[116].mxu0 }
 0x24b   : > { %v3435_v46 = vadd.f32 %v3388_v45, %v3325_v36  ;;  %v3390_v47 = vpop.f32.mrb[117].mxu0 }
 0x24c   : > { %v3436_v48 = vadd.f32 %v3390_v47, %v3326_v37  ;;  %v3392_v49 = vpop.f32.mrb[118].mxu0  ;;  %v3539_v50 = vpop.f32.mrb[120].mxu1 }
 0x24d   : > { %v3393_v51 = vpop.f32.mrb[119].mxu0  ;;  %v3547_v52 = vadd.f32 %v3539_v50, %v3437_v41  ;;  %v6086_v53 = vpop.f32.mrb[121].mxu1 }
 0x24e   : > { %v3542_v54 = vpop.f32.mrb[122].mxu1 }
 0x24f   : > { %v6087_v55 = vpop.f32.mrb[123].mxu1 }
 0x252   : > { %v3498_v56 = vpop.f32.mrb[120].mxu0 }
 0x253   : > { %v3545_v57 = vadd.f32 %v3498_v56, %v3435_v46  ;;  %v3500_v58 = vpop.f32.mrb[121].mxu0 }
 0x254   : > { %v3546_v59 = vadd.f32 %v3500_v58, %v3436_v48  ;;  %v3502_v60 = vpop.f32.mrb[122].mxu0  ;;  %v3649_v61 = vpop.f32.mrb[124].mxu1 }
 0x255   : > { %v3503_v62 = vpop.f32.mrb[123].mxu0  ;;  %v3657_v63 = vadd.f32 %v3649_v61, %v3547_v52  ;;  %v6092_v2 = vpop.f32.mrb[125].mxu1 }
 0x256   : > { %v3652_v3 = vpop.f32.mrb[126].mxu1 }
 0x257   : > { %v6093_v6 = vpop.f32.mrb[127].mxu1 }
 0x25a   : > { %v3608_v9 = vpop.f32.mrb[124].mxu0 }
 0x25b   : > { %v3655_v10 = vadd.f32 %v3608_v9, %v3545_v57  ;;  %v3610_v11 = vpop.f32.mrb[125].mxu0 }
 0x25c   : > { %v3656_v12 = vadd.f32 %v3610_v11, %v3546_v59  ;;  %v3612_v13 = vpop.f32.mrb[126].mxu0  ;;  %v3759_v14 = vpop.f32.mrb[128].mxu1 }
 0x25d   : > { %v3613_v5 = vpop.f32.mrb[127].mxu0  ;;  %v3767_v4 = vadd.f32 %v3759_v14, %v3657_v63  ;;  %v6098_v15 = vpop.f32.mrb[129].mxu1 }
 0x25e   : > { %v3762_v16 = vpop.f32.mrb[130].mxu1 }
 0x25f   : > { %v6099_v17 = vpop.f32.mrb[131].mxu1 }
 0x262   : > { %v3718_v18 = vpop.f32.mrb[128].mxu0 }
 0x263   : > { %v3765_v7 = vadd.f32 %v3718_v18, %v3655_v10  ;;  %v3720_v20 = vpop.f32.mrb[129].mxu0 }
 0x264   : > { %v3766_v21 = vadd.f32 %v3720_v20, %v3656_v12  ;;  %v3722_v19 = vpop.f32.mrb[130].mxu0  ;;  %v3869_v22 = vpop.f32.mrb[132].mxu1 }
 0x265   : > { %v3723_v23 = vpop.f32.mrb[131].mxu0  ;;  %v3877_v0 = vadd.f32 %v3869_v22, %v3767_v4  ;;  %v6104_v24 = vpop.f32.mrb[133].mxu1 }
 0x266   : > { %v3872_v25 = vpop.f32.mrb[134].mxu1 }
 0x267   : > { %v6105_v26 = vpop.f32.mrb[135].mxu1 }
 0x26a   : > { %v3828_v27 = vpop.f32.mrb[132].mxu0 }
 0x26b   : > { %v3875_v28 = vadd.f32 %v3828_v27, %v3765_v7  ;;  %v3830_v29 = vpop.f32.mrb[133].mxu0 }
 0x26c   : > { %v3876_v30 = vadd.f32 %v3830_v29, %v3766_v21  ;;  %v3832_v31 = vpop.f32.mrb[134].mxu0  ;;  %v3979_v32 = vpop.f32.mrb[136].mxu1 }
 0x26d   : > { %v3833_v33 = vpop.f32.mrb[135].mxu0  ;;  %v3987_v8 = vadd.f32 %v3979_v32, %v3877_v0  ;;  %v6110_v34 = vpop.f32.mrb[137].mxu1 }
 0x26e   : > { %v3982_v35 = vpop.f32.mrb[138].mxu1 }
 0x26f   : > { %v6111_v36 = vpop.f32.mrb[139].mxu1 }
 0x272   : > { %v3938_v1 = vpop.f32.mrb[136].mxu0 }
 0x273   : > { %v3985_v37 = vadd.f32 %v3938_v1, %v3875_v28  ;;  %v3940_v38 = vpop.f32.mrb[137].mxu0 }
 0x274   : > { %v3986_v39 = vadd.f32 %v3940_v38, %v3876_v30  ;;  %v3942_v40 = vpop.f32.mrb[138].mxu0  ;;  %v4089_v41 = vpop.f32.mrb[140].mxu1 }
 0x275   : > { %v3943_v42 = vpop.f32.mrb[139].mxu0  ;;  %v4097_v43 = vadd.f32 %v4089_v41, %v3987_v8  ;;  %v6116_v44 = vpop.f32.mrb[141].mxu1 }
 0x276   : > { %v4092_v45 = vpop.f32.mrb[142].mxu1 }
 0x277   : > { %v6117_v46 = vpop.f32.mrb[143].mxu1 }
 0x27a   : > { %v4048_v47 = vpop.f32.mrb[140].mxu0 }
 0x27b   : > { %v4095_v48 = vadd.f32 %v4048_v47, %v3985_v37  ;;  %v4050_v49 = vpop.f32.mrb[141].mxu0 }
 0x27c   : > { %v4096_v50 = vadd.f32 %v4050_v49, %v3986_v39  ;;  %v4052_v51 = vpop.f32.mrb[142].mxu0  ;;  %v4199_v52 = vpop.f32.mrb[144].mxu1 }
 0x27d   : > { %v4053_v53 = vpop.f32.mrb[143].mxu0  ;;  %v4207_v54 = vadd.f32 %v4199_v52, %v4097_v43  ;;  %v6122_v55 = vpop.f32.mrb[145].mxu1 }
 0x27e   : > { %v4202_v56 = vpop.f32.mrb[146].mxu1 }
 0x27f   : > { %v6123_v57 = vpop.f32.mrb[147].mxu1 }
 0x282   : > { %v4158_v58 = vpop.f32.mrb[144].mxu0 }
 0x283   : > { %v4205_v59 = vadd.f32 %v4158_v58, %v4095_v48  ;;  %v4160_v60 = vpop.f32.mrb[145].mxu0 }
 0x284   : > { %v4206_v61 = vadd.f32 %v4160_v60, %v4096_v50  ;;  %v4162_v62 = vpop.f32.mrb[146].mxu0  ;;  %v4309_v63 = vpop.f32.mrb[148].mxu1 }
 0x285   : > { %v4163_v2 = vpop.f32.mrb[147].mxu0  ;;  %v4317_v3 = vadd.f32 %v4309_v63, %v4207_v54  ;;  %v6128_v6 = vpop.f32.mrb[149].mxu1 }
 0x286   : > { %v4312_v9 = vpop.f32.mrb[150].mxu1 }
 0x287   : > { %v6129_v10 = vpop.f32.mrb[151].mxu1 }
 0x28a   : > { %v4268_v11 = vpop.f32.mrb[148].mxu0 }
 0x28b   : > { %v4315_v12 = vadd.f32 %v4268_v11, %v4205_v59  ;;  %v4270_v13 = vpop.f32.mrb[149].mxu0 }
 0x28c   : > { %v4316_v14 = vadd.f32 %v4270_v13, %v4206_v61  ;;  %v4272_v5 = vpop.f32.mrb[150].mxu0  ;;  %v4419_v4 = vpop.f32.mrb[152].mxu1 }
 0x28d   : > { %v4273_v15 = vpop.f32.mrb[151].mxu0  ;;  %v4427_v16 = vadd.f32 %v4419_v4, %v4317_v3  ;;  %v6134_v17 = vpop.f32.mrb[153].mxu1 }
 0x28e   : > { %v4422_v18 = vpop.f32.mrb[154].mxu1 }
 0x28f   : > { %v6135_v7 = vpop.f32.mrb[155].mxu1 }
 0x292   : > { %v4378_v20 = vpop.f32.mrb[152].mxu0 }
 0x293   : > { %v4425_v21 = vadd.f32 %v4378_v20, %v4315_v12  ;;  %v4380_v19 = vpop.f32.mrb[153].mxu0 }
 0x294   : > { %v4426_v22 = vadd.f32 %v4380_v19, %v4316_v14  ;;  %v4382_v23 = vpop.f32.mrb[154].mxu0  ;;  %v4529_v0 = vpop.f32.mrb[156].mxu1 }
 0x295   : > { %v4383_v24 = vpop.f32.mrb[155].mxu0  ;;  %v4537_v25 = vadd.f32 %v4529_v0, %v4427_v16  ;;  %v6140_v26 = vpop.f32.mrb[157].mxu1 }
 0x296   : > { %v4532_v27 = vpop.f32.mrb[158].mxu1 }
 0x297   : > { %v6141_v28 = vpop.f32.mrb[159].mxu1 }
 0x29a   : > { %v4488_v29 = vpop.f32.mrb[156].mxu0 }
 0x29b   : > { %v4535_v30 = vadd.f32 %v4488_v29, %v4425_v21  ;;  %v4490_v31 = vpop.f32.mrb[157].mxu0 }
 0x29c   : > { %v4536_v32 = vadd.f32 %v4490_v31, %v4426_v22  ;;  %v4492_v33 = vpop.f32.mrb[158].mxu0  ;;  %v4639_v8 = vpop.f32.mrb[160].mxu1 }
 0x29d   : > { %v4493_v34 = vpop.f32.mrb[159].mxu0  ;;  %v4647_v35 = vadd.f32 %v4639_v8, %v4537_v25  ;;  %v6146_v36 = vpop.f32.mrb[161].mxu1 }
 0x29e   : > { %v4642_v1 = vpop.f32.mrb[162].mxu1 }
 0x29f   : > { %v6147_v37 = vpop.f32.mrb[163].mxu1 }
 0x2a2   : > { %v4598_v38 = vpop.f32.mrb[160].mxu0 }
 0x2a3   : > { %v4645_v39 = vadd.f32 %v4598_v38, %v4535_v30  ;;  %v4600_v40 = vpop.f32.mrb[161].mxu0 }
 0x2a4   : > { %v4646_v41 = vadd.f32 %v4600_v40, %v4536_v32  ;;  %v4602_v42 = vpop.f32.mrb[162].mxu0  ;;  %v4749_v43 = vpop.f32.mrb[164].mxu1 }
 0x2a5   : > { %v4603_v44 = vpop.f32.mrb[163].mxu0  ;;  %v4757_v45 = vadd.f32 %v4749_v43, %v4647_v35  ;;  %v6152_v46 = vpop.f32.mrb[165].mxu1 }
 0x2a6   : > { %v4752_v47 = vpop.f32.mrb[166].mxu1 }
 0x2a7   : > { %v6153_v48 = vpop.f32.mrb[167].mxu1 }
 0x2aa   : > { %v4708_v49 = vpop.f32.mrb[164].mxu0 }
 0x2ab   : > { %v4755_v50 = vadd.f32 %v4708_v49, %v4645_v39  ;;  %v4710_v51 = vpop.f32.mrb[165].mxu0 }
 0x2ac   : > { %v4756_v52 = vadd.f32 %v4710_v51, %v4646_v41  ;;  %v4712_v53 = vpop.f32.mrb[166].mxu0  ;;  %v4865_v54 = vpop.f32.mrb[168].mxu1 }
 0x2ad   : > { %v4713_v55 = vpop.f32.mrb[167].mxu0  ;;  %v4873_v56 = vadd.f32 %v4865_v54, %v4757_v45  ;;  %v6158_v57 = vpop.f32.mrb[169].mxu1 }
 0x2ae   : > { %v4868_v58 = vpop.f32.mrb[170].mxu1  ;;  %v5518_v54 = vpop.permute.xlu0 %5517 }
 0x2af   : > { %v6159_v59 = vpop.f32.mrb[171].mxu1 }
 0x2b2   : > { %v4824_v60 = vpop.f32.mrb[168].mxu0 }
 0x2b3   : > { %v4871_v61 = vadd.f32 %v4824_v60, %v4755_v50  ;;  %v4826_v62 = vpop.f32.mrb[169].mxu0 }
 0x2b4   : > { %v4872_v63 = vadd.f32 %v4826_v62, %v4756_v52  ;;  %v4828_v2 = vpop.f32.mrb[170].mxu0  ;;  %v4971_v3 = vpop.f32.mrb[172].mxu1 }
 0x2b5   : > { %v4829_v6 = vpop.f32.mrb[171].mxu0  ;;  %v4979_v9 = vadd.f32 %v4971_v3, %v4873_v56  ;;  %v6164_v10 = vpop.f32.mrb[173].mxu1 }
 0x2b6   : > { %v4974_v11 = vpop.f32.mrb[174].mxu1 }
 0x2b7   : > { %v6165_v12 = vpop.f32.mrb[175].mxu1 }
 0x2ba   : > { %v4930_v13 = vpop.f32.mrb[172].mxu0 }
 0x2bb   : > { %v4977_v14 = vadd.f32 %v4930_v13, %v4871_v61  ;;  %v4932_v5 = vpop.f32.mrb[173].mxu0 }
 0x2bc   : > { %v4978_v4 = vadd.f32 %v4932_v5, %v4872_v63  ;;  %v4934_v15 = vpop.f32.mrb[174].mxu0  ;;  %v5077_v16 = vpop.f32.mrb[176].mxu1 }
 0x2bd   : > { %v4935_v17 = vpop.f32.mrb[175].mxu0  ;;  %v5085_v18 = vadd.f32 %v5077_v16, %v4979_v9  ;;  %v6170_v7 = vpop.f32.mrb[177].mxu1 }
 0x2be   : > { %v5080_v20 = vpop.f32.mrb[178].mxu1 }
 0x2bf   : > { %v6171_v21 = vpop.f32.mrb[179].mxu1 }
 0x2c2   : > { %v5036_v19 = vpop.f32.mrb[176].mxu0 }
 0x2c3   : > { %v5083_v22 = vadd.f32 %v5036_v19, %v4977_v14  ;;  %v5038_v23 = vpop.f32.mrb[177].mxu0 }
 0x2c4   : > { %v5084_v0 = vadd.f32 %v5038_v23, %v4978_v4  ;;  %v5040_v24 = vpop.f32.mrb[178].mxu0  ;;  %v5184_v25 = vpop.f32.mrb[180].mxu1 }
 0x2c5   : > { %v5041_v26 = vpop.f32.mrb[179].mxu0  ;;  %v5192_v27 = vadd.f32 %v5184_v25, %v5085_v18  ;;  %v6176_v28 = vpop.f32.mrb[181].mxu1 }
 0x2c6   : > { %v5187_v29 = vpop.f32.mrb[182].mxu1 }
 0x2c7   : > { %v6177_v30 = vpop.f32.mrb[183].mxu1 }
 0x2ca   : > { %v5143_v31 = vpop.f32.mrb[180].mxu0 }
 0x2cb   : > { %v5190_v32 = vadd.f32 %v5143_v31, %v5083_v22  ;;  %v5145_v33 = vpop.f32.mrb[181].mxu0 }
 0x2cc   : > { %v5191_v8 = vadd.f32 %v5145_v33, %v5084_v0  ;;  %v5147_v34 = vpop.f32.mrb[182].mxu0  ;;  %v5291_v35 = vpop.f32.mrb[184].mxu1 }
 0x2cd   : > { %v5148_v36 = vpop.f32.mrb[183].mxu0  ;;  %v5299_v1 = vadd.f32 %v5291_v35, %v5192_v27  ;;  %v6182_v37 = vpop.f32.mrb[185].mxu1 }
 0x2ce   : > { %v5294_v38 = vpop.f32.mrb[186].mxu1 }
 0x2cf   : > { %v6183_v39 = vpop.f32.mrb[187].mxu1 }
 0x2d2   : > { %v5250_v40 = vpop.f32.mrb[184].mxu0 }
 0x2d3   : > { %v5297_v41 = vadd.f32 %v5250_v40, %v5190_v32  ;;  %v5252_v42 = vpop.f32.mrb[185].mxu0 }
 0x2d4   : > { %v5298_v43 = vadd.f32 %v5252_v42, %v5191_v8  ;;  %v5254_v44 = vpop.f32.mrb[186].mxu0  ;;  %v5398_v45 = vpop.f32.mrb[188].mxu1 }
 0x2d5   : > { %v5255_v46 = vpop.f32.mrb[187].mxu0  ;;  %v5406_v47 = vadd.f32 %v5398_v45, %v5299_v1  ;;  %v6188_v48 = vpop.f32.mrb[189].mxu1 }
 0x2d6   : > { %v5401_v49 = vpop.f32.mrb[190].mxu1 }
 0x2d7   : > { %v6189_v50 = vpop.f32.mrb[191].mxu1 }
 0x2da   : > { %v5357_v51 = vpop.f32.mrb[188].mxu0 }
 0x2db   : > { %v5404_v52 = vadd.f32 %v5357_v51, %v5297_v41  ;;  %v5359_v53 = vpop.f32.mrb[189].mxu0 }
 0x2dc   : > { %v5405_v55 = vadd.f32 %v5359_v53, %v5298_v43  ;;  %v5361_v56 = vpop.f32.mrb[190].mxu0  ;;  %v5505_v57 = vpop.f32.mrb[192].mxu1 }
 0x2dd   : > { %v5362_v58 = vpop.f32.mrb[191].mxu0  ;;  %v5513_v59 = vadd.f32 %v5505_v57, %v5406_v47  ;;  %v6194_v60 = vpop.f32.mrb[193].mxu1 }
 0x2de   : > { %v5508_v61 = vpop.f32.mrb[194].mxu1 }
 0x2df   : > { %v5522_v62 = vadd.f32 %v5518_v54, %v5513_v59  ;;  %v6195_v63 = vpop.f32.mrb[195].mxu1 }
 0x2e1   : > { %6262 = vtanh.f32 %v5522_v62 }
 0x2e2   : > { %v5464_v2 = vpop.f32.mrb[192].mxu0 }
 0x2e3   : > { %v5511_v3 = vadd.f32 %v5464_v2, %v5404_v52  ;;  %v5466_v6 = vpop.f32.mrb[193].mxu0 }
 0x2e4   : > { %v5512_v9 = vadd.f32 %v5466_v6, %v5405_v55  ;;  %v5468_v10 = vpop.f32.mrb[194].mxu0 }
 0x2e5   : > { %v5520_v11 = vadd.f32 %v5518_v54, %v5511_v3  ;;  %v5469_v12 = vpop.f32.mrb[195].mxu0 }
 0x2e6   : > { %v5521_v13 = vadd.f32 %v5518_v54, %v5512_v9 }
 0x2e7   : > { %6264 = vtanh.f32 %v5520_v11 }
 0x2e8   : > { %6266 = vtanh.f32 %v5521_v13 }
 0x2eb   : > { %v6263_v14 = vpop.eup %6262 }
 0x2ec   : > { %5532 = vst.msk [vmem:[%s170_s30 + $0x8] sm:$0x7] %vm5531_vm0, %v6263_v14 }
 0x2f1   : > { %v6265_v5 = vpop.eup %6264 }
 0x2f2   : > { %v6267_v4 = vpop.eup %6266 }
 0x2f3   : > { %v5528_v15 = vcombine.low %v6265_v5, %v6267_v4 }
 0x2f5   : > { %5530 = vst [vmem:[%s170_s30] sm:$0x77] %v5528_v15 }
 0x2f6 PF: > { %s13_s12 = sadd.s32 1, %s6274_s12  }
 0x2f7   : > { %p10_p4 = scmp.ge.s32.totalorder %s13_s12, 4  }
 0x2f9   :  { %12 = sbr.rel (!%p10_p4) target bundleno = 1 (0x1), region = 110 }

</bundles_post_ra>
